<compile_context>
chip_gen: v7x
topology: tpu7x:2x2x1
jax: 0.10.0
libtpu: 0.0.40
codegen_flags: <defaults>
</compile_context>

<pallas_src>
import math

import jax
import jax.numpy as jnp
from jax.experimental import pallas as pl
from jax.experimental.pallas import tpu as pltpu

LN_EPS = 1e-12        # BERT layer_norm_eps default
ROW_TILE = 128        # rows (flattened batch*seq) per grid step
VOCAB_TILE = 128      # lane-dense vocab tile for decoder + online-LSE CE
STATS_LANES = 128     # lane-dense per-tile loss partials


def _layernorm(x, gamma, beta, eps=LN_EPS):
    """One-pass LN stats: var = E[x^2] - mu^2 (single cross-lane reduce pair)."""
    x = x.astype(jnp.float32)
    mu = jnp.mean(x, axis=-1, keepdims=True)
    ms = jnp.mean(x * x, axis=-1, keepdims=True)
    var = jnp.maximum(ms - mu * mu, 0.0)
    return (x - mu) * jax.lax.rsqrt(var + eps) * gamma + beta


def _mm(x, w, b):
    """bf16 MXU matmul with f32 accumulation + f32 bias (y = x @ W + b)."""
    y = jnp.dot(x.astype(jnp.bfloat16), w, preferred_element_type=jnp.float32)
    return y + b


def _gelu(x):
    # tanh-form gelu -> EUP slot (nearly free); exact erf gelu is VALU-heavy.
    return jax.nn.gelu(x, approximate=True)


# ---------------------------------------------------------------------------
# Fused kernel.  One grid step = one (ROW_TILE, H) slab of flattened tokens:
#   embeddings-LN -> self-attention (block-diag mask) -> FFN -> LMHead
#   -> vocab-tiled decoder + online-LSE cross-entropy partials.
# ---------------------------------------------------------------------------
def fused_mlm_kernel(
    # per-tile data blocks
    emb_ref, mask_ref, lab_ref,
    # backbone weights (whole arrays, VMEM-resident; tiny at these sizes)
    ln0_g, ln0_b,
    wqkv, bqkv, wo, bo,
    ln1_g, ln1_b,
    w1, b1, w2, b2,
    ln2_g, ln2_b,
    # LM head weights
    lm_dense_w, lm_dense_b, lm_ln_g, lm_ln_b, lm_dec_w, lm_dec_b,
    # outputs
    scores_ref, stats_ref,
):
    RT, H = emb_ref.shape
    V = scores_ref.shape[1]

    # ---- embedding LayerNorm ---------------------------------------------
    x = _layernorm(emb_ref[...], ln0_g[...], ln0_b[...])              # (RT, H)

    # ---- single-head self-attention (fused QKV projection) ----------------
    qkv = _mm(x, wqkv[...], bqkv[...])                                # (RT, 3H)
    q = qkv[:, :H]
    k = qkv[:, H:2 * H]
    v = qkv[:, 2 * H:3 * H]

    scale = 1.0 / math.sqrt(H)                                        # head_dim == H
    s = jax.lax.dot_general(                                          # q @ k.T
        q.astype(jnp.bfloat16), k.astype(jnp.bfloat16),
        dimension_numbers=(((1,), (1,)), ((), ())),
        preferred_element_type=jnp.float32)                           # (RT, RT)
    # additive mask = block-diagonal per sequence AND key-padding (built in
    # the wrapper: 0 where attention is allowed, -1e9 otherwise).
    s = s * scale + mask_ref[0]
    m = jnp.max(s, axis=-1, keepdims=True)
    e = jnp.exp(s - m)
    p = e * pl.reciprocal(jnp.sum(e, axis=-1, keepdims=True), approx=True)
    ctx = jnp.dot(p.astype(jnp.bfloat16), v.astype(jnp.bfloat16),
                  preferred_element_type=jnp.float32)                 # (RT, H)
    attn = _mm(ctx, wo[...], bo[...])
    x = _layernorm(x + attn, ln1_g[...], ln1_b[...])

    # ---- feed-forward ------------------------------------------------------
    h = _gelu(_mm(x, w1[...], b1[...]))                               # (RT, I)
    ffn = _mm(h, w2[...], b2[...])
    seq = _layernorm(x + ffn, ln2_g[...], ln2_b[...])                 # (RT, H)

    # ---- LM head: dense -> gelu -> LN --------------------------------------
    y = _gelu(_mm(seq, lm_dense_w[...], lm_dense_b[...]))
    y = _layernorm(y, lm_ln_g[...], lm_ln_b[...])
    y16 = y.astype(jnp.bfloat16)

    # ---- vocab-tiled decoder + online-LSE cross-entropy --------------------
    # Labels already shifted in the wrapper; -100 marks ignored positions.
    lab = lab_ref[...]                                                # (RT, 1) i32
    valid = (lab >= 0).astype(jnp.float32)                            # (RT, 1)

    m_run = jnp.full((RT, 1), -jnp.inf, jnp.float32)
    l_run = jnp.zeros((RT, 1), jnp.float32)
    lbl_logit = jnp.zeros((RT, 1), jnp.float32)

    # Static (fully unrolled) loop -- V is small here.  At real vocab sizes,
    # switch to a fori_loop and stream lm_dec_w tiles (see module TODOs).
    for vt in range(V // VOCAB_TILE):
        lo = vt * VOCAB_TILE
        w_t = lm_dec_w[:, lo:lo + VOCAB_TILE]                         # (H, VT)
        b_t = lm_dec_b[:, lo:lo + VOCAB_TILE]                         # (1, VT)
        logits_t = jnp.dot(y16, w_t,
                           preferred_element_type=jnp.float32) + b_t  # (RT, VT)
        scores_ref[:, lo:lo + VOCAB_TILE] = logits_t.astype(scores_ref.dtype)

        m_new = jnp.maximum(m_run, jnp.max(logits_t, axis=-1, keepdims=True))
        l_run = (l_run * jnp.exp(m_run - m_new)
                 + jnp.sum(jnp.exp(logits_t - m_new), axis=-1, keepdims=True))
        m_run = m_new

        vocab_ids = lo + jax.lax.broadcasted_iota(jnp.int32, logits_t.shape, 1)
        lbl_logit = lbl_logit + jnp.sum(
            jnp.where(vocab_ids == lab, logits_t, 0.0), axis=-1, keepdims=True)

    lse = m_run + jnp.log(l_run)
    nll_sum = jnp.sum((lse - lbl_logit) * valid)
    n_valid = jnp.sum(valid)

    lane = jax.lax.broadcasted_iota(jnp.int32, (1, STATS_LANES), 1)
    stats_ref[0] = jnp.where(lane == 0, nll_sum,
                             jnp.where(lane == 1, n_valid, 0.0))


# ---------------------------------------------------------------------------
# Wrapper
# ---------------------------------------------------------------------------
_RESIDENT = pl.BlockSpec(memory_space=pltpu.MemorySpace.VMEM)   # whole-array weight

_WEIGHT_ORDER = (
    'emb_ln_g', 'emb_ln_b',
    'wqkv', 'bqkv', 'wo', 'bo',
    'ln1_g', 'ln1_b',
    'w1', 'b1', 'w2', 'b2',
    'ln2_g', 'ln2_b',
    'lm_dense_w', 'lm_dense_b', 'lm_ln_g', 'lm_ln_b', 'lm_dec_w', 'lm_dec_b',
)


@jax.jit
def mlm_forward(params, input_ids, labels, attention_mask):
    """Mirrors BaseMLMModel.forward: returns (lm_loss, prediction_scores)."""
    B, S = input_ids.shape
    H = params['word_emb'].shape[1]
    V = params['lm_dec_w'].shape[1]
    RT = ROW_TILE
    rows = B * S
    assert rows % RT == 0 and RT % S == 0, "sequences must not straddle row tiles"
    num_tiles = rows // RT

    # --- embedding gather + add (wrapper glue; see in-kernel-gather TODO) ---
    word = jnp.take(params['word_emb'], input_ids, axis=0)            # (B, S, H)
    pos = params['pos_emb'][:S][None, :, :]
    tok = params['type_emb'][0][None, None, :]
    emb = (word + pos + tok).astype(jnp.float32).reshape(rows, H)     # (B*S, H)

    # --- combined additive attention mask per row tile ----------------------
    # allowed(i, j) = (i and j in the same sequence) AND (key j not padded)
    seg = jnp.repeat(jnp.arange(B, dtype=jnp.int32), S).reshape(num_tiles, RT)
    key_ok = (attention_mask.astype(jnp.float32) > 0.5).reshape(num_tiles, RT)
    allowed = (seg[:, :, None] == seg[:, None, :]) & key_ok[:, None, :]
    add_mask = jnp.where(allowed, 0.0, -1e9).astype(jnp.float32)      # (T, RT, RT)

    # --- shifted labels: position t predicts labels[t+1]; -100 = ignore -----
    pad = jnp.full((B, 1), -100, dtype=jnp.int32)
    labels_next = jnp.concatenate([labels.astype(jnp.int32)[:, 1:], pad], axis=1)
    lab_col = labels_next.reshape(rows, 1)                            # (B*S, 1)

    weights = tuple(params[name] for name in _WEIGHT_ORDER)

    data_specs = [
        pl.BlockSpec((RT, H), lambda t: (t, 0)),           # embeddings slab
        pl.BlockSpec((1, RT, RT), lambda t: (t, 0, 0)),    # additive attn mask
        pl.BlockSpec((RT, 1), lambda t: (t, 0)),           # shifted labels
    ]

    scores2d, stats = pl.pallas_call(
        fused_mlm_kernel,
        grid=(num_tiles,),
        in_specs=data_specs + [_RESIDENT] * len(weights),
        out_specs=(
            pl.BlockSpec((RT, V), lambda t: (t, 0)),
            pl.BlockSpec((1, 1, STATS_LANES), lambda t: (t, 0, 0)),
        ),
        out_shape=(
            jax.ShapeDtypeStruct((rows, V), jnp.bfloat16),            # bf16 scores
            jax.ShapeDtypeStruct((num_tiles, 1, STATS_LANES), jnp.float32),
        ),
        compiler_params=pltpu.CompilerParams(
            dimension_semantics=("parallel",),            # row tiles across TCs
            vmem_limit_bytes=32 * 1024 * 1024,
        ),
    )(emb, add_mask, lab_col, *weights)

    # tiny scalar glue: combine per-tile partials (honors ignore_index count)
    nll_total = jnp.sum(stats[:, 0, 0])
    n_valid = jnp.sum(stats[:, 0, 1])
    lm_loss = nll_total / jnp.maximum(n_valid, 1.0)
    return lm_loss, scores2d.reshape(B, S, V)


# ---------------------------------------------------------------------------
# Deterministic parameter construction (lane-dense sizes, bf16 MXU weights)
# ---------------------------------------------------------------------------
def make_params(key, vocab=256, hidden=128, intermediate=512, max_pos=64):
    ks = jax.random.split(key, 12)
    H, I, V = hidden, intermediate, vocab

    def nf(k, shape):      # f32 (embeddings)
        return (0.02 * jax.random.normal(k, shape)).astype(jnp.float32)

    def nw(k, shape):      # bf16 MXU weights (f32 accumulation in-kernel)
        return (0.02 * jax.random.normal(k, shape)).astype(jnp.bfloat16)

    ones = lambda shape: jnp.ones(shape, jnp.float32)
    zeros = lambda shape: jnp.zeros(shape, jnp.float32)

    return {
        'word_emb': nf(ks[0], (V, H)),
        'pos_emb': nf(ks[1], (max_pos, H)),
        'type_emb': nf(ks[2], (2, H)),
        'emb_ln_g': ones((1, H)), 'emb_ln_b': zeros((1, H)),
        # fused q/k/v projection: (H, 3H) = concat of the three nn.Linear weights
        'wqkv': nw(ks[3], (H, 3 * H)), 'bqkv': zeros((1, 3 * H)),
        'wo': nw(ks[4], (H, H)), 'bo': zeros((1, H)),
        'ln1_g': ones((1, H)), 'ln1_b': zeros((1, H)),
        'w1': nw(ks[5], (H, I)), 'b1': zeros((1, I)),
        'w2': nw(ks[6], (I, H)), 'b2': zeros((1, H)),
        'ln2_g': ones((1, H)), 'ln2_b': zeros((1, H)),
        # LMHead: dense(H,H) -> gelu -> LN -> decoder(H,V) + bias(V)
        'lm_dense_w': nw(ks[7], (H, H)), 'lm_dense_b': zeros((1, H)),
        'lm_ln_g': ones((1, H)), 'lm_ln_b': zeros((1, H)),
        'lm_dec_w': nw(ks[8], (H, V)), 'lm_dec_b': zeros((1, V)),
    }


if __name__ == "__main__":
    # Small but lane/sublane-dense: B*S = 256 rows -> two 128-row tiles
    # (even tile count keeps both v7x TensorCores busy).
    B, S = 4, 64
    H, I, V, MAXPOS = 128, 512, 256, 64

    key = jax.random.PRNGKey(0)
    kp, kid, klab = jax.random.split(key, 3)

    params = make_params(kp, vocab=V, hidden=H, intermediate=I, max_pos=MAXPOS)
    input_ids = jax.random.randint(kid, (B, S), 0, V, dtype=jnp.int32)
    labels = jax.random.randint(klab, (B, S), 0, V, dtype=jnp.int32)
    attention_mask = jnp.ones((B, S), jnp.float32)

    loss, scores = mlm_forward(params, input_ids, labels, attention_mask)
    jax.block_until_ready((loss, scores))
    assert scores.shape == (B, S, V) and loss.shape == ()
    assert bool(jnp.isfinite(loss))
    print("KERNEL_OK")
</pallas_src>

<mosaic_0001>
module attributes {stable_mosaic.version = 11 : i64} {
  func.func @fused_mlm_kernel(%arg0: i32, %arg1: memref<128x128xf32, #tpu.memory_space<vmem>>, %arg2: memref<1x128x128xf32, #tpu.memory_space<vmem>>, %arg3: memref<128x1xi32, #tpu.memory_space<vmem>>, %arg4: memref<1x128xf32, #tpu.memory_space<vmem>>, %arg5: memref<1x128xf32, #tpu.memory_space<vmem>>, %arg6: memref<128x384xbf16, #tpu.memory_space<vmem>>, %arg7: memref<1x384xf32, #tpu.memory_space<vmem>>, %arg8: memref<128x128xbf16, #tpu.memory_space<vmem>>, %arg9: memref<1x128xf32, #tpu.memory_space<vmem>>, %arg10: memref<1x128xf32, #tpu.memory_space<vmem>>, %arg11: memref<1x128xf32, #tpu.memory_space<vmem>>, %arg12: memref<128x512xbf16, #tpu.memory_space<vmem>>, %arg13: memref<1x512xf32, #tpu.memory_space<vmem>>, %arg14: memref<512x128xbf16, #tpu.memory_space<vmem>>, %arg15: memref<1x128xf32, #tpu.memory_space<vmem>>, %arg16: memref<1x128xf32, #tpu.memory_space<vmem>>, %arg17: memref<1x128xf32, #tpu.memory_space<vmem>>, %arg18: memref<128x128xbf16, #tpu.memory_space<vmem>>, %arg19: memref<1x128xf32, #tpu.memory_space<vmem>>, %arg20: memref<1x128xf32, #tpu.memory_space<vmem>>, %arg21: memref<1x128xf32, #tpu.memory_space<vmem>>, %arg22: memref<128x256xbf16, #tpu.memory_space<vmem>>, %arg23: memref<1x256xf32, #tpu.memory_space<vmem>>, %arg24: memref<128x256xbf16, #tpu.memory_space<vmem>>, %arg25: memref<1x1x128xf32, #tpu.memory_space<vmem>>) attributes {dimension_semantics = [#tpu.dimension_semantics<parallel>], iteration_bounds = array<i64: 2>, scalar_prefetch = 0 : i64, scratch_operands = 0 : i64, tpu.core_type = #tpu.core_type<tc>, window_params = [{transform_indices = @transform_0, window_bounds = array<i64: 128, 128>}, {transform_indices = @transform_1, window_bounds = array<i64: 1, 128, 128>}, {transform_indices = @transform_2, window_bounds = array<i64: 128, 1>}, {pipeline_mode = #tpu.pipeline_mode<synchronous>, transform_indices = @transform_3, window_bounds = array<i64: 1, 128>}, {pipeline_mode = #tpu.pipeline_mode<synchronous>, transform_indices = @transform_4, window_bounds = array<i64: 1, 128>}, {pipeline_mode = #tpu.pipeline_mode<synchronous>, transform_indices = @transform_5, window_bounds = array<i64: 128, 384>}, {pipeline_mode = #tpu.pipeline_mode<synchronous>, transform_indices = @transform_6, window_bounds = array<i64: 1, 384>}, {pipeline_mode = #tpu.pipeline_mode<synchronous>, transform_indices = @transform_7, window_bounds = array<i64: 128, 128>}, {pipeline_mode = #tpu.pipeline_mode<synchronous>, transform_indices = @transform_8, window_bounds = array<i64: 1, 128>}, {pipeline_mode = #tpu.pipeline_mode<synchronous>, transform_indices = @transform_9, window_bounds = array<i64: 1, 128>}, {pipeline_mode = #tpu.pipeline_mode<synchronous>, transform_indices = @transform_10, window_bounds = array<i64: 1, 128>}, {pipeline_mode = #tpu.pipeline_mode<synchronous>, transform_indices = @transform_11, window_bounds = array<i64: 128, 512>}, {pipeline_mode = #tpu.pipeline_mode<synchronous>, transform_indices = @transform_12, window_bounds = array<i64: 1, 512>}, {pipeline_mode = #tpu.pipeline_mode<synchronous>, transform_indices = @transform_13, window_bounds = array<i64: 512, 128>}, {pipeline_mode = #tpu.pipeline_mode<synchronous>, transform_indices = @transform_14, window_bounds = array<i64: 1, 128>}, {pipeline_mode = #tpu.pipeline_mode<synchronous>, transform_indices = @transform_15, window_bounds = array<i64: 1, 128>}, {pipeline_mode = #tpu.pipeline_mode<synchronous>, transform_indices = @transform_16, window_bounds = array<i64: 1, 128>}, {pipeline_mode = #tpu.pipeline_mode<synchronous>, transform_indices = @transform_17, window_bounds = array<i64: 128, 128>}, {pipeline_mode = #tpu.pipeline_mode<synchronous>, transform_indices = @transform_18, window_bounds = array<i64: 1, 128>}, {pipeline_mode = #tpu.pipeline_mode<synchronous>, transform_indices = @transform_19, window_bounds = array<i64: 1, 128>}, {pipeline_mode = #tpu.pipeline_mode<synchronous>, transform_indices = @transform_20, window_bounds = array<i64: 1, 128>}, {pipeline_mode = #tpu.pipeline_mode<synchronous>, transform_indices = @transform_21, window_bounds = array<i64: 128, 256>}, {pipeline_mode = #tpu.pipeline_mode<synchronous>, transform_indices = @transform_22, window_bounds = array<i64: 1, 256>}, {transform_indices = @transform_23, window_bounds = array<i64: 128, 256>}, {transform_indices = @transform_24, window_bounds = array<i64: 1, 1, 128>}]} {
    %c0 = arith.constant 0 : index
    %c0_0 = arith.constant 0 : index
    %0 = vector.load %arg1[%c0, %c0_0] : memref<128x128xf32, #tpu.memory_space<vmem>>, vector<128x128xf32>
    %c0_1 = arith.constant 0 : index
    %c0_2 = arith.constant 0 : index
    %1 = vector.load %arg4[%c0_1, %c0_2] : memref<1x128xf32, #tpu.memory_space<vmem>>, vector<1x128xf32>
    %c0_3 = arith.constant 0 : index
    %c0_4 = arith.constant 0 : index
    %2 = vector.load %arg5[%c0_3, %c0_4] : memref<1x128xf32, #tpu.memory_space<vmem>>, vector<1x128xf32>
    %cst = arith.constant dense<0.000000e+00> : vector<128xf32>
    %3 = vector.multi_reduction <add>, %0, %cst [1] : vector<128x128xf32> to vector<128xf32>
    %4 = vector.shape_cast %3 : vector<128xf32> to vector<128x1xf32>
    %cst_5 = arith.constant 1.280000e+02 : f32
    %5 = vector.broadcast %cst_5 : f32 to vector<128x1xf32>
    %6 = arith.divf %4, %5 : vector<128x1xf32>
    %7 = arith.mulf %0, %0 : vector<128x128xf32>
    %cst_6 = arith.constant dense<0.000000e+00> : vector<128xf32>
    %8 = vector.multi_reduction <add>, %7, %cst_6 [1] : vector<128x128xf32> to vector<128xf32>
    %9 = vector.shape_cast %8 : vector<128xf32> to vector<128x1xf32>
    %cst_7 = arith.constant 1.280000e+02 : f32
    %10 = vector.broadcast %cst_7 : f32 to vector<128x1xf32>
    %11 = arith.divf %9, %10 : vector<128x1xf32>
    %12 = arith.mulf %6, %6 : vector<128x1xf32>
    %13 = arith.subf %11, %12 : vector<128x1xf32>
    %cst_8 = arith.constant 0.000000e+00 : f32
    %14 = vector.broadcast %cst_8 : f32 to vector<128x1xf32>
    %15 = arith.maximumf %13, %14 : vector<128x1xf32>
    %16 = vector.broadcast %6 : vector<128x1xf32> to vector<128x128xf32>
    %17 = arith.subf %0, %16 : vector<128x128xf32>
    %cst_9 = arith.constant 9.99999996E-13 : f32
    %18 = vector.broadcast %cst_9 : f32 to vector<128x1xf32>
    %19 = arith.addf %15, %18 : vector<128x1xf32>
    %20 = math.rsqrt %19 : vector<128x1xf32>
    %21 = vector.broadcast %20 : vector<128x1xf32> to vector<128x128xf32>
    %22 = arith.mulf %17, %21 : vector<128x128xf32>
    %23 = vector.broadcast %1 : vector<1x128xf32> to vector<128x128xf32>
    %24 = arith.mulf %22, %23 : vector<128x128xf32>
    %25 = vector.broadcast %2 : vector<1x128xf32> to vector<128x128xf32>
    %26 = arith.addf %24, %25 : vector<128x128xf32>
    %c0_10 = arith.constant 0 : index
    %c0_11 = arith.constant 0 : index
    %27 = vector.load %arg6[%c0_10, %c0_11] : memref<128x384xbf16, #tpu.memory_space<vmem>>, vector<128x384xbf16>
    %c0_12 = arith.constant 0 : index
    %c0_13 = arith.constant 0 : index
    %28 = vector.load %arg7[%c0_12, %c0_13] : memref<1x384xf32, #tpu.memory_space<vmem>>, vector<1x384xf32>
    %29 = arith.truncf %26 : vector<128x128xf32> to vector<128x128xbf16>
    %cst_14 = arith.constant dense<0.000000e+00> : vector<128x384xf32>
    %30 = tpu.matmul %29, %27, %cst_14 {dimension_numbers = #tpu.dot_dimension_numbers<[1], [0], [0], [1], [0, 0, 1, 1], [], []>} : vector<128x128xbf16>, vector<128x384xbf16>, vector<128x384xf32> -> vector<128x384xf32>
    %31 = vector.broadcast %28 : vector<1x384xf32> to vector<128x384xf32>
    %32 = arith.addf %30, %31 : vector<128x384xf32>
    %33 = vector.extract_strided_slice %32 {offsets = [0, 0], sizes = [128, 128], strides = [1, 1]} : vector<128x384xf32> to vector<128x128xf32>
    %34 = vector.extract_strided_slice %32 {offsets = [0, 128], sizes = [128, 128], strides = [1, 1]} : vector<128x384xf32> to vector<128x128xf32>
    %35 = vector.extract_strided_slice %32 {offsets = [0, 256], sizes = [128, 128], strides = [1, 1]} : vector<128x384xf32> to vector<128x128xf32>
    %36 = arith.truncf %33 : vector<128x128xf32> to vector<128x128xbf16>
    %37 = arith.truncf %34 : vector<128x128xf32> to vector<128x128xbf16>
    %cst_15 = arith.constant dense<0.000000e+00> : vector<128x128xf32>
    %38 = tpu.matmul %36, %37, %cst_15 {dimension_numbers = #tpu.dot_dimension_numbers<[1], [1], [0], [0], [0, 0, 1, 0], [], []>} : vector<128x128xbf16>, vector<128x128xbf16>, vector<128x128xf32> -> vector<128x128xf32>
    %cst_16 = arith.constant 0.0883883461 : f32
    %39 = vector.broadcast %cst_16 : f32 to vector<128x128xf32>
    %40 = arith.mulf %38, %39 : vector<128x128xf32>
    %c0_17 = arith.constant 0 : index
    %c0_18 = arith.constant 0 : index
    %c0_19 = arith.constant 0 : index
    %41 = vector.load %arg2[%c0_17, %c0_18, %c0_19] : memref<1x128x128xf32, #tpu.memory_space<vmem>>, vector<1x128x128xf32>
    %42 = vector.shape_cast %41 : vector<1x128x128xf32> to vector<128x128xf32>
    %43 = arith.addf %40, %42 : vector<128x128xf32>
    %cst_20 = arith.constant dense<0xFF800000> : vector<128xf32>
    %44 = vector.multi_reduction <maximumf>, %43, %cst_20 [1] : vector<128x128xf32> to vector<128xf32>
    %45 = vector.shape_cast %44 : vector<128xf32> to vector<128x1xf32>
    %46 = vector.broadcast %45 : vector<128x1xf32> to vector<128x128xf32>
    %47 = arith.subf %43, %46 : vector<128x128xf32>
    %48 = math.exp %47 : vector<128x128xf32>
    %cst_21 = arith.constant dense<0.000000e+00> : vector<128xf32>
    %49 = vector.multi_reduction <add>, %48, %cst_21 [1] : vector<128x128xf32> to vector<128xf32>
    %50 = vector.shape_cast %49 : vector<128xf32> to vector<128x1xf32>
    %51 = tpu.reciprocal %50 {approx = true} : vector<128x1xf32> -> vector<128x1xf32>
    %52 = vector.broadcast %51 : vector<128x1xf32> to vector<128x128xf32>
    %53 = arith.mulf %48, %52 : vector<128x128xf32>
    %54 = arith.truncf %53 : vector<128x128xf32> to vector<128x128xbf16>
    %55 = arith.truncf %35 : vector<128x128xf32> to vector<128x128xbf16>
    %cst_22 = arith.constant dense<0.000000e+00> : vector<128x128xf32>
    %56 = tpu.matmul %54, %55, %cst_22 {dimension_numbers = #tpu.dot_dimension_numbers<[1], [0], [0], [1], [0, 0, 1, 1], [], []>} : vector<128x128xbf16>, vector<128x128xbf16>, vector<128x128xf32> -> vector<128x128xf32>
    %c0_23 = arith.constant 0 : index
    %c0_24 = arith.constant 0 : index
    %57 = vector.load %arg8[%c0_23, %c0_24] : memref<128x128xbf16, #tpu.memory_space<vmem>>, vector<128x128xbf16>
    %c0_25 = arith.constant 0 : index
    %c0_26 = arith.constant 0 : index
    %58 = vector.load %arg9[%c0_25, %c0_26] : memref<1x128xf32, #tpu.memory_space<vmem>>, vector<1x128xf32>
    %59 = arith.truncf %56 : vector<128x128xf32> to vector<128x128xbf16>
    %cst_27 = arith.constant dense<0.000000e+00> : vector<128x128xf32>
    %60 = tpu.matmul %59, %57, %cst_27 {dimension_numbers = #tpu.dot_dimension_numbers<[1], [0], [0], [1], [0, 0, 1, 1], [], []>} : vector<128x128xbf16>, vector<128x128xbf16>, vector<128x128xf32> -> vector<128x128xf32>
    %61 = vector.broadcast %58 : vector<1x128xf32> to vector<128x128xf32>
    %62 = arith.addf %60, %61 : vector<128x128xf32>
    %63 = arith.addf %26, %62 : vector<128x128xf32>
    %c0_28 = arith.constant 0 : index
    %c0_29 = arith.constant 0 : index
    %64 = vector.load %arg10[%c0_28, %c0_29] : memref<1x128xf32, #tpu.memory_space<vmem>>, vector<1x128xf32>
    %c0_30 = arith.constant 0 : index
    %c0_31 = arith.constant 0 : index
    %65 = vector.load %arg11[%c0_30, %c0_31] : memref<1x128xf32, #tpu.memory_space<vmem>>, vector<1x128xf32>
    %cst_32 = arith.constant dense<0.000000e+00> : vector<128xf32>
    %66 = vector.multi_reduction <add>, %63, %cst_32 [1] : vector<128x128xf32> to vector<128xf32>
    %67 = vector.shape_cast %66 : vector<128xf32> to vector<128x1xf32>
    %cst_33 = arith.constant 1.280000e+02 : f32
    %68 = vector.broadcast %cst_33 : f32 to vector<128x1xf32>
    %69 = arith.divf %67, %68 : vector<128x1xf32>
    %70 = arith.mulf %63, %63 : vector<128x128xf32>
    %cst_34 = arith.constant dense<0.000000e+00> : vector<128xf32>
    %71 = vector.multi_reduction <add>, %70, %cst_34 [1] : vector<128x128xf32> to vector<128xf32>
    %72 = vector.shape_cast %71 : vector<128xf32> to vector<128x1xf32>
    %cst_35 = arith.constant 1.280000e+02 : f32
    %73 = vector.broadcast %cst_35 : f32 to vector<128x1xf32>
    %74 = arith.divf %72, %73 : vector<128x1xf32>
    %75 = arith.mulf %69, %69 : vector<128x1xf32>
    %76 = arith.subf %74, %75 : vector<128x1xf32>
    %cst_36 = arith.constant 0.000000e+00 : f32
    %77 = vector.broadcast %cst_36 : f32 to vector<128x1xf32>
    %78 = arith.maximumf %76, %77 : vector<128x1xf32>
    %79 = vector.broadcast %69 : vector<128x1xf32> to vector<128x128xf32>
    %80 = arith.subf %63, %79 : vector<128x128xf32>
    %cst_37 = arith.constant 9.99999996E-13 : f32
    %81 = vector.broadcast %cst_37 : f32 to vector<128x1xf32>
    %82 = arith.addf %78, %81 : vector<128x1xf32>
    %83 = math.rsqrt %82 : vector<128x1xf32>
    %84 = vector.broadcast %83 : vector<128x1xf32> to vector<128x128xf32>
    %85 = arith.mulf %80, %84 : vector<128x128xf32>
    %86 = vector.broadcast %64 : vector<1x128xf32> to vector<128x128xf32>
    %87 = arith.mulf %85, %86 : vector<128x128xf32>
    %88 = vector.broadcast %65 : vector<1x128xf32> to vector<128x128xf32>
    %89 = arith.addf %87, %88 : vector<128x128xf32>
    %c0_38 = arith.constant 0 : index
    %c0_39 = arith.constant 0 : index
    %90 = vector.load %arg12[%c0_38, %c0_39] : memref<128x512xbf16, #tpu.memory_space<vmem>>, vector<128x512xbf16>
    %c0_40 = arith.constant 0 : index
    %c0_41 = arith.constant 0 : index
    %91 = vector.load %arg13[%c0_40, %c0_41] : memref<1x512xf32, #tpu.memory_space<vmem>>, vector<1x512xf32>
    %92 = arith.truncf %89 : vector<128x128xf32> to vector<128x128xbf16>
    %cst_42 = arith.constant dense<0.000000e+00> : vector<128x512xf32>
    %93 = tpu.matmul %92, %90, %cst_42 {dimension_numbers = #tpu.dot_dimension_numbers<[1], [0], [0], [1], [0, 0, 1, 1], [], []>} : vector<128x128xbf16>, vector<128x512xbf16>, vector<128x512xf32> -> vector<128x512xf32>
    %94 = vector.broadcast %91 : vector<1x512xf32> to vector<128x512xf32>
    %95 = arith.addf %93, %94 : vector<128x512xf32>
    %96 = arith.mulf %95, %95 : vector<128x512xf32>
    %97 = arith.mulf %95, %96 : vector<128x512xf32>
    %cst_43 = arith.constant 4.471500e-02 : f32
    %98 = vector.broadcast %cst_43 : f32 to vector<128x512xf32>
    %99 = arith.mulf %98, %97 : vector<128x512xf32>
    %100 = arith.addf %95, %99 : vector<128x512xf32>
    %cst_44 = arith.constant 0.797884583 : f32
    %101 = vector.broadcast %cst_44 : f32 to vector<128x512xf32>
    %102 = arith.mulf %101, %100 : vector<128x512xf32>
    %103 = math.tanh %102 : vector<128x512xf32>
    %cst_45 = arith.constant 1.000000e+00 : f32
    %104 = vector.broadcast %cst_45 : f32 to vector<128x512xf32>
    %105 = arith.addf %104, %103 : vector<128x512xf32>
    %cst_46 = arith.constant 5.000000e-01 : f32
    %106 = vector.broadcast %cst_46 : f32 to vector<128x512xf32>
    %107 = arith.mulf %106, %105 : vector<128x512xf32>
    %108 = arith.mulf %95, %107 : vector<128x512xf32>
    %c0_47 = arith.constant 0 : index
    %c0_48 = arith.constant 0 : index
    %109 = vector.load %arg14[%c0_47, %c0_48] : memref<512x128xbf16, #tpu.memory_space<vmem>>, vector<512x128xbf16>
    %c0_49 = arith.constant 0 : index
    %c0_50 = arith.constant 0 : index
    %110 = vector.load %arg15[%c0_49, %c0_50] : memref<1x128xf32, #tpu.memory_space<vmem>>, vector<1x128xf32>
    %111 = arith.truncf %108 : vector<128x512xf32> to vector<128x512xbf16>
    %cst_51 = arith.constant dense<0.000000e+00> : vector<128x128xf32>
    %112 = tpu.matmul %111, %109, %cst_51 {dimension_numbers = #tpu.dot_dimension_numbers<[1], [0], [0], [1], [0, 0, 1, 1], [], []>} : vector<128x512xbf16>, vector<512x128xbf16>, vector<128x128xf32> -> vector<128x128xf32>
    %113 = vector.broadcast %110 : vector<1x128xf32> to vector<128x128xf32>
    %114 = arith.addf %112, %113 : vector<128x128xf32>
    %115 = arith.addf %89, %114 : vector<128x128xf32>
    %c0_52 = arith.constant 0 : index
    %c0_53 = arith.constant 0 : index
    %116 = vector.load %arg16[%c0_52, %c0_53] : memref<1x128xf32, #tpu.memory_space<vmem>>, vector<1x128xf32>
    %c0_54 = arith.constant 0 : index
    %c0_55 = arith.constant 0 : index
    %117 = vector.load %arg17[%c0_54, %c0_55] : memref<1x128xf32, #tpu.memory_space<vmem>>, vector<1x128xf32>
    %cst_56 = arith.constant dense<0.000000e+00> : vector<128xf32>
    %118 = vector.multi_reduction <add>, %115, %cst_56 [1] : vector<128x128xf32> to vector<128xf32>
    %119 = vector.shape_cast %118 : vector<128xf32> to vector<128x1xf32>
    %cst_57 = arith.constant 1.280000e+02 : f32
    %120 = vector.broadcast %cst_57 : f32 to vector<128x1xf32>
    %121 = arith.divf %119, %120 : vector<128x1xf32>
    %122 = arith.mulf %115, %115 : vector<128x128xf32>
    %cst_58 = arith.constant dense<0.000000e+00> : vector<128xf32>
    %123 = vector.multi_reduction <add>, %122, %cst_58 [1] : vector<128x128xf32> to vector<128xf32>
    %124 = vector.shape_cast %123 : vector<128xf32> to vector<128x1xf32>
    %cst_59 = arith.constant 1.280000e+02 : f32
    %125 = vector.broadcast %cst_59 : f32 to vector<128x1xf32>
    %126 = arith.divf %124, %125 : vector<128x1xf32>
    %127 = arith.mulf %121, %121 : vector<128x1xf32>
    %128 = arith.subf %126, %127 : vector<128x1xf32>
    %cst_60 = arith.constant 0.000000e+00 : f32
    %129 = vector.broadcast %cst_60 : f32 to vector<128x1xf32>
    %130 = arith.maximumf %128, %129 : vector<128x1xf32>
    %131 = vector.broadcast %121 : vector<128x1xf32> to vector<128x128xf32>
    %132 = arith.subf %115, %131 : vector<128x128xf32>
    %cst_61 = arith.constant 9.99999996E-13 : f32
    %133 = vector.broadcast %cst_61 : f32 to vector<128x1xf32>
    %134 = arith.addf %130, %133 : vector<128x1xf32>
    %135 = math.rsqrt %134 : vector<128x1xf32>
    %136 = vector.broadcast %135 : vector<128x1xf32> to vector<128x128xf32>
    %137 = arith.mulf %132, %136 : vector<128x128xf32>
    %138 = vector.broadcast %116 : vector<1x128xf32> to vector<128x128xf32>
    %139 = arith.mulf %137, %138 : vector<128x128xf32>
    %140 = vector.broadcast %117 : vector<1x128xf32> to vector<128x128xf32>
    %141 = arith.addf %139, %140 : vector<128x128xf32>
    %c0_62 = arith.constant 0 : index
    %c0_63 = arith.constant 0 : index
    %142 = vector.load %arg18[%c0_62, %c0_63] : memref<128x128xbf16, #tpu.memory_space<vmem>>, vector<128x128xbf16>
    %c0_64 = arith.constant 0 : index
    %c0_65 = arith.constant 0 : index
    %143 = vector.load %arg19[%c0_64, %c0_65] : memref<1x128xf32, #tpu.memory_space<vmem>>, vector<1x128xf32>
    %144 = arith.truncf %141 : vector<128x128xf32> to vector<128x128xbf16>
    %cst_66 = arith.constant dense<0.000000e+00> : vector<128x128xf32>
    %145 = tpu.matmul %144, %142, %cst_66 {dimension_numbers = #tpu.dot_dimension_numbers<[1], [0], [0], [1], [0, 0, 1, 1], [], []>} : vector<128x128xbf16>, vector<128x128xbf16>, vector<128x128xf32> -> vector<128x128xf32>
    %146 = vector.broadcast %143 : vector<1x128xf32> to vector<128x128xf32>
    %147 = arith.addf %145, %146 : vector<128x128xf32>
    %148 = arith.mulf %147, %147 : vector<128x128xf32>
    %149 = arith.mulf %147, %148 : vector<128x128xf32>
    %cst_67 = arith.constant 4.471500e-02 : f32
    %150 = vector.broadcast %cst_67 : f32 to vector<128x128xf32>
    %151 = arith.mulf %150, %149 : vector<128x128xf32>
    %152 = arith.addf %147, %151 : vector<128x128xf32>
    %cst_68 = arith.constant 0.797884583 : f32
    %153 = vector.broadcast %cst_68 : f32 to vector<128x128xf32>
    %154 = arith.mulf %153, %152 : vector<128x128xf32>
    %155 = math.tanh %154 : vector<128x128xf32>
    %cst_69 = arith.constant 1.000000e+00 : f32
    %156 = vector.broadcast %cst_69 : f32 to vector<128x128xf32>
    %157 = arith.addf %156, %155 : vector<128x128xf32>
    %cst_70 = arith.constant 5.000000e-01 : f32
    %158 = vector.broadcast %cst_70 : f32 to vector<128x128xf32>
    %159 = arith.mulf %158, %157 : vector<128x128xf32>
    %160 = arith.mulf %147, %159 : vector<128x128xf32>
    %c0_71 = arith.constant 0 : index
    %c0_72 = arith.constant 0 : index
    %161 = vector.load %arg20[%c0_71, %c0_72] : memref<1x128xf32, #tpu.memory_space<vmem>>, vector<1x128xf32>
    %c0_73 = arith.constant 0 : index
    %c0_74 = arith.constant 0 : index
    %162 = vector.load %arg21[%c0_73, %c0_74] : memref<1x128xf32, #tpu.memory_space<vmem>>, vector<1x128xf32>
    %cst_75 = arith.constant dense<0.000000e+00> : vector<128xf32>
    %163 = vector.multi_reduction <add>, %160, %cst_75 [1] : vector<128x128xf32> to vector<128xf32>
    %164 = vector.shape_cast %163 : vector<128xf32> to vector<128x1xf32>
    %cst_76 = arith.constant 1.280000e+02 : f32
    %165 = vector.broadcast %cst_76 : f32 to vector<128x1xf32>
    %166 = arith.divf %164, %165 : vector<128x1xf32>
    %167 = arith.mulf %160, %160 : vector<128x128xf32>
    %cst_77 = arith.constant dense<0.000000e+00> : vector<128xf32>
    %168 = vector.multi_reduction <add>, %167, %cst_77 [1] : vector<128x128xf32> to vector<128xf32>
    %169 = vector.shape_cast %168 : vector<128xf32> to vector<128x1xf32>
    %cst_78 = arith.constant 1.280000e+02 : f32
    %170 = vector.broadcast %cst_78 : f32 to vector<128x1xf32>
    %171 = arith.divf %169, %170 : vector<128x1xf32>
    %172 = arith.mulf %166, %166 : vector<128x1xf32>
    %173 = arith.subf %171, %172 : vector<128x1xf32>
    %cst_79 = arith.constant 0.000000e+00 : f32
    %174 = vector.broadcast %cst_79 : f32 to vector<128x1xf32>
    %175 = arith.maximumf %173, %174 : vector<128x1xf32>
    %176 = vector.broadcast %166 : vector<128x1xf32> to vector<128x128xf32>
    %177 = arith.subf %160, %176 : vector<128x128xf32>
    %cst_80 = arith.constant 9.99999996E-13 : f32
    %178 = vector.broadcast %cst_80 : f32 to vector<128x1xf32>
    %179 = arith.addf %175, %178 : vector<128x1xf32>
    %180 = math.rsqrt %179 : vector<128x1xf32>
    %181 = vector.broadcast %180 : vector<128x1xf32> to vector<128x128xf32>
    %182 = arith.mulf %177, %181 : vector<128x128xf32>
    %183 = vector.broadcast %161 : vector<1x128xf32> to vector<128x128xf32>
    %184 = arith.mulf %182, %183 : vector<128x128xf32>
    %185 = vector.broadcast %162 : vector<1x128xf32> to vector<128x128xf32>
    %186 = arith.addf %184, %185 : vector<128x128xf32>
    %187 = arith.truncf %186 : vector<128x128xf32> to vector<128x128xbf16>
    %c0_81 = arith.constant 0 : index
    %c0_82 = arith.constant 0 : index
    %188 = vector.load %arg3[%c0_81, %c0_82] : memref<128x1xi32, #tpu.memory_space<vmem>>, vector<128x1xi32>
    %c0_i32 = arith.constant 0 : i32
    %189 = vector.broadcast %c0_i32 : i32 to vector<128x1xi32>
    %190 = arith.cmpi sge, %188, %189 : vector<128x1xi32>
    %191 = arith.extui %190 : vector<128x1xi1> to vector<128x1xi32>
    %192 = arith.sitofp %191 : vector<128x1xi32> to vector<128x1xf32>
    %cst_83 = arith.constant 0xFF800000 : f32
    %193 = vector.broadcast %cst_83 : f32 to vector<128x1xf32>
    %cst_84 = arith.constant 0.000000e+00 : f32
    %194 = vector.broadcast %cst_84 : f32 to vector<128x1xf32>
    %cst_85 = arith.constant 0.000000e+00 : f32
    %195 = vector.broadcast %cst_85 : f32 to vector<128x1xf32>
    %c0_86 = arith.constant 0 : index
    %c0_87 = arith.constant 0 : index
    %196 = vector.load %arg22[%c0_86, %c0_87] : memref<128x256xbf16, #tpu.memory_space<vmem>>, vector<128x128xbf16>
    %c0_88 = arith.constant 0 : index
    %c0_89 = arith.constant 0 : index
    %197 = vector.load %arg23[%c0_88, %c0_89] : memref<1x256xf32, #tpu.memory_space<vmem>>, vector<1x128xf32>
    %cst_90 = arith.constant dense<0.000000e+00> : vector<128x128xf32>
    %198 = tpu.matmul %187, %196, %cst_90 {dimension_numbers = #tpu.dot_dimension_numbers<[1], [0], [0], [1], [0, 0, 1, 1], [], []>} : vector<128x128xbf16>, vector<128x128xbf16>, vector<128x128xf32> -> vector<128x128xf32>
    %199 = vector.broadcast %197 : vector<1x128xf32> to vector<128x128xf32>
    %200 = arith.addf %198, %199 : vector<128x128xf32>
    %201 = arith.truncf %200 : vector<128x128xf32> to vector<128x128xbf16>
    %c0_91 = arith.constant 0 : index
    %c0_92 = arith.constant 0 : index
    %202 = vector.load %arg24[%c0_91, %c0_92] : memref<128x256xbf16, #tpu.memory_space<vmem>>, vector<128x128xbf16>
    tpu.vector_store %arg24[%c0_91, %c0_92], %201 {strides = array<i32>} : memref<128x256xbf16, #tpu.memory_space<vmem>>, vector<128x128xbf16>,
    %cst_93 = arith.constant dense<0xFF800000> : vector<128xf32>
    %203 = vector.multi_reduction <maximumf>, %200, %cst_93 [1] : vector<128x128xf32> to vector<128xf32>
    %204 = vector.shape_cast %203 : vector<128xf32> to vector<128x1xf32>
    %205 = arith.maximumf %193, %204 : vector<128x1xf32>
    %206 = arith.subf %193, %205 : vector<128x1xf32>
    %207 = math.exp %206 : vector<128x1xf32>
    %208 = arith.mulf %194, %207 : vector<128x1xf32>
    %209 = vector.broadcast %205 : vector<128x1xf32> to vector<128x128xf32>
    %210 = arith.subf %200, %209 : vector<128x128xf32>
    %211 = math.exp %210 : vector<128x128xf32>
    %cst_94 = arith.constant dense<0.000000e+00> : vector<128xf32>
    %212 = vector.multi_reduction <add>, %211, %cst_94 [1] : vector<128x128xf32> to vector<128xf32>
    %213 = vector.shape_cast %212 : vector<128xf32> to vector<128x1xf32>
    %214 = arith.addf %208, %213 : vector<128x1xf32>
    %215 = tpu.iota {dimensions = array<i32: 1>} : vector<128x128xi32>
    %c0_i32_95 = arith.constant 0 : i32
    %216 = vector.broadcast %c0_i32_95 : i32 to vector<128x128xi32>
    %217 = arith.addi %216, %215 : vector<128x128xi32>
    %218 = vector.broadcast %188 : vector<128x1xi32> to vector<128x128xi32>
    %219 = arith.cmpi eq, %217, %218 : vector<128x128xi32>
    %cst_96 = arith.constant 0.000000e+00 : f32
    %220 = vector.broadcast %cst_96 : f32 to vector<128x128xf32>
    %221 = arith.select %219, %200, %220 : vector<128x128xi1>, vector<128x128xf32>
    %cst_97 = arith.constant dense<0.000000e+00> : vector<128xf32>
    %222 = vector.multi_reduction <add>, %221, %cst_97 [1] : vector<128x128xf32> to vector<128xf32>
    %223 = vector.shape_cast %222 : vector<128xf32> to vector<128x1xf32>
    %224 = arith.addf %195, %223 : vector<128x1xf32>
    %c0_98 = arith.constant 0 : index
    %c128 = arith.constant 128 : index
    %225 = vector.load %arg22[%c0_98, %c128] : memref<128x256xbf16, #tpu.memory_space<vmem>>, vector<128x128xbf16>
    %c0_99 = arith.constant 0 : index
    %c128_100 = arith.constant 128 : index
    %226 = vector.load %arg23[%c0_99, %c128_100] : memref<1x256xf32, #tpu.memory_space<vmem>>, vector<1x128xf32>
    %cst_101 = arith.constant dense<0.000000e+00> : vector<128x128xf32>
    %227 = tpu.matmul %187, %225, %cst_101 {dimension_numbers = #tpu.dot_dimension_numbers<[1], [0], [0], [1], [0, 0, 1, 1], [], []>} : vector<128x128xbf16>, vector<128x128xbf16>, vector<128x128xf32> -> vector<128x128xf32>
    %228 = vector.broadcast %226 : vector<1x128xf32> to vector<128x128xf32>
    %229 = arith.addf %227, %228 : vector<128x128xf32>
    %230 = arith.truncf %229 : vector<128x128xf32> to vector<128x128xbf16>
    %c0_102 = arith.constant 0 : index
    %c128_103 = arith.constant 128 : index
    %231 = vector.load %arg24[%c0_102, %c128_103] : memref<128x256xbf16, #tpu.memory_space<vmem>>, vector<128x128xbf16>
    tpu.vector_store %arg24[%c0_102, %c128_103], %230 {strides = array<i32>} : memref<128x256xbf16, #tpu.memory_space<vmem>>, vector<128x128xbf16>,
    %cst_104 = arith.constant dense<0xFF800000> : vector<128xf32>
    %232 = vector.multi_reduction <maximumf>, %229, %cst_104 [1] : vector<128x128xf32> to vector<128xf32>
    %233 = vector.shape_cast %232 : vector<128xf32> to vector<128x1xf32>
    %234 = arith.maximumf %205, %233 : vector<128x1xf32>
    %235 = arith.subf %205, %234 : vector<128x1xf32>
    %236 = math.exp %235 : vector<128x1xf32>
    %237 = arith.mulf %214, %236 : vector<128x1xf32>
    %238 = vector.broadcast %234 : vector<128x1xf32> to vector<128x128xf32>
    %239 = arith.subf %229, %238 : vector<128x128xf32>
    %240 = math.exp %239 : vector<128x128xf32>
    %cst_105 = arith.constant dense<0.000000e+00> : vector<128xf32>
    %241 = vector.multi_reduction <add>, %240, %cst_105 [1] : vector<128x128xf32> to vector<128xf32>
    %242 = vector.shape_cast %241 : vector<128xf32> to vector<128x1xf32>
    %243 = arith.addf %237, %242 : vector<128x1xf32>
    %244 = tpu.iota {dimensions = array<i32: 1>} : vector<128x128xi32>
    %c128_i32 = arith.constant 128 : i32
    %245 = vector.broadcast %c128_i32 : i32 to vector<128x128xi32>
    %246 = arith.addi %245, %244 : vector<128x128xi32>
    %247 = vector.broadcast %188 : vector<128x1xi32> to vector<128x128xi32>
    %248 = arith.cmpi eq, %246, %247 : vector<128x128xi32>
    %cst_106 = arith.constant 0.000000e+00 : f32
    %249 = vector.broadcast %cst_106 : f32 to vector<128x128xf32>
    %250 = arith.select %248, %229, %249 : vector<128x128xi1>, vector<128x128xf32>
    %cst_107 = arith.constant dense<0.000000e+00> : vector<128xf32>
    %251 = vector.multi_reduction <add>, %250, %cst_107 [1] : vector<128x128xf32> to vector<128xf32>
    %252 = vector.shape_cast %251 : vector<128xf32> to vector<128x1xf32>
    %253 = arith.addf %224, %252 : vector<128x1xf32>
    %254 = math.log %243 : vector<128x1xf32>
    %255 = arith.addf %234, %254 : vector<128x1xf32>
    %256 = arith.subf %255, %253 : vector<128x1xf32>
    %257 = arith.mulf %256, %192 : vector<128x1xf32>
    %258 = vector.shape_cast %257 : vector<128x1xf32> to vector<1x128x1xf32>
    %cst_108 = arith.constant dense<0.000000e+00> : vector<1xf32>
    %259 = vector.multi_reduction <add>, %258, %cst_108 [1, 2] : vector<1x128x1xf32> to vector<1xf32>
    %260 = vector.shape_cast %259 : vector<1xf32> to vector<1x1x1xf32>
    %261 = vector.extract %260[0, 0, 0] : f32 from vector<1x1x1xf32>
    %262 = vector.shape_cast %192 : vector<128x1xf32> to vector<1x128x1xf32>
    %cst_109 = arith.constant dense<0.000000e+00> : vector<1xf32>
    %263 = vector.multi_reduction <add>, %262, %cst_109 [1, 2] : vector<1x128x1xf32> to vector<1xf32>
    %264 = vector.shape_cast %263 : vector<1xf32> to vector<1x1x1xf32>
    %265 = vector.extract %264[0, 0, 0] : f32 from vector<1x1x1xf32>
    %266 = tpu.iota {dimensions = array<i32: 1>} : vector<1x128xi32>
    %c0_i32_110 = arith.constant 0 : i32
    %267 = vector.broadcast %c0_i32_110 : i32 to vector<1x128xi32>
    %268 = arith.cmpi eq, %266, %267 : vector<1x128xi32>
    %c1_i32 = arith.constant 1 : i32
    %269 = vector.broadcast %c1_i32 : i32 to vector<1x128xi32>
    %270 = arith.cmpi eq, %266, %269 : vector<1x128xi32>
    %cst_111 = arith.constant 0.000000e+00 : f32
    %271 = vector.broadcast %265 : f32 to vector<1x128xf32>
    %272 = vector.broadcast %cst_111 : f32 to vector<1x128xf32>
    %273 = arith.select %270, %271, %272 : vector<1x128xi1>, vector<1x128xf32>
    %274 = vector.broadcast %261 : f32 to vector<1x128xf32>
    %275 = arith.select %268, %274, %273 : vector<1x128xi1>, vector<1x128xf32>
    %c0_112 = arith.constant 0 : index
    %c0_113 = arith.constant 0 : index
    %c0_114 = arith.constant 0 : index
    %276 = vector.load %arg25[%c0_112, %c0_113, %c0_114] : memref<1x1x128xf32, #tpu.memory_space<vmem>>, vector<1x1x128xf32>
    %277 = vector.shape_cast %276 : vector<1x1x128xf32> to vector<1x128xf32>
    %278 = vector.shape_cast %275 : vector<1x128xf32> to vector<1x1x128xf32>
    tpu.vector_store %arg25[%c0_112, %c0_113, %c0_114], %278 {strides = array<i32>} : memref<1x1x128xf32, #tpu.memory_space<vmem>>, vector<1x1x128xf32>,
    return
  }
  func.func @transform_0(%arg0: i32) -> (i32, i32) {
    %c0_i32 = arith.constant 0 : i32
    %c0_i32_0 = arith.constant 0 : i32
    return %arg0, %c0_i32 : i32, i32
  }
  func.func @transform_1(%arg0: i32) -> (i32, i32, i32) {
    %c0_i32 = arith.constant 0 : i32
    %c0_i32_0 = arith.constant 0 : i32
    %c0_i32_1 = arith.constant 0 : i32
    return %arg0, %c0_i32, %c0_i32_0 : i32, i32, i32
  }
  func.func @transform_2(%arg0: i32) -> (i32, i32) {
    %c0_i32 = arith.constant 0 : i32
    %c0_i32_0 = arith.constant 0 : i32
    return %arg0, %c0_i32 : i32, i32
  }
  func.func @transform_3(%arg0: i32) -> (i32, i32) {
    %c0_i32 = arith.constant 0 : i32
    %c0_i32_0 = arith.constant 0 : i32
    %c0_i32_1 = arith.constant 0 : i32
    return %c0_i32, %c0_i32_0 : i32, i32
  }
  func.func @transform_4(%arg0: i32) -> (i32, i32) {
    %c0_i32 = arith.constant 0 : i32
    %c0_i32_0 = arith.constant 0 : i32
    %c0_i32_1 = arith.constant 0 : i32
    return %c0_i32, %c0_i32_0 : i32, i32
  }
  func.func @transform_5(%arg0: i32) -> (i32, i32) {
    %c0_i32 = arith.constant 0 : i32
    %c0_i32_0 = arith.constant 0 : i32
    %c0_i32_1 = arith.constant 0 : i32
    return %c0_i32, %c0_i32_0 : i32, i32
  }
  func.func @transform_6(%arg0: i32) -> (i32, i32) {
    %c0_i32 = arith.constant 0 : i32
    %c0_i32_0 = arith.constant 0 : i32
    %c0_i32_1 = arith.constant 0 : i32
    return %c0_i32, %c0_i32_0 : i32, i32
  }
  func.func @transform_7(%arg0: i32) -> (i32, i32) {
    %c0_i32 = arith.constant 0 : i32
    %c0_i32_0 = arith.constant 0 : i32
    %c0_i32_1 = arith.constant 0 : i32
    return %c0_i32, %c0_i32_0 : i32, i32
  }
  func.func @transform_8(%arg0: i32) -> (i32, i32) {
    %c0_i32 = arith.constant 0 : i32
    %c0_i32_0 = arith.constant 0 : i32
    %c0_i32_1 = arith.constant 0 : i32
    return %c0_i32, %c0_i32_0 : i32, i32
  }
  func.func @transform_9(%arg0: i32) -> (i32, i32) {
    %c0_i32 = arith.constant 0 : i32
    %c0_i32_0 = arith.constant 0 : i32
    %c0_i32_1 = arith.constant 0 : i32
    return %c0_i32, %c0_i32_0 : i32, i32
  }
  func.func @transform_10(%arg0: i32) -> (i32, i32) {
    %c0_i32 = arith.constant 0 : i32
    %c0_i32_0 = arith.constant 0 : i32
    %c0_i32_1 = arith.constant 0 : i32
    return %c0_i32, %c0_i32_0 : i32, i32
  }
  func.func @transform_11(%arg0: i32) -> (i32, i32) {
    %c0_i32 = arith.constant 0 : i32
    %c0_i32_0 = arith.constant 0 : i32
    %c0_i32_1 = arith.constant 0 : i32
    return %c0_i32, %c0_i32_0 : i32, i32
  }
  func.func @transform_12(%arg0: i32) -> (i32, i32) {
    %c0_i32 = arith.constant 0 : i32
    %c0_i32_0 = arith.constant 0 : i32
    %c0_i32_1 = arith.constant 0 : i32
    return %c0_i32, %c0_i32_0 : i32, i32
  }
  func.func @transform_13(%arg0: i32) -> (i32, i32) {
    %c0_i32 = arith.constant 0 : i32
    %c0_i32_0 = arith.constant 0 : i32
    %c0_i32_1 = arith.constant 0 : i32
    return %c0_i32, %c0_i32_0 : i32, i32
  }
  func.func @transform_14(%arg0: i32) -> (i32, i32) {
    %c0_i32 = arith.constant 0 : i32
    %c0_i32_0 = arith.constant 0 : i32
    %c0_i32_1 = arith.constant 0 : i32
    return %c0_i32, %c0_i32_0 : i32, i32
  }
  func.func @transform_15(%arg0: i32) -> (i32, i32) {
    %c0_i32 = arith.constant 0 : i32
    %c0_i32_0 = arith.constant 0 : i32
    %c0_i32_1 = arith.constant 0 : i32
    return %c0_i32, %c0_i32_0 : i32, i32
  }
  func.func @transform_16(%arg0: i32) -> (i32, i32) {
    %c0_i32 = arith.constant 0 : i32
    %c0_i32_0 = arith.constant 0 : i32
    %c0_i32_1 = arith.constant 0 : i32
    return %c0_i32, %c0_i32_0 : i32, i32
  }
  func.func @transform_17(%arg0: i32) -> (i32, i32) {
    %c0_i32 = arith.constant 0 : i32
    %c0_i32_0 = arith.constant 0 : i32
    %c0_i32_1 = arith.constant 0 : i32
    return %c0_i32, %c0_i32_0 : i32, i32
  }
  func.func @transform_18(%arg0: i32) -> (i32, i32) {
    %c0_i32 = arith.constant 0 : i32
    %c0_i32_0 = arith.constant 0 : i32
    %c0_i32_1 = arith.constant 0 : i32
    return %c0_i32, %c0_i32_0 : i32, i32
  }
  func.func @transform_19(%arg0: i32) -> (i32, i32) {
    %c0_i32 = arith.constant 0 : i32
    %c0_i32_0 = arith.constant 0 : i32
    %c0_i32_1 = arith.constant 0 : i32
    return %c0_i32, %c0_i32_0 : i32, i32
  }
  func.func @transform_20(%arg0: i32) -> (i32, i32) {
    %c0_i32 = arith.constant 0 : i32
    %c0_i32_0 = arith.constant 0 : i32
    %c0_i32_1 = arith.constant 0 : i32
    return %c0_i32, %c0_i32_0 : i32, i32
  }
  func.func @transform_21(%arg0: i32) -> (i32, i32) {
    %c0_i32 = arith.constant 0 : i32
    %c0_i32_0 = arith.constant 0 : i32
    %c0_i32_1 = arith.constant 0 : i32
    return %c0_i32, %c0_i32_0 : i32, i32
  }
  func.func @transform_22(%arg0: i32) -> (i32, i32) {
    %c0_i32 = arith.constant 0 : i32
    %c0_i32_0 = arith.constant 0 : i32
    %c0_i32_1 = arith.constant 0 : i32
    return %c0_i32, %c0_i32_0 : i32, i32
  }
  func.func @transform_23(%arg0: i32) -> (i32, i32) {
    %c0_i32 = arith.constant 0 : i32
    %c0_i32_0 = arith.constant 0 : i32
    return %arg0, %c0_i32 : i32, i32
  }
  func.func @transform_24(%arg0: i32) -> (i32, i32, i32) {
    %c0_i32 = arith.constant 0 : i32
    %c0_i32_0 = arith.constant 0 : i32
    %c0_i32_1 = arith.constant 0 : i32
    return %arg0, %c0_i32, %c0_i32_0 : i32, i32, i32
  }
}

</mosaic_0001>

<bundles_post_ra>
// kernel: eq.8
= control target key start
LH: loop header
LB: loop body
LE: loop exit
PB: predicated region body
PF: predicated region fallthrough
CT: control target
= control target key end

     0   :  { %s6_s8 = smov 3  ;;  %vm8_vm0 = vcmask 523264   ;;  %s24_s9 = smov 64   ;;  %vm15_vm1 = vcmask 1048064   ;;  %s41_s0 = inlined_call_operand.vmem [shape: s32[4,64], index: 0, kind: input, shape index: {}]   ;;  %s42_s1 = inlined_call_operand.vmem [shape: s32[2,128], index: 1, kind: output, shape index: {}]  }
   0x1   :  { %v4_v0 = vld [vmem:[%s41_s0] sm:$0xf]  ;;  %s11_s0 = smov 3 }
   0x2   :  { %5 = vst [vmem:[#allocation1] sm:$0xf] %v4_v0 }
   0x9   :  { %v12_v1 = vld [vmem:[#allocation1 + $0x1] ss:$2 sm:%s11_s0]   ;;  %v7_v2 = vld [vmem:[#allocation1] ss:$2 sm:%s6_s8]  }
   0xa   :  { %13 = vrot.lane.b32.xlu0 %v12_v1, %s24_s9  ;;  %9 = vst.msk [vmem:[#allocation0] sm:$0x3] %vm8_vm0, %v7_v2  }
  0x7c   :  { %v14_v3 = vpop.permute.xlu0 %13  }
  0x7d   :  { %16 = vst.msk [vmem:[#allocation0] sm:$0x3] %vm15_vm1, %v14_v3  }
  0x84   :  { %v20_v4 = vld [vmem:[#allocation0] sm:$0x3] }
  0x85   :  { %22 = vst [vmem:[%s42_s1] sm:$0x3] %v20_v4 }

// kernel: mlm_forward.1
= control target key start
LH: loop header
LB: loop body
LE: loop exit
PB: predicated region body
PF: predicated region fallthrough
CT: control target
= control target key end

     0   :  { %s11347_s0 = inlined_call_operand.vmem [shape: f32[256,128], index: 0, kind: input, shape index: {}]   ;;  %s11348_s1 = inlined_call_operand.vmem [shape: f32[2,128,128], index: 1, kind: input, shape index: {}]   ;;  %s11349_s2 = inlined_call_operand.vmem [shape: s32[256,1], index: 2, kind: input, shape index: {}]   ;;  %s11350_s3 = inlined_call_operand.vmem [shape: f32[1,128], index: 3, kind: input, shape index: {}]   ;;  %s11351_s4 = inlined_call_operand.vmem [shape: f32[1,128], index: 4, kind: input, shape index: {}]   ;;  %s11352_s5 = inlined_call_operand.vmem [shape: bf16[128,384], index: 5, kind: input, shape index: {}]   ;;  %s11353_s6 = inlined_call_operand.vmem [shape: f32[1,384], index: 6, kind: input, shape index: {}]   ;;  %s11354_s7 = inlined_call_operand.vmem [shape: bf16[128,128], index: 7, kind: input, shape index: {}]   ;;  %s11355_s8 = inlined_call_operand.vmem [shape: f32[1,128], index: 8, kind: input, shape index: {}]   ;;  %s11356_s9 = inlined_call_operand.vmem [shape: f32[1,128], index: 9, kind: input, shape index: {}]   ;;  %s11357_s10 = inlined_call_operand.vmem [shape: f32[1,128], index: 10, kind: input, shape index: {}]   ;;  %s11358_s11 = inlined_call_operand.vmem [shape: bf16[128,512], index: 11, kind: input, shape index: {}]   ;;  %s11359_s12 = inlined_call_operand.vmem [shape: f32[1,512], index: 12, kind: input, shape index: {}]   ;;  %s11360_s13 = inlined_call_operand.vmem [shape: bf16[512,128], index: 13, kind: input, shape index: {}]   ;;  %s11361_s14 = inlined_call_operand.vmem [shape: f32[1,128], index: 14, kind: input, shape index: {}]   ;;  %s11362_s15 = inlined_call_operand.vmem [shape: f32[1,128], index: 15, kind: input, shape index: {}]   ;;  %s11363_s16 = inlined_call_operand.vmem [shape: f32[1,128], index: 16, kind: input, shape index: {}]   ;;  %s11364_s17 = inlined_call_operand.vmem [shape: bf16[128,128], index: 17, kind: input, shape index: {}]   ;;  %s11365_s18 = inlined_call_operand.vmem [shape: f32[1,128], index: 18, kind: input, shape index: {}]   ;;  %s11366_s19 = inlined_call_operand.vmem [shape: f32[1,128], index: 19, kind: input, shape index: {}]   ;;  %s11367_s20 = inlined_call_operand.vmem [shape: f32[1,128], index: 20, kind: input, shape index: {}]   ;;  %s11368_s21 = inlined_call_operand.vmem [shape: bf16[128,256], index: 21, kind: input, shape index: {}]   ;;  %s11369_s22 = inlined_call_operand.vmem [shape: f32[1,256], index: 22, kind: input, shape index: {}]   ;;  %s11370_s23 = inlined_call_operand.hbm [shape: bf16[256,256], index: 23, kind: output, shape index: {0}]   ;;  %s11371_s24 = inlined_call_operand.vmem [shape: f32[2,1,128], index: 24, kind: output, shape index: {1}]  }
   0x1   :  { %11462 = sst [smem:[#allocation76_spill]] %s11347_s0 }
   0x2   :  { %11463 = sst [smem:[#allocation77_spill]] %s11348_s1 }
   0x3   :  { %11464 = sst [smem:[#allocation78_spill]] %s11349_s2 }
   0x4   :  { %11465 = sst [smem:[#allocation79_spill]] %s11350_s3 }
   0x5   :  { %11466 = sst [smem:[#allocation80_spill]] %s11351_s4 }
   0x6   :  { %11467 = sst [smem:[#allocation81_spill]] %s11352_s5 }
   0x7   :  { %11468 = sst [smem:[#allocation82_spill]] %s11353_s6 }
   0x8   :  { %11469 = sst [smem:[#allocation83_spill]] %s11354_s7 }
   0x9   :  { %11470 = sst [smem:[#allocation84_spill]] %s11355_s8 }
   0xa   :  { %11471 = sst [smem:[#allocation85_spill]] %s11356_s9 }
   0xb   :  { %11472 = sst [smem:[#allocation86_spill]] %s11357_s10 }
   0xc   :  { %30 = vsyncpa [#allocation3], 0 }
   0xd   :  { %32 = vsyncpa [#allocation3 + $0x1], 0  ;;  %s7843_s5 = smov 0   ;;  %s7845_s26 = smov 0  }
   0xe   :  { %s7847_s27 = smov 0   ;;  %s7849_s28 = smov 0  }
   0xf LB: > { %11473 = sst [smem:[#allocation5_spill]] %s7707_s27  ;;  %s7864_s6 = sadd.s32 4294967295, %s7711_s28   ;;  %s7711_s28 = sphi %s7849_s28, %s11685_s28   ;;  %s7707_s27 = sphi %s7847_s27, %s11687_s27   ;;  %s7703_s26 = sphi %s7845_s26, %s11689_s26   ;;  %s7699_s5 = sphi %s7843_s5, %s11688_s5  }
  0x10   : > { %s6215_s2 = sadd.s32 4294967294, %s7711_s28   ;;  %s7868_s29 = sadd.s32 1, %s7711_s28  }
  0x11   : > { %11474 = sst [smem:[#allocation6_spill]] %s7868_s29  ;;  %s543_s0 = sadd.s32 1, %s7707_s27 }
  0x12   : > { %s540_s7 = ssub.s32 %s7711_s28, %s7868_s29  ;;  %p553_p0 = scmp.ne.s32.totalorder %s7707_s27, %s7703_s26 }
  0x13   : > { %p541_p1 = scmp.eq.s32.totalorder %s540_s7, 0  ;;  %p554_p2 = scmp.eq.s32.totalorder %s7864_s6, 1 }
  0x14   : > { %p559_p3 = scmp.ne.s32.totalorder %s7703_s26, %s7699_s5  ;;  %p560_p4 = scmp.eq.s32.totalorder %s6215_s2, 1 }
  0x15   : > { %s7879_s30 = scalar_select %p541_p1, %s7707_s27, %s543_s0  }
  0x16   : > { %p7881_p5 = por %p554_p2, %p553_p0  ;;  %p7885_p6 = por %p560_p4, %p559_p3 }
  0x17   : > { %11475 = sst [smem:[#allocation7_spill]] %s7879_s30  ;;  %p6218_p7 = scmp.ge.s32.totalorder %s7711_s28, 1 }
  0x18   : > { %s11477_s25 = scalar_select %p7885_p6, 1, 0 }
  0x19   : > { %p690_p8 = scmp.lt.s32.totalorder %s7711_s28, 3 }
  0x1a   : > { %11478 = sst [smem:[#allocation8_spill]] %s11477_s25 }
  0x1b   : > { %p691_p9 = pnand %p6218_p7, %p690_p8 }
  0x1d   : > { %694 = sbr.rel (%p691_p9) target bundleno = 3649 (0xe41), region = 112 }
  0x24   : > { %s6220_s8 = sshll.u32 %s7864_s6, 4  ;;  %s11479_s0 = sld [smem:[#allocation76_spill]]  ;;  %v7713_v49 = vmov 0  }
  0x25   : > { %p770_p10 = scmp.lt.s32.totalorder %s6220_s8, 31  ;;  %1295 = vmatprep.mubr.bf16.mxu0 %v7713_v49  ;;  %6976 = vset.pattern.permute.xlu1 %v7713_v49  ;;  %s11481_s25 = sld [smem:[#allocation79_spill]] }
  0x26   : > { %6975 = vset.pattern.permute.xlu0 %v7713_v49  ;;  %p775_p11 = scmp.lt.s32.totalorder %s7864_s6, 1  ;;  %s11486_s2 = sld [smem:[#allocation84_spill]] }
  0x27   : > { %s11691_s8 = smov (!%p770_p10, %s6220_s8), 31  ;;  %s11487_s9 = sld [smem:[#allocation85_spill]] }
  0x28   : > { %s11374_s4 = sshll.u32 %s11691_s8, 3  ;;  %s11488_s10 = sld [smem:[#allocation86_spill]] }
  0x29   : > { %s8362_s30 = scalar_select %p775_p11, %s7864_s6, 1 }
  0x2a   : > { %s7900_s7 = scalar_lea.vmem %s11479_s0, %s11374_s4  ;;  %s11480_s0 = sld [smem:[#allocation81_spill]] }
  0x2b   : > { %v7903_v0 = vld [vmem:[%s7900_s7] sm:$0xff]  ;;  %v7906_v1 = vld [vmem:[%s7900_s7 + $0x8] sm:$0xff]  ;;  %v7915_v4 = vld [vmem:[%s7900_s7 + $0x10] sm:$0xff]  ;;  %s11482_s4 = sld [smem:[#allocation80_spill]]  ;;  %s11645_s29 = sshll.u32 %s11691_s8, 3 }
  0x2c   : > { %809 = vadd.xlane.f32.xlu0 %v7903_v0  ;;  %v858_v2 = vmul.f32 %v7903_v0, %v7903_v0  ;;  %v859_v3 = vmul.f32 %v7906_v1, %v7906_v1  ;;  %v7918_v5 = vld [vmem:[%s7900_s7 + $0x18] sm:$0xff]  ;;  %v860_v6 = vmul.f32 %v7915_v4, %v7915_v4  ;;  %v7927_v8 = vld [vmem:[%s7900_s7 + $0x20] sm:$0xff]  ;;  %v7930_v9 = vld [vmem:[%s7900_s7 + $0x28] sm:$0xff] }
  0x2d   : > { %v861_v7 = vmul.f32 %v7918_v5, %v7918_v5  ;;  %v862_v12 = vmul.f32 %v7927_v8, %v7927_v8  ;;  %v863_v14 = vmul.f32 %v7930_v9, %v7930_v9  ;;  %v7951_v16 = vld [vmem:[%s7900_s7 + $0x30] sm:$0xff]  ;;  %v7954_v17 = vld [vmem:[%s7900_s7 + $0x38] sm:$0xff]  ;;  %v7978_v25 = vld [vmem:[%s7900_s7 + $0x40] sm:$0xff] }
  0x2e   : > { %874 = vadd.xlane.f32.xlu1 %v858_v2  ;;  %v864_v21 = vmul.f32 %v7951_v16, %v7951_v16  ;;  %v865_v22 = vmul.f32 %v7954_v17, %v7954_v17  ;;  %v7984_v27 = vld [vmem:[%s7900_s7 + $0x48] sm:$0xff]  ;;  %v866_v31 = vmul.f32 %v7978_v25, %v7978_v25  ;;  %v8011_v36 = vld [vmem:[%s7900_s7 + $0x50] sm:$0xff]  ;;  %v8020_v39 = vld [vmem:[%s7900_s7 + $0x58] sm:$0xff] }
  0x2f   : > { %v867_v32 = vmul.f32 %v7984_v27, %v7984_v27  ;;  %v868_v41 = vmul.f32 %v8011_v36, %v8011_v36  ;;  %v869_v42 = vmul.f32 %v8020_v39, %v8020_v39  ;;  %v8038_v45 = vld [vmem:[%s7900_s7 + $0x60] sm:$0xff]  ;;  %v8044_v47 = vld [vmem:[%s7900_s7 + $0x68] sm:$0xff]  ;;  %v8062_v53 = vld [vmem:[%s7900_s7 + $0x70] sm:$0xff] }
  0x30   : > { %811 = vadd.xlane.f32.xlu0 %v7906_v1  ;;  %v6977_v10 = vld [vmem:[%s11480_s0 + $0x4] ss:$12 sps:$4 sm:$0xff]   ;;  %v6979_v11 = vld [vmem:[%s11480_s0] ss:$12 sps:$4 sm:$0xff]   ;;  %v6980_v13 = vld [vmem:[%s11480_s0 + $0x1c] ss:$12 sps:$4 sm:$0xff]   ;;  %v870_v50 = vmul.f32 %v8038_v45, %v8038_v45  ;;  %v871_v51 = vmul.f32 %v8044_v47, %v8044_v47  ;;  %v872_v55 = vmul.f32 %v8062_v53, %v8062_v53 }
  0x31   : > { %1263 = vmatprep.subr.bf16.mxu0 %v6977_v10  ;;  %v6982_v15 = vld [vmem:[%s11480_s0 + $0x18] ss:$12 sps:$4 sm:$0xff]   ;;  %v6983_v18 = vld [vmem:[%s11480_s0 + $0x34] ss:$12 sps:$4 sm:$0xff]   ;;  %v6986_v20 = vld [vmem:[%s11480_s0 + $0x30] ss:$12 sps:$4 sm:$0xff]  }
  0x32   : > { %876 = vadd.xlane.f32.xlu1 %v859_v3  ;;  %1264 = vmatpush1.bf16.msra.mxu0 %v6979_v11  ;;  %v6985_v19 = vld [vmem:[%s11480_s0 + $0x8] ss:$12 sps:$4 sm:$0xff]   ;;  %v6987_v23 = vld [vmem:[%s11480_s0 + $0x4c] ss:$12 sps:$4 sm:$0xff]   ;;  %v6991_v28 = vld [vmem:[%s11480_s0 + $0x64] ss:$12 sps:$4 sm:$0xff]  }
  0x33   : > { %1265 = vmatprep.subr.bf16.mxu0 %v6980_v13  ;;  %6688 = vmatprep.subr.bf16.mxu1 %v6985_v19  ;;  %v6989_v24 = vld [vmem:[%s11480_s0 + $0x20] ss:$12 sps:$4 sm:$0xff]   ;;  %v6990_v26 = vld [vmem:[%s11480_s0 + $0x48] ss:$12 sps:$4 sm:$0xff]   ;;  %v6993_v29 = vld [vmem:[%s11480_s0 + $0x38] ss:$12 sps:$4 sm:$0xff]  }
  0x34   : > { %813 = vadd.xlane.f32.xlu0 %v7915_v4  ;;  %6689 = vmatpush3.bf16.msra.mxu1 %v6985_v19  ;;  %v6994_v30 = vld [vmem:[%s11480_s0 + $0x60] ss:$12 sps:$4 sm:$0xff]   ;;  %v6995_v33 = vld [vmem:[%s11480_s0 + $0x7c] ss:$12 sps:$4 sm:$0xff]   ;;  %v6998_v35 = vld [vmem:[%s11480_s0 + $0x78] ss:$12 sps:$4 sm:$0xff]  }
  0x35   : > { %6690 = vmatprep.subr.bf16.mxu1 %v6989_v24  ;;  %v6997_v34 = vld [vmem:[%s11480_s0 + $0x50] ss:$12 sps:$4 sm:$0xff]   ;;  %v6999_v37 = vld [vmem:[%s11480_s0 + $0x94] ss:$12 sps:$4 sm:$0xff]   ;;  %v7003_v43 = vld [vmem:[%s11480_s0 + $0xac] ss:$12 sps:$4 sm:$0xff]  }
  0x36   : > { %815 = vadd.xlane.f32.xlu1 %v7918_v5  ;;  %1266 = vmatpush1.bf16.msra.mxu0 %v6982_v15  ;;  %v7001_v38 = vld [vmem:[%s11480_s0 + $0x68] ss:$12 sps:$4 sm:$0xff]   ;;  %v7002_v40 = vld [vmem:[%s11480_s0 + $0x90] ss:$12 sps:$4 sm:$0xff]   ;;  %v7005_v44 = vld [vmem:[%s11480_s0 + $0x80] ss:$12 sps:$4 sm:$0xff]  }
  0x37   : > { %1267 = vmatprep.subr.bf16.mxu0 %v6983_v18  ;;  %v7006_v46 = vld [vmem:[%s11480_s0 + $0xa8] ss:$12 sps:$4 sm:$0xff]   ;;  %v7007_v48 = vld [vmem:[%s11480_s0 + $0x98] ss:$12 sps:$4 sm:$0xff]   ;;  %v7008_v52 = vld [vmem:[%s11480_s0 + $0xb0] ss:$12 sps:$4 sm:$0xff]  }
  0x38   : > { %878 = vadd.xlane.f32.xlu0 %v860_v6  ;;  %6691 = vmatpush3.bf16.msra.mxu1 %v6989_v24  ;;  %v8065_v54 = vld [vmem:[%s7900_s7 + $0x78] sm:$0xff]  ;;  %s11483_s7 = sld [smem:[#allocation82_spill]] }
  0x39   : > { %6692 = vmatprep.subr.bf16.mxu1 %v6993_v29  ;;  %v873_v56 = vmul.f32 %v8065_v54, %v8065_v54 }
  0x3a   : > { %880 = vadd.xlane.f32.xlu1 %v861_v7  ;;  %1268 = vmatpush1.bf16.msra.mxu0 %v6986_v20 }
  0x3b   : > { %1269 = vmatprep.subr.bf16.mxu0 %v6987_v23 }
  0x3c   : > { %817 = vadd.xlane.f32.xlu0 %v7927_v8  ;;  %6693 = vmatpush3.bf16.msra.mxu1 %v6993_v29 }
  0x3d   : > { %6694 = vmatprep.subr.bf16.mxu1 %v6997_v34 }
  0x3e   : > { %819 = vadd.xlane.f32.xlu1 %v7930_v9  ;;  %1270 = vmatpush1.bf16.msra.mxu0 %v6990_v26 }
  0x3f   : > { %1271 = vmatprep.subr.bf16.mxu0 %v6991_v28 }
  0x40   : > { %882 = vadd.xlane.f32.xlu0 %v862_v12  ;;  %6695 = vmatpush3.bf16.msra.mxu1 %v6997_v34 }
  0x41   : > { %6696 = vmatprep.subr.bf16.mxu1 %v7001_v38 }
  0x42   : > { %884 = vadd.xlane.f32.xlu1 %v863_v14  ;;  %1272 = vmatpush1.bf16.msra.mxu0 %v6994_v30 }
  0x43   : > { %1273 = vmatprep.subr.bf16.mxu0 %v6995_v33 }
  0x44   : > { %821 = vadd.xlane.f32.xlu0 %v7951_v16  ;;  %6697 = vmatpush3.bf16.msra.mxu1 %v7001_v38 }
  0x45   : > { %6698 = vmatprep.subr.bf16.mxu1 %v7005_v44 }
  0x46   : > { %823 = vadd.xlane.f32.xlu1 %v7954_v17  ;;  %1274 = vmatpush1.bf16.msra.mxu0 %v6998_v35 }
  0x47   : > { %1275 = vmatprep.subr.bf16.mxu0 %v6999_v37 }
  0x48   : > { %886 = vadd.xlane.f32.xlu0 %v864_v21  ;;  %6699 = vmatpush3.bf16.msra.mxu1 %v7005_v44 }
  0x49   : > { %6700 = vmatprep.subr.bf16.mxu1 %v7007_v48 }
  0x4a   : > { %888 = vadd.xlane.f32.xlu1 %v865_v22  ;;  %1276 = vmatpush1.bf16.msra.mxu0 %v7002_v40 }
  0x4b   : > { %1277 = vmatprep.subr.bf16.mxu0 %v7003_v43 }
  0x4c   : > { %825 = vadd.xlane.f32.xlu0 %v7978_v25  ;;  %6701 = vmatpush3.bf16.msra.mxu1 %v7007_v48 }
  0x4d   : > { %6702 = vmatprep.subr.bf16.mxu1 %v7008_v52 }
  0x4e   : > { %827 = vadd.xlane.f32.xlu1 %v7984_v27  ;;  %1278 = vmatpush1.bf16.msra.mxu0 %v7006_v46 }
  0x50   : > { %890 = vadd.xlane.f32.xlu0 %v866_v31  ;;  %6703 = vmatpush3.bf16.msra.mxu1 %v7008_v52 }
  0x52   : > { %892 = vadd.xlane.f32.xlu1 %v867_v32 }
  0x54   : > { %829 = vadd.xlane.f32.xlu0 %v8011_v36 }
  0x56   : > { %831 = vadd.xlane.f32.xlu1 %v8020_v39 }
  0x58   : > { %894 = vadd.xlane.f32.xlu0 %v868_v41 }
  0x5a   : > { %896 = vadd.xlane.f32.xlu1 %v869_v42 }
  0x5c   : > { %833 = vadd.xlane.f32.xlu0 %v8038_v45 }
  0x5e   : > { %835 = vadd.xlane.f32.xlu1 %v8044_v47 }
  0x60   : > { %898 = vadd.xlane.f32.xlu0 %v870_v50 }
  0x62   : > { %900 = vadd.xlane.f32.xlu1 %v871_v51 }
  0x64   : > { %837 = vadd.xlane.f32.xlu0 %v8062_v53 }
  0x66   : > { %839 = vadd.xlane.f32.xlu1 %v8065_v54 }
  0x68   : > { %902 = vadd.xlane.f32.xlu0 %v872_v55 }
  0x6a   : > { %904 = vadd.xlane.f32.xlu1 %v873_v56  ;;  %v8093_v56 = vld [vmem:[%s11481_s25] ss:$0 sm:$0xff]  ;;  %s6413_s25 = sshll.u32 %s8362_s30, 7 }
  0xb9   : > { %v810_v57 = vpop.xlane.xlu0 %809 }
  0xba   : > { %v842_v58 = vmul.f32 0.0078125, %v810_v57 }
  0xbb   : > { %v875_v59 = vpop.xlane.xlu1 %874 }
  0xbc   : > { %v922_v60 = vmul.f32 %v842_v58, %v842_v58  ;;  %v906_v61 = vmul.f32 0.0078125, %v875_v59  ;;  %v970_v40 = vsub.f32 %v7903_v0, %v842_v58 }
  0xbd   : > { %v812_v62 = vpop.xlane.xlu0 %811 }
  0xbe   : > { %v938_v63 = vsub.f32 %v906_v61, %v922_v60  ;;  %v843_v2 = vmul.f32 0.0078125, %v812_v62 }
  0xbf   : > { %v877_v3 = vpop.xlane.xlu1 %876 }
  0xc0   : > { %v954_v6 = vmax.f32 %v938_v63, 0.0  ;;  %v923_v7 = vmul.f32 %v843_v2, %v843_v2  ;;  %v907_v10 = vmul.f32 0.0078125, %v877_v3  ;;  %v971_v0 = vsub.f32 %v7906_v1, %v843_v2 }
  0xc1   : > { %v814_v11 = vpop.xlane.xlu0 %813 }
  0xc2   : > { %v986_v12 = vadd.f32 1e-12, %v954_v6  ;;  %v939_v13 = vsub.f32 %v907_v10, %v923_v7  ;;  %v8073_v14 = vmul.f32 0.0078125, %v814_v11  ;;  %v8104_v11 = vld [vmem:[%s11482_s4] ss:$0 sm:$0xff]  ;;  %s11484_s4 = sld [smem:[#allocation77_spill]] }
  0xc3   : > { %v816_v15 = vpop.xlane.xlu1 %815 }
  0xc4   : > { %7121 = vrsqrt.f32 %v986_v12  ;;  %v955_v18 = vmax.f32 %v939_v13, 0.0  ;;  %v924_v19 = vmul.f32 %v8073_v14, %v8073_v14  ;;  %v8077_v20 = vmul.f32 0.0078125, %v816_v15 }
  0xc5   : > { %v879_v21 = vpop.xlane.xlu0 %878 }
  0xc6   : > { %v987_v22 = vadd.f32 1e-12, %v955_v18  ;;  %v908_v23 = vmul.f32 0.0078125, %v879_v21  ;;  %v925_v26 = vmul.f32 %v8077_v20, %v8077_v20  ;;  %v972_v18 = vsub.f32 %v7915_v4, %v8073_v14 }
  0xc7   : > { %v881_v24 = vpop.xlane.xlu1 %880 }
  0xc8   : > { %7123 = vrsqrt.f32 %v987_v22  ;;  %v940_v28 = vsub.f32 %v908_v23, %v924_v19  ;;  %v909_v29 = vmul.f32 0.0078125, %v881_v24  ;;  %s8368_s1 = scalar_lea.vmem %s11484_s4, %s6413_s25  ;;  %s11485_s25 = sld [smem:[#allocation83_spill]] }
  0xc9   : > { %v818_v30 = vpop.xlane.xlu0 %817 }
  0xca   : > { %v956_v31 = vmax.f32 %v940_v28, 0.0  ;;  %v941_v32 = vsub.f32 %v909_v29, %v925_v26  ;;  %v8081_v33 = vmul.f32 0.0078125, %v818_v30  ;;  %v973_v29 = vsub.f32 %v7918_v5, %v8077_v20 }
  0xcb   : > { %v820_v34 = vpop.xlane.xlu1 %819 }
  0xcc   : > { %v988_v35 = vadd.f32 1e-12, %v956_v31  ;;  %v957_v37 = vmax.f32 %v941_v32, 0.0  ;;  %v926_v38 = vmul.f32 %v8081_v33, %v8081_v33  ;;  %v8086_v41 = vmul.f32 0.0078125, %v820_v34 }
  0xcd   : > { %v883_v42 = vpop.xlane.xlu0 %882 }
  0xce   : > { %v7122_v43 = vpop.eup %7121  ;;  %7125 = vrsqrt.f32 %v988_v35  ;;  %v989_v44 = vadd.f32 1e-12, %v957_v37  ;;  %v910_v46 = vmul.f32 0.0078125, %v883_v42  ;;  %v927_v51 = vmul.f32 %v8086_v41, %v8086_v41 }
  0xcf   : > { %v885_v48 = vpop.xlane.xlu1 %884  ;;  %v1018_v50 = vmul.f32 %v7122_v43, %v970_v40 }
  0xd0   : > { %7127 = vrsqrt.f32 %v989_v44  ;;  %v942_v52 = vsub.f32 %v910_v46, %v926_v38  ;;  %v911_v55 = vmul.f32 0.0078125, %v885_v48 }
  0xd1   : > { %v822_v57 = vpop.xlane.xlu0 %821  ;;  %v1040_v3 = vmul.f32 %v8093_v56, %v1018_v50 }
  0xd2   : > { %v7124_v58 = vpop.eup %7123  ;;  %v958_v59 = vmax.f32 %v942_v52, 0.0  ;;  %v943_v60 = vsub.f32 %v911_v55, %v927_v51  ;;  %v8096_v61 = vmul.f32 0.0078125, %v822_v57  ;;  %v974_v51 = vsub.f32 %v7927_v8, %v8081_v33 }
  0xd3   : > { %v824_v62 = vpop.xlane.xlu1 %823  ;;  %v1019_v63 = vmul.f32 %v7124_v58, %v971_v0  ;;  %v8112_v21 = vadd.f32 %v8104_v11, %v1040_v3 }
  0xd4   : > { %v990_v6 = vadd.f32 1e-12, %v958_v59  ;;  %v959_v7 = vmax.f32 %v943_v60, 0.0  ;;  %v928_v10 = vmul.f32 %v8096_v61, %v8096_v61  ;;  %v8106_v1 = vmul.f32 0.0078125, %v824_v62 }
  0xd5   : > { %v887_v2 = vpop.xlane.xlu0 %886  ;;  %v1041_v12 = vmul.f32 %v8093_v56, %v1019_v63  ;;  %v975_v62 = vsub.f32 %v7930_v9, %v8086_v41 }
  0xd6   : > { %7129 = vrsqrt.f32 %v990_v6  ;;  %v991_v13 = vadd.f32 1e-12, %v959_v7  ;;  %v912_v15 = vmul.f32 0.0078125, %v887_v2  ;;  %v929_v24 = vmul.f32 %v8106_v1, %v8106_v1 }
  0xd7   : > { %v889_v19 = vpop.xlane.xlu1 %888  ;;  %v8115_v22 = vadd.f32 %v8104_v11, %v1041_v12 }
  0xd8   : > { %v7126_v23 = vpop.eup %7125  ;;  %7131 = vrsqrt.f32 %v991_v13  ;;  %v944_v26 = vsub.f32 %v912_v15, %v928_v10  ;;  %v913_v28 = vmul.f32 0.0078125, %v889_v19 }
  0xd9   : > { %v826_v30 = vpop.xlane.xlu0 %825  ;;  %v1111_v4 = vpack.c.bf16 %v8115_v22, %v8112_v21  ;;  %v1020_v14 = vmul.f32 %v7126_v23, %v972_v18 }
  0xda   : > { %v7128_v31 = vpop.eup %7127  ;;  %v960_v32 = vmax.f32 %v944_v26, 0.0  ;;  %v945_v34 = vsub.f32 %v913_v28, %v929_v24  ;;  %v8123_v35 = vmul.f32 0.0078125, %v826_v30  ;;  %v976_v28 = vsub.f32 %v7951_v16, %v8096_v61 }
  0xdb   : > { %1296 = vmatmul.mubr.bf16.vlgmr.msra.gmra.mrb[0].mxu0 %v1111_v4  ;;  %6704 = vmatprep.mubr.bf16.mxu1 %v1111_v4  ;;  %v828_v37 = vpop.xlane.xlu1 %827  ;;  %v1021_v38 = vmul.f32 %v7128_v31, %v973_v29  ;;  %v1042_v40 = vmul.f32 %v8093_v56, %v1020_v14 }
  0xdc   : > { %v992_v42 = vadd.f32 1e-12, %v960_v32  ;;  %v961_v43 = vmax.f32 %v945_v34, 0.0  ;;  %v930_v5 = vmul.f32 %v8123_v35, %v8123_v35  ;;  %1305 = vmatprep.mubr.bf16.mxu0 %v7713_v49  ;;  %v8129_v20 = vmul.f32 0.0078125, %v828_v37 }
  0xdd   : > { %v891_v44 = vpop.xlane.xlu0 %890  ;;  %v1043_v46 = vmul.f32 %v8093_v56, %v1021_v38  ;;  %v8135_v55 = vadd.f32 %v8104_v11, %v1042_v40  ;;  %v977_v37 = vsub.f32 %v7954_v17, %v8106_v1 }
  0xde   : > { %7133 = vrsqrt.f32 %v992_v42  ;;  %v993_v48 = vadd.f32 1e-12, %v961_v43  ;;  %v914_v50 = vmul.f32 0.0078125, %v891_v44  ;;  %v931_v58 = vmul.f32 %v8129_v20, %v8129_v20 }
  0xdf   : > { %v893_v52 = vpop.xlane.xlu1 %892  ;;  %v8138_v0 = vadd.f32 %v8104_v11, %v1043_v46 }
  0xe0   : > { %v7130_v57 = vpop.eup %7129  ;;  %7135 = vrsqrt.f32 %v993_v48  ;;  %v946_v59 = vsub.f32 %v914_v50, %v930_v5  ;;  %v915_v60 = vmul.f32 0.0078125, %v893_v52 }
  0xe1   : > { %v830_v63 = vpop.xlane.xlu0 %829  ;;  %v1112_v8 = vpack.c.bf16 %v8138_v0, %v8135_v55  ;;  %v1022_v33 = vmul.f32 %v7130_v57, %v974_v51 }
  0xe2   : > { %v7132_v3 = vpop.eup %7131  ;;  %v962_v6 = vmax.f32 %v946_v59, 0.0  ;;  %v947_v7 = vsub.f32 %v915_v60, %v931_v58  ;;  %v8146_v10 = vmul.f32 0.0078125, %v830_v63  ;;  %v978_v60 = vsub.f32 %v7978_v25, %v8123_v35 }
  0xe3   : > { %1306 = vmatmul.mubr.bf16.gmra.mrb[4].mxu0 %v1112_v8  ;;  %6705 = vmatmul.mubr.bf16.vlgmr.msra.gmra.mrb[0].mxu1 %v1112_v8  ;;  %v832_v2 = vpop.xlane.xlu1 %831  ;;  %v1023_v12 = vmul.f32 %v7132_v3, %v975_v62  ;;  %v1044_v13 = vmul.f32 %v8093_v56, %v1022_v33 }
  0xe4   : > { %v994_v15 = vadd.f32 1e-12, %v962_v6  ;;  %v963_v18 = vmax.f32 %v947_v7, 0.0  ;;  %v932_v9 = vmul.f32 %v8146_v10, %v8146_v10  ;;  %1315 = vmatprep.mubr.bf16.mxu0 %v7713_v49  ;;  %v8152_v41 = vmul.f32 0.0078125, %v832_v2 }
  0xe5   : > { %v895_v19 = vpop.xlane.xlu0 %894  ;;  %v1045_v23 = vmul.f32 %v8093_v56, %v1023_v12  ;;  %v8158_v30 = vadd.f32 %v8104_v11, %v1044_v13  ;;  %v979_v2 = vsub.f32 %v7984_v27, %v8129_v20 }
  0xe6   : > { %7137 = vrsqrt.f32 %v994_v15  ;;  %v995_v24 = vadd.f32 1e-12, %v963_v18  ;;  %v916_v26 = vmul.f32 0.0078125, %v895_v19  ;;  %v933_v31 = vmul.f32 %v8152_v41, %v8152_v41 }
  0xe7   : > { %v897_v29 = vpop.xlane.xlu1 %896  ;;  %v8161_v4 = vadd.f32 %v8104_v11, %v1045_v23 }
  0xe8   : > { %v7134_v14 = vpop.eup %7133  ;;  %7139 = vrsqrt.f32 %v995_v24  ;;  %v948_v32 = vsub.f32 %v916_v26, %v932_v9  ;;  %v917_v34 = vmul.f32 0.0078125, %v897_v29 }
  0xe9   : > { %v834_v38 = vpop.xlane.xlu0 %833  ;;  %v1113_v16 = vpack.c.bf16 %v8161_v4, %v8158_v30  ;;  %v1024_v61 = vmul.f32 %v7134_v14, %v976_v28 }
  0xea   : > { %v7136_v40 = vpop.eup %7135  ;;  %v964_v42 = vmax.f32 %v948_v32, 0.0  ;;  %v949_v43 = vsub.f32 %v917_v34, %v933_v31  ;;  %v8169_v5 = vmul.f32 0.0078125, %v834_v38  ;;  %v980_v34 = vsub.f32 %v8011_v36, %v8146_v10 }
  0xeb   : > { %1316 = vmatmul.mubr.bf16.gmra.mrb[8].mxu0 %v1113_v16  ;;  %6708 = vmatprep.mubr.bf16.mxu1 %v1113_v16  ;;  %v836_v44 = vpop.xlane.xlu1 %835  ;;  %v1025_v46 = vmul.f32 %v7136_v40, %v977_v37  ;;  %v1046_v48 = vmul.f32 %v8093_v56, %v1024_v61 }
  0xec   : > { %v996_v50 = vadd.f32 1e-12, %v964_v42  ;;  %v965_v51 = vmax.f32 %v949_v43, 0.0  ;;  %v934_v17 = vmul.f32 %v8169_v5, %v8169_v5  ;;  %1325 = vmatprep.mubr.bf16.mxu0 %v7713_v49  ;;  %v8175_v1 = vmul.f32 0.0078125, %v836_v44 }
  0xed   : > { %v899_v52 = vpop.xlane.xlu0 %898  ;;  %v1047_v57 = vmul.f32 %v8093_v56, %v1025_v46  ;;  %v8181_v63 = vadd.f32 %v8104_v11, %v1046_v48  ;;  %v981_v44 = vsub.f32 %v8020_v39, %v8152_v41  ;;  %v982_v41 = vsub.f32 %v8038_v45, %v8169_v5 }
  0xee   : > { %7141 = vrsqrt.f32 %v996_v50  ;;  %v997_v58 = vadd.f32 1e-12, %v965_v51  ;;  %v918_v59 = vmul.f32 0.0078125, %v899_v52  ;;  %v935_v3 = vmul.f32 %v8175_v1, %v8175_v1 }
  0xef   : > { %v901_v62 = vpop.xlane.xlu1 %900  ;;  %v8184_v8 = vadd.f32 %v8104_v11, %v1047_v57 }
  0xf0   : > { %v7138_v33 = vpop.eup %7137  ;;  %7143 = vrsqrt.f32 %v997_v58  ;;  %v950_v6 = vsub.f32 %v918_v59, %v934_v17  ;;  %v919_v7 = vmul.f32 0.0078125, %v901_v62 }
  0xf1   : > { %v838_v12 = vpop.xlane.xlu0 %837  ;;  %v1114_v25 = vpack.c.bf16 %v8184_v8, %v8181_v63  ;;  %v1026_v35 = vmul.f32 %v7138_v33, %v978_v60  ;;  %v983_v33 = vsub.f32 %v8044_v47, %v8175_v1 }
  0xf2   : > { %v7140_v13 = vpop.eup %7139  ;;  %v966_v15 = vmax.f32 %v950_v6, 0.0  ;;  %v951_v18 = vsub.f32 %v919_v7, %v935_v3  ;;  %v8192_v9 = vmul.f32 0.0078125, %v838_v12 }
  0xf3   : > { %1326 = vmatmul.mubr.bf16.gmra.mrb[12].mxu0 %v1114_v25  ;;  %6709 = vmatmul.mubr.bf16.gmra.mrb[4].mxu1 %v1114_v25  ;;  %v840_v19 = vpop.xlane.xlu1 %839  ;;  %v1027_v23 = vmul.f32 %v7140_v13, %v979_v2  ;;  %v1048_v24 = vmul.f32 %v8093_v56, %v1026_v35 }
  0xf4   : > { %v998_v26 = vadd.f32 1e-12, %v966_v15  ;;  %v967_v28 = vmax.f32 %v951_v18, 0.0  ;;  %v936_v27 = vmul.f32 %v8192_v9, %v8192_v9  ;;  %1335 = vmatprep.mubr.bf16.mxu0 %v7713_v49  ;;  %v857_v20 = vmul.f32 0.0078125, %v840_v19 }
  0xf5   : > { %v903_v29 = vpop.xlane.xlu0 %902  ;;  %v1049_v14 = vmul.f32 %v8093_v56, %v1027_v23  ;;  %v8202_v38 = vadd.f32 %v8104_v11, %v1048_v24  ;;  %v984_v12 = vsub.f32 %v8062_v53, %v8192_v9 }
  0xf6   : > { %7145 = vrsqrt.f32 %v998_v26  ;;  %v999_v31 = vadd.f32 1e-12, %v967_v28  ;;  %v920_v32 = vmul.f32 0.0078125, %v903_v29  ;;  %v937_v40 = vmul.f32 %v857_v20, %v857_v20 }
  0xf7   : > { %v905_v37 = vpop.xlane.xlu1 %904  ;;  %v8205_v16 = vadd.f32 %v8104_v11, %v1049_v14  ;;  %v985_v35 = vsub.f32 %v8065_v54, %v857_v20  ;;  %v11381_v26 = vlaneseq }
  0xf8   : > { %v7142_v61 = vpop.eup %7141  ;;  %7147 = vrsqrt.f32 %v999_v31  ;;  %v952_v42 = vsub.f32 %v920_v32, %v936_v27  ;;  %v921_v43 = vmul.f32 0.0078125, %v905_v37 }
  0xf9   : > { %v1115_v46 = vpack.c.bf16 %v8205_v16, %v8202_v38  ;;  %v1028_v48 = vmul.f32 %v7142_v61, %v980_v34  ;;  %v8252_v28 = vshrl.u32 %v11381_v26, 7 }
  0xfa   : > { %v7144_v36 = vpop.eup %7143  ;;  %v968_v10 = vmax.f32 %v952_v42, 0.0  ;;  %v953_v50 = vsub.f32 %v921_v43, %v937_v40 }
  0xfb   : > { %1336 = vmatmul.mubr.bf16.gmra.mrb[16].mxu0 %v1115_v46  ;;  %6712 = vmatprep.mubr.bf16.mxu1 %v1115_v46  ;;  %v1029_v51 = vmul.f32 %v7144_v36, %v981_v44  ;;  %v1050_v17 = vmul.f32 %v8093_v56, %v1028_v48  ;;  %v1122_v27 = vsub.s32 0, %v8252_v28  ;;  %v1126_v20 = vsub.s32 1, %v8252_v28 }
  0xfc   : > { %v1000_v52 = vadd.f32 1e-12, %v968_v10  ;;  %v969_v57 = vmax.f32 %v953_v50, 0.0  ;;  %1345 = vmatprep.mubr.bf16.mxu0 %v7713_v49  ;;  %v1130_v40 = vsub.s32 2, %v8252_v28 }
  0xfd   : > { %v1051_v58 = vmul.f32 %v8093_v56, %v1029_v51  ;;  %v8217_v59 = vadd.f32 %v8104_v11, %v1050_v17 }
  0xfe   : > { %7149 = vrsqrt.f32 %v1000_v52  ;;  %v1001_v39 = vadd.f32 1e-12, %v969_v57 }
  0xff   : > { %v8220_v60 = vadd.f32 %v8104_v11, %v1051_v58 }
 0x100   : > { %v7146_v62 = vpop.eup %7145  ;;  %7151 = vrsqrt.f32 %v1001_v39 }
 0x101   : > { %v1116_v3 = vpack.c.bf16 %v8220_v60, %v8217_v59  ;;  %v1030_v6 = vmul.f32 %v7146_v62, %v982_v41 }
 0x102   : > { %v7148_v7 = vpop.eup %7147 }
 0x103   : > { %1346 = vmatmul.mubr.bf16.gmra.mrb[20].mxu0 %v1116_v3  ;;  %6713 = vmatmul.mubr.bf16.gmra.mrb[8].mxu1 %v1116_v3  ;;  %v1031_v2 = vmul.f32 %v7148_v7, %v983_v33  ;;  %v1052_v45 = vmul.f32 %v8093_v56, %v1030_v6 }
 0x104   : > { %1355 = vmatprep.mubr.bf16.mxu0 %v7713_v49 }
 0x105   : > { %v1053_v5 = vmul.f32 %v8093_v56, %v1031_v2  ;;  %v8232_v25 = vadd.f32 %v8104_v11, %v1052_v45 }
 0x107   : > { %v8235_v47 = vadd.f32 %v8104_v11, %v1053_v5 }
 0x108   : > { %v7150_v1 = vpop.eup %7149 }
 0x109   : > { %v1117_v13 = vpack.c.bf16 %v8235_v47, %v8232_v25  ;;  %v1032_v15 = vmul.f32 %v7150_v1, %v984_v12 }
 0x10a   : > { %v7152_v18 = vpop.eup %7151 }
 0x10b   : > { %1356 = vmatmul.mubr.bf16.gmra.mrb[24].mxu0 %v1117_v13  ;;  %6716 = vmatprep.mubr.bf16.mxu1 %v1117_v13  ;;  %v1033_v19 = vmul.f32 %v7152_v18, %v985_v35  ;;  %v1054_v23 = vmul.f32 %v8093_v56, %v1032_v15 }
 0x10c   : > { %1365 = vmatprep.mubr.bf16.mxu0 %v7713_v49 }
 0x10d   : > { %v1055_v53 = vmul.f32 %v8093_v56, %v1033_v19  ;;  %v8244_v9 = vadd.f32 %v8104_v11, %v1054_v23  ;;  %v1110_v56 = vld [vmem:[%s11483_s7] sm:$0x7] }
 0x10e   : > { %v8265_v14 = vrot.slane %v1110_v56, %v1126_v20  ;;  %v8274_v48 = vrot.slane %v1110_v56, %v1130_v40 }
 0x10f   : > { %v8247_v24 = vadd.f32 %v8104_v11, %v1055_v53  ;;  %v8261_v11 = vrot.slane %v1110_v56, %v1122_v27 }
 0x111   : > { %v1118_v54 = vpack.c.bf16 %v8247_v24, %v8244_v9 }
 0x113   : > { %1366 = vmatmul.mubr.bf16.gmra.mrb[28].mxu0 %v1118_v54  ;;  %6717 = vmatmul.mubr.bf16.gmra.mrb[12].mxu1 %v1118_v54 }
 0x1ae   : > { %v1297_v29 = vpop.f32.mrb[0].mxu0 }
 0x1af   : > { %v1299_v31 = vpop.f32.mrb[1].mxu0  ;;  %v1298_v34 = vadd.f32 %v1297_v29, %v8261_v11 }
 0x1b0   : > { %v1301_v32 = vpop.f32.mrb[2].mxu0  ;;  %v1300_v42 = vadd.f32 %v1299_v31, %v8265_v14 }
 0x1b1   : > { %v1302_v37 = vadd.f32 %v1301_v32, %v8261_v11  ;;  %v1303_v61 = vpop.f32.mrb[3].mxu0 }
 0x1b2   : > { %v1304_v43 = vadd.f32 %v1303_v61, %v8265_v14 }
 0x1b3   : > { %v1473_v44 = vpack.c.bf16 %v1302_v37, %v1298_v34 }
 0x1b4   : > { %v1481_v46 = vpack.c.bf16 %v1304_v43, %v1300_v42 }
 0x1b5   : > { %6736 = vmatprep.mubr.bf16.mxu0 %v1473_v44 }
 0x1b6   : > { %v1307_v36 = vpop.f32.mrb[4].mxu0  ;;  %v6706_v10 = vpop.f32.mrb[0].mxu1  ;;  %6720 = vmatprep.subr.bf16.mxu0 %v1481_v46 }
 0x1b7   : > { %v8277_v50 = vadd.f32 %v1307_v36, %v8261_v11  ;;  %v1309_v51 = vpop.f32.mrb[5].mxu0  ;;  %v1410_v17 = vpop.f32.mrb[1].mxu1  ;;  %6721 = vmatpush3.bf16.xpose.msra.mxu0 %v1481_v46  ;;  %v1419_v58 = vadd.f32 %v6706_v10, %v8274_v48 }
 0x1b8   : > { %v1311_v52 = vpop.f32.mrb[6].mxu0  ;;  %v6707_v57 = vpop.f32.mrb[2].mxu1  ;;  %v1310_v3 = vadd.f32 %v1309_v51, %v8265_v14  ;;  %v1411_v6 = vadd.f32 %v1410_v17, %v8274_v48 }
 0x1b9   : > { %v8281_v39 = vadd.f32 %v1311_v52, %v8261_v11  ;;  %v1422_v41 = vadd.f32 %v6707_v57, %v8274_v48  ;;  %v1313_v62 = vpop.f32.mrb[7].mxu0  ;;  %v1413_v33 = vpop.f32.mrb[3].mxu1 }
 0x1ba   : > { %v1314_v7 = vadd.f32 %v1313_v62, %v8265_v14  ;;  %v1414_v2 = vadd.f32 %v1413_v33, %v8274_v48 }
 0x1bb   : > { %v1474_v45 = vpack.c.bf16 %v8281_v39, %v8277_v50  ;;  %v1787_v5 = vpack.c.bf16 %v1422_v41, %v1419_v58 }
 0x1bc   : > { %v1482_v12 = vpack.c.bf16 %v1314_v7, %v1310_v3  ;;  %v1786_v1 = vpack.c.bf16 %v1414_v2, %v1411_v6 }
 0x1be   : > { %v1317_v35 = vpop.f32.mrb[8].mxu0  ;;  %6722 = vmatprep.subr.bf16.mxu0 %v1482_v12  ;;  %6752 = vmatprep.subr.bf16.mxu1 %v1786_v1 }
 0x1bf   : > { %v8291_v13 = vadd.f32 %v1317_v35, %v8261_v11  ;;  %v1319_v15 = vpop.f32.mrb[9].mxu0  ;;  %6723 = vmatpush3.bf16.xpose.msra.mxu0 %v1482_v12  ;;  %6753 = vmatpush3.bf16.msra.mxu1 %v1786_v1 }
 0x1c0   : > { %v1321_v18 = vpop.f32.mrb[10].mxu0  ;;  %6754 = vmatprep.subr.bf16.mxu1 %v1787_v5  ;;  %v1320_v53 = vadd.f32 %v1319_v15, %v8265_v14 }
 0x1c1   : > { %v8294_v19 = vadd.f32 %v1321_v18, %v8261_v11  ;;  %v1323_v23 = vpop.f32.mrb[11].mxu0 }
 0x1c2   : > { %v1324_v54 = vadd.f32 %v1323_v23, %v8265_v14 }
 0x1c3   : > { %v1475_v56 = vpack.c.bf16 %v8294_v19, %v8291_v13  ;;  %6755 = vmatpush3.bf16.msra.mxu1 %v1787_v5  ;;  %v1603_v13 = vld [vmem:[%s8368_s1 + $0x8] sm:$0xff] }
 0x1c4   : > { %v1483_v29 = vpack.c.bf16 %v1324_v54, %v1320_v53 }
 0x1c6   : > { %v1327_v31 = vpop.f32.mrb[12].mxu0  ;;  %v6710_v32 = vpop.f32.mrb[4].mxu1  ;;  %6724 = vmatprep.subr.bf16.mxu0 %v1483_v29 }
 0x1c7   : > { %v8301_v34 = vadd.f32 %v1327_v31, %v8261_v11  ;;  %v1329_v37 = vpop.f32.mrb[13].mxu0  ;;  %v1426_v61 = vpop.f32.mrb[5].mxu1  ;;  %6725 = vmatpush3.bf16.xpose.msra.mxu0 %v1483_v29  ;;  %v1435_v44 = vadd.f32 %v6710_v32, %v8274_v48 }
 0x1c8   : > { %v1331_v42 = vpop.f32.mrb[14].mxu0  ;;  %v6711_v43 = vpop.f32.mrb[6].mxu1  ;;  %v1330_v17 = vadd.f32 %v1329_v37, %v8265_v14  ;;  %v1427_v52 = vadd.f32 %v1426_v61, %v8274_v48 }
 0x1c9   : > { %v8305_v46 = vadd.f32 %v1331_v42, %v8261_v11  ;;  %v1438_v36 = vadd.f32 %v6711_v43, %v8274_v48  ;;  %v1333_v10 = vpop.f32.mrb[15].mxu0  ;;  %v1429_v51 = vpop.f32.mrb[7].mxu1 }
 0x1ca   : > { %v1334_v57 = vadd.f32 %v1333_v10, %v8265_v14  ;;  %v1430_v58 = vadd.f32 %v1429_v51, %v8274_v48 }
 0x1cb   : > { %v1476_v41 = vpack.c.bf16 %v8305_v46, %v8301_v34  ;;  %v1789_v62 = vpack.c.bf16 %v1438_v36, %v1435_v44  ;;  %v1604_v46 = vld [vmem:[%s8368_s1 + $0x10] sm:$0xff] }
 0x1cc   : > { %v1484_v33 = vpack.c.bf16 %v1334_v57, %v1330_v17  ;;  %v1788_v3 = vpack.c.bf16 %v1430_v58, %v1427_v52 }
 0x1ce   : > { %v1337_v6 = vpop.f32.mrb[16].mxu0  ;;  %6726 = vmatprep.subr.bf16.mxu0 %v1484_v33  ;;  %6756 = vmatprep.subr.bf16.mxu1 %v1788_v3 }
 0x1cf   : > { %v8315_v7 = vadd.f32 %v1337_v6, %v8261_v11  ;;  %v1339_v2 = vpop.f32.mrb[17].mxu0  ;;  %6727 = vmatpush3.bf16.xpose.msra.mxu0 %v1484_v33  ;;  %6757 = vmatpush3.bf16.msra.mxu1 %v1788_v3 }
 0x1d0   : > { %v1341_v5 = vpop.f32.mrb[18].mxu0  ;;  %6758 = vmatprep.subr.bf16.mxu1 %v1789_v62  ;;  %v1340_v35 = vadd.f32 %v1339_v2, %v8265_v14 }
 0x1d1   : > { %v8318_v12 = vadd.f32 %v1341_v5, %v8261_v11  ;;  %v1343_v1 = vpop.f32.mrb[19].mxu0 }
 0x1d2   : > { %v1344_v15 = vadd.f32 %v1343_v1, %v8265_v14 }
 0x1d3   : > { %v1477_v18 = vpack.c.bf16 %v8318_v12, %v8315_v7  ;;  %6759 = vmatpush3.bf16.msra.mxu1 %v1789_v62  ;;  %v1605_v12 = vld [vmem:[%s8368_s1 + $0x18] sm:$0xff] }
 0x1d4   : > { %v1485_v23 = vpack.c.bf16 %v1344_v15, %v1340_v35 }
 0x1d6   : > { %v1347_v53 = vpop.f32.mrb[20].mxu0  ;;  %v6714_v54 = vpop.f32.mrb[8].mxu1  ;;  %6728 = vmatprep.subr.bf16.mxu0 %v1485_v23 }
 0x1d7   : > { %v8325_v29 = vadd.f32 %v1347_v53, %v8261_v11  ;;  %v1349_v31 = vpop.f32.mrb[21].mxu0  ;;  %v1442_v32 = vpop.f32.mrb[9].mxu1  ;;  %6729 = vmatpush3.bf16.xpose.msra.mxu0 %v1485_v23  ;;  %v1451_v42 = vadd.f32 %v6714_v54, %v8274_v48 }
 0x1d8   : > { %v1351_v37 = vpop.f32.mrb[22].mxu0  ;;  %v6715_v61 = vpop.f32.mrb[10].mxu1  ;;  %v1350_v51 = vadd.f32 %v1349_v31, %v8265_v14  ;;  %v1443_v17 = vadd.f32 %v1442_v32, %v8274_v48 }
 0x1d9   : > { %v1352_v43 = vadd.f32 %v1351_v37, %v8261_v11  ;;  %v1454_v44 = vadd.f32 %v6715_v61, %v8274_v48  ;;  %v1353_v36 = vpop.f32.mrb[23].mxu0  ;;  %v1445_v10 = vpop.f32.mrb[11].mxu1 }
 0x1da   : > { %v1354_v52 = vadd.f32 %v1353_v36, %v8265_v14  ;;  %v1446_v57 = vadd.f32 %v1445_v10, %v8274_v48 }
 0x1db   : > { %v1478_v58 = vpack.c.bf16 %v1352_v43, %v8325_v29  ;;  %v1791_v62 = vpack.c.bf16 %v1454_v44, %v1451_v42 }
 0x1dc   : > { %v1486_v33 = vpack.c.bf16 %v1354_v52, %v1350_v51  ;;  %v1790_v3 = vpack.c.bf16 %v1446_v57, %v1443_v17 }
 0x1de   : > { %v1357_v6 = vpop.f32.mrb[24].mxu0  ;;  %6730 = vmatprep.subr.bf16.mxu0 %v1486_v33  ;;  %6760 = vmatprep.subr.bf16.mxu1 %v1790_v3 }
 0x1df   : > { %v1358_v2 = vadd.f32 %v1357_v6, %v8261_v11  ;;  %v1359_v5 = vpop.f32.mrb[25].mxu0  ;;  %6731 = vmatpush3.bf16.xpose.msra.mxu0 %v1486_v33  ;;  %6761 = vmatpush3.bf16.msra.mxu1 %v1790_v3 }
 0x1e0   : > { %v1361_v1 = vpop.f32.mrb[26].mxu0  ;;  %6762 = vmatprep.subr.bf16.mxu1 %v1791_v62  ;;  %v1360_v23 = vadd.f32 %v1359_v5, %v8265_v14 }
 0x1e1   : > { %v1362_v35 = vadd.f32 %v1361_v1, %v8261_v11  ;;  %v1363_v15 = vpop.f32.mrb[27].mxu0 }
 0x1e2   : > { %v1364_v53 = vadd.f32 %v1363_v15, %v8265_v14  ;;  %v1606_v15 = vld [vmem:[%s8368_s1 + $0x20] sm:$0xff] }
 0x1e3   : > { %v1479_v54 = vpack.c.bf16 %v1362_v35, %v1358_v2  ;;  %6763 = vmatpush3.bf16.msra.mxu1 %v1791_v62 }
 0x1e4   : > { %v1487_v29 = vpack.c.bf16 %v1364_v53, %v1360_v23 }
 0x1e6   : > { %v1367_v31 = vpop.f32.mrb[28].mxu0  ;;  %v6718_v32 = vpop.f32.mrb[12].mxu1  ;;  %6732 = vmatprep.subr.bf16.mxu0 %v1487_v29 }
 0x1e7   : > { %v1368_v37 = vadd.f32 %v1367_v31, %v8261_v11  ;;  %v1369_v61 = vpop.f32.mrb[29].mxu0  ;;  %v1458_v42 = vpop.f32.mrb[13].mxu1  ;;  %6733 = vmatpush3.bf16.xpose.msra.mxu0 %v1487_v29  ;;  %v1467_v36 = vadd.f32 %v6718_v32, %v8274_v48  ;;  %v1607_v31 = vld [vmem:[%s8368_s1 + $0x28] sm:$0xff] }
 0x1e8   : > { %v1371_v43 = vpop.f32.mrb[30].mxu0  ;;  %v6719_v44 = vpop.f32.mrb[14].mxu1  ;;  %v1370_v57 = vadd.f32 %v1369_v61, %v8265_v14  ;;  %v1459_v62 = vadd.f32 %v1458_v42, %v8274_v48  ;;  %v1608_v42 = vld [vmem:[%s8368_s1 + $0x30] sm:$0xff] }
 0x1e9   : > { %v1372_v10 = vadd.f32 %v1371_v43, %v8261_v11  ;;  %v1470_v51 = vadd.f32 %v6719_v44, %v8274_v48  ;;  %v1373_v17 = vpop.f32.mrb[31].mxu0  ;;  %v1461_v52 = vpop.f32.mrb[15].mxu1 }
 0x1ea   : > { %v1374_v33 = vadd.f32 %v1373_v17, %v8265_v14  ;;  %v1462_v3 = vadd.f32 %v1461_v52, %v8274_v48  ;;  %v1602_v48 = vld [vmem:[%s8368_s1] sm:$0xff] }
 0x1eb   : > { %v1480_v6 = vpack.c.bf16 %v1372_v10, %v1368_v37  ;;  %v1793_v2 = vpack.c.bf16 %v1470_v51, %v1467_v36  ;;  %v1609_v36 = vld [vmem:[%s8368_s1 + $0x38] sm:$0xff]  ;;  %v1610_v52 = vld [vmem:[%s8368_s1 + $0x40] sm:$0xff] }
 0x1ec   : > { %v1488_v5 = vpack.c.bf16 %v1374_v33, %v1370_v57  ;;  %v1792_v1 = vpack.c.bf16 %v1462_v3, %v1459_v62 }
 0x1ee   : > { %6734 = vmatprep.subr.bf16.mxu0 %v1488_v5  ;;  %6764 = vmatprep.subr.bf16.mxu1 %v1792_v1 }
 0x1ef   : > { %6735 = vmatpush3.bf16.xpose.msra.mxu0 %v1488_v5  ;;  %6765 = vmatpush3.bf16.msra.mxu1 %v1792_v1 }
 0x1f0   : > { %6766 = vmatprep.subr.bf16.mxu1 %v1793_v2 }
 0x1f3   : > { %6767 = vmatpush3.bf16.msra.mxu1 %v1793_v2 }
 0x1f6   : > { %6737 = vmatmul.mubr.bf16.vlgmr.msra.gmra.mrb[32].mxu0 %v1474_v45 }
 0x1f7   : > { %6740 = vmatprep.mubr.bf16.mxu0 %v1475_v56 }
 0x1fe   : > { %6741 = vmatmul.mubr.bf16.gmra.mrb[36].mxu0 %v1476_v41 }
 0x1ff   : > { %6744 = vmatprep.mubr.bf16.mxu0 %v1477_v18 }
 0x206   : > { %6745 = vmatmul.mubr.bf16.gmra.mrb[40].mxu0 %v1478_v58 }
 0x207   : > { %6748 = vmatprep.mubr.bf16.mxu0 %v1479_v54 }
 0x20e   : > { %6749 = vmatmul.mubr.bf16.gmra.mrb[44].mxu0 %v1480_v6  ;;  %v1611_v6 = vld [vmem:[%s8368_s1 + $0x48] sm:$0xff] }
 0x20f   : > { %2607 = vmatprep.mubr.bf16.mxu0 %v7713_v49 }
 0x2c9   : > { %v6738_v11 = vpop.f32.mrb[32].mxu0 }
 0x2ca   : > { %v1523_v14 = vpop.f32.mrb[33].mxu0  ;;  %v1588_v19 = vmul.f32 0.088388346, %v6738_v11  ;;  %v1612_v11 = vld [vmem:[%s8368_s1 + $0x50] sm:$0xff] }
 0x2cb   : > { %v1586_v50 = vmul.f32 0.088388346, %v1523_v14  ;;  %v6739_v39 = vpop.f32.mrb[34].mxu0 }
 0x2cc   : > { %v1526_v45 = vpop.f32.mrb[35].mxu0  ;;  %v1589_v41 = vmul.f32 0.088388346, %v6739_v39  ;;  %v8380_v58 = vadd.f32 %v1604_v46, %v1588_v19  ;;  %v1614_v19 = vld [vmem:[%s8368_s1 + $0x60] sm:$0xff] }
 0x2cd   : > { %v1587_v56 = vmul.f32 0.088388346, %v1526_v45  ;;  %v8372_v34 = vadd.f32 %v1602_v48, %v1586_v50  ;;  %v1613_v50 = vld [vmem:[%s8368_s1 + $0x58] sm:$0xff] }
 0x2ce   : > { %v8384_v54 = vadd.f32 %v1605_v12, %v1589_v41 }
 0x2cf   : > { %1634 = vmax.xlane.f32.xlu0 %v8372_v34  ;;  %v8376_v7 = vadd.f32 %v1603_v13, %v1587_v56 }
 0x2d1   : > { %1636 = vmax.xlane.f32.xlu1 %v8376_v7  ;;  %v6742_v18 = vpop.f32.mrb[36].mxu0 }
 0x2d2   : > { %v1539_v35 = vpop.f32.mrb[37].mxu0  ;;  %v1592_v32 = vmul.f32 0.088388346, %v6742_v18  ;;  %v1615_v18 = vld [vmem:[%s8368_s1 + $0x68] sm:$0xff] }
 0x2d3   : > { %v1590_v23 = vmul.f32 0.088388346, %v1539_v35  ;;  %1638 = vmax.xlane.f32.xlu0 %v8380_v58  ;;  %v6743_v53 = vpop.f32.mrb[38].mxu0 }
 0x2d4   : > { %v1542_v29 = vpop.f32.mrb[39].mxu0  ;;  %v1593_v43 = vmul.f32 0.088388346, %v6743_v53  ;;  %v8396_v51 = vadd.f32 %v1608_v42, %v1592_v32  ;;  %v1616_v53 = vld [vmem:[%s8368_s1 + $0x70] sm:$0xff]  ;;  %v1617_v32 = vld [vmem:[%s8368_s1 + $0x78] sm:$0xff] }
 0x2d5   : > { %v1591_v37 = vmul.f32 0.088388346, %v1542_v29  ;;  %1640 = vmax.xlane.f32.xlu1 %v8384_v54  ;;  %v8388_v61 = vadd.f32 %v1606_v15, %v1590_v23 }
 0x2d6   : > { %v8400_v33 = vadd.f32 %v1609_v36, %v1593_v43 }
 0x2d7   : > { %1642 = vmax.xlane.f32.xlu0 %v8388_v61  ;;  %v8392_v44 = vadd.f32 %v1607_v31, %v1591_v37 }
 0x2d9   : > { %1644 = vmax.xlane.f32.xlu1 %v8392_v44  ;;  %v6746_v10 = vpop.f32.mrb[40].mxu0 }
 0x2da   : > { %v1555_v17 = vpop.f32.mrb[41].mxu0  ;;  %v1596_v2 = vmul.f32 0.088388346, %v6746_v10 }
 0x2db   : > { %v1594_v57 = vmul.f32 0.088388346, %v1555_v17  ;;  %1646 = vmax.xlane.f32.xlu0 %v8396_v51  ;;  %v6747_v62 = vpop.f32.mrb[42].mxu0 }
 0x2dc   : > { %v1558_v3 = vpop.f32.mrb[43].mxu0  ;;  %v1597_v14 = vmul.f32 0.088388346, %v6747_v62  ;;  %v8412_v45 = vadd.f32 %v1612_v11, %v1596_v2 }
 0x2dd   : > { %v1595_v5 = vmul.f32 0.088388346, %v1558_v3  ;;  %1648 = vmax.xlane.f32.xlu1 %v8400_v33  ;;  %v8404_v1 = vadd.f32 %v1610_v52, %v1594_v57 }
 0x2de   : > { %v8416_v41 = vadd.f32 %v1613_v50, %v1597_v14 }
 0x2df   : > { %1650 = vmax.xlane.f32.xlu0 %v8404_v1  ;;  %v8408_v48 = vadd.f32 %v1611_v6, %v1595_v5 }
 0x2e1   : > { %1652 = vmax.xlane.f32.xlu1 %v8408_v48  ;;  %v6750_v39 = vpop.f32.mrb[44].mxu0 }
 0x2e2   : > { %v1571_v13 = vpop.f32.mrb[45].mxu0  ;;  %v1600_v35 = vmul.f32 0.088388346, %v6750_v39 }
 0x2e3   : > { %v1598_v56 = vmul.f32 0.088388346, %v1571_v13  ;;  %1654 = vmax.xlane.f32.xlu0 %v8412_v45  ;;  %v6751_v46 = vpop.f32.mrb[46].mxu0 }
 0x2e4   : > { %v1574_v12 = vpop.f32.mrb[47].mxu0  ;;  %v1601_v29 = vmul.f32 0.088388346, %v6751_v46  ;;  %v8428_v37 = vadd.f32 %v1616_v53, %v1600_v35 }
 0x2e5   : > { %v1599_v15 = vmul.f32 0.088388346, %v1574_v12  ;;  %1656 = vmax.xlane.f32.xlu1 %v8416_v41  ;;  %v8420_v23 = vadd.f32 %v1614_v19, %v1598_v56 }
 0x2e6   : > { %v8431_v42 = vadd.f32 %v1617_v32, %v1601_v29 }
 0x2e7   : > { %1658 = vmax.xlane.f32.xlu0 %v8420_v23  ;;  %v8424_v31 = vadd.f32 %v1615_v18, %v1599_v15 }
 0x2e9   : > { %1660 = vmax.xlane.f32.xlu1 %v8424_v31 }
 0x2eb   : > { %1662 = vmax.xlane.f32.xlu0 %v8428_v37 }
 0x2ed   : > { %1664 = vmax.xlane.f32.xlu1 %v8431_v42 }
 0x35c   : > { %v1635_v43 = vpop.xlane.xlu0 %1634 }
 0x35d   : > { %v1666_v36 = vsub.f32 %v8372_v34, %v1635_v43 }
 0x35e   : > { %v1637_v10 = vpop.xlane.xlu1 %1636 }
 0x35f   : > { %v1682_v17 = vmul.f32 1.442695, %v1666_v36  ;;  %v1667_v52 = vsub.f32 %v8376_v7, %v1637_v10 }
 0x360   : > { %v1639_v57 = vpop.xlane.xlu0 %1638 }
 0x361   : > { %7153 = vpow2.f32 %v1682_v17  ;;  %v1684_v62 = vmul.f32 1.442695, %v1667_v52  ;;  %v1668_v3 = vsub.f32 %v8380_v58, %v1639_v57 }
 0x362   : > { %v1641_v6 = vpop.xlane.xlu1 %1640 }
 0x363   : > { %7155 = vpow2.f32 %v1684_v62  ;;  %v1686_v2 = vmul.f32 1.442695, %v1668_v3  ;;  %v1669_v5 = vsub.f32 %v8384_v54, %v1641_v6 }
 0x364   : > { %v1643_v11 = vpop.xlane.xlu0 %1642 }
 0x365   : > { %7157 = vpow2.f32 %v1686_v2  ;;  %v1688_v14 = vmul.f32 1.442695, %v1669_v5  ;;  %v1670_v50 = vsub.f32 %v8388_v61, %v1643_v11 }
 0x366   : > { %v1645_v34 = vpop.xlane.xlu1 %1644 }
 0x367   : > { %7159 = vpow2.f32 %v1688_v14  ;;  %v1690_v39 = vmul.f32 1.442695, %v1670_v50  ;;  %v1671_v7 = vsub.f32 %v8392_v44, %v1645_v34 }
 0x368   : > { %v1647_v13 = vpop.xlane.xlu0 %1646 }
 0x369   : > { %7161 = vpow2.f32 %v1690_v39  ;;  %v1692_v19 = vmul.f32 1.442695, %v1671_v7  ;;  %v1672_v58 = vsub.f32 %v8396_v51, %v1647_v13 }
 0x36a   : > { %v1649_v56 = vpop.xlane.xlu1 %1648 }
 0x36b   : > { %v8441_v46 = vpop.eup %7153  ;;  %7163 = vpow2.f32 %v1692_v19  ;;  %v1694_v54 = vmul.f32 1.442695, %v1672_v58  ;;  %v1673_v12 = vsub.f32 %v8400_v33, %v1649_v56 }
 0x36c   : > { %v1651_v18 = vpop.xlane.xlu0 %1650  ;;  %1714 = vadd.xlane.f32.xlu0 %v8441_v46 }
 0x36d   : > { %v8445_v61 = vpop.eup %7155  ;;  %7165 = vpow2.f32 %v1694_v54  ;;  %v1696_v35 = vmul.f32 1.442695, %v1673_v12  ;;  %v1674_v44 = vsub.f32 %v8404_v1, %v1651_v18  ;;  %v7009_v12 = vld [vmem:[%s11485_s25] sm:$0xff]  }
 0x36e   : > { %v1653_v15 = vpop.xlane.xlu1 %1652  ;;  %1716 = vadd.xlane.f32.xlu1 %v8445_v61  ;;  %6784 = vmatprep.subr.bf16.mxu1 %v7009_v12 }
 0x36f   : > { %v8449_v51 = vpop.eup %7157  ;;  %7167 = vpow2.f32 %v1696_v35  ;;  %v1698_v53 = vmul.f32 1.442695, %v1674_v44  ;;  %v1675_v29 = vsub.f32 %v8408_v48, %v1653_v15 }
 0x370   : > { %v1655_v32 = vpop.xlane.xlu0 %1654  ;;  %1718 = vadd.xlane.f32.xlu0 %v8449_v51 }
 0x371   : > { %v8453_v33 = vpop.eup %7159  ;;  %7169 = vpow2.f32 %v1698_v53  ;;  %v1700_v43 = vmul.f32 1.442695, %v1675_v29  ;;  %v1676_v36 = vsub.f32 %v8412_v45, %v1655_v32 }
 0x372   : > { %v1657_v10 = vpop.xlane.xlu1 %1656  ;;  %1720 = vadd.xlane.f32.xlu1 %v8453_v33 }
 0x373   : > { %v8457_v1 = vpop.eup %7161  ;;  %7171 = vpow2.f32 %v1700_v43  ;;  %v1702_v17 = vmul.f32 1.442695, %v1676_v36  ;;  %v1677_v52 = vsub.f32 %v8416_v41, %v1657_v10 }
 0x374   : > { %1722 = vadd.xlane.f32.xlu0 %v8457_v1  ;;  %v1659_v48 = vpop.xlane.xlu0 %1658 }
 0x375   : > { %v8461_v57 = vpop.eup %7163  ;;  %7173 = vpow2.f32 %v1702_v17  ;;  %v1704_v62 = vmul.f32 1.442695, %v1677_v52  ;;  %v1678_v3 = vsub.f32 %v8420_v23, %v1659_v48 }
 0x376   : > { %1724 = vadd.xlane.f32.xlu1 %v8461_v57  ;;  %v1661_v45 = vpop.xlane.xlu1 %1660 }
 0x377   : > { %v8465_v6 = vpop.eup %7165  ;;  %7175 = vpow2.f32 %v1704_v62  ;;  %v1706_v2 = vmul.f32 1.442695, %v1678_v3  ;;  %v1679_v5 = vsub.f32 %v8424_v31, %v1661_v45 }
 0x378   : > { %1726 = vadd.xlane.f32.xlu0 %v8465_v6  ;;  %v1663_v41 = vpop.xlane.xlu0 %1662 }
 0x379   : > { %v8469_v11 = vpop.eup %7167  ;;  %7177 = vpow2.f32 %v1706_v2  ;;  %v1708_v14 = vmul.f32 1.442695, %v1679_v5  ;;  %v1680_v50 = vsub.f32 %v8428_v37, %v1663_v41 }
 0x37a   : > { %1728 = vadd.xlane.f32.xlu1 %v8469_v11  ;;  %v1665_v23 = vpop.xlane.xlu1 %1664 }
 0x37b   : > { %v8473_v34 = vpop.eup %7169  ;;  %7179 = vpow2.f32 %v1708_v14  ;;  %v1710_v39 = vmul.f32 1.442695, %v1680_v50  ;;  %v1681_v7 = vsub.f32 %v8431_v42, %v1665_v23 }
 0x37c   : > { %1730 = vadd.xlane.f32.xlu0 %v8473_v34 }
 0x37d   : > { %v8477_v31 = vpop.eup %7171  ;;  %7181 = vpow2.f32 %v1710_v39  ;;  %v1712_v13 = vmul.f32 1.442695, %v1681_v7 }
 0x37e   : > { %1732 = vadd.xlane.f32.xlu1 %v8477_v31 }
 0x37f   : > { %v8480_v19 = vpop.eup %7173  ;;  %7183 = vpow2.f32 %v1712_v13 }
 0x380   : > { %1734 = vadd.xlane.f32.xlu0 %v8480_v19 }
 0x381   : > { %v8483_v37 = vpop.eup %7175 }
 0x382   : > { %1736 = vadd.xlane.f32.xlu1 %v8483_v37 }
 0x383   : > { %v8486_v58 = vpop.eup %7177 }
 0x384   : > { %1738 = vadd.xlane.f32.xlu0 %v8486_v58 }
 0x385   : > { %v8489_v42 = vpop.eup %7179 }
 0x386   : > { %1740 = vadd.xlane.f32.xlu1 %v8489_v42 }
 0x387   : > { %v8492_v56 = vpop.eup %7181 }
 0x388   : > { %1742 = vadd.xlane.f32.xlu0 %v8492_v56 }
 0x389   : > { %v8495_v54 = vpop.eup %7183 }
 0x38a   : > { %1744 = vadd.xlane.f32.xlu1 %v8495_v54 }
 0x3f9   : > { %v1715_v18 = vpop.xlane.xlu0 %1714 }
 0x3fa   : > { %7185 = vrcp.f32 %v1715_v18 }
 0x3fb   : > { %v1717_v35 = vpop.xlane.xlu1 %1716 }
 0x3fc   : > { %7187 = vrcp.f32 %v1717_v35  ;;  %v7011_v35 = vld [vmem:[%s11485_s25 + $0x10] sm:$0xff]  }
 0x3fd   : > { %v1719_v44 = vpop.xlane.xlu0 %1718 }
 0x3fe   : > { %7189 = vrcp.f32 %v1719_v44 }
 0x3ff   : > { %v1721_v15 = vpop.xlane.xlu1 %1720 }
 0x400   : > { %7191 = vrcp.f32 %v1721_v15 }
 0x401   : > { %v1723_v53 = vpop.xlane.xlu0 %1722 }
 0x402   : > { %7193 = vrcp.f32 %v1723_v53 }
 0x403   : > { %v1725_v29 = vpop.xlane.xlu1 %1724 }
 0x404   : > { %v7186_v32 = vpop.eup %7185  ;;  %7195 = vrcp.f32 %v1725_v29 }
 0x405   : > { %v1727_v43 = vpop.xlane.xlu0 %1726  ;;  %v1762_v17 = vmul.f32 %v7186_v32, %v8441_v46  ;;  %v7010_v46 = vld [vmem:[%s11485_s25 + $0x8] sm:$0xff]   ;;  %v7012_v32 = vld [vmem:[%s11485_s25 + $0x18] sm:$0xff]  }
 0x406   : > { %v7188_v36 = vpop.eup %7187  ;;  %7197 = vrcp.f32 %v1727_v43 }
 0x407   : > { %v1729_v10 = vpop.xlane.xlu1 %1728  ;;  %v1763_v52 = vmul.f32 %v7188_v36, %v8445_v61 }
 0x408   : > { %v7190_v48 = vpop.eup %7189  ;;  %7199 = vrcp.f32 %v1729_v10 }
 0x409   : > { %v1731_v62 = vpop.xlane.xlu0 %1730  ;;  %v1778_v3 = vpack.c.bf16 %v1763_v52, %v1762_v17  ;;  %v1764_v2 = vmul.f32 %v7190_v48, %v8449_v51  ;;  %v7013_v52 = vld [vmem:[%s11485_s25 + $0x20] sm:$0xff]  }
 0x40a   : > { %v7192_v45 = vpop.eup %7191  ;;  %7201 = vrcp.f32 %v1731_v62 }
 0x40b   : > { %v1765_v5 = vmul.f32 %v7192_v45, %v8453_v33  ;;  %6768 = vmatprep.mubr.bf16.mxu1 %v1778_v3  ;;  %v1733_v41 = vpop.xlane.xlu1 %1732 }
 0x40c   : > { %v7194_v14 = vpop.eup %7193  ;;  %7203 = vrcp.f32 %v1733_v41 }
 0x40d   : > { %v1735_v50 = vpop.xlane.xlu0 %1734  ;;  %v1779_v23 = vpack.c.bf16 %v1765_v5, %v1764_v2  ;;  %v1766_v7 = vmul.f32 %v7194_v14, %v8457_v1 }
 0x40e   : > { %v7196_v61 = vpop.eup %7195  ;;  %7205 = vrcp.f32 %v1735_v50 }
 0x40f   : > { %6769 = vmatmul.mubr.bf16.vlgmr.msra.gmra.mrb[16].mxu1 %v1779_v23  ;;  %v1737_v39 = vpop.xlane.xlu1 %1736  ;;  %v1767_v51 = vmul.f32 %v7196_v61, %v8461_v57 }
 0x410   : > { %v7198_v13 = vpop.eup %7197  ;;  %7207 = vrcp.f32 %v1737_v39  ;;  %6785 = vmatpush3.bf16.msra.mxu1 %v7009_v12 }
 0x411   : > { %v1739_v33 = vpop.xlane.xlu0 %1738  ;;  %v1780_v18 = vpack.c.bf16 %v1767_v51, %v1766_v7  ;;  %6786 = vmatprep.subr.bf16.mxu1 %v7010_v46  ;;  %v1768_v53 = vmul.f32 %v7198_v13, %v8465_v6 }
 0x412   : > { %v7200_v44 = vpop.eup %7199  ;;  %7209 = vrcp.f32 %v1739_v33 }
 0x413   : > { %6772 = vmatprep.mubr.bf16.mxu1 %v1780_v18  ;;  %v1741_v15 = vpop.xlane.xlu1 %1740  ;;  %v1769_v1 = vmul.f32 %v7200_v44, %v8469_v11 }
 0x414   : > { %v7202_v29 = vpop.eup %7201  ;;  %7211 = vrcp.f32 %v1741_v15  ;;  %6787 = vmatpush3.bf16.msra.mxu1 %v7010_v46 }
 0x415   : > { %v1743_v57 = vpop.xlane.xlu0 %1742  ;;  %v1781_v12 = vpack.c.bf16 %v1769_v1, %v1768_v53  ;;  %6788 = vmatprep.subr.bf16.mxu1 %v7011_v35  ;;  %v1770_v10 = vmul.f32 %v7202_v29, %v8473_v34 }
 0x416   : > { %v7204_v43 = vpop.eup %7203  ;;  %7213 = vrcp.f32 %v1743_v57 }
 0x417   : > { %6773 = vmatmul.mubr.bf16.gmra.mrb[20].mxu1 %v1781_v12  ;;  %v1745_v36 = vpop.xlane.xlu1 %1744  ;;  %v1771_v6 = vmul.f32 %v7204_v43, %v8477_v31  ;;  %v7014_v31 = vld [vmem:[%s11485_s25 + $0x28] sm:$0xff]  }
 0x418   : > { %v7206_v17 = vpop.eup %7205  ;;  %7215 = vrcp.f32 %v1745_v36  ;;  %6789 = vmatpush3.bf16.msra.mxu1 %v7011_v35 }
 0x419   : > { %v1782_v11 = vpack.c.bf16 %v1771_v6, %v1770_v10  ;;  %6790 = vmatprep.subr.bf16.mxu1 %v7012_v32  ;;  %v1772_v62 = vmul.f32 %v7206_v17, %v8480_v19  ;;  %v7015_v19 = vld [vmem:[%s11485_s25 + $0x30] sm:$0xff]  }
 0x41a   : > { %v7208_v48 = vpop.eup %7207 }
 0x41b   : > { %6776 = vmatprep.mubr.bf16.mxu1 %v1782_v11  ;;  %v1773_v3 = vmul.f32 %v7208_v48, %v8483_v37 }
 0x41c   : > { %v7210_v45 = vpop.eup %7209  ;;  %6791 = vmatpush3.bf16.msra.mxu1 %v7012_v32 }
 0x41d   : > { %v1783_v34 = vpack.c.bf16 %v1773_v3, %v1772_v62  ;;  %6792 = vmatprep.subr.bf16.mxu1 %v7013_v52  ;;  %v1774_v5 = vmul.f32 %v7210_v45, %v8486_v58  ;;  %v7016_v58 = vld [vmem:[%s11485_s25 + $0x38] sm:$0xff]  }
 0x41e   : > { %v7212_v2 = vpop.eup %7211 }
 0x41f   : > { %6777 = vmatmul.mubr.bf16.gmra.mrb[24].mxu1 %v1783_v34  ;;  %v1775_v41 = vmul.f32 %v7212_v2, %v8489_v42 }
 0x420   : > { %v7214_v14 = vpop.eup %7213  ;;  %6793 = vmatpush3.bf16.msra.mxu1 %v7013_v52  ;;  %v8542_v52 = vld [vmem:[%s11486_s2] ss:$0 sm:$0xff]  ;;  %s11646_s2 = sld [smem:[#allocation78_spill]] }
 0x421   : > { %v1784_v50 = vpack.c.bf16 %v1775_v41, %v1774_v5  ;;  %6794 = vmatprep.subr.bf16.mxu1 %v7014_v31  ;;  %v1776_v23 = vmul.f32 %v7214_v14, %v8492_v56 }
 0x422   : > { %v7216_v37 = vpop.eup %7215 }
 0x423   : > { %6780 = vmatprep.mubr.bf16.mxu1 %v1784_v50  ;;  %v1777_v46 = vmul.f32 %v7216_v37, %v8495_v54 }
 0x424   : > { %6795 = vmatpush3.bf16.msra.mxu1 %v7014_v31 }
 0x425   : > { %v1785_v61 = vpack.c.bf16 %v1777_v46, %v1776_v23  ;;  %6796 = vmatprep.subr.bf16.mxu1 %v7015_v19 }
 0x426   : > { %s10428_s0 = scalar_lea.vmem %s11646_s2, %s11645_s29 }
 0x427   : > { %6781 = vmatmul.mubr.bf16.gmra.mrb[28].mxu1 %v1785_v61 }
 0x428   : > { %6797 = vmatpush3.bf16.msra.mxu1 %v7015_v19 }
 0x429   : > { %6798 = vmatprep.subr.bf16.mxu1 %v7016_v58 }
 0x42c   : > { %6799 = vmatpush3.bf16.msra.mxu1 %v7016_v58 }
 0x4e2   : > { %v6770_v42 = vpop.f32.mrb[16].mxu1 }
 0x4e3   : > { %v1828_v39 = vpop.f32.mrb[17].mxu1 }
 0x4e4   : > { %v6771_v7 = vpop.f32.mrb[18].mxu1 }
 0x4e5   : > { %v1909_v51 = vpack.c.bf16 %v6771_v7, %v6770_v42  ;;  %v1831_v13 = vpop.f32.mrb[19].mxu1 }
 0x4e6   : > { %v1908_v33 = vpack.c.bf16 %v1831_v13, %v1828_v39 }
 0x4e8   : > { %6800 = vmatprep.mubr.bf16.mxu1 %v1908_v33 }
 0x4e9   : > { %6801 = vmatmul.mubr.bf16.vlgmr.msra.gmra.mrb[32].mxu1 %v1909_v51 }
 0x4ea   : > { %v6774_v56 = vpop.f32.mrb[20].mxu1 }
 0x4eb   : > { %v1844_v54 = vpop.f32.mrb[21].mxu1 }
 0x4ec   : > { %v6775_v18 = vpop.f32.mrb[22].mxu1 }
 0x4ed   : > { %v1911_v35 = vpack.c.bf16 %v6775_v18, %v6774_v56  ;;  %v1847_v44 = vpop.f32.mrb[23].mxu1  ;;  %v7019_v56 = vld [vmem:[%s11358_s11 + $0x4] ss:$16 sps:$4 sm:$0xff]   ;;  %v7017_v18 = vld [vmem:[%s11358_s11] ss:$16 sps:$4 sm:$0xff]  }
 0x4ee   : > { %v1910_v15 = vpack.c.bf16 %v1847_v44, %v1844_v54  ;;  %v7022_v54 = vld [vmem:[%s11358_s11 + $0xc] ss:$16 sps:$4 sm:$0xff]   ;;  %2575 = vmatprep.subr.bf16.mxu0 %v7019_v56 }
 0x4ef   : > { %2688 = vmatprep.subr.bf16.mxu1 %v7022_v54  ;;  %2576 = vmatpush1.bf16.msra.mxu0 %v7017_v18  ;;  %v7055_v54 = vld [vmem:[%s11358_s11 + $0xc4] ss:$16 sps:$4 sm:$0xff]   ;;  %v7053_v18 = vld [vmem:[%s11358_s11 + $0xc0] ss:$16 sps:$4 sm:$0xff]  }
 0x4f0   : > { %6804 = vmatprep.mubr.bf16.mxu1 %v1910_v15 }
 0x4f1   : > { %6805 = vmatmul.mubr.bf16.gmra.mrb[36].mxu1 %v1911_v35  ;;  %v7020_v35 = vld [vmem:[%s11358_s11 + $0x8] ss:$16 sps:$4 sm:$0xff]  }
 0x4f2   : > { %v6778_v53 = vpop.f32.mrb[24].mxu1  ;;  %2689 = vmatpush1.bf16.msra.mxu1 %v7020_v35  ;;  %v7056_v35 = vld [vmem:[%s11358_s11 + $0xc8] ss:$16 sps:$4 sm:$0xff]  }
 0x4f3   : > { %v1860_v1 = vpop.f32.mrb[25].mxu1 }
 0x4f4   : > { %v6779_v29 = vpop.f32.mrb[26].mxu1 }
 0x4f5   : > { %v1913_v57 = vpack.c.bf16 %v6779_v29, %v6778_v53  ;;  %v1863_v12 = vpop.f32.mrb[27].mxu1 }
 0x4f6   : > { %v1912_v32 = vpack.c.bf16 %v1863_v12, %v1860_v1  ;;  %v7028_v1 = vld [vmem:[%s11358_s11 + $0x2c] ss:$16 sps:$4 sm:$0xff]   ;;  %v7026_v12 = vld [vmem:[%s11358_s11 + $0x28] ss:$16 sps:$4 sm:$0xff]  }
 0x4f7   : > { %2690 = vmatprep.subr.bf16.mxu1 %v7028_v1  ;;  %v7059_v1 = vld [vmem:[%s11358_s11 + $0xe0] ss:$16 sps:$4 sm:$0xff]  }
 0x4f8   : > { %6808 = vmatprep.mubr.bf16.mxu1 %v1912_v32  ;;  %2691 = vmatpush1.bf16.msra.mxu1 %v7026_v12 }
 0x4f9   : > { %6809 = vmatmul.mubr.bf16.gmra.mrb[40].mxu1 %v1913_v57  ;;  %v7023_v57 = vld [vmem:[%s11358_s11 + $0x20] ss:$16 sps:$4 sm:$0xff]  }
 0x4fa   : > { %v6782_v43 = vpop.f32.mrb[28].mxu1 }
 0x4fb   : > { %v1876_v36 = vpop.f32.mrb[29].mxu1 }
 0x4fc   : > { %v6783_v10 = vpop.f32.mrb[30].mxu1 }
 0x4fd   : > { %v1915_v6 = vpack.c.bf16 %v6783_v10, %v6782_v43  ;;  %v1879_v17 = vpop.f32.mrb[31].mxu1 }
 0x4fe   : > { %v1914_v11 = vpack.c.bf16 %v1879_v17, %v1876_v36  ;;  %v7031_v17 = vld [vmem:[%s11358_s11 + $0x44] ss:$16 sps:$4 sm:$0xff]  }
 0x500   : > { %6812 = vmatprep.mubr.bf16.mxu1 %v1914_v11  ;;  %v7034_v11 = vld [vmem:[%s11358_s11 + $0x4c] ss:$16 sps:$4 sm:$0xff]  }
 0x501   : > { %6813 = vmatmul.mubr.bf16.gmra.mrb[44].mxu1 %v1915_v6  ;;  %2692 = vmatprep.subr.bf16.mxu1 %v7034_v11 }
 0x502   : > { %2720 = vmatprep.mubr.bf16.mxu1 %v7713_v49 }
 0x5bc   : > { %v6802_v48 = vpop.f32.mrb[32].mxu1 }
 0x5bd   : > { %v2004_v62 = vpop.f32.mrb[33].mxu1  ;;  %v2013_v41 = vadd.f32 %v6802_v48, %v8542_v52  ;;  %v7029_v48 = vld [vmem:[%s11358_s11 + $0x40] ss:$16 sps:$4 sm:$0xff]  }
 0x5be   : > { %v2005_v3 = vadd.f32 %v8542_v52, %v2004_v62  ;;  %v6803_v45 = vpop.f32.mrb[34].mxu1  ;;  %v7032_v62 = vld [vmem:[%s11358_s11 + $0x48] ss:$16 sps:$4 sm:$0xff]  }
 0x5bf   : > { %v2007_v34 = vpop.f32.mrb[35].mxu1  ;;  %v2016_v37 = vadd.f32 %v6803_v45, %v8542_v52  ;;  %v8561_v46 = vadd.f32 %v2013_v41, %v8135_v55  ;;  %2693 = vmatpush1.bf16.msra.mxu1 %v7032_v62  ;;  %v7038_v41 = vld [vmem:[%s11358_s11 + $0x68] ss:$16 sps:$4 sm:$0xff]  }
 0x5c0   : > { %v8546_v31 = vadd.f32 %v2005_v3, %v8112_v21  ;;  %v2008_v2 = vadd.f32 %v8542_v52, %v2007_v34  ;;  %v7037_v34 = vld [vmem:[%s11358_s11 + $0x64] ss:$16 sps:$4 sm:$0xff]  }
 0x5c1   : > { %v8564_v61 = vadd.f32 %v2016_v37, %v8138_v0  ;;  %v2135_v39 = vmul.f32 %v8561_v46, %v8561_v46  ;;  %v7043_v37 = vld [vmem:[%s11358_s11 + $0x84] ss:$16 sps:$4 sm:$0xff]  }
 0x5c2   : > { %v8550_v5 = vadd.f32 %v2008_v2, %v8115_v22  ;;  %2085 = vadd.xlane.f32.xlu0 %v8546_v31  ;;  %v2133_v50 = vmul.f32 %v8546_v31, %v8546_v31  ;;  %v7035_v2 = vld [vmem:[%s11358_s11 + $0x60] ss:$16 sps:$4 sm:$0xff]  }
 0x5c3   : > { %v2136_v0 = vmul.f32 %v8564_v61, %v8564_v61 }
 0x5c4   : > { %v6806_v14 = vpop.f32.mrb[36].mxu1  ;;  %2087 = vadd.xlane.f32.xlu1 %v8550_v5  ;;  %v2134_v23 = vmul.f32 %v8550_v5, %v8550_v5 }
 0x5c5   : > { %v2020_v19 = vpop.f32.mrb[37].mxu1  ;;  %v2029_v44 = vadd.f32 %v6806_v14, %v8542_v52 }
 0x5c6   : > { %v6807_v21 = vpop.f32.mrb[38].mxu1  ;;  %2149 = vadd.xlane.f32.xlu0 %v2133_v50  ;;  %v2021_v58 = vadd.f32 %v8542_v52, %v2020_v19 }
 0x5c7   : > { %v2023_v22 = vpop.f32.mrb[39].mxu1  ;;  %v2032_v32 = vadd.f32 %v6807_v21, %v8542_v52  ;;  %v8625_v6 = vadd.f32 %v2029_v44, %v8181_v63  ;;  %v7046_v21 = vld [vmem:[%s11358_s11 + $0x8c] ss:$16 sps:$4 sm:$0xff]  }
 0x5c8   : > { %2151 = vadd.xlane.f32.xlu1 %v2134_v23  ;;  %v2024_v51 = vadd.f32 %v8542_v52, %v2023_v22  ;;  %v8579_v33 = vadd.f32 %v2021_v58, %v8158_v30  ;;  %v7041_v23 = vld [vmem:[%s11358_s11 + $0x80] ss:$16 sps:$4 sm:$0xff]   ;;  %v7044_v22 = vld [vmem:[%s11358_s11 + $0x88] ss:$16 sps:$4 sm:$0xff]  }
 0x5c9   : > { %v8640_v63 = vadd.f32 %v2032_v32, %v8184_v8  ;;  %v2139_v45 = vmul.f32 %v8625_v6, %v8625_v6  ;;  %v7040_v8 = vld [vmem:[%s11358_s11 + $0x6c] ss:$16 sps:$4 sm:$0xff]  }
 0x5ca   : > { %2089 = vadd.xlane.f32.xlu0 %v8561_v46  ;;  %v8594_v30 = vadd.f32 %v2024_v51, %v8161_v4  ;;  %v2137_v53 = vmul.f32 %v8579_v33, %v8579_v33  ;;  %v7025_v4 = vld [vmem:[%s11358_s11 + $0x24] ss:$16 sps:$4 sm:$0xff]   ;;  %2694 = vmatprep.subr.bf16.mxu1 %v7040_v8  ;;  %v7047_v51 = vld [vmem:[%s11358_s11 + $0xa0] ss:$16 sps:$4 sm:$0xff]  }
 0x5cb   : > { %2577 = vmatprep.subr.bf16.mxu0 %v7025_v4  ;;  %v2140_v50 = vmul.f32 %v8640_v63, %v8640_v63  ;;  %2695 = vmatpush1.bf16.msra.mxu1 %v7038_v41  ;;  %v7061_v4 = vld [vmem:[%s11358_s11 + $0xe4] ss:$16 sps:$4 sm:$0xff]  }
 0x5cc   : > { %v8568_v42 = vpop.f32.mrb[40].mxu1  ;;  %2091 = vadd.xlane.f32.xlu1 %v8564_v61  ;;  %v2138_v36 = vmul.f32 %v8594_v30, %v8594_v30  ;;  %2578 = vmatpush1.bf16.msra.mxu0 %v7023_v57 }
 0x5cd   : > { %v2036_v7 = vpop.f32.mrb[41].mxu1  ;;  %2579 = vmatprep.subr.bf16.mxu0 %v7031_v17  ;;  %2696 = vmatprep.subr.bf16.mxu1 %v7046_v21  ;;  %v2045_v58 = vadd.f32 %v8568_v42, %v8542_v52  ;;  %v7050_v42 = vld [vmem:[%s11358_s11 + $0xa8] ss:$16 sps:$4 sm:$0xff]  }
 0x5ce   : > { %v8574_v55 = vpop.f32.mrb[42].mxu1  ;;  %2153 = vadd.xlane.f32.xlu0 %v2135_v39  ;;  %v2037_v3 = vadd.f32 %v8542_v52, %v2036_v7  ;;  %v7049_v7 = vld [vmem:[%s11358_s11 + $0xa4] ss:$16 sps:$4 sm:$0xff]  }
 0x5cf   : > { %v2039_v13 = vpop.f32.mrb[43].mxu1  ;;  %2697 = vmatpush1.bf16.msra.mxu1 %v7044_v22  ;;  %v8703_v56 = vadd.f32 %v2045_v58, %v8217_v59 }
 0x5d0   : > { %2155 = vadd.xlane.f32.xlu1 %v2136_v0  ;;  %2580 = vmatpush1.bf16.msra.mxu0 %v7029_v48  ;;  %v2040_v14 = vadd.f32 %v8542_v52, %v2039_v13  ;;  %v8663_v19 = vadd.f32 %v2037_v3, %v8202_v38  ;;  %v2048_v0 = vadd.f32 %v8574_v55, %v8542_v52  ;;  %v7058_v55 = vld [vmem:[%s11358_s11 + $0xcc] ss:$16 sps:$4 sm:$0xff]  }
 0x5d1   : > { %2581 = vmatprep.subr.bf16.mxu0 %v7037_v34 }
 0x5d2   : > { %2093 = vadd.xlane.f32.xlu0 %v8579_v33  ;;  %v8678_v38 = vadd.f32 %v2040_v14, %v8205_v16  ;;  %v2141_v39 = vmul.f32 %v8663_v19, %v8663_v19  ;;  %v7052_v16 = vld [vmem:[%s11358_s11 + $0xac] ss:$16 sps:$4 sm:$0xff]   ;;  %v8718_v59 = vadd.f32 %v2048_v0, %v8220_v60 }
 0x5d3   : > { %2698 = vmatprep.subr.bf16.mxu1 %v7052_v16  ;;  %v7064_v60 = vld [vmem:[%s11358_s11 + $0xec] ss:$16 sps:$4 sm:$0xff]  }
 0x5d4   : > { %2095 = vadd.xlane.f32.xlu1 %v8594_v30  ;;  %v8599_v15 = vpop.f32.mrb[44].mxu1  ;;  %2582 = vmatpush1.bf16.msra.mxu0 %v7035_v2  ;;  %v2142_v13 = vmul.f32 %v8678_v38, %v8678_v38  ;;  %v2144_v12 = vmul.f32 %v8718_v59, %v8718_v59 }
 0x5d5   : > { %v8609_v29 = vpop.f32.mrb[45].mxu1  ;;  %2583 = vmatprep.subr.bf16.mxu0 %v7043_v37  ;;  %2699 = vmatpush1.bf16.msra.mxu1 %v7050_v42 }
 0x5d6   : > { %2157 = vadd.xlane.f32.xlu0 %v2137_v53  ;;  %v8618_v43 = vpop.f32.mrb[46].mxu1  ;;  %2700 = vmatprep.subr.bf16.mxu1 %v7058_v55  ;;  %v2053_v44 = vadd.f32 %v8542_v52, %v8609_v29  ;;  %v2143_v53 = vmul.f32 %v8703_v56, %v8703_v56  ;;  %v7062_v29 = vld [vmem:[%s11358_s11 + $0xe8] ss:$16 sps:$4 sm:$0xff]  }
 0x5d7   : > { %v8622_v10 = vpop.f32.mrb[47].mxu1  ;;  %v2064_v11 = vadd.f32 %v8618_v43, %v8542_v52 }
 0x5d8   : > { %2159 = vadd.xlane.f32.xlu1 %v2138_v36  ;;  %2584 = vmatpush1.bf16.msra.mxu0 %v7041_v23  ;;  %v2056_v57 = vadd.f32 %v8542_v52, %v8622_v10  ;;  %v8743_v32 = vadd.f32 %v2053_v44, %v8232_v25  ;;  %v2061_v10 = vadd.f32 %v8599_v15, %v8542_v52 }
 0x5d9   : > { %2585 = vmatprep.subr.bf16.mxu0 %v7049_v7  ;;  %2701 = vmatpush1.bf16.msra.mxu1 %v7056_v35  ;;  %v8762_v48 = vadd.f32 %v2064_v11, %v8247_v24  ;;  %v7067_v24 = vld [vmem:[%s11360_s13 + $0xc0] sm:$0xff]  }
 0x5da   : > { %2097 = vadd.xlane.f32.xlu0 %v8625_v6  ;;  %2702 = vmatprep.subr.bf16.mxu1 %v7064_v60  ;;  %v8746_v36 = vadd.f32 %v2056_v57, %v8235_v47  ;;  %v2145_v17 = vmul.f32 %v8743_v32, %v8743_v32  ;;  %v8759_v47 = vadd.f32 %v2061_v10, %v8244_v9  ;;  %v7065_v9 = vld [vmem:[%s11360_s13 + $0x40] sm:$0xff]  }
 0x5db   : > { %v2148_v52 = vmul.f32 %v8762_v48, %v8762_v48 }
 0x5dc   : > { %2099 = vadd.xlane.f32.xlu1 %v8640_v63  ;;  %2586 = vmatpush1.bf16.msra.mxu0 %v7047_v51  ;;  %v2146_v25 = vmul.f32 %v8746_v36, %v8746_v36  ;;  %v2147_v15 = vmul.f32 %v8759_v47, %v8759_v47 }
 0x5dd   : > { %2587 = vmatprep.subr.bf16.mxu0 %v7055_v54  ;;  %2703 = vmatpush1.bf16.msra.mxu1 %v7062_v29 }
 0x5de   : > { %2161 = vadd.xlane.f32.xlu0 %v2139_v45  ;;  %6576 = vmatprep.subr.bf16.mxu1 %v7067_v24 }
 0x5e0   : > { %2163 = vadd.xlane.f32.xlu1 %v2140_v50  ;;  %2588 = vmatpush1.bf16.msra.mxu0 %v7053_v18 }
 0x5e1   : > { %2589 = vmatprep.subr.bf16.mxu0 %v7061_v4 }
 0x5e2   : > { %2101 = vadd.xlane.f32.xlu0 %v8663_v19 }
 0x5e4   : > { %2103 = vadd.xlane.f32.xlu1 %v8678_v38  ;;  %2590 = vmatpush1.bf16.msra.mxu0 %v7059_v1 }
 0x5e5   : > { %6512 = vmatprep.subr.bf16.mxu0 %v7065_v9 }
 0x5e6   : > { %2165 = vadd.xlane.f32.xlu0 %v2141_v39 }
 0x5e8   : > { %2167 = vadd.xlane.f32.xlu1 %v2142_v13 }
 0x5ea   : > { %2105 = vadd.xlane.f32.xlu0 %v8703_v56 }
 0x5ec   : > { %2107 = vadd.xlane.f32.xlu1 %v8718_v59 }
 0x5ee   : > { %2169 = vadd.xlane.f32.xlu0 %v2143_v53 }
 0x5f0   : > { %2171 = vadd.xlane.f32.xlu1 %v2144_v12 }
 0x5f2   : > { %2109 = vadd.xlane.f32.xlu0 %v8743_v32 }
 0x5f4   : > { %2111 = vadd.xlane.f32.xlu1 %v8746_v36 }
 0x5f6   : > { %2173 = vadd.xlane.f32.xlu0 %v2145_v17 }
 0x5f8   : > { %2175 = vadd.xlane.f32.xlu1 %v2146_v25 }
 0x5fa   : > { %2113 = vadd.xlane.f32.xlu0 %v8759_v47 }
 0x5fc   : > { %2115 = vadd.xlane.f32.xlu1 %v8762_v48 }
 0x5fe   : > { %2177 = vadd.xlane.f32.xlu0 %v2147_v15 }
 0x600   : > { %2179 = vadd.xlane.f32.xlu1 %v2148_v52 }
 0x64f   : > { %v2086_v43 = vpop.xlane.xlu0 %2085 }
 0x650   : > { %v2117_v62 = vmul.f32 0.0078125, %v2086_v43 }
 0x651   : > { %v2088_v3 = vpop.xlane.xlu1 %2087 }
 0x652   : > { %v2118_v45 = vmul.f32 0.0078125, %v2088_v3  ;;  %v2197_v8 = vmul.f32 %v2117_v62, %v2117_v62  ;;  %v2245_v52 = vsub.f32 %v8546_v31, %v2117_v62 }
 0x653   : > { %v2150_v34 = vpop.xlane.xlu0 %2149 }
 0x654   : > { %v2181_v2 = vmul.f32 0.0078125, %v2150_v34  ;;  %v2198_v14 = vmul.f32 %v2118_v45, %v2118_v45 }
 0x655   : > { %v2152_v41 = vpop.xlane.xlu1 %2151 }
 0x656   : > { %v2213_v50 = vsub.f32 %v2181_v2, %v2197_v8  ;;  %v2182_v37 = vmul.f32 0.0078125, %v2152_v41  ;;  %v8796_v8 = vld [vmem:[%s11487_s9] ss:$0 sm:$0xff]  ;;  %v2246_v2 = vsub.f32 %v8550_v5, %v2118_v45  ;;  %s761_s9 = sand.u32 1, %s7703_s26  }
 0x657   : > { %v2090_v21 = vpop.xlane.xlu0 %2089  ;;  %s6219_s2 = sshll.u32 %s761_s9, 7  ;;  %s11300_s29 = scalar_lea.sflag [#allocation3], %s761_s9 }
 0x658   : > { %v2229_v23 = vmax.f32 %v2213_v50, 0.0  ;;  %v2214_v22 = vsub.f32 %v2182_v37, %v2198_v14  ;;  %v8776_v58 = vmul.f32 0.0078125, %v2090_v21  ;;  %s10635_s8 = scalar_lea.vmem [#allocation2], %s6219_s2 }
 0x659   : > { %v2092_v39 = vpop.xlane.xlu1 %2091 }
 0x65a   : > { %v2261_v7 = vadd.f32 1e-12, %v2229_v23  ;;  %v2230_v16 = vmax.f32 %v2214_v22, 0.0  ;;  %v8778_v51 = vmul.f32 0.0078125, %v2092_v39  ;;  %v2199_v13 = vmul.f32 %v8776_v58, %v8776_v58 }
 0x65b   : > { %v2154_v42 = vpop.xlane.xlu0 %2153 }
 0x65c   : > { %7217 = vrsqrt.f32 %v2261_v7  ;;  %v2262_v0 = vadd.f32 1e-12, %v2230_v16  ;;  %v2183_v54 = vmul.f32 0.0078125, %v2154_v42  ;;  %v2200_v18 = vmul.f32 %v8778_v51, %v8778_v51  ;;  %v8805_v16 = vld [vmem:[%s11488_s10] ss:$0 sm:$0xff]  ;;  %s6107_s10 = sshll.u32 %s10635_s8, 4  ;;  %s11296_s10 = int_to_ptr.vmem [resolvable:$true] %s6107_s10 }
 0x65d   : > { %v2156_v55 = vpop.xlane.xlu1 %2155  ;;  %s7649_s4 = scalar_lea.vmem %s11296_s10, 2048 }
 0x65e   : > { %7219 = vrsqrt.f32 %v2262_v0  ;;  %v2215_v35 = vsub.f32 %v2183_v54, %v2199_v13  ;;  %v2184_v44 = vmul.f32 0.0078125, %v2156_v55  ;;  %v2247_v55 = vsub.f32 %v8561_v46, %v8776_v58  ;;  %p7650_p12 = scmp.ne.s32.totalorder %s11296_s10, %s7649_s4 }
 0x65f   : > { %v2094_v53 = vpop.xlane.xlu0 %2093 }
 0x660   : > { %v2231_v4 = vmax.f32 %v2215_v35, 0.0  ;;  %v2216_v60 = vsub.f32 %v2184_v44, %v2200_v18  ;;  %v8784_v1 = vmul.f32 0.0078125, %v2094_v53  ;;  %p7651_p13 = pnand %p7650_p12, %p7881_p5 }
 0x661   : > { %v2096_v29 = vpop.xlane.xlu1 %2095 }
 0x662   : > { %v2263_v57 = vadd.f32 1e-12, %v2231_v4  ;;  %v2232_v12 = vmax.f32 %v2216_v60, 0.0  ;;  %v8786_v10 = vmul.f32 0.0078125, %v2096_v29  ;;  %v2201_v25 = vmul.f32 %v8784_v1, %v8784_v1  ;;  %p7652_p0 = pneg %p7651_p13 }
 0x663   : > { %v2158_v17 = vpop.xlane.xlu0 %2157 }
 0x664   : > { %7221 = vrsqrt.f32 %v2263_v57  ;;  %v2264_v11 = vadd.f32 1e-12, %v2232_v12  ;;  %v2185_v15 = vmul.f32 0.0078125, %v2158_v17  ;;  %v2202_v43 = vmul.f32 %v8786_v10, %v8786_v10  ;;  %v7066_v17 = vld [vmem:[%s11360_s13] sm:$0xff]  }
 0x665   : > { %v2160_v9 = vpop.xlane.xlu1 %2159  ;;  %v2248_v57 = vsub.f32 %v8564_v61, %v8778_v51  ;;  %v7069_v61 = vld [vmem:[%s11360_s13 + $0x48] sm:$0xff]  }
 0x666   : > { %v7218_v24 = vpop.eup %7217  ;;  %7223 = vrsqrt.f32 %v2264_v11  ;;  %v2217_v3 = vsub.f32 %v2185_v15, %v2201_v25  ;;  %v2186_v34 = vmul.f32 0.0078125, %v2160_v9  ;;  %v7068_v11 = vld [vmem:[%s11360_s13 + $0x80] sm:$0xff]   ;;  %v7071_v51 = vld [vmem:[%s11360_s13 + $0xc8] sm:$0xff]  }
 0x667   : > { %v2293_v41 = vmul.f32 %v7218_v24, %v2245_v52  ;;  %v2098_v14 = vpop.xlane.xlu0 %2097 }
 0x668   : > { %v7220_v50 = vpop.eup %7219  ;;  %v2233_v37 = vmax.f32 %v2217_v3, 0.0  ;;  %v2218_v31 = vsub.f32 %v2186_v34, %v2202_v43  ;;  %v8799_v62 = vmul.f32 0.0078125, %v2098_v14 }
 0x669   : > { %v2294_v21 = vmul.f32 %v7220_v50, %v2246_v2  ;;  %v2100_v23 = vpop.xlane.xlu1 %2099  ;;  %v2315_v22 = vmul.f32 %v8796_v8, %v2293_v41 }
 0x66a   : > { %v2265_v39 = vadd.f32 1e-12, %v2233_v37  ;;  %v2234_v7 = vmax.f32 %v2218_v31, 0.0  ;;  %v8807_v42 = vmul.f32 0.0078125, %v2100_v23  ;;  %v2203_v13 = vmul.f32 %v8799_v62, %v8799_v62  ;;  %v7070_v37 = vld [vmem:[%s11360_s13 + $0x8] sm:$0xff]  }
 0x66b   : > { %v2162_v5 = vpop.xlane.xlu0 %2161  ;;  %v2316_v45 = vmul.f32 %v8796_v8, %v2294_v21  ;;  %v8815_v35 = vadd.f32 %v8805_v16, %v2315_v22  ;;  %v7072_v31 = vld [vmem:[%s11360_s13 + $0x88] sm:$0xff]  }
 0x66c   : > { %7225 = vrsqrt.f32 %v2265_v39  ;;  %v2266_v0 = vadd.f32 1e-12, %v2234_v7  ;;  %v2187_v54 = vmul.f32 0.0078125, %v2162_v5  ;;  %v2204_v4 = vmul.f32 %v8807_v42, %v8807_v42  ;;  %v7073_v39 = vld [vmem:[%s11360_s13 + $0x50] sm:$0xff]  }
 0x66d   : > { %v2164_v18 = vpop.xlane.xlu1 %2163  ;;  %11489 = vst [vmem:[#allocation9_spill] sm:$0xff] %v8815_v35  ;;  %v8818_v44 = vadd.f32 %v8805_v16, %v2316_v45  ;;  %v7075_v7 = vld [vmem:[%s11360_s13 + $0xd0] sm:$0xff]   ;;  %v2249_v5 = vsub.f32 %v8579_v33, %v8784_v1 }
 0x66e   : > { %v7222_v53 = vpop.eup %7221  ;;  %7227 = vrsqrt.f32 %v2266_v0  ;;  %v2219_v60 = vsub.f32 %v2187_v54, %v2203_v13  ;;  %v2188_v29 = vmul.f32 0.0078125, %v2164_v18 }
 0x66f   : > { %11490 = vst [vmem:[#allocation10_spill] sm:$0xff] %v8818_v44  ;;  %v2102_v12 = vpop.xlane.xlu0 %2101  ;;  %v2386_v46 = vpack.c.bf16 %v8818_v44, %v8815_v35  ;;  %v2295_v58 = vmul.f32 %v7222_v53, %v2247_v55 }
 0x670   : > { %v7224_v25 = vpop.eup %7223  ;;  %v2235_v15 = vmax.f32 %v2219_v60, 0.0  ;;  %v2220_v52 = vsub.f32 %v2188_v29, %v2204_v4  ;;  %v8832_v9 = vmul.f32 0.0078125, %v2102_v12  ;;  %v2250_v4 = vsub.f32 %v8594_v30, %v8786_v10  ;;  %v7074_v29 = vld [vmem:[%s11360_s13 + $0x10] sm:$0xff]   ;;  %v7077_v30 = vld [vmem:[%s11360_s13 + $0x58] sm:$0xff]  }
 0x671   : > { %v2104_v24 = vpop.xlane.xlu1 %2103  ;;  %2608 = vmatmul.mubr.bf16.vlgmr.msra.gmra.mrb[48].mxu0 %v2386_v46  ;;  %2721 = vmatmul.mubr.bf16.vlgmr.msra.gmra.mrb[48].mxu1 %v2386_v46  ;;  %v2296_v43 = vmul.f32 %v7224_v25, %v2248_v57  ;;  %v2317_v3 = vmul.f32 %v8796_v8, %v2295_v58  ;;  %v7076_v57 = vld [vmem:[%s11360_s13 + $0x90] sm:$0xff]   ;;  %v7079_v10 = vld [vmem:[%s11360_s13 + $0xd8] sm:$0xff]  }
 0x672   : > { %v2267_v34 = vadd.f32 1e-12, %v2235_v15  ;;  %v2236_v2 = vmax.f32 %v2220_v52, 0.0  ;;  %2617 = vmatprep.mubr.bf16.mxu0 %v7713_v49  ;;  %2730 = vmatprep.mubr.bf16.mxu1 %v7713_v49  ;;  %v8843_v41 = vmul.f32 0.0078125, %v2104_v24  ;;  %v2205_v23 = vmul.f32 %v8832_v9, %v8832_v9 }
 0x673   : > { %v2166_v14 = vpop.xlane.xlu0 %2165  ;;  %v2318_v50 = vmul.f32 %v8796_v8, %v2296_v43  ;;  %6513 = vmatpush3.bf16.msra.mxu0 %v7066_v17  ;;  %6577 = vmatpush3.bf16.msra.mxu1 %v7068_v11  ;;  %v8863_v0 = vadd.f32 %v8805_v16, %v2317_v3  ;;  %v7078_v3 = vld [vmem:[%s11360_s13 + $0x18] sm:$0xff]  }
 0x674   : > { %7229 = vrsqrt.f32 %v2267_v34  ;;  %v2268_v21 = vadd.f32 1e-12, %v2236_v2  ;;  %v2189_v22 = vmul.f32 0.0078125, %v2166_v14  ;;  %6514 = vmatprep.subr.bf16.mxu0 %v7069_v61  ;;  %6578 = vmatprep.subr.bf16.mxu1 %v7071_v51  ;;  %v2206_v55 = vmul.f32 %v8843_v41, %v8843_v41  ;;  %v7080_v34 = vld [vmem:[%s11360_s13 + $0x98] sm:$0xff]  }
 0x675   : > { %v2168_v45 = vpop.xlane.xlu1 %2167  ;;  %11491 = vst [vmem:[#allocation11_spill] sm:$0xff] %v8863_v0  ;;  %v8866_v13 = vadd.f32 %v8805_v16, %v2318_v50 }
 0x676   : > { %v7226_v54 = vpop.eup %7225  ;;  %7231 = vrsqrt.f32 %v2268_v21  ;;  %v2221_v18 = vsub.f32 %v2189_v22, %v2205_v23  ;;  %v2190_v53 = vmul.f32 0.0078125, %v2168_v45  ;;  %v2252_v45 = vsub.f32 %v8640_v63, %v8807_v42 }
 0x677   : > { %11492 = vst [vmem:[#allocation12_spill] sm:$0xff] %v8866_v13  ;;  %v2106_v60 = vpop.xlane.xlu0 %2105  ;;  %v2387_v33 = vpack.c.bf16 %v8866_v13, %v8863_v0  ;;  %v2297_v1 = vmul.f32 %v7226_v54, %v2249_v5  ;;  %6515 = vmatpush3.bf16.msra.mxu0 %v7070_v37  ;;  %6579 = vmatpush3.bf16.msra.mxu1 %v7072_v31 }
 0x678   : > { %v7228_v12 = vpop.eup %7227  ;;  %v2237_v46 = vmax.f32 %v2221_v18, 0.0  ;;  %v2222_v58 = vsub.f32 %v2190_v53, %v2206_v55  ;;  %v8880_v17 = vmul.f32 0.0078125, %v2106_v60  ;;  %6516 = vmatprep.subr.bf16.mxu0 %v7073_v39  ;;  %6580 = vmatprep.subr.bf16.mxu1 %v7075_v7  ;;  %v2251_v37 = vsub.f32 %v8625_v6, %v8799_v62 }
 0x679   : > { %v2108_v11 = vpop.xlane.xlu1 %2107  ;;  %2618 = vmatmul.mubr.bf16.gmra.mrb[52].mxu0 %v2387_v33  ;;  %2731 = vmatmul.mubr.bf16.gmra.mrb[52].mxu1 %v2387_v33  ;;  %v2298_v25 = vmul.f32 %v7228_v12, %v2250_v4  ;;  %v2319_v15 = vmul.f32 %v8796_v8, %v2297_v1 }
 0x67a   : > { %v2269_v52 = vadd.f32 1e-12, %v2237_v46  ;;  %v2238_v61 = vmax.f32 %v2222_v58, 0.0  ;;  %2627 = vmatprep.mubr.bf16.mxu0 %v7713_v49  ;;  %2740 = vmatprep.mubr.bf16.mxu1 %v7713_v49  ;;  %v8891_v51 = vmul.f32 0.0078125, %v2108_v11  ;;  %v2207_v14 = vmul.f32 %v8880_v17, %v8880_v17 }
 0x67b   : > { %v2170_v24 = vpop.xlane.xlu0 %2169  ;;  %v2320_v43 = vmul.f32 %v8796_v8, %v2298_v25  ;;  %6517 = vmatpush3.bf16.msra.mxu0 %v7074_v29  ;;  %6581 = vmatpush3.bf16.msra.mxu1 %v7076_v57  ;;  %v8905_v21 = vadd.f32 %v8805_v16, %v2319_v15 }
 0x67c   : > { %7233 = vrsqrt.f32 %v2269_v52  ;;  %v2270_v2 = vadd.f32 1e-12, %v2238_v61  ;;  %v2191_v50 = vmul.f32 0.0078125, %v2170_v24  ;;  %6518 = vmatprep.subr.bf16.mxu0 %v7077_v30  ;;  %6582 = vmatprep.subr.bf16.mxu1 %v7079_v10  ;;  %v2208_v39 = vmul.f32 %v8891_v51, %v8891_v51 }
 0x67d   : > { %v2172_v31 = vpop.xlane.xlu1 %2171  ;;  %11493 = vst [vmem:[#allocation13_spill] sm:$0xff] %v8905_v21  ;;  %v8908_v23 = vadd.f32 %v8805_v16, %v2320_v43  ;;  %v2253_v10 = vsub.f32 %v8663_v19, %v8832_v9 }
 0x67e   : > { %v7230_v22 = vpop.eup %7229  ;;  %7235 = vrsqrt.f32 %v2270_v2  ;;  %v2223_v7 = vsub.f32 %v2191_v50, %v2207_v14  ;;  %v2192_v5 = vmul.f32 0.0078125, %v2172_v31 }
 0x67f   : > { %11494 = vst [vmem:[#allocation14_spill] sm:$0xff] %v8908_v23  ;;  %v2110_v54 = vpop.xlane.xlu0 %2109  ;;  %v2388_v6 = vpack.c.bf16 %v8908_v23, %v8905_v21  ;;  %v2299_v62 = vmul.f32 %v7230_v22, %v2251_v37  ;;  %6519 = vmatpush3.bf16.msra.mxu0 %v7078_v3  ;;  %6583 = vmatpush3.bf16.msra.mxu1 %v7080_v34 }
 0x680   : > { %v7232_v55 = vpop.eup %7231  ;;  %v2239_v18 = vmax.f32 %v2223_v7, 0.0  ;;  %v2224_v53 = vsub.f32 %v2192_v5, %v2208_v39  ;;  %v8916_v4 = vmul.f32 0.0078125, %v2110_v54  ;;  %v2254_v3 = vsub.f32 %v8678_v38, %v8843_v41 }
 0x681   : > { %2628 = vmatmul.mubr.bf16.gmra.mrb[56].mxu0 %v2388_v6  ;;  %2741 = vmatmul.mubr.bf16.gmra.mrb[56].mxu1 %v2388_v6  ;;  %v2112_v60 = vpop.xlane.xlu1 %2111  ;;  %v2300_v33 = vmul.f32 %v7232_v55, %v2252_v45  ;;  %v2321_v1 = vmul.f32 %v8796_v8, %v2299_v62  ;;  %v2255_v55 = vsub.f32 %v8703_v56, %v8880_v17 }
 0x682   : > { %v2271_v29 = vadd.f32 1e-12, %v2239_v18  ;;  %v2240_v63 = vmax.f32 %v2224_v53, 0.0  ;;  %2637 = vmatprep.mubr.bf16.mxu0 %v7713_v49  ;;  %2750 = vmatprep.mubr.bf16.mxu1 %v7713_v49  ;;  %v8921_v42 = vmul.f32 0.0078125, %v2112_v60  ;;  %v2209_v58 = vmul.f32 %v8916_v4, %v8916_v4 }
 0x683   : > { %v2174_v57 = vpop.xlane.xlu0 %2173  ;;  %v2322_v12 = vmul.f32 %v8796_v8, %v2300_v33  ;;  %v8929_v25 = vadd.f32 %v8805_v16, %v2321_v1 }
 0x684   : > { %7237 = vrsqrt.f32 %v2271_v29  ;;  %v2272_v46 = vadd.f32 1e-12, %v2240_v63  ;;  %v2193_v30 = vmul.f32 0.0078125, %v2174_v57  ;;  %v2210_v61 = vmul.f32 %v8921_v42, %v8921_v42 }
 0x685   : > { %v2176_v11 = vpop.xlane.xlu1 %2175  ;;  %11495 = vst [vmem:[#allocation15_spill] sm:$0xff] %v8929_v25  ;;  %v8932_v15 = vadd.f32 %v8805_v16, %v2322_v12  ;;  %v2256_v57 = vsub.f32 %v8718_v59, %v8891_v51 }
 0x686   : > { %v7234_v52 = vpop.eup %7233  ;;  %7239 = vrsqrt.f32 %v2272_v46  ;;  %v2225_v24 = vsub.f32 %v2193_v30, %v2209_v58  ;;  %v2194_v43 = vmul.f32 0.0078125, %v2176_v11 }
 0x687   : > { %11496 = vst [vmem:[#allocation16_spill] sm:$0xff] %v8932_v15  ;;  %v2114_v34 = vpop.xlane.xlu0 %2113  ;;  %v2389_v19 = vpack.c.bf16 %v8932_v15, %v8929_v25  ;;  %v2301_v9 = vmul.f32 %v7234_v52, %v2253_v10 }
 0x688   : > { %v7236_v2 = vpop.eup %7235  ;;  %v2241_v14 = vmax.f32 %v2225_v24, 0.0  ;;  %v2226_v50 = vsub.f32 %v2194_v43, %v2210_v61  ;;  %v8940_v37 = vmul.f32 0.0078125, %v2114_v34  ;;  %v2257_v61 = vsub.f32 %v8743_v32, %v8916_v4 }
 0x689   : > { %2638 = vmatmul.mubr.bf16.gmra.mrb[60].mxu0 %v2389_v19  ;;  %2751 = vmatmul.mubr.bf16.gmra.mrb[60].mxu1 %v2389_v19  ;;  %v2116_v31 = vpop.xlane.xlu1 %2115  ;;  %v2302_v22 = vmul.f32 %v7236_v2, %v2254_v3  ;;  %v2323_v39 = vmul.f32 %v8796_v8, %v2301_v9  ;;  %v2258_v34 = vsub.f32 %v8746_v36, %v8921_v42 }
 0x68a   : > { %v2273_v7 = vadd.f32 1e-12, %v2241_v14  ;;  %v2242_v5 = vmax.f32 %v2226_v50, 0.0  ;;  %2647 = vmatprep.mubr.bf16.mxu0 %v7713_v49  ;;  %2760 = vmatprep.mubr.bf16.mxu1 %v7713_v49  ;;  %v2132_v38 = vmul.f32 0.0078125, %v2116_v31  ;;  %v2211_v6 = vmul.f32 %v8940_v37, %v8940_v37 }
 0x68b   : > { %v2178_v41 = vpop.xlane.xlu0 %2177  ;;  %v2324_v45 = vmul.f32 %v8796_v8, %v2302_v22  ;;  %v8951_v53 = vadd.f32 %v8805_v16, %v2323_v39  ;;  %v2259_v50 = vsub.f32 %v8759_v47, %v8940_v37 }
 0x68c   : > { %7241 = vrsqrt.f32 %v2273_v7  ;;  %v2274_v54 = vadd.f32 1e-12, %v2242_v5  ;;  %v2195_v62 = vmul.f32 0.0078125, %v2178_v41  ;;  %v2212_v1 = vmul.f32 %v2132_v38, %v2132_v38 }
 0x68d   : > { %v2180_v18 = vpop.xlane.xlu1 %2179  ;;  %11497 = vst [vmem:[#allocation17_spill] sm:$0xff] %v8951_v53  ;;  %v8954_v60 = vadd.f32 %v8805_v16, %v2324_v45  ;;  %v2260_v22 = vsub.f32 %v8762_v48, %v2132_v38 }
 0x68e   : > { %v7238_v33 = vpop.eup %7237  ;;  %7243 = vrsqrt.f32 %v2274_v54  ;;  %v2227_v29 = vsub.f32 %v2195_v62, %v2211_v6  ;;  %v2196_v63 = vmul.f32 0.0078125, %v2180_v18  ;;  %v7081_v54 = vld [vmem:[%s11360_s13 + $0x60] sm:$0xff]   ;;  %v7085_v6 = vld [vmem:[%s11360_s13 + $0x68] sm:$0xff]  }
 0x68f   : > { %11498 = vst [vmem:[#allocation18_spill] sm:$0xff] %v8954_v60  ;;  %v2390_v12 = vpack.c.bf16 %v8954_v60, %v8951_v53  ;;  %v2303_v46 = vmul.f32 %v7238_v33, %v2255_v55  ;;  %6520 = vmatprep.subr.bf16.mxu0 %v7081_v54  ;;  %v7087_v62 = vld [vmem:[%s11360_s13 + $0xe8] sm:$0xff]   ;;  %v7089_v33 = vld [vmem:[%s11360_s13 + $0x70] sm:$0xff]  }
 0x690   : > { %v7240_v56 = vpop.eup %7239  ;;  %v2243_v17 = vmax.f32 %v2227_v29, 0.0  ;;  %v2228_v58 = vsub.f32 %v2196_v63, %v2212_v1  ;;  %v7086_v55 = vld [vmem:[%s11360_s13 + $0x28] sm:$0xff]   ;;  %v7091_v1 = vld [vmem:[%s11360_s13 + $0xf0] sm:$0xff]  }
 0x691   : > { %2648 = vmatmul.mubr.bf16.gmra.mrb[64].mxu0 %v2390_v12  ;;  %2761 = vmatmul.mubr.bf16.gmra.mrb[64].mxu1 %v2390_v12  ;;  %v2304_v30 = vmul.f32 %v7240_v56, %v2256_v57  ;;  %v2325_v10 = vmul.f32 %v8796_v8, %v2303_v46  ;;  %v7088_v18 = vld [vmem:[%s11360_s13 + $0xa8] sm:$0xff]   ;;  %v7090_v29 = vld [vmem:[%s11360_s13 + $0x30] sm:$0xff]   ;;  %v7093_v57 = vld [vmem:[%s11360_s13 + $0x78] sm:$0xff]  }
 0x692   : > { %v2275_v11 = vadd.f32 1e-12, %v2243_v17  ;;  %v2244_v52 = vmax.f32 %v2228_v58, 0.0  ;;  %2657 = vmatprep.mubr.bf16.mxu0 %v7713_v49  ;;  %2770 = vmatprep.mubr.bf16.mxu1 %v7713_v49  ;;  %v7092_v63 = vld [vmem:[%s11360_s13 + $0xb0] sm:$0xff]   ;;  %v7095_v12 = vld [vmem:[%s11360_s13 + $0xf8] sm:$0xff]   ;;  %v2409_v58 = vsub.s32 3, %v8252_v28 }
 0x693   : > { %v2326_v59 = vmul.f32 %v8796_v8, %v2304_v30  ;;  %v8967_v24 = vadd.f32 %v8805_v16, %v2325_v10  ;;  %v7094_v46 = vld [vmem:[%s11360_s13 + $0x38] sm:$0xff]   ;;  %v2385_v17 = vld [vmem:[%s11359_s12] sm:$0xf] }
 0x694   : > { %7245 = vrsqrt.f32 %v2275_v11  ;;  %v2276_v51 = vadd.f32 1e-12, %v2244_v52  ;;  %v7096_v56 = vld [vmem:[%s11360_s13 + $0xb8] sm:$0xff]   ;;  %v9057_v30 = vrot.slane %v2385_v17, %v1122_v27  ;;  %v9061_v10 = vrot.slane %v2385_v17, %v1130_v40 }
 0x695   : > { %11499 = vst [vmem:[#allocation19_spill] sm:$0xff] %v8967_v24  ;;  %v8970_v43 = vadd.f32 %v8805_v16, %v2326_v59  ;;  %v9065_v11 = vrot.slane %v2385_v17, %v1126_v20  ;;  %v9067_v52 = vrot.slane %v2385_v17, %v2409_v58 }
 0x696   : > { %v7242_v3 = vpop.eup %7241  ;;  %7247 = vrsqrt.f32 %v2276_v51 }
 0x697   : > { %11500 = vst [vmem:[#allocation20_spill] sm:$0xff] %v8970_v43  ;;  %v2391_v19 = vpack.c.bf16 %v8970_v43, %v8967_v24  ;;  %v2305_v9 = vmul.f32 %v7242_v3, %v2257_v61 }
 0x698   : > { %v7244_v2 = vpop.eup %7243 }
 0x699   : > { %2658 = vmatmul.mubr.bf16.gmra.mrb[68].mxu0 %v2391_v19  ;;  %2771 = vmatmul.mubr.bf16.gmra.mrb[68].mxu1 %v2391_v19  ;;  %v2306_v14 = vmul.f32 %v7244_v2, %v2258_v34  ;;  %v2327_v32 = vmul.f32 %v8796_v8, %v2305_v9 }
 0x69a   : > { %2667 = vmatprep.mubr.bf16.mxu0 %v7713_v49  ;;  %2780 = vmatprep.mubr.bf16.mxu1 %v7713_v49 }
 0x69b   : > { %v2328_v4 = vmul.f32 %v8796_v8, %v2306_v14  ;;  %v8983_v36 = vadd.f32 %v8805_v16, %v2327_v32 }
 0x69d   : > { %11501 = vst [vmem:[#allocation21_spill] sm:$0xff] %v8983_v36  ;;  %v8986_v42 = vadd.f32 %v8805_v16, %v2328_v4 }
 0x69e   : > { %v7246_v31 = vpop.eup %7245 }
 0x69f   : > { %11502 = vst [vmem:[#allocation22_spill] sm:$0xff] %v8986_v42  ;;  %v2392_v39 = vpack.c.bf16 %v8986_v42, %v8983_v36  ;;  %v2307_v7 = vmul.f32 %v7246_v31, %v2259_v50 }
 0x6a0   : > { %v7248_v5 = vpop.eup %7247 }
 0x6a1   : > { %2668 = vmatmul.mubr.bf16.gmra.mrb[72].mxu0 %v2392_v39  ;;  %2781 = vmatmul.mubr.bf16.gmra.mrb[72].mxu1 %v2392_v39  ;;  %v2308_v41 = vmul.f32 %v7248_v5, %v2260_v22  ;;  %v2329_v45 = vmul.f32 %v8796_v8, %v2307_v7 }
 0x6a2   : > { %2677 = vmatprep.mubr.bf16.mxu0 %v7713_v49  ;;  %2790 = vmatprep.mubr.bf16.mxu1 %v7713_v49  ;;  %v7083_v49 = vld [vmem:[%s11360_s13 + $0xe0] sm:$0xff]  }
 0x6a3   : > { %v2330_v47 = vmul.f32 %v8796_v8, %v2308_v41  ;;  %v8996_v37 = vadd.f32 %v8805_v16, %v2329_v45  ;;  %v7082_v8 = vld [vmem:[%s11360_s13 + $0x20] sm:$0xff]   ;;  %6584 = vmatprep.subr.bf16.mxu1 %v7083_v49 }
 0x6a4   : > { %6521 = vmatpush3.bf16.msra.mxu0 %v7082_v8 }
 0x6a5   : > { %11503 = vst [vmem:[#allocation23_spill] sm:$0xff] %v8996_v37  ;;  %v8999_v48 = vadd.f32 %v8805_v16, %v2330_v47  ;;  %v7084_v16 = vld [vmem:[%s11360_s13 + $0xa0] sm:$0xff]   ;;  %6522 = vmatprep.subr.bf16.mxu0 %v7085_v6 }
 0x6a6   : > { %6585 = vmatpush3.bf16.msra.mxu1 %v7084_v16 }
 0x6a7   : > { %11504 = vst [vmem:[#allocation24_spill] sm:$0xff] %v8999_v48  ;;  %v2393_v38 = vpack.c.bf16 %v8999_v48, %v8996_v37  ;;  %6586 = vmatprep.subr.bf16.mxu1 %v7087_v62 }
 0x6a8   : > { %6523 = vmatpush3.bf16.msra.mxu0 %v7086_v55 }
 0x6a9   : > { %2678 = vmatmul.mubr.bf16.gmra.mrb[76].mxu0 %v2393_v38  ;;  %2791 = vmatmul.mubr.bf16.gmra.mrb[76].mxu1 %v2393_v38 }
 0x6aa   : > { %6587 = vmatpush3.bf16.msra.mxu1 %v7088_v18  ;;  %6524 = vmatprep.subr.bf16.mxu0 %v7089_v33 }
 0x6ab   : > { %6588 = vmatprep.subr.bf16.mxu1 %v7091_v1 }
 0x6ac   : > { %6525 = vmatpush3.bf16.msra.mxu0 %v7090_v29 }
 0x6ad   : > { %6526 = vmatprep.subr.bf16.mxu0 %v7093_v57 }
 0x6ae   : > { %6589 = vmatpush3.bf16.msra.mxu1 %v7092_v63 }
 0x6af   : > { %6590 = vmatprep.subr.bf16.mxu1 %v7095_v12 }
 0x6b0   : > { %6527 = vmatpush3.bf16.msra.mxu0 %v7094_v46 }
 0x6b2   : > { %6591 = vmatpush3.bf16.msra.mxu1 %v7096_v56 }
 0x744   : > { %v2609_v59 = vpop.f32.mrb[48].mxu0  ;;  %v2722_v51 = vpop.f32.mrb[48].mxu1 }
 0x745   : > { %v9070_v61 = vadd.f32 %v2609_v59, %v9057_v30  ;;  %v9073_v3 = vadd.f32 %v2722_v51, %v9061_v10  ;;  %v2611_v27 = vpop.f32.mrb[49].mxu0  ;;  %v2724_v34 = vpop.f32.mrb[49].mxu1 }
 0x746   : > { %v9076_v19 = vadd.f32 %v2611_v27, %v9065_v11  ;;  %v9079_v40 = vadd.f32 %v2724_v34, %v9067_v52  ;;  %v2613_v28 = vpop.f32.mrb[50].mxu0  ;;  %v2726_v20 = vpop.f32.mrb[50].mxu1 }
 0x747   : > { %v2801_v9 = vmul.f32 %v9070_v61, %v9070_v61  ;;  %v2803_v2 = vmul.f32 %v9073_v3, %v9073_v3  ;;  %v9086_v14 = vadd.f32 %v2613_v28, %v9057_v30  ;;  %v9089_v32 = vadd.f32 %v2726_v20, %v9061_v10  ;;  %v2615_v4 = vpop.f32.mrb[51].mxu0  ;;  %v2728_v50 = vpop.f32.mrb[51].mxu1 }
 0x748   : > { %v2802_v31 = vmul.f32 %v9076_v19, %v9076_v19  ;;  %v2804_v22 = vmul.f32 %v9079_v40, %v9079_v40  ;;  %v9096_v39 = vadd.f32 %v2615_v4, %v9065_v11  ;;  %v9099_v7 = vadd.f32 %v2728_v50, %v9067_v52 }
 0x749   : > { %v2865_v5 = vmul.f32 %v2801_v9, %v9070_v61  ;;  %v2867_v41 = vmul.f32 %v2803_v2, %v9073_v3  ;;  %v2805_v45 = vmul.f32 %v9086_v14, %v9086_v14  ;;  %v2807_v47 = vmul.f32 %v9089_v32, %v9089_v32 }
 0x74a   : > { %v2866_v38 = vmul.f32 %v2802_v31, %v9076_v19  ;;  %v2868_v54 = vmul.f32 %v2804_v22, %v9079_v40  ;;  %v2806_v49 = vmul.f32 %v9096_v39, %v9096_v39  ;;  %v2808_v8 = vmul.f32 %v9099_v7, %v9099_v7 }
 0x74b   : > { %v2929_v16 = vmul.f32 0.044715, %v2865_v5  ;;  %v2931_v6 = vmul.f32 0.044715, %v2867_v41  ;;  %v2869_v62 = vmul.f32 %v2805_v45, %v9086_v14  ;;  %v2871_v55 = vmul.f32 %v2807_v47, %v9089_v32 }
 0x74c   : > { %v2930_v18 = vmul.f32 0.044715, %v2866_v38  ;;  %v2932_v33 = vmul.f32 0.044715, %v2868_v54  ;;  %v2870_v1 = vmul.f32 %v2806_v49, %v9096_v39  ;;  %v2872_v29 = vmul.f32 %v2808_v8, %v9099_v7  ;;  %v2619_v63 = vpop.f32.mrb[52].mxu0  ;;  %v2732_v57 = vpop.f32.mrb[52].mxu1 }
 0x74d   : > { %v2993_v12 = vadd.f32 %v2929_v16, %v9070_v61  ;;  %v2995_v46 = vadd.f32 %v2931_v6, %v9073_v3  ;;  %v2933_v56 = vmul.f32 0.044715, %v2869_v62  ;;  %v2935_v17 = vmul.f32 0.044715, %v2871_v55  ;;  %v2621_v58 = vpop.f32.mrb[53].mxu0  ;;  %v2734_v59 = vpop.f32.mrb[53].mxu1 }
 0x74e   : > { %v2994_v51 = vadd.f32 %v2930_v18, %v9076_v19  ;;  %v2996_v27 = vadd.f32 %v2932_v33, %v9079_v40  ;;  %v2934_v34 = vmul.f32 0.044715, %v2870_v1  ;;  %v2936_v28 = vmul.f32 0.044715, %v2872_v29  ;;  %v2623_v20 = vpop.f32.mrb[54].mxu0  ;;  %v2736_v9 = vpop.f32.mrb[54].mxu1 }
 0x74f   : > { %v3057_v2 = vmul.f32 0.7978846, %v2993_v12  ;;  %v3059_v4 = vmul.f32 0.7978846, %v2995_v46  ;;  %v2997_v50 = vadd.f32 %v2933_v56, %v9086_v14  ;;  %v2999_v31 = vadd.f32 %v2935_v17, %v9089_v32  ;;  %v2625_v22 = vpop.f32.mrb[55].mxu0  ;;  %v2738_v5 = vpop.f32.mrb[55].mxu1 }
 0x750   : > { %v3058_v41 = vmul.f32 0.7978846, %v2994_v51  ;;  %v3060_v45 = vmul.f32 0.7978846, %v2996_v27  ;;  %v2998_v47 = vadd.f32 %v2934_v34, %v9096_v39  ;;  %v3000_v38 = vadd.f32 %v2936_v28, %v9099_v7 }
 0x751   : > { %7249 = vtanh.f32 %v3057_v2  ;;  %v3061_v54 = vmul.f32 0.7978846, %v2997_v50  ;;  %v3063_v49 = vmul.f32 0.7978846, %v2999_v31  ;;  %v9126_v8 = vadd.f32 %v2619_v63, %v9057_v30 }
 0x752   : > { %7251 = vtanh.f32 %v3059_v4  ;;  %v3062_v16 = vmul.f32 0.7978846, %v2998_v47  ;;  %v3064_v6 = vmul.f32 0.7978846, %v3000_v38  ;;  %v9129_v62 = vadd.f32 %v2732_v57, %v9061_v10 }
 0x753   : > { %11505 = vst [vmem:[#allocation25_spill] sm:$0xff] %v9126_v8  ;;  %7253 = vtanh.f32 %v3058_v41  ;;  %v2809_v55 = vmul.f32 %v9126_v8, %v9126_v8  ;;  %v9134_v18 = vadd.f32 %v2621_v58, %v9065_v11  ;;  %v9137_v33 = vadd.f32 %v2734_v59, %v9067_v52 }
 0x754   : > { %11506 = vst [vmem:[#allocation26_spill] sm:$0xff] %v9129_v62  ;;  %7255 = vtanh.f32 %v3060_v45  ;;  %v2811_v1 = vmul.f32 %v9129_v62, %v9129_v62  ;;  %v9142_v29 = vadd.f32 %v2623_v20, %v9057_v30  ;;  %v9145_v63 = vadd.f32 %v2736_v9, %v9061_v10  ;;  %v9147_v57 = vpop.f32.mrb[56].mxu0  ;;  %v9149_v12 = vpop.f32.mrb[56].mxu1 }
 0x755   : > { %11507 = vst [vmem:[#allocation27_spill] sm:$0xff] %v9137_v33  ;;  %7257 = vtanh.f32 %v3061_v54  ;;  %v2873_v46 = vmul.f32 %v2809_v55, %v9126_v8  ;;  %v2810_v56 = vmul.f32 %v9134_v18, %v9134_v18  ;;  %v2812_v17 = vmul.f32 %v9137_v33, %v9137_v33  ;;  %v9156_v58 = vpop.f32.mrb[57].mxu0  ;;  %v9158_v59 = vpop.f32.mrb[57].mxu1 }
 0x756   : > { %11508 = vst [vmem:[#allocation28_spill] sm:$0xff] %v9142_v29  ;;  %11509 = vst [vmem:[#allocation29_spill] sm:$0xff] %v9145_v63  ;;  %7259 = vtanh.f32 %v3063_v49  ;;  %v2875_v51 = vmul.f32 %v2811_v1, %v9129_v62  ;;  %v2813_v27 = vmul.f32 %v9142_v29, %v9142_v29  ;;  %v2815_v34 = vmul.f32 %v9145_v63, %v9145_v63  ;;  %v9165_v28 = vpop.f32.mrb[58].mxu0  ;;  %v9167_v20 = vpop.f32.mrb[58].mxu1 }
 0x757   : > { %7261 = vtanh.f32 %v3062_v16  ;;  %v2937_v9 = vmul.f32 0.044715, %v2873_v46  ;;  %v2874_v2 = vmul.f32 %v2810_v56, %v9134_v18  ;;  %v2876_v4 = vmul.f32 %v2812_v17, %v9137_v33  ;;  %v9171_v50 = vpop.f32.mrb[59].mxu0  ;;  %v9173_v31 = vpop.f32.mrb[59].mxu1 }
 0x758   : > { %7263 = vtanh.f32 %v3064_v6  ;;  %v2939_v41 = vmul.f32 0.044715, %v2875_v51  ;;  %v2877_v45 = vmul.f32 %v2813_v27, %v9142_v29  ;;  %v2879_v47 = vmul.f32 %v2815_v34, %v9145_v63 }
 0x759   : > { %v3001_v38 = vadd.f32 %v2937_v9, %v9126_v8  ;;  %v2938_v54 = vmul.f32 0.044715, %v2874_v2  ;;  %v2940_v49 = vmul.f32 0.044715, %v2876_v4  ;;  %v9179_v16 = vadd.f32 %v2625_v22, %v9065_v11 }
 0x75a   : > { %v3003_v55 = vadd.f32 %v2939_v41, %v9129_v62  ;;  %v2941_v1 = vmul.f32 0.044715, %v2877_v45  ;;  %v2943_v46 = vmul.f32 0.044715, %v2879_v47  ;;  %v9183_v56 = vadd.f32 %v2738_v5, %v9067_v52 }
 0x75b   : > { %11510 = vst [vmem:[#allocation30_spill] sm:$0xff] %v9179_v16  ;;  %v7250_v6 = vpop.eup %7249  ;;  %v3065_v17 = vmul.f32 0.7978846, %v3001_v38  ;;  %v3002_v51 = vadd.f32 %v2938_v54, %v9134_v18  ;;  %v3004_v27 = vadd.f32 %v2940_v49, %v9137_v33  ;;  %v2814_v34 = vmul.f32 %v9179_v16, %v9179_v16 }
 0x75c   : > { %11511 = vst [vmem:[#allocation31_spill] sm:$0xff] %v9183_v56  ;;  %v7252_v9 = vpop.eup %7251  ;;  %v3185_v2 = vadd.f32 1.0, %v7250_v6  ;;  %v3067_v22 = vmul.f32 0.7978846, %v3003_v55  ;;  %v3005_v4 = vadd.f32 %v2941_v1, %v9142_v29  ;;  %v3007_v41 = vadd.f32 %v2943_v46, %v9145_v63  ;;  %v9191_v45 = vpop.f32.mrb[60].mxu0 }
 0x75d   : > { %v9193_v5 = vpop.f32.mrb[60].mxu1  ;;  %v9195_v47 = vpop.eup %7253  ;;  %v3187_v38 = vadd.f32 1.0, %v7252_v9  ;;  %7265 = vtanh.f32 %v3065_v17  ;;  %v3066_v54 = vmul.f32 0.7978846, %v3002_v51  ;;  %v3068_v49 = vmul.f32 0.7978846, %v3004_v27 }
 0x75e   : > { %v9197_v26 = vpop.f32.mrb[61].mxu0  ;;  %v9199_v48 = vpop.eup %7255  ;;  %v3249_v6 = vmul.f32 0.5, %v3185_v2  ;;  %7267 = vtanh.f32 %v3067_v22  ;;  %v3069_v55 = vmul.f32 0.7978846, %v3005_v4  ;;  %v3071_v1 = vmul.f32 0.7978846, %v3007_v41 }
 0x75f   : > { %v9201_v37 = vpop.f32.mrb[61].mxu1  ;;  %v7258_v46 = vpop.eup %7257  ;;  %v3251_v42 = vmul.f32 0.5, %v3187_v38  ;;  %7269 = vtanh.f32 %v3066_v54  ;;  %v2878_v36 = vmul.f32 %v2814_v34, %v9179_v16  ;;  %v2816_v17 = vmul.f32 %v9183_v56, %v9183_v56 }
 0x760   : > { %v9206_v51 = vpop.f32.mrb[62].mxu0  ;;  %v9208_v27 = vpop.f32.mrb[62].mxu1  ;;  %v9211_v2 = vmul.f32 %v3249_v6, %v9070_v61  ;;  %v3189_v22 = vadd.f32 1.0, %v7258_v46  ;;  %7271 = vtanh.f32 %v3068_v49  ;;  %v9215_v4 = vadd.f32 %v9147_v57, %v9057_v30 }
 0x761   : > { %v7260_v9 = vpop.eup %7259  ;;  %v9217_v41 = vpop.f32.mrb[63].mxu0  ;;  %v9224_v54 = vmul.f32 %v3251_v42, %v9073_v3  ;;  %7273 = vtanh.f32 %v3069_v55  ;;  %v2942_v24 = vmul.f32 0.044715, %v2878_v36  ;;  %v2880_v49 = vmul.f32 %v2816_v17, %v9183_v56 }
 0x762   : > { %11512 = vst [vmem:[#allocation32_spill] sm:$0xff] %v9215_v4  ;;  %v9219_v34 = vpop.f32.mrb[63].mxu1  ;;  %v9221_v38 = vpop.eup %7261  ;;  %v3191_v43 = vadd.f32 1.0, %v7260_v9  ;;  %v3253_v6 = vmul.f32 0.5, %v3189_v22  ;;  %7275 = vtanh.f32 %v3071_v1  ;;  %v2817_v57 = vmul.f32 %v9215_v4, %v9215_v4 }
 0x763   : > { %v9226_v61 = vpop.eup %7263  ;;  %v3006_v60 = vadd.f32 %v2942_v24, %v9179_v16  ;;  %v9234_v53 = vadd.f32 %v9149_v12, %v9061_v10  ;;  %v9238_v42 = vadd.f32 %v9156_v58, %v9065_v11  ;;  %v2944_v3 = vmul.f32 0.044715, %v2880_v49 }
 0x764   : > { %v3255_v46 = vmul.f32 0.5, %v3191_v43  ;;  %v9241_v36 = vmul.f32 %v3253_v6, %v9086_v14  ;;  %v2881_v55 = vmul.f32 %v2817_v57, %v9215_v4  ;;  %v9246_v1 = vadd.f32 %v9158_v59, %v9067_v52  ;;  %v9248_v43 = vpop.f32.mrb[64].mxu0  ;;  %v9250_v24 = vpop.f32.mrb[64].mxu1 }
 0x765   : > { %11513 = vst [vmem:[#allocation33_spill] sm:$0xff] %v9234_v53  ;;  %11514 = vst [vmem:[#allocation34_spill] sm:$0xff] %v9238_v42  ;;  %v3070_v17 = vmul.f32 0.7978846, %v3006_v60  ;;  %v2819_v58 = vmul.f32 %v9234_v53, %v9234_v53  ;;  %v2818_v14 = vmul.f32 %v9238_v42, %v9238_v42  ;;  %v9259_v9 = vpop.f32.mrb[65].mxu0  ;;  %v9261_v22 = vpop.f32.mrb[65].mxu1  ;;  %v3008_v6 = vadd.f32 %v2944_v3, %v9183_v56 }
 0x766   : > { %11515 = vst [vmem:[#allocation35_spill] sm:$0xff] %v9246_v1  ;;  %v9253_v12 = vmul.f32 %v3255_v46, %v9089_v32  ;;  %v2945_v49 = vmul.f32 0.044715, %v2881_v55  ;;  %v2820_v32 = vmul.f32 %v9246_v1, %v9246_v1  ;;  %v9268_v60 = vpop.f32.mrb[66].mxu0  ;;  %v9270_v57 = vpop.f32.mrb[66].mxu1  ;;  %v9288_v44 = vadd.f32 %v9165_v28, %v9057_v30 }
 0x767   : > { %v9272_v46 = vpop.eup %7265  ;;  %7277 = vtanh.f32 %v3070_v17  ;;  %v2883_v25 = vmul.f32 %v2819_v58, %v9234_v53  ;;  %v2882_v59 = vmul.f32 %v2818_v14, %v9238_v42  ;;  %v9278_v23 = vpop.f32.mrb[67].mxu0  ;;  %v3072_v21 = vmul.f32 0.7978846, %v3008_v6 }
 0x768   : > { %v9280_v3 = vpop.f32.mrb[67].mxu1  ;;  %v9282_v55 = vpop.eup %7267  ;;  %v3009_v13 = vadd.f32 %v2945_v49, %v9215_v4  ;;  %v2884_v0 = vmul.f32 %v2820_v32, %v9246_v1  ;;  %11517 = vst [vmem:[#allocation37_spill] sm:$0xff] %v9288_v44  ;;  %v9294_v14 = vadd.f32 %v9167_v20, %v9061_v10  ;;  %v9298_v35 = vadd.f32 %v9171_v50, %v9065_v11 }
 0x769   : > { %11516 = vst [vmem:[#allocation36_spill] sm:$0xff] %v9282_v55  ;;  %v9290_v17 = vpop.eup %7269  ;;  %v2947_v58 = vmul.f32 0.044715, %v2883_v25  ;;  %v2946_v15 = vmul.f32 0.044715, %v2882_v59  ;;  %7279 = vtanh.f32 %v3072_v21  ;;  %v2821_v28 = vmul.f32 %v9288_v44, %v9288_v44 }
 0x76a   : > { %11518 = vst [vmem:[#allocation38_spill] sm:$0xff] %v9294_v14  ;;  %11519 = vst [vmem:[#allocation39_spill] sm:$0xff] %v9298_v35  ;;  %v9300_v6 = vpop.eup %7271  ;;  %v3073_v49 = vmul.f32 0.7978846, %v3009_v13  ;;  %v2948_v32 = vmul.f32 0.044715, %v2884_v0  ;;  %v2823_v20 = vmul.f32 %v9294_v14, %v9294_v14  ;;  %v2822_v50 = vmul.f32 %v9298_v35, %v9298_v35 }
 0x76b   : > { %v9304_v4 = vpop.eup %7273  ;;  %v3011_v25 = vadd.f32 %v2947_v58, %v9234_v53  ;;  %v3010_v59 = vadd.f32 %v2946_v15, %v9238_v42  ;;  %v2885_v13 = vmul.f32 %v2821_v28, %v9288_v44  ;;  %v9318_v21 = vadd.f32 %v9173_v31, %v9067_v52 }
 0x76c   : > { %11520 = vst [vmem:[#allocation40_spill] sm:$0xff] %v9304_v4  ;;  %v9312_v63 = vpop.eup %7275  ;;  %7281 = vtanh.f32 %v3073_v49  ;;  %v3012_v0 = vadd.f32 %v2948_v32, %v9246_v1  ;;  %v9320_v58 = vpop.f32.mrb[68].mxu0  ;;  %v2887_v62 = vmul.f32 %v2823_v20, %v9294_v14  ;;  %v2886_v29 = vmul.f32 %v2822_v50, %v9298_v35 }
 0x76d   : > { %11521 = vst [vmem:[#allocation41_spill] sm:$0xff] %v9312_v63  ;;  %11522 = vst [vmem:[#allocation42_spill] sm:$0xff] %v9318_v21  ;;  %v9322_v15 = vpop.f32.mrb[68].mxu1  ;;  %v3075_v53 = vmul.f32 0.7978846, %v3011_v25  ;;  %v9326_v8 = vpop.f32.mrb[69].mxu0  ;;  %v2824_v31 = vmul.f32 %v9318_v21, %v9318_v21  ;;  %v9334_v1 = vadd.f32 %v9191_v45, %v9057_v30  ;;  %v9342_v50 = vadd.f32 %v9193_v5, %v9061_v10 }
 0x76e   : > { %v3074_v42 = vmul.f32 0.7978846, %v3010_v59  ;;  %v9328_v49 = vpop.f32.mrb[69].mxu1  ;;  %v3076_v32 = vmul.f32 0.7978846, %v3012_v0  ;;  %v9336_v63 = vpop.f32.mrb[70].mxu0 }
 0x76f   : > { %v2949_v28 = vmul.f32 0.044715, %v2885_v13  ;;  %11523 = vst [vmem:[#allocation43_spill] sm:$0xff] %v9334_v1  ;;  %v9338_v25 = vpop.f32.mrb[70].mxu1  ;;  %7283 = vtanh.f32 %v3075_v53  ;;  %v2951_v59 = vmul.f32 0.044715, %v2887_v62  ;;  %v2888_v45 = vmul.f32 %v2824_v31, %v9318_v21 }
 0x770   : > { %v2950_v20 = vmul.f32 0.044715, %v2886_v29  ;;  %11524 = vst [vmem:[#allocation44_spill] sm:$0xff] %v9342_v50  ;;  %v9344_v0 = vpop.f32.mrb[71].mxu0  ;;  %v9346_v13 = vpop.f32.mrb[71].mxu1  ;;  %7285 = vtanh.f32 %v3074_v42  ;;  %v2825_v56 = vmul.f32 %v9334_v1, %v9334_v1  ;;  %v2827_v29 = vmul.f32 %v9342_v50, %v9342_v50 }
 0x771   : > { %v3013_v55 = vadd.f32 %v2949_v28, %v9288_v44  ;;  %v9352_v4 = vpop.eup %7277  ;;  %7287 = vtanh.f32 %v3076_v32  ;;  %v3015_v53 = vadd.f32 %v2951_v59, %v9294_v14  ;;  %v2952_v33 = vmul.f32 0.044715, %v2888_v45 }
 0x772   : > { %v3014_v62 = vadd.f32 %v2950_v20, %v9298_v35  ;;  %v2889_v42 = vmul.f32 %v2825_v56, %v9334_v1  ;;  %v9361_v28 = vadd.f32 %v9197_v26, %v9065_v11  ;;  %v2891_v16 = vmul.f32 %v2827_v29, %v9342_v50 }
 0x773   : > { %v3077_v5 = vmul.f32 0.7978846, %v3013_v55  ;;  %v3079_v31 = vmul.f32 0.7978846, %v3015_v53  ;;  %v9366_v32 = vadd.f32 %v9201_v37, %v9067_v52  ;;  %v9368_v59 = vpop.eup %7279  ;;  %v3016_v55 = vadd.f32 %v2952_v33, %v9318_v21 }
 0x774   : > { %11525 = vst [vmem:[#allocation45_spill] sm:$0xff] %v9361_v28  ;;  %v3078_v44 = vmul.f32 0.7978846, %v3014_v62  ;;  %v2953_v20 = vmul.f32 0.044715, %v2889_v42  ;;  %v2826_v56 = vmul.f32 %v9361_v28, %v9361_v28  ;;  %v9373_v45 = vpop.f32.mrb[72].mxu0  ;;  %v9381_v37 = vadd.f32 %v9206_v51, %v9057_v30 }
 0x775   : > { %11526 = vst [vmem:[#allocation46_spill] sm:$0xff] %v9366_v32  ;;  %7289 = vtanh.f32 %v3077_v5  ;;  %v9375_v26 = vpop.f32.mrb[72].mxu1  ;;  %v2955_v53 = vmul.f32 0.044715, %v2891_v16  ;;  %v2828_v62 = vmul.f32 %v9366_v32, %v9366_v32  ;;  %v9383_v29 = vpop.f32.mrb[73].mxu0 }
 0x776   : > { %7291 = vtanh.f32 %v3079_v31  ;;  %11527 = vst [vmem:[#allocation47_spill] sm:$0xff] %v9381_v37  ;;  %11528 = vst [vmem:[#allocation48_spill] sm:$0xff] %v9383_v29  ;;  %v9385_v33 = vpop.f32.mrb[73].mxu1  ;;  %v9387_v5 = vpop.eup %7281  ;;  %v3080_v42 = vmul.f32 0.7978846, %v3016_v55  ;;  %v3017_v14 = vadd.f32 %v2953_v20, %v9334_v1  ;;  %v2890_v31 = vmul.f32 %v2826_v56, %v9361_v28 }
 0x777   : > { %11529 = vst [vmem:[#allocation49_spill] sm:$0xff] %v9387_v5  ;;  %7293 = vtanh.f32 %v3078_v44  ;;  %v9391_v16 = vpop.f32.mrb[74].mxu0  ;;  %v9393_v21 = vpop.f32.mrb[74].mxu1  ;;  %v3019_v35 = vadd.f32 %v2955_v53, %v9342_v50  ;;  %v2892_v51 = vmul.f32 %v2828_v62, %v9366_v32  ;;  %v2829_v29 = vmul.f32 %v9381_v37, %v9381_v37 }
 0x778   : > { %11530 = vst [vmem:[#allocation50_spill] sm:$0xff] %v9391_v16  ;;  %11531 = vst [vmem:[#allocation51_spill] sm:$0xff] %v9393_v21  ;;  %v9401_v5 = vadd.f32 %v9208_v27, %v9061_v10  ;;  %v9403_v44 = vpop.f32.mrb[75].mxu0  ;;  %v9405_v55 = vpop.f32.mrb[75].mxu1  ;;  %7295 = vtanh.f32 %v3080_v42  ;;  %v3081_v20 = vmul.f32 0.7978846, %v3017_v14  ;;  %v9409_v1 = vadd.f32 %v9217_v41, %v9065_v11 }
 0x779   : > { %v2954_v56 = vmul.f32 0.044715, %v2890_v31  ;;  %v9411_v53 = vpop.eup %7283  ;;  %v3083_v62 = vmul.f32 0.7978846, %v3019_v35  ;;  %v2956_v50 = vmul.f32 0.044715, %v2892_v51  ;;  %v2893_v21 = vmul.f32 %v2829_v29, %v9381_v37 }
 0x77a   : > { %11532 = vst [vmem:[#allocation52_spill] sm:$0xff] %v9401_v5  ;;  %11533 = vst [vmem:[#allocation53_spill] sm:$0xff] %v9409_v1  ;;  %v2831_v27 = vmul.f32 %v9401_v5, %v9401_v5  ;;  %v9416_v16 = vpop.eup %7285  ;;  %7297 = vtanh.f32 %v3081_v20  ;;  %v2830_v14 = vmul.f32 %v9409_v1, %v9409_v1  ;;  %v9423_v41 = vadd.f32 %v9219_v34, %v9067_v52 }
 0x77b   : > { %11534 = vst [vmem:[#allocation54_spill] sm:$0xff] %v9411_v53  ;;  %11535 = vst [vmem:[#allocation55_spill] sm:$0xff] %v9416_v16  ;;  %v3018_v42 = vadd.f32 %v2954_v56, %v9361_v28  ;;  %v9425_v31 = vpop.eup %7287  ;;  %7299 = vtanh.f32 %v3083_v62  ;;  %v3020_v35 = vadd.f32 %v2956_v50, %v9366_v32  ;;  %v2957_v29 = vmul.f32 0.044715, %v2893_v21 }
 0x77c   : > { %11536 = vst [vmem:[#allocation56_spill] sm:$0xff] %v9423_v41  ;;  %v2895_v51 = vmul.f32 %v2831_v27, %v9401_v5  ;;  %v2894_v20 = vmul.f32 %v2830_v14, %v9409_v1  ;;  %v2832_v56 = vmul.f32 %v9423_v41, %v9423_v41  ;;  %v9434_v28 = vadd.f32 %v9248_v43, %v9057_v30  ;;  %v9436_v34 = vpop.f32.mrb[76].mxu0  ;;  %v9438_v16 = vpop.f32.mrb[76].mxu1 }
 0x77d   : > { %v3082_v53 = vmul.f32 0.7978846, %v3018_v42  ;;  %11538 = vst [vmem:[#allocation58_spill] sm:$0xff] %v9436_v34  ;;  %11539 = vst [vmem:[#allocation59_spill] sm:$0xff] %v9438_v16  ;;  %v3084_v62 = vmul.f32 0.7978846, %v3020_v35  ;;  %v3021_v50 = vadd.f32 %v2957_v29, %v9381_v37  ;;  %v9443_v27 = vadd.f32 %v9250_v24, %v9061_v10 }
 0x77e   : > { %11537 = vst [vmem:[#allocation57_spill] sm:$0xff] %v9434_v28  ;;  %v2959_v21 = vmul.f32 0.044715, %v2895_v51  ;;  %v9445_v42 = vpop.f32.mrb[77].mxu0  ;;  %v9447_v14 = vpop.f32.mrb[77].mxu1  ;;  %v2896_v34 = vmul.f32 %v2832_v56, %v9423_v41  ;;  %v2833_v35 = vmul.f32 %v9434_v28, %v9434_v28 }
 0x77f   : > { %11540 = vst [vmem:[#allocation60_spill] sm:$0xff] %v9443_v27  ;;  %11541 = vst [vmem:[#allocation61_spill] sm:$0xff] %v9445_v42  ;;  %v9449_v32 = vpop.eup %7289  ;;  %7301 = vtanh.f32 %v3082_v53  ;;  %v2958_v43 = vmul.f32 0.044715, %v2894_v20  ;;  %v9454_v16 = vpop.f32.mrb[78].mxu0 }
 0x780   : > { %11542 = vst [vmem:[#allocation62_spill] sm:$0xff] %v9447_v14  ;;  %11543 = vst [vmem:[#allocation63_spill] sm:$0xff] %v9454_v16  ;;  %v9456_v29 = vpop.f32.mrb[78].mxu1  ;;  %v9458_v51 = vpop.eup %7291  ;;  %7303 = vtanh.f32 %v3084_v62  ;;  %v3085_v24 = vmul.f32 0.7978846, %v3021_v50  ;;  %v3023_v37 = vadd.f32 %v2959_v21, %v9401_v5  ;;  %v2835_v14 = vmul.f32 %v9443_v27, %v9443_v27 }
 0x781   : > { %11544 = vst [vmem:[#allocation64_spill] sm:$0xff] %v9456_v29  ;;  %v9463_v53 = vpop.f32.mrb[79].mxu0  ;;  %v9465_v20 = vpop.f32.mrb[79].mxu1  ;;  %v3022_v42 = vadd.f32 %v2958_v43, %v9409_v1  ;;  %v2960_v16 = vmul.f32 0.044715, %v2896_v34  ;;  %v2897_v29 = vmul.f32 %v2833_v35, %v9434_v28  ;;  %v9473_v62 = vadd.f32 %v9259_v9, %v9065_v11 }
 0x782   : > { %11545 = vst [vmem:[#allocation65_spill] sm:$0xff] %v9463_v53  ;;  %11546 = vst [vmem:[#allocation66_spill] sm:$0xff] %v9465_v20  ;;  %v9467_v56 = vpop.eup %7293  ;;  %7305 = vtanh.f32 %v3085_v24  ;;  %v3087_v50 = vmul.f32 0.7978846, %v3023_v37  ;;  %v2899_v21 = vmul.f32 %v2835_v14, %v9443_v27  ;;  %v9478_v5 = vadd.f32 %v9261_v22, %v9067_v52 }
 0x783   : > { %11547 = vst [vmem:[#allocation67_spill] sm:$0xff] %v9473_v62  ;;  %v9480_v20 = vpop.eup %7295  ;;  %v3086_v53 = vmul.f32 0.7978846, %v3022_v42  ;;  %v3024_v43 = vadd.f32 %v2960_v16, %v9423_v41  ;;  %v2961_v34 = vmul.f32 0.044715, %v2897_v29  ;;  %v2834_v35 = vmul.f32 %v9473_v62, %v9473_v62 }
 0x784   : > { %11548 = vst [vmem:[#allocation68_spill] sm:$0xff] %v9478_v5  ;;  %7307 = vtanh.f32 %v3087_v50  ;;  %v2963_v9 = vmul.f32 0.044715, %v2899_v21  ;;  %v2836_v37 = vmul.f32 %v9478_v5, %v9478_v5  ;;  %v9489_v14 = vadd.f32 %v9268_v60, %v9057_v30  ;;  %v9491_v22 = vpop.eup %7297 }
 0x785   : > { %11549 = vst [vmem:[#allocation69_spill] sm:$0xff] %v9491_v22  ;;  %7309 = vtanh.f32 %v3086_v53  ;;  %v3088_v24 = vmul.f32 0.7978846, %v3024_v43  ;;  %v3025_v42 = vadd.f32 %v2961_v34, %v9434_v28  ;;  %v2898_v16 = vmul.f32 %v2834_v35, %v9473_v62  ;;  %v9495_v29 = vpop.eup %7299 }
 0x786   : > { %11550 = vst [vmem:[#allocation70_spill] sm:$0xff] %v9495_v29  ;;  %v3027_v50 = vadd.f32 %v2963_v9, %v9443_v27  ;;  %v2900_v21 = vmul.f32 %v2836_v37, %v9478_v5  ;;  %v2837_v41 = vmul.f32 %v9489_v14, %v9489_v14  ;;  %v9503_v60 = vadd.f32 %v9270_v57, %v9061_v10 }
 0x787   : > { %7311 = vtanh.f32 %v3088_v24  ;;  %v3089_v53 = vmul.f32 0.7978846, %v3025_v42  ;;  %v2962_v43 = vmul.f32 0.044715, %v2898_v16  ;;  %v9507_v34 = vadd.f32 %v9278_v23, %v9065_v11 }
 0x788   : > { %v3091_v35 = vmul.f32 0.7978846, %v3027_v50  ;;  %v2964_v28 = vmul.f32 0.044715, %v2900_v21  ;;  %v2901_v9 = vmul.f32 %v2837_v41, %v9489_v14  ;;  %v2839_v37 = vmul.f32 %v9503_v60, %v9503_v60 }
 0x789   : > { %v9512_v27 = vpop.eup %7301  ;;  %7313 = vtanh.f32 %v3089_v53  ;;  %v3026_v57 = vadd.f32 %v2962_v43, %v9473_v62  ;;  %v2838_v24 = vmul.f32 %v9507_v34, %v9507_v34  ;;  %v9519_v42 = vadd.f32 %v9280_v3, %v9067_v52 }
 0x78a   : > { %v9521_v23 = vpop.eup %7303  ;;  %7315 = vtanh.f32 %v3091_v35  ;;  %v3028_v41 = vadd.f32 %v2964_v28, %v9478_v5  ;;  %v2965_v16 = vmul.f32 0.044715, %v2901_v9  ;;  %v2903_v50 = vmul.f32 %v2839_v37, %v9503_v60 }
 0x78b   : > { %11551 = vst [vmem:[#allocation71_spill] sm:$0xff] %v9521_v23  ;;  %v3090_v21 = vmul.f32 0.7978846, %v3026_v57  ;;  %v2902_v53 = vmul.f32 %v2838_v24, %v9507_v34  ;;  %v2840_v43 = vmul.f32 %v9519_v42, %v9519_v42  ;;  %v3186_v62 = vadd.f32 1.0, %v9195_v47 }
 0x78c   : > { %v9529_v29 = vpop.eup %7305  ;;  %v3092_v3 = vmul.f32 0.7978846, %v3028_v41  ;;  %v3029_v1 = vadd.f32 %v2965_v16, %v9489_v14  ;;  %v2967_v22 = vmul.f32 0.044715, %v2903_v50  ;;  %v3190_v35 = vadd.f32 1.0, %v9221_v38 }
 0x78d   : > { %7317 = vtanh.f32 %v3090_v21  ;;  %v2966_v28 = vmul.f32 0.044715, %v2902_v53  ;;  %v2904_v9 = vmul.f32 %v2840_v43, %v9519_v42  ;;  %v3250_v37 = vmul.f32 0.5, %v3186_v62 }
 0x78e   : > { %v9534_v57 = vpop.eup %7307  ;;  %7319 = vtanh.f32 %v3092_v3  ;;  %v3093_v24 = vmul.f32 0.7978846, %v3029_v1  ;;  %v3031_v5 = vadd.f32 %v2967_v22, %v9503_v60  ;;  %v3254_v47 = vmul.f32 0.5, %v3190_v35 }
 0x78f   : > { %v9537_v23 = vpop.eup %7309  ;;  %v3030_v41 = vadd.f32 %v2966_v28, %v9507_v34  ;;  %v2968_v16 = vmul.f32 0.044715, %v2904_v9  ;;  %v3314_v50 = vmul.f32 %v3250_v37, %v9076_v19  ;;  %v3188_v38 = vadd.f32 1.0, %v9199_v48 }
 0x790   : > { %7321 = vtanh.f32 %v3093_v24  ;;  %v3095_v21 = vmul.f32 0.7978846, %v3031_v5  ;;  %v3318_v62 = vmul.f32 %v3254_v47, %v9096_v39  ;;  %v3192_v53 = vadd.f32 1.0, %v9226_v61 }
 0x791   : > { %v9544_v43 = vpop.eup %7311  ;;  %v3094_v1 = vmul.f32 0.7978846, %v3030_v41  ;;  %v3032_v22 = vadd.f32 %v2968_v16, %v9519_v42  ;;  %v3252_v3 = vmul.f32 0.5, %v3188_v38  ;;  %v9549_v35 = vadd.f32 %v9320_v58, %v9057_v30 }
 0x792   : > { %7323 = vtanh.f32 %v3095_v21  ;;  %v3443_v19 = vpack.c.bf16 %v3318_v62, %v3314_v50  ;;  %v3256_v28 = vmul.f32 0.5, %v3192_v53  ;;  %v9553_v48 = vadd.f32 %v9322_v15, %v9061_v10 }
 0x793   : > { %11552 = vst [vmem:[#allocation72_spill] sm:$0xff] %v9549_v35  ;;  %v9555_v39 = vpop.eup %7313  ;;  %7325 = vtanh.f32 %v3094_v1  ;;  %v3096_v61 = vmul.f32 0.7978846, %v3032_v22  ;;  %v3316_v5 = vmul.f32 %v3252_v3, %v9079_v40  ;;  %v2841_v9 = vmul.f32 %v9549_v35, %v9549_v35 }
 0x794   : > { %11553 = vst [vmem:[#allocation73_spill] sm:$0xff] %v9553_v48  ;;  %v9560_v37 = vpop.eup %7315  ;;  %3704 = vmatprep.mubr.bf16.mxu0 %v3443_v19  ;;  %v3320_v58 = vmul.f32 %v3256_v28, %v9099_v7  ;;  %v2843_v24 = vmul.f32 %v9553_v48, %v9553_v48  ;;  %v9567_v15 = vadd.f32 %v9326_v8, %v9065_v11 }
 0x795   : > { %v9571_v47 = vadd.f32 %v9328_v49, %v9067_v52  ;;  %7327 = vtanh.f32 %v3096_v61  ;;  %v11554_v40 = vpack.c.bf16 %v9241_v36, %v9211_v2  ;;  %v2905_v41 = vmul.f32 %v2841_v9, %v9549_v35 }
 0x796   : > { %v9579_v7 = vadd.f32 %v9336_v63, %v9057_v30  ;;  %v9583_v16 = vadd.f32 %v9338_v25, %v9061_v10  ;;  %v3445_v8 = vpack.c.bf16 %v3320_v58, %v3316_v5  ;;  %v2907_v50 = vmul.f32 %v2843_v24, %v9553_v48 }
 0x797   : > { %3705 = vmatmul.mubr.bf16.vlgmr.msra.gmra.mrb[80].mxu0 %v11554_v40  ;;  %v2842_v49 = vmul.f32 %v9567_v15, %v9567_v15  ;;  %v2844_v2 = vmul.f32 %v9571_v47, %v9571_v47  ;;  %v9590_v36 = vpop.eup %7317  ;;  %v2969_v38 = vmul.f32 0.044715, %v2905_v41  ;;  %v9598_v25 = vadd.f32 %v9344_v0, %v9065_v11 }
 0x798   : > { %11555 = vst [vmem:[#allocation74_spill] sm:$0xff] %v9579_v7  ;;  %11556 = vst [vmem:[#allocation75_spill] sm:$0xff] %v9583_v16  ;;  %v2845_v63 = vmul.f32 %v9579_v7, %v9579_v7  ;;  %v2847_v21 = vmul.f32 %v9583_v16, %v9583_v16  ;;  %v9600_v62 = vpop.eup %7319  ;;  %3801 = vmatprep.mubr.bf16.mxu1 %v3445_v8  ;;  %v2971_v53 = vmul.f32 0.044715, %v2907_v50 }
 0x799   : > { %v2906_v1 = vmul.f32 %v2842_v49, %v9567_v15  ;;  %v2908_v22 = vmul.f32 %v2844_v2, %v9571_v47  ;;  %v9606_v3 = vadd.f32 %v9346_v13, %v9067_v52  ;;  %v11557_v19 = vpack.c.bf16 %v9253_v12, %v9224_v54 }
 0x79a   : > { %v3033_v28 = vadd.f32 %v2969_v38, %v9549_v35  ;;  %v2909_v0 = vmul.f32 %v2845_v63, %v9579_v7  ;;  %v2911_v61 = vmul.f32 %v2847_v21, %v9583_v16  ;;  %v2846_v5 = vmul.f32 %v9598_v25, %v9598_v25  ;;  %v9616_v9 = vpop.eup %7321 }
 0x79b   : > { %3802 = vmatmul.mubr.bf16.vlgmr.msra.gmra.mrb[80].mxu1 %v11557_v19  ;;  %v3035_v58 = vadd.f32 %v2971_v53, %v9553_v48  ;;  %v2970_v24 = vmul.f32 0.044715, %v2906_v1  ;;  %v2972_v13 = vmul.f32 0.044715, %v2908_v22  ;;  %v2848_v40 = vmul.f32 %v9606_v3, %v9606_v3 }
 0x79c   : > { %v3097_v54 = vmul.f32 0.7978846, %v3033_v28  ;;  %v2973_v12 = vmul.f32 0.044715, %v2909_v0  ;;  %v2975_v41 = vmul.f32 0.044715, %v2911_v61  ;;  %v2910_v8 = vmul.f32 %v2846_v5, %v9598_v25  ;;  %v9622_v50 = vpop.eup %7323 }
 0x79d   : > { %v3099_v49 = vmul.f32 0.7978846, %v3035_v58  ;;  %v3034_v2 = vadd.f32 %v2970_v24, %v9567_v15  ;;  %v3036_v38 = vadd.f32 %v2972_v13, %v9571_v47  ;;  %v2912_v63 = vmul.f32 %v2848_v40, %v9606_v3  ;;  %v9627_v21 = vpop.eup %7325 }
 0x79e   : > { %7329 = vtanh.f32 %v3097_v54  ;;  %v3037_v53 = vadd.f32 %v2973_v12, %v9579_v7  ;;  %v3039_v1 = vadd.f32 %v2975_v41, %v9583_v16  ;;  %v2974_v22 = vmul.f32 0.044715, %v2910_v8 }
 0x79f   : > { %7331 = vtanh.f32 %v3099_v49  ;;  %v3098_v19 = vmul.f32 0.7978846, %v3034_v2  ;;  %v3100_v28 = vmul.f32 0.7978846, %v3036_v38  ;;  %v2976_v0 = vmul.f32 0.044715, %v2912_v63  ;;  %v9631_v61 = vpop.eup %7327 }
 0x7a0   : > { %v3101_v5 = vmul.f32 0.7978846, %v3037_v53  ;;  %v3103_v58 = vmul.f32 0.7978846, %v3039_v1  ;;  %v3038_v24 = vadd.f32 %v2974_v22, %v9598_v25  ;;  %v3194_v13 = vadd.f32 1.0, %v9290_v17  ;;  %v11558_v22 = vld [vmem:[#allocation30_spill] sm:$0xff] }
 0x7a1   : > { %7333 = vtanh.f32 %v3098_v19  ;;  %v3040_v40 = vadd.f32 %v2976_v0, %v9606_v3  ;;  %v3198_v54 = vadd.f32 1.0, %v9352_v4  ;;  %v3196_v12 = vadd.f32 1.0, %v9300_v6  ;;  %v11559_v19 = vld [vmem:[#allocation27_spill] sm:$0xff] }
 0x7a2   : > { %7335 = vtanh.f32 %v3100_v28  ;;  %v3102_v41 = vmul.f32 0.7978846, %v3038_v24  ;;  %v3258_v8 = vmul.f32 0.5, %v3194_v13  ;;  %v3200_v49 = vadd.f32 1.0, %v9368_v59  ;;  %v11560_v28 = vld [vmem:[#allocation40_spill] sm:$0xff]  ;;  %v11561_v24 = vld [vmem:[#allocation31_spill] sm:$0xff] }
 0x7a3   : > { %7337 = vtanh.f32 %v3101_v5  ;;  %v3104_v2 = vmul.f32 0.7978846, %v3040_v40  ;;  %v3262_v38 = vmul.f32 0.5, %v3198_v54  ;;  %v3260_v63 = vmul.f32 0.5, %v3196_v12  ;;  %v11562_v13 = vld [vmem:[#allocation36_spill] sm:$0xff]  ;;  %v11563_v12 = vld [vmem:[#allocation41_spill] sm:$0xff] }
 0x7a4   : > { %7339 = vtanh.f32 %v3103_v58  ;;  %v3322_v53 = vmul.f32 %v3258_v8, %v9134_v18  ;;  %v3264_v17 = vmul.f32 0.5, %v3200_v49  ;;  %v3193_v1 = vadd.f32 1.0, %v9272_v46  ;;  %v11565_v49 = vld [vmem:[#allocation25_spill] sm:$0xff] }
 0x7a5   : > { %7341 = vtanh.f32 %v3102_v41  ;;  %v3326_v4 = vmul.f32 %v3262_v38, %v11558_v22  ;;  %v3324_v6 = vmul.f32 %v3260_v63, %v11559_v19  ;;  %v3197_v0 = vadd.f32 1.0, %v11560_v28 }
 0x7a6   : > { %7343 = vtanh.f32 %v3104_v2  ;;  %v3328_v59 = vmul.f32 %v3264_v17, %v11561_v24  ;;  %v3257_v5 = vmul.f32 0.5, %v3193_v1  ;;  %v3195_v40 = vadd.f32 1.0, %v11562_v13  ;;  %v11571_v24 = vld [vmem:[#allocation50_spill] sm:$0xff] }
 0x7a7   : > { %v3447_v54 = vpack.c.bf16 %v3326_v4, %v3322_v53  ;;  %v3261_v58 = vmul.f32 0.5, %v3197_v0  ;;  %v3199_v18 = vadd.f32 1.0, %v11563_v12  ;;  %v9649_v46 = vadd.f32 %v9373_v45, %v9057_v30  ;;  %v11567_v53 = vld [vmem:[#allocation28_spill] sm:$0xff] }
 0x7a8   : > { %v9651_v41 = vpop.eup %7329  ;;  %v3449_v8 = vpack.c.bf16 %v3328_v59, %v3324_v6  ;;  %v3321_v38 = vmul.f32 %v3257_v5, %v11565_v49  ;;  %v3259_v63 = vmul.f32 0.5, %v3195_v40  ;;  %v9656_v2 = vadd.f32 %v9375_v26, %v9061_v10  ;;  %v11568_v4 = vld [vmem:[#allocation48_spill] sm:$0xff]  ;;  %v11570_v6 = vld [vmem:[#allocation26_spill] sm:$0xff]  ;;  %v11573_v40 = vld [vmem:[#allocation29_spill] sm:$0xff] }
 0x7a9   : > { %11564 = vst [vmem:[#allocation30_spill] sm:$0xff] %v9649_v46  ;;  %v9658_v17 = vpop.eup %7331  ;;  %3712 = vmatprep.mubr.bf16.mxu0 %v3447_v54  ;;  %v3325_v1 = vmul.f32 %v3261_v58, %v11567_v53  ;;  %v3263_v22 = vmul.f32 0.5, %v3199_v18  ;;  %v2849_v45 = vmul.f32 %v9649_v46, %v9649_v46  ;;  %v9665_v19 = vadd.f32 %v11568_v4, %v9065_v11 }
 0x7aa   : > { %11566 = vst [vmem:[#allocation27_spill] sm:$0xff] %v9656_v2  ;;  %3809 = vmatprep.mubr.bf16.mxu1 %v3449_v8  ;;  %v3323_v28 = vmul.f32 %v3259_v63, %v11570_v6  ;;  %v2851_v26 = vmul.f32 %v9656_v2, %v9656_v2  ;;  %v9672_v0 = vadd.f32 %v9385_v33, %v9067_v52  ;;  %v11574_v63 = vld [vmem:[#allocation51_spill] sm:$0xff] }
 0x7ab   : > { %11569 = vst [vmem:[#allocation40_spill] sm:$0xff] %v9665_v19  ;;  %v9676_v59 = vadd.f32 %v11571_v24, %v9057_v30  ;;  %v9678_v5 = vpop.eup %7333  ;;  %v3446_v13 = vpack.c.bf16 %v3325_v1, %v3321_v38  ;;  %v3327_v54 = vmul.f32 %v3263_v22, %v11573_v40  ;;  %v2913_v58 = vmul.f32 %v2849_v45, %v9649_v46 }
 0x7ac   : > { %v2850_v12 = vmul.f32 %v9665_v19, %v9665_v19  ;;  %v9684_v18 = vpop.eup %7335  ;;  %v2915_v8 = vmul.f32 %v2851_v26, %v9656_v2  ;;  %v2852_v33 = vmul.f32 %v9672_v0, %v9672_v0  ;;  %v9693_v38 = vadd.f32 %v11574_v63, %v9061_v10 }
 0x7ad   : > { %11572 = vst [vmem:[#allocation31_spill] sm:$0xff] %v9676_v59  ;;  %v2853_v49 = vmul.f32 %v9676_v59, %v9676_v59  ;;  %v9695_v53 = vpop.eup %7337  ;;  %3713 = vmatmul.mubr.bf16.gmra.mrb[84].mxu0 %v3446_v13  ;;  %v3448_v1 = vpack.c.bf16 %v3327_v54, %v3323_v28  ;;  %v2977_v22 = vmul.f32 0.044715, %v2913_v58  ;;  %v9700_v4 = vadd.f32 %v9403_v44, %v9065_v11 }
 0x7ae   : > { %11575 = vst [vmem:[#allocation36_spill] sm:$0xff] %v9693_v38  ;;  %v2914_v45 = vmul.f32 %v2850_v12, %v9665_v19  ;;  %v9702_v6 = vpop.eup %7339  ;;  %v2979_v26 = vmul.f32 0.044715, %v2915_v8  ;;  %v2916_v24 = vmul.f32 %v2852_v33, %v9672_v0  ;;  %v2855_v63 = vmul.f32 %v9693_v38, %v9693_v38 }
 0x7af   : > { %v2917_v40 = vmul.f32 %v2853_v49, %v9676_v59  ;;  %v9708_v16 = vpop.eup %7341  ;;  %3810 = vmatmul.mubr.bf16.gmra.mrb[84].mxu1 %v3448_v1  ;;  %v3041_v28 = vadd.f32 %v2977_v22, %v9649_v46  ;;  %v2854_v44 = vmul.f32 %v9700_v4, %v9700_v4  ;;  %v9715_v54 = vadd.f32 %v9405_v55, %v9067_v52 }
 0x7b0   : > { %v2978_v13 = vmul.f32 0.044715, %v2914_v45  ;;  %v9717_v58 = vpop.eup %7343  ;;  %v3043_v12 = vadd.f32 %v2979_v26, %v9656_v2  ;;  %v2980_v8 = vmul.f32 0.044715, %v2916_v24  ;;  %v2919_v49 = vmul.f32 %v2855_v63, %v9693_v38 }
 0x7b1   : > { %11576 = vst [vmem:[#allocation41_spill] sm:$0xff] %v9715_v54  ;;  %v2981_v33 = vmul.f32 0.044715, %v2917_v40  ;;  %v3105_v48 = vmul.f32 0.7978846, %v3041_v28  ;;  %v2918_v22 = vmul.f32 %v2854_v44, %v9700_v4  ;;  %v2856_v45 = vmul.f32 %v9715_v54, %v9715_v54 }
 0x7b2   : > { %v3042_v1 = vadd.f32 %v2978_v13, %v9665_v19  ;;  %v3107_v46 = vmul.f32 0.7978846, %v3043_v12  ;;  %v3044_v55 = vadd.f32 %v2980_v8, %v9672_v0  ;;  %v2983_v35 = vmul.f32 0.044715, %v2919_v49  ;;  %v11577_v12 = vld [vmem:[#allocation55_spill] sm:$0xff] }
 0x7b3   : > { %v3045_v7 = vadd.f32 %v2981_v33, %v9676_v59  ;;  %7345 = vtanh.f32 %v3105_v48  ;;  %v2982_v24 = vmul.f32 0.044715, %v2918_v22  ;;  %v2920_v40 = vmul.f32 %v2856_v45, %v9715_v54 }
 0x7b4   : > { %v3106_v26 = vmul.f32 0.7978846, %v3042_v1  ;;  %7347 = vtanh.f32 %v3107_v46  ;;  %v3108_v63 = vmul.f32 0.7978846, %v3044_v55  ;;  %v3047_v13 = vadd.f32 %v2983_v35, %v9693_v38  ;;  %v11578_v55 = vld [vmem:[#allocation34_spill] sm:$0xff] }
 0x7b5   : > { %v3109_v28 = vmul.f32 0.7978846, %v3045_v7  ;;  %v3046_v44 = vadd.f32 %v2982_v24, %v9700_v4  ;;  %v2984_v2 = vmul.f32 0.044715, %v2920_v40  ;;  %v3202_v19 = vadd.f32 1.0, %v11577_v12  ;;  %v11579_v24 = vld [vmem:[#allocation49_spill] sm:$0xff] }
 0x7b6   : > { %7349 = vtanh.f32 %v3106_v26  ;;  %v3111_v8 = vmul.f32 0.7978846, %v3047_v13  ;;  %v3206_v33 = vadd.f32 1.0, %v9467_v56  ;;  %v3204_v48 = vadd.f32 1.0, %v9425_v31  ;;  %v11581_v31 = vld [vmem:[#allocation35_spill] sm:$0xff] }
 0x7b7   : > { %7351 = vtanh.f32 %v3108_v63  ;;  %v3110_v49 = vmul.f32 0.7978846, %v3046_v44  ;;  %v3048_v46 = vadd.f32 %v2984_v2, %v9715_v54  ;;  %v3266_v1 = vmul.f32 0.5, %v3202_v19  ;;  %v11580_v63 = vld [vmem:[#allocation39_spill] sm:$0xff]  ;;  %v11582_v19 = vld [vmem:[#allocation54_spill] sm:$0xff] }
 0x7b8   : > { %7353 = vtanh.f32 %v3109_v28  ;;  %v3270_v7 = vmul.f32 0.5, %v3206_v33  ;;  %v3208_v35 = vadd.f32 1.0, %v9480_v20  ;;  %v3268_v22 = vmul.f32 0.5, %v3204_v48  ;;  %v11583_v33 = vld [vmem:[#allocation42_spill] sm:$0xff] }
 0x7b9   : > { %7355 = vtanh.f32 %v3111_v8  ;;  %v3112_v45 = vmul.f32 0.7978846, %v3048_v46  ;;  %v3330_v26 = vmul.f32 %v3266_v1, %v11578_v55  ;;  %v3201_v40 = vadd.f32 1.0, %v11579_v24  ;;  %v11584_v46 = vld [vmem:[#allocation58_spill] sm:$0xff] }
 0x7ba   : > { %7357 = vtanh.f32 %v3110_v49  ;;  %v3334_v56 = vmul.f32 %v3270_v7, %v11580_v63  ;;  %v3272_v13 = vmul.f32 0.5, %v3208_v35  ;;  %v3332_v28 = vmul.f32 %v3268_v22, %v11581_v31  ;;  %v11586_v35 = vld [vmem:[#allocation32_spill] sm:$0xff] }
 0x7bb   : > { %v3205_v44 = vadd.f32 1.0, %v9449_v32  ;;  %7359 = vtanh.f32 %v3112_v45  ;;  %v3265_v2 = vmul.f32 0.5, %v3201_v40  ;;  %v3203_v12 = vadd.f32 1.0, %v11582_v19  ;;  %v11587_v45 = vld [vmem:[#allocation59_spill] sm:$0xff] }
 0x7bc   : > { %v3207_v20 = vadd.f32 1.0, %v9458_v51  ;;  %v3451_v8 = vpack.c.bf16 %v3334_v56, %v3330_v26  ;;  %v3336_v48 = vmul.f32 %v3272_v13, %v11583_v33  ;;  %v9745_v1 = vadd.f32 %v11584_v46, %v9057_v30  ;;  %v11590_v26 = vld [vmem:[#allocation37_spill] sm:$0xff] }
 0x7bd   : > { %v3269_v49 = vmul.f32 0.5, %v3205_v44  ;;  %v9747_v7 = vpop.eup %7345  ;;  %v3329_v22 = vmul.f32 %v3265_v2, %v11586_v35  ;;  %v3267_v55 = vmul.f32 0.5, %v3203_v12  ;;  %v9752_v24 = vadd.f32 %v11587_v45, %v9061_v10  ;;  %v11591_v13 = vld [vmem:[#allocation61_spill] sm:$0xff]  ;;  %v11593_v12 = vld [vmem:[#allocation38_spill] sm:$0xff] }
 0x7be   : > { %11585 = vst [vmem:[#allocation25_spill] sm:$0xff] %v9745_v1  ;;  %v3271_v32 = vmul.f32 0.5, %v3207_v20  ;;  %v9754_v40 = vpop.eup %7347  ;;  %3720 = vmatprep.mubr.bf16.mxu0 %v3451_v8  ;;  %v3453_v51 = vpack.c.bf16 %v3336_v48, %v3332_v28  ;;  %v2857_v56 = vmul.f32 %v9745_v1, %v9745_v1  ;;  %v9761_v31 = vadd.f32 %v11591_v13, %v9065_v11  ;;  %v11592_v2 = vld [vmem:[#allocation33_spill] sm:$0xff]  ;;  %v11594_v28 = vld [vmem:[#allocation62_spill] sm:$0xff] }
 0x7bf   : > { %11588 = vst [vmem:[#allocation28_spill] sm:$0xff] %v9752_v24  ;;  %11589 = vst [vmem:[#allocation48_spill] sm:$0xff] %v9754_v40  ;;  %v3333_v63 = vmul.f32 %v3269_v49, %v11590_v26  ;;  %v3331_v19 = vmul.f32 %v3267_v55, %v11592_v2  ;;  %v2859_v33 = vmul.f32 %v9752_v24, %v9752_v24  ;;  %v11595_v55 = vld [vmem:[#allocation63_spill] sm:$0xff] }
 0x7c0   : > { %v9763_v44 = vpop.eup %7349  ;;  %v3335_v20 = vmul.f32 %v3271_v32, %v11593_v12  ;;  %v9771_v8 = vadd.f32 %v11594_v28, %v9067_v52  ;;  %3817 = vmatprep.mubr.bf16.mxu1 %v3453_v51  ;;  %v2921_v46 = vmul.f32 %v2857_v56, %v9745_v1  ;;  %v2858_v35 = vmul.f32 %v9761_v31, %v9761_v31  ;;  %v11596_v51 = vld [vmem:[#allocation64_spill] sm:$0xff] }
 0x7c1   : > { %v9773_v48 = vpop.eup %7351  ;;  %v3450_v49 = vpack.c.bf16 %v3333_v63, %v3329_v22  ;;  %v9780_v45 = vadd.f32 %v11595_v55, %v9057_v30  ;;  %v2923_v13 = vmul.f32 %v2859_v33, %v9752_v24  ;;  %v9789_v22 = vadd.f32 %v11596_v51, %v9061_v10 }
 0x7c2   : > { %v9782_v32 = vpop.eup %7353  ;;  %v3452_v26 = vpack.c.bf16 %v3335_v20, %v3331_v19  ;;  %v2860_v2 = vmul.f32 %v9771_v8, %v9771_v8  ;;  %v2985_v56 = vmul.f32 0.044715, %v2921_v46  ;;  %v2922_v12 = vmul.f32 %v2858_v35, %v9761_v31  ;;  %v11598_v19 = vld [vmem:[#allocation65_spill] sm:$0xff] }
 0x7c3   : > { %v9791_v63 = vpop.eup %7355  ;;  %3721 = vmatmul.mubr.bf16.gmra.mrb[88].mxu0 %v3450_v49  ;;  %v2861_v30 = vmul.f32 %v9780_v45, %v9780_v45  ;;  %v9798_v20 = vadd.f32 %v11598_v19, %v9065_v11  ;;  %v2987_v28 = vmul.f32 0.044715, %v2923_v13  ;;  %v2863_v55 = vmul.f32 %v9789_v22, %v9789_v22  ;;  %v11599_v49 = vld [vmem:[#allocation66_spill] sm:$0xff] }
 0x7c4   : > { %11597 = vst [vmem:[#allocation26_spill] sm:$0xff] %v9791_v63  ;;  %v9800_v33 = vpop.eup %7357  ;;  %3818 = vmatmul.mubr.bf16.gmra.mrb[88].mxu1 %v3452_v26  ;;  %v2924_v10 = vmul.f32 %v2860_v2, %v9771_v8  ;;  %v9807_v46 = vadd.f32 %v11599_v49, %v9067_v52  ;;  %v3049_v35 = vadd.f32 %v2985_v56, %v9745_v1  ;;  %v2986_v51 = vmul.f32 0.044715, %v2922_v12 }
 0x7c5   : > { %v2925_v38 = vmul.f32 %v2861_v30, %v9780_v45  ;;  %v2862_v11 = vmul.f32 %v9798_v20, %v9798_v20  ;;  %v9813_v19 = vpop.eup %7359  ;;  %v3051_v26 = vadd.f32 %v2987_v28, %v9752_v24  ;;  %v2927_v2 = vmul.f32 %v2863_v55, %v9789_v22 }
 0x7c6   : > { %v2988_v13 = vmul.f32 0.044715, %v2924_v10  ;;  %v2864_v59 = vmul.f32 %v9807_v46, %v9807_v46  ;;  %v3113_v52 = vmul.f32 0.7978846, %v3049_v35  ;;  %v3050_v49 = vadd.f32 %v2986_v51, %v9761_v31 }
 0x7c7   : > { %v2989_v56 = vmul.f32 0.044715, %v2925_v38  ;;  %v2926_v12 = vmul.f32 %v2862_v11, %v9798_v20  ;;  %v3115_v30 = vmul.f32 0.7978846, %v3051_v26  ;;  %v2991_v54 = vmul.f32 0.044715, %v2927_v2 }
 0x7c8   : > { %v3052_v1 = vadd.f32 %v2988_v13, %v9771_v8  ;;  %v2928_v63 = vmul.f32 %v2864_v59, %v9807_v46  ;;  %7361 = vtanh.f32 %v3113_v52  ;;  %v3114_v28 = vmul.f32 0.7978846, %v3050_v49  ;;  %v11600_v49 = vld [vmem:[#allocation71_spill] sm:$0xff] }
 0x7c9   : > { %v3053_v10 = vadd.f32 %v2989_v56, %v9780_v45  ;;  %v2990_v55 = vmul.f32 0.044715, %v2926_v12  ;;  %7363 = vtanh.f32 %v3115_v30  ;;  %v3055_v35 = vadd.f32 %v2991_v54, %v9789_v22  ;;  %v11601_v12 = vld [vmem:[#allocation45_spill] sm:$0xff] }
 0x7ca   : > { %v3116_v24 = vmul.f32 0.7978846, %v3052_v1  ;;  %v2992_v40 = vmul.f32 0.044715, %v2928_v63  ;;  %7365 = vtanh.f32 %v3114_v28  ;;  %v3210_v11 = vadd.f32 1.0, %v9512_v27 }
 0x7cb   : > { %v3117_v38 = vmul.f32 0.7978846, %v3053_v10  ;;  %v3054_v51 = vadd.f32 %v2990_v55, %v9798_v20  ;;  %v3119_v26 = vmul.f32 0.7978846, %v3055_v35  ;;  %v3214_v13 = vadd.f32 1.0, %v9537_v23  ;;  %v11604_v35 = vld [vmem:[#allocation46_spill] sm:$0xff] }
 0x7cc   : > { %7367 = vtanh.f32 %v3116_v24  ;;  %v3056_v59 = vadd.f32 %v2992_v40, %v9807_v46  ;;  %v3274_v52 = vmul.f32 0.5, %v3210_v11  ;;  %v3212_v1 = vadd.f32 1.0, %v11600_v49  ;;  %v11602_v24 = vld [vmem:[#allocation69_spill] sm:$0xff]  ;;  %v11605_v11 = vld [vmem:[#allocation70_spill] sm:$0xff] }
 0x7cd   : > { %7369 = vtanh.f32 %v3117_v38  ;;  %v3118_v2 = vmul.f32 0.7978846, %v3054_v51  ;;  %v3278_v63 = vmul.f32 0.5, %v3214_v13  ;;  %v3216_v56 = vadd.f32 1.0, %v9544_v43  ;;  %v11603_v40 = vld [vmem:[#allocation53_spill] sm:$0xff]  ;;  %v11606_v13 = vld [vmem:[#allocation56_spill] sm:$0xff] }
 0x7ce   : > { %7371 = vtanh.f32 %v3119_v26  ;;  %v3120_v54 = vmul.f32 0.7978846, %v3056_v59  ;;  %v3338_v30 = vmul.f32 %v3274_v52, %v11601_v12  ;;  %v3276_v27 = vmul.f32 0.5, %v3212_v1 }
 0x7cf   : > { %7373 = vtanh.f32 %v3118_v2  ;;  %v3209_v28 = vadd.f32 1.0, %v11602_v24  ;;  %v3342_v10 = vmul.f32 %v3278_v63, %v11603_v40  ;;  %v3280_v23 = vmul.f32 0.5, %v3216_v56 }
 0x7d0   : > { %7375 = vtanh.f32 %v3120_v54  ;;  %v3213_v55 = vadd.f32 1.0, %v9529_v29  ;;  %v3340_v38 = vmul.f32 %v3276_v27, %v11604_v35  ;;  %v3211_v26 = vadd.f32 1.0, %v11605_v11  ;;  %v11607_v54 = vld [vmem:[#allocation43_spill] sm:$0xff] }
 0x7d1   : > { %v3273_v51 = vmul.f32 0.5, %v3209_v28  ;;  %v3215_v59 = vadd.f32 1.0, %v9534_v57  ;;  %v3455_v43 = vpack.c.bf16 %v3342_v10, %v3338_v30  ;;  %v3344_v2 = vmul.f32 %v3280_v23, %v11606_v13  ;;  %v11608_v28 = vld [vmem:[#allocation47_spill] sm:$0xff] }
 0x7d2   : > { %v3277_v52 = vmul.f32 0.5, %v3213_v55  ;;  %v3218_v49 = vadd.f32 1.0, %v9590_v36  ;;  %v9840_v1 = vpop.eup %7361  ;;  %v3275_v56 = vmul.f32 0.5, %v3211_v26  ;;  %v3222_v29 = vadd.f32 1.0, %v9627_v21  ;;  %v11609_v36 = vld [vmem:[#allocation44_spill] sm:$0xff] }
 0x7d3   : > { %v3337_v63 = vmul.f32 %v3273_v51, %v11607_v54  ;;  %v3279_v12 = vmul.f32 0.5, %v3215_v59  ;;  %v9844_v27 = vpop.eup %7363  ;;  %3728 = vmatprep.mubr.bf16.mxu0 %v3455_v43  ;;  %v3457_v24 = vpack.c.bf16 %v3344_v2, %v3340_v38  ;;  %v3220_v40 = vadd.f32 1.0, %v9600_v62  ;;  %v11610_v55 = vld [vmem:[#allocation52_spill] sm:$0xff]  ;;  %v11611_v59 = vld [vmem:[#allocation67_spill] sm:$0xff] }
 0x7d4   : > { %v3341_v57 = vmul.f32 %v3277_v52, %v11608_v28  ;;  %v3282_v30 = vmul.f32 0.5, %v3218_v49  ;;  %v9848_v10 = vpop.eup %7365  ;;  %v3339_v23 = vmul.f32 %v3275_v56, %v11609_v36  ;;  %v3286_v51 = vmul.f32 0.5, %v3222_v29 }
 0x7d5   : > { %v3343_v35 = vmul.f32 %v3279_v12, %v11610_v55  ;;  %v3224_v11 = vadd.f32 1.0, %v9631_v61  ;;  %3825 = vmatprep.mubr.bf16.mxu1 %v3457_v24  ;;  %v3284_v43 = vmul.f32 0.5, %v3220_v40  ;;  %v3217_v13 = vadd.f32 1.0, %v9555_v39  ;;  %v11612_v61 = vld [vmem:[#allocation68_spill] sm:$0xff]  ;;  %v11613_v40 = vld [vmem:[#allocation57_spill] sm:$0xff] }
 0x7d6   : > { %v9853_v26 = vpop.eup %7367  ;;  %v3454_v21 = vpack.c.bf16 %v3341_v57, %v3337_v63  ;;  %v3346_v38 = vmul.f32 %v3282_v30, %v11611_v59  ;;  %v3350_v52 = vmul.f32 %v3286_v51, %v9507_v34  ;;  %v3221_v54 = vadd.f32 1.0, %v9616_v9 }
 0x7d7   : > { %v9857_v2 = vpop.eup %7369  ;;  %v3456_v62 = vpack.c.bf16 %v3343_v35, %v3339_v23  ;;  %v3288_v49 = vmul.f32 0.5, %v3224_v11  ;;  %v3348_v12 = vmul.f32 %v3284_v43, %v11612_v61  ;;  %v3281_v29 = vmul.f32 0.5, %v3217_v13 }
 0x7d8   : > { %v9861_v56 = vpop.eup %7371  ;;  %3729 = vmatmul.mubr.bf16.gmra.mrb[92].mxu0 %v3454_v21  ;;  %v3219_v63 = vadd.f32 1.0, %v9560_v37  ;;  %v3223_v24 = vadd.f32 1.0, %v9622_v50  ;;  %v3459_v39 = vpack.c.bf16 %v3350_v52, %v3346_v38  ;;  %v3285_v34 = vmul.f32 0.5, %v3221_v54  ;;  %v11614_v21 = vld [vmem:[#allocation60_spill] sm:$0xff] }
 0x7d9   : > { %v9866_v28 = vpop.eup %7373  ;;  %3826 = vmatmul.mubr.bf16.gmra.mrb[92].mxu1 %v3456_v62  ;;  %v3352_v57 = vmul.f32 %v3288_v49, %v9519_v42  ;;  %v3226_v30 = vadd.f32 1.0, %v9678_v5  ;;  %v3345_v36 = vmul.f32 %v3281_v29, %v11613_v40  ;;  %v3230_v35 = vadd.f32 1.0, %v9708_v16 }
 0x7da   : > { %v9870_v9 = vpop.eup %7375  ;;  %v3283_v23 = vmul.f32 0.5, %v3219_v63  ;;  %v3287_v55 = vmul.f32 0.5, %v3223_v24  ;;  %3736 = vmatprep.mubr.bf16.mxu0 %v3459_v39  ;;  %v3349_v50 = vmul.f32 %v3285_v34, %v9489_v14  ;;  %v3228_v11 = vadd.f32 1.0, %v9684_v18  ;;  %v11615_v63 = vld [vmem:[#allocation72_spill] sm:$0xff] }
 0x7db   : > { %v3461_v37 = vpack.c.bf16 %v3352_v57, %v3348_v12  ;;  %v3290_v51 = vmul.f32 0.5, %v3226_v30  ;;  %v3294_v5 = vmul.f32 0.5, %v3230_v35  ;;  %v3232_v38 = vadd.f32 1.0, %v9717_v58  ;;  %v11616_v57 = vld [vmem:[#allocation74_spill] sm:$0xff]  ;;  %v11617_v30 = vld [vmem:[#allocation73_spill] sm:$0xff]  ;;  %v11619_v35 = vld [vmem:[#allocation40_spill] sm:$0xff] }
 0x7dc   : > { %v3347_v42 = vmul.f32 %v3283_v23, %v11614_v21  ;;  %v3351_v59 = vmul.f32 %v3287_v55, %v9503_v60  ;;  %v3458_v43 = vpack.c.bf16 %v3349_v50, %v3345_v36  ;;  %v3292_v62 = vmul.f32 0.5, %v3228_v11 }
 0x7dd   : > { %3833 = vmatprep.mubr.bf16.mxu1 %v3461_v37  ;;  %v3354_v13 = vmul.f32 %v3290_v51, %v9567_v15  ;;  %v3225_v16 = vadd.f32 1.0, %v9651_v41  ;;  %v3358_v14 = vmul.f32 %v3294_v5, %v9598_v25  ;;  %v3296_v49 = vmul.f32 0.5, %v3232_v38  ;;  %v11620_v5 = vld [vmem:[#allocation48_spill] sm:$0xff] }
 0x7de   : > { %v3460_v52 = vpack.c.bf16 %v3351_v59, %v3347_v42  ;;  %v3229_v18 = vadd.f32 1.0, %v9695_v53  ;;  %v3356_v54 = vmul.f32 %v3292_v62, %v9571_v47  ;;  %v3227_v60 = vadd.f32 1.0, %v9658_v17  ;;  %v11622_v62 = vld [vmem:[#allocation41_spill] sm:$0xff] }
 0x7df   : > { %v3289_v61 = vmul.f32 0.5, %v3225_v16  ;;  %v3231_v58 = vadd.f32 1.0, %v9702_v6  ;;  %v3463_v12 = vpack.c.bf16 %v3358_v14, %v3354_v13  ;;  %v3360_v15 = vmul.f32 %v3296_v49, %v9606_v3  ;;  %v11618_v3 = vld [vmem:[#allocation75_spill] sm:$0xff] }
 0x7e0   : > { %3737 = vmatmul.mubr.bf16.gmra.mrb[96].mxu0 %v3458_v43  ;;  %v3293_v29 = vmul.f32 0.5, %v3229_v18  ;;  %v3234_v41 = vadd.f32 1.0, %v9763_v44  ;;  %v3291_v24 = vmul.f32 0.5, %v3227_v60  ;;  %v3238_v53 = vadd.f32 1.0, %v9800_v33  ;;  %v11621_v43 = vld [vmem:[#allocation26_spill] sm:$0xff] }
 0x7e1   : > { %3834 = vmatmul.mubr.bf16.gmra.mrb[96].mxu1 %v3460_v52  ;;  %v3353_v25 = vmul.f32 %v3289_v61, %v11615_v63  ;;  %v3295_v39 = vmul.f32 0.5, %v3231_v58  ;;  %3744 = vmatprep.mubr.bf16.mxu0 %v3463_v12  ;;  %v3465_v47 = vpack.c.bf16 %v3360_v15, %v3356_v54  ;;  %v3236_v6 = vadd.f32 1.0, %v9773_v48  ;;  %v11624_v54 = vld [vmem:[#allocation31_spill] sm:$0xff] }
 0x7e2   : > { %v3357_v17 = vmul.f32 %v3293_v29, %v11616_v57  ;;  %v3298_v34 = vmul.f32 0.5, %v3234_v41  ;;  %v3355_v40 = vmul.f32 %v3291_v24, %v11617_v30  ;;  %v3302_v23 = vmul.f32 0.5, %v3238_v53  ;;  %v11625_v12 = vld [vmem:[#allocation27_spill] sm:$0xff]  ;;  %v11626_v29 = vld [vmem:[#allocation36_spill] sm:$0xff] }
 0x7e3   : > { %v3359_v36 = vmul.f32 %v3295_v39, %v11618_v3  ;;  %v3240_v44 = vadd.f32 1.0, %v9813_v19  ;;  %3841 = vmatprep.mubr.bf16.mxu1 %v3465_v47  ;;  %v3300_v50 = vmul.f32 0.5, %v3236_v6  ;;  %v3233_v33 = vadd.f32 1.0, %v9747_v7  ;;  %v11623_v7 = vld [vmem:[#allocation30_spill] sm:$0xff] }
 0x7e4   : > { %v3462_v55 = vpack.c.bf16 %v3357_v17, %v3353_v25  ;;  %v3362_v37 = vmul.f32 %v3298_v34, %v11619_v35  ;;  %v3366_v11 = vmul.f32 %v3302_v23, %v9700_v4  ;;  %v3237_v48 = vadd.f32 1.0, %v9782_v32  ;;  %v11627_v23 = vld [vmem:[#allocation25_spill] sm:$0xff]  ;;  %v7098_v35 = vld [vmem:[%s11364_s17 + $0x8] sm:$0xff]  }
 0x7e5   : > { %v3464_v51 = vpack.c.bf16 %v3359_v36, %v3355_v40  ;;  %v3304_v21 = vmul.f32 0.5, %v3240_v44  ;;  %v3364_v42 = vmul.f32 %v3300_v50, %v9672_v0  ;;  %v3297_v59 = vmul.f32 0.5, %v3233_v33 }
 0x7e6   : > { %v3235_v38 = vadd.f32 1.0, %v11620_v5  ;;  %v3239_v19 = vadd.f32 1.0, %v11621_v43  ;;  %v3467_v13 = vpack.c.bf16 %v3366_v11, %v3362_v37  ;;  %v3301_v52 = vmul.f32 0.5, %v3237_v48  ;;  %v9935_v37 = vld [vmem:[%s11361_s14] ss:$0 sm:$0xff] }
 0x7e7   : > { %v3368_v16 = vmul.f32 %v3304_v21, %v11622_v62  ;;  %v3242_v14 = vadd.f32 1.0, %v9848_v10  ;;  %v3361_v49 = vmul.f32 %v3297_v59, %v11623_v7  ;;  %v3246_v32 = vadd.f32 1.0, %v9866_v28  ;;  %v11630_v7 = vld [vmem:[#allocation10_spill] sm:$0xff] }
 0x7e8   : > { %3745 = vmatmul.mubr.bf16.gmra.mrb[100].mxu0 %v3462_v55  ;;  %v3299_v4 = vmul.f32 0.5, %v3235_v38  ;;  %v3303_v18 = vmul.f32 0.5, %v3239_v19  ;;  %v3365_v61 = vmul.f32 %v3301_v52, %v11624_v54  ;;  %v3244_v58 = vadd.f32 1.0, %v9853_v26  ;;  %v11629_v52 = vld [vmem:[#allocation9_spill] sm:$0xff] }
 0x7e9   : > { %3842 = vmatmul.mubr.bf16.gmra.mrb[100].mxu1 %v3464_v51  ;;  %3752 = vmatprep.mubr.bf16.mxu0 %v3467_v13  ;;  %v3469_v0 = vpack.c.bf16 %v3368_v16, %v3364_v42  ;;  %v3306_v60 = vmul.f32 0.5, %v3242_v14  ;;  %v3310_v10 = vmul.f32 0.5, %v3246_v32  ;;  %v3248_v63 = vadd.f32 1.0, %v9870_v9 }
 0x7ea   : > { %v3363_v15 = vmul.f32 %v3299_v4, %v11625_v12  ;;  %v3367_v41 = vmul.f32 %v3303_v18, %v11626_v29  ;;  %v3466_v25 = vpack.c.bf16 %v3365_v61, %v3361_v49  ;;  %v3308_v28 = vmul.f32 0.5, %v3244_v58 }
 0x7eb   : > { %3849 = vmatprep.mubr.bf16.mxu1 %v3469_v0  ;;  %v3370_v24 = vmul.f32 %v3306_v60, %v9761_v31  ;;  %v3241_v39 = vadd.f32 1.0, %v9840_v1  ;;  %v3374_v47 = vmul.f32 %v3310_v10, %v9798_v20  ;;  %v3312_v57 = vmul.f32 0.5, %v3248_v63 }
 0x7ec   : > { %v3468_v53 = vpack.c.bf16 %v3367_v41, %v3363_v15  ;;  %v3245_v26 = vadd.f32 1.0, %v9857_v2  ;;  %v3243_v34 = vadd.f32 1.0, %v9844_v27  ;;  %v3247_v6 = vadd.f32 1.0, %v9861_v56  ;;  %v11628_v2 = vld [vmem:[#allocation28_spill] sm:$0xff] }
 0x7ed   : > { %v3305_v17 = vmul.f32 0.5, %v3241_v39  ;;  %v3471_v30 = vpack.c.bf16 %v3374_v47, %v3370_v24  ;;  %v3372_v9 = vmul.f32 %v3308_v28, %v9771_v8  ;;  %v3376_v40 = vmul.f32 %v3312_v57, %v9807_v46  ;;  %v7097_v46 = vld [vmem:[%s11364_s17] sm:$0xff]   ;;  %v11631_v47 = vld [vmem:[#allocation11_spill] sm:$0xff] }
 0x7ee   : > { %v3309_v31 = vmul.f32 0.5, %v3245_v26  ;;  %v3307_v3 = vmul.f32 0.5, %v3243_v34  ;;  %v3311_v36 = vmul.f32 0.5, %v3247_v6  ;;  %6816 = vmatprep.subr.bf16.mxu0 %v7097_v46  ;;  %v11632_v26 = vld [vmem:[#allocation12_spill] sm:$0xff] }
 0x7ef   : > { %v3473_v1 = vpack.c.bf16 %v3376_v40, %v3372_v9  ;;  %v3369_v20 = vmul.f32 %v3305_v17, %v11627_v23  ;;  %6817 = vmatpush3.bf16.msra.mxu0 %v7097_v46 }
 0x7f0   : > { %3753 = vmatmul.mubr.bf16.gmra.mrb[104].mxu0 %v3466_v25  ;;  %v3373_v44 = vmul.f32 %v3309_v31, %v9780_v45  ;;  %v3371_v27 = vmul.f32 %v3307_v3, %v11628_v2  ;;  %v3375_v56 = vmul.f32 %v3311_v36, %v9789_v22  ;;  %6818 = vmatprep.subr.bf16.mxu0 %v7098_v35  ;;  %v7099_v45 = vld [vmem:[%s11364_s17 + $0x10] sm:$0xff]   ;;  %v7100_v25 = vld [vmem:[%s11364_s17 + $0x18] sm:$0xff]  }
 0x7f1   : > { %3850 = vmatmul.mubr.bf16.gmra.mrb[104].mxu1 %v3468_v53  ;;  %3760 = vmatprep.mubr.bf16.mxu0 %v3471_v30 }
 0x7f2   : > { %3857 = vmatprep.mubr.bf16.mxu1 %v3473_v1  ;;  %v3470_v55 = vpack.c.bf16 %v3373_v44, %v3369_v20  ;;  %v3472_v8 = vpack.c.bf16 %v3375_v56, %v3371_v27 }
 0x7f3   : > { %6819 = vmatpush3.bf16.msra.mxu0 %v7098_v35 }
 0x7f4   : > { %6820 = vmatprep.subr.bf16.mxu0 %v7099_v45 }
 0x7f7   : > { %6821 = vmatpush3.bf16.msra.mxu0 %v7099_v45  ;;  %v11633_v45 = vld [vmem:[#allocation13_spill] sm:$0xff] }
 0x7f8   : > { %3761 = vmatmul.mubr.bf16.gmra.mrb[108].mxu0 %v3470_v55  ;;  %6822 = vmatprep.subr.bf16.mxu0 %v7100_v25  ;;  %v7101_v55 = vld [vmem:[%s11364_s17 + $0x20] sm:$0xff]  }
 0x7f9   : > { %3858 = vmatmul.mubr.bf16.gmra.mrb[108].mxu1 %v3472_v8 }
 0x7fb   : > { %6823 = vmatpush3.bf16.msra.mxu0 %v7100_v25 }
 0x7fc   : > { %6824 = vmatprep.subr.bf16.mxu0 %v7101_v55 }
 0x7ff   : > { %6825 = vmatpush3.bf16.msra.mxu0 %v7101_v55 }
 0x86a   : > { %v6528_v22 = vpop.f32.mrb[80].mxu0 }
 0x86b   : > { %v6529_v50 = vpop.f32.mrb[81].mxu0 }
 0x86c   : > { %v6530_v33 = vadd.f32 %v6529_v50, %v6528_v22  ;;  %v6531_v51 = vpop.f32.mrb[82].mxu0  ;;  %v11634_v50 = vld [vmem:[#allocation14_spill] sm:$0xff] }
 0x86d   : > { %v6532_v11 = vpop.f32.mrb[83].mxu0 }
 0x86e   : > { %v6592_v21 = vpop.f32.mrb[80].mxu1  ;;  %v3707_v48 = vadd.f32 %v6530_v33, %v9935_v37  ;;  %v6533_v42 = vadd.f32 %v6532_v11, %v6531_v51 }
 0x86f   : > { %v6593_v59 = vpop.f32.mrb[81].mxu1 }
 0x870   : > { %v6594_v5 = vadd.f32 %v6593_v59, %v6592_v21  ;;  %v6595_v38 = vpop.f32.mrb[82].mxu1  ;;  %v3710_v43 = vadd.f32 %v6533_v42, %v9935_v37 }
 0x871   : > { %v6596_v19 = vpop.f32.mrb[83].mxu1 }
 0x872   : > { %v3804_v13 = vadd.f32 %v6594_v5, %v3707_v48  ;;  %v6597_v62 = vadd.f32 %v6596_v19, %v6595_v38 }
 0x874   : > { %v3807_v16 = vadd.f32 %v6597_v62, %v3710_v43  ;;  %v9940_v14 = vadd.f32 %v3804_v13, %v11629_v52 }
 0x876   : > { %3884 = vadd.xlane.f32.xlu0 %v9940_v14  ;;  %v9944_v49 = vadd.f32 %v3807_v16, %v11630_v7  ;;  %v3932_v4 = vmul.f32 %v9940_v14, %v9940_v14 }
 0x878   : > { %3886 = vadd.xlane.f32.xlu1 %v9944_v49  ;;  %v3933_v18 = vmul.f32 %v9944_v49, %v9944_v49 }
 0x87a   : > { %3948 = vadd.xlane.f32.xlu0 %v3932_v4 }
 0x87c   : > { %3950 = vadd.xlane.f32.xlu1 %v3933_v18 }
 0x880   : > { %v6534_v32 = vpop.f32.mrb[84].mxu0 }
 0x881   : > { %v6535_v0 = vpop.f32.mrb[85].mxu0 }
 0x882   : > { %v6598_v54 = vpop.f32.mrb[84].mxu1  ;;  %v6536_v61 = vadd.f32 %v6535_v0, %v6534_v32  ;;  %v6537_v60 = vpop.f32.mrb[86].mxu0  ;;  %v7102_v32 = vld [vmem:[%s11364_s17 + $0x28] sm:$0xff]  }
 0x883   : > { %v6599_v58 = vpop.f32.mrb[85].mxu1  ;;  %v6538_v12 = vpop.f32.mrb[87].mxu0  ;;  %6826 = vmatprep.subr.bf16.mxu0 %v7102_v32 }
 0x884   : > { %v3715_v15 = vadd.f32 %v6536_v61, %v9935_v37  ;;  %v6600_v29 = vadd.f32 %v6599_v58, %v6598_v54  ;;  %v6601_v41 = vpop.f32.mrb[86].mxu1  ;;  %v6539_v10 = vadd.f32 %v6538_v12, %v6537_v60  ;;  %v11635_v61 = vld [vmem:[#allocation15_spill] sm:$0xff]  ;;  %6827 = vmatpush3.bf16.msra.mxu0 %v7102_v32 }
 0x885   : > { %v6602_v63 = vpop.f32.mrb[87].mxu1 }
 0x886   : > { %v3812_v24 = vadd.f32 %v6600_v29, %v3715_v15  ;;  %v3718_v28 = vadd.f32 %v6539_v10, %v9935_v37  ;;  %v6603_v39 = vadd.f32 %v6602_v63, %v6601_v41  ;;  %v11636_v10 = vld [vmem:[#allocation16_spill] sm:$0xff] }
 0x888   : > { %v3815_v53 = vadd.f32 %v6603_v39, %v3718_v28  ;;  %v9957_v57 = vadd.f32 %v3812_v24, %v11631_v47 }
 0x88a   : > { %3888 = vadd.xlane.f32.xlu0 %v9957_v57  ;;  %v9961_v17 = vadd.f32 %v3815_v53, %v11632_v26  ;;  %v3934_v34 = vmul.f32 %v9957_v57, %v9957_v57 }
 0x88c   : > { %3890 = vadd.xlane.f32.xlu1 %v9961_v17  ;;  %v3935_v6 = vmul.f32 %v9961_v17, %v9961_v17 }
 0x88e   : > { %3952 = vadd.xlane.f32.xlu0 %v3934_v34 }
 0x890   : > { %3954 = vadd.xlane.f32.xlu1 %v3935_v6 }
 0x896   : > { %v6540_v30 = vpop.f32.mrb[88].mxu0 }
 0x897   : > { %v6604_v9 = vpop.f32.mrb[88].mxu1  ;;  %v6541_v40 = vpop.f32.mrb[89].mxu0 }
 0x898   : > { %v6542_v31 = vadd.f32 %v6541_v40, %v6540_v30  ;;  %v6605_v3 = vpop.f32.mrb[89].mxu1  ;;  %v6543_v36 = vpop.f32.mrb[90].mxu0 }
 0x899   : > { %v6606_v1 = vadd.f32 %v6605_v3, %v6604_v9  ;;  %v6607_v23 = vpop.f32.mrb[90].mxu1  ;;  %v6544_v20 = vpop.f32.mrb[91].mxu0  ;;  %v11637_v3 = vld [vmem:[#allocation17_spill] sm:$0xff] }
 0x89a   : > { %v3723_v44 = vadd.f32 %v6542_v31, %v9935_v37  ;;  %v6545_v2 = vadd.f32 %v6544_v20, %v6543_v36  ;;  %v6608_v27 = vpop.f32.mrb[91].mxu1 }
 0x89b   : > { %v6609_v56 = vadd.f32 %v6608_v27, %v6607_v23  ;;  %v11638_v27 = vld [vmem:[#allocation18_spill] sm:$0xff] }
 0x89c   : > { %v3820_v8 = vadd.f32 %v6606_v1, %v3723_v44  ;;  %v3726_v46 = vadd.f32 %v6545_v2, %v9935_v37 }
 0x89e   : > { %v3823_v35 = vadd.f32 %v6609_v56, %v3726_v46  ;;  %v9974_v22 = vadd.f32 %v3820_v8, %v11633_v45 }
 0x8a0   : > { %3892 = vadd.xlane.f32.xlu0 %v9974_v22  ;;  %v9978_v33 = vadd.f32 %v3823_v35, %v11634_v50  ;;  %v3936_v51 = vmul.f32 %v9974_v22, %v9974_v22 }
 0x8a2   : > { %3894 = vadd.xlane.f32.xlu1 %v9978_v33  ;;  %v3937_v11 = vmul.f32 %v9978_v33, %v9978_v33 }
 0x8a4   : > { %3956 = vadd.xlane.f32.xlu0 %v3936_v51 }
 0x8a6   : > { %3958 = vadd.xlane.f32.xlu1 %v3937_v11 }
 0x8ab   : > { %v6546_v21 = vpop.f32.mrb[92].mxu0 }
 0x8ac   : > { %v6610_v48 = vpop.f32.mrb[92].mxu1  ;;  %v6547_v42 = vpop.f32.mrb[93].mxu0 }
 0x8ad   : > { %v6548_v59 = vadd.f32 %v6547_v42, %v6546_v21  ;;  %v6611_v5 = vpop.f32.mrb[93].mxu1  ;;  %v6549_v38 = vpop.f32.mrb[94].mxu0 }
 0x8ae   : > { %v6612_v43 = vadd.f32 %v6611_v5, %v6610_v48  ;;  %v6613_v19 = vpop.f32.mrb[94].mxu1  ;;  %v6550_v13 = vpop.f32.mrb[95].mxu0 }
 0x8af   : > { %v3731_v62 = vadd.f32 %v6548_v59, %v9935_v37  ;;  %v6551_v16 = vadd.f32 %v6550_v13, %v6549_v38  ;;  %v6614_v52 = vpop.f32.mrb[95].mxu1  ;;  %v11639_v38 = vld [vmem:[#allocation19_spill] sm:$0xff] }
 0x8b0   : > { %v6615_v7 = vadd.f32 %v6614_v52, %v6613_v19 }
 0x8b1   : > { %v3828_v4 = vadd.f32 %v6612_v43, %v3731_v62  ;;  %v3734_v18 = vadd.f32 %v6551_v16, %v9935_v37 }
 0x8b3   : > { %v3831_v0 = vadd.f32 %v6615_v7, %v3734_v18  ;;  %v6552_v54 = vpop.f32.mrb[96].mxu0  ;;  %v9991_v60 = vadd.f32 %v3828_v4, %v11635_v61  ;;  %v11640_v7 = vld [vmem:[#allocation20_spill] sm:$0xff]  ;;  %v7103_v18 = vld [vmem:[%s11364_s17 + $0x30] sm:$0xff]  }
 0x8b4   : > { %v6616_v58 = vpop.f32.mrb[96].mxu1  ;;  %v6553_v12 = vpop.f32.mrb[97].mxu0  ;;  %6828 = vmatprep.subr.bf16.mxu0 %v7103_v18 }
 0x8b5   : > { %v6554_v15 = vadd.f32 %v6553_v12, %v6552_v54  ;;  %v6617_v29 = vpop.f32.mrb[97].mxu1  ;;  %v6555_v41 = vpop.f32.mrb[98].mxu0  ;;  %3896 = vadd.xlane.f32.xlu0 %v9991_v60  ;;  %v9995_v63 = vadd.f32 %v3831_v0, %v11636_v10  ;;  %v3938_v26 = vmul.f32 %v9991_v60, %v9991_v60  ;;  %6829 = vmatpush3.bf16.msra.mxu0 %v7103_v18 }
 0x8b6   : > { %v6618_v25 = vadd.f32 %v6617_v29, %v6616_v58  ;;  %v6619_v24 = vpop.f32.mrb[98].mxu1  ;;  %v6556_v28 = vpop.f32.mrb[99].mxu0 }
 0x8b7   : > { %v3739_v39 = vadd.f32 %v6554_v15, %v9935_v37  ;;  %v6557_v53 = vadd.f32 %v6556_v28, %v6555_v41  ;;  %v6620_v47 = vpop.f32.mrb[99].mxu1  ;;  %3898 = vadd.xlane.f32.xlu1 %v9995_v63  ;;  %v3939_v9 = vmul.f32 %v9995_v63, %v9995_v63 }
 0x8b8   : > { %v6621_v34 = vadd.f32 %v6620_v47, %v6619_v24 }
 0x8b9   : > { %v3836_v6 = vadd.f32 %v6618_v25, %v3739_v39  ;;  %v3742_v30 = vadd.f32 %v6557_v53, %v9935_v37  ;;  %3960 = vadd.xlane.f32.xlu0 %v3938_v26  ;;  %v11641_v39 = vld [vmem:[#allocation21_spill] sm:$0xff] }
 0x8bb   : > { %v3839_v40 = vadd.f32 %v6621_v34, %v3742_v30  ;;  %v6558_v31 = vpop.f32.mrb[100].mxu0  ;;  %3962 = vadd.xlane.f32.xlu1 %v3939_v9  ;;  %v10005_v36 = vadd.f32 %v3836_v6, %v11637_v3  ;;  %v11642_v9 = vld [vmem:[#allocation22_spill] sm:$0xff] }
 0x8bc   : > { %v6622_v1 = vpop.f32.mrb[100].mxu1  ;;  %v6559_v23 = vpop.f32.mrb[101].mxu0 }
 0x8bd   : > { %v6560_v20 = vadd.f32 %v6559_v23, %v6558_v31  ;;  %v6623_v44 = vpop.f32.mrb[101].mxu1  ;;  %v6561_v2 = vpop.f32.mrb[102].mxu0  ;;  %3900 = vadd.xlane.f32.xlu0 %v10005_v36  ;;  %v10009_v56 = vadd.f32 %v3839_v40, %v11638_v27  ;;  %v3940_v51 = vmul.f32 %v10005_v36, %v10005_v36 }
 0x8be   : > { %v6624_v55 = vadd.f32 %v6623_v44, %v6622_v1  ;;  %v6625_v8 = vpop.f32.mrb[102].mxu1  ;;  %v6562_v46 = vpop.f32.mrb[103].mxu0 }
 0x8bf   : > { %v3747_v35 = vadd.f32 %v6560_v20, %v9935_v37  ;;  %v6563_v45 = vadd.f32 %v6562_v46, %v6561_v2  ;;  %v6626_v50 = vpop.f32.mrb[103].mxu1  ;;  %3902 = vadd.xlane.f32.xlu1 %v10009_v56  ;;  %v3941_v42 = vmul.f32 %v10009_v56, %v10009_v56 }
 0x8c0   : > { %v6627_v11 = vadd.f32 %v6626_v50, %v6625_v8  ;;  %v11643_v50 = vld [vmem:[#allocation23_spill] sm:$0xff] }
 0x8c1   : > { %v3844_v21 = vadd.f32 %v6624_v55, %v3747_v35  ;;  %v3750_v48 = vadd.f32 %v6563_v45, %v9935_v37  ;;  %3964 = vadd.xlane.f32.xlu0 %v3940_v51  ;;  %v7104_v35 = vld [vmem:[%s11364_s17 + $0x38] sm:$0xff]  }
 0x8c2   : > { %6830 = vmatprep.subr.bf16.mxu0 %v7104_v35 }
 0x8c3   : > { %v3847_v59 = vadd.f32 %v6627_v11, %v3750_v48  ;;  %v6564_v5 = vpop.f32.mrb[104].mxu0  ;;  %3966 = vadd.xlane.f32.xlu1 %v3941_v42  ;;  %v10019_v43 = vadd.f32 %v3844_v21, %v11639_v38  ;;  %6831 = vmatpush3.bf16.msra.mxu0 %v7104_v35  ;;  %v11644_v11 = vld [vmem:[#allocation24_spill] sm:$0xff] }
 0x8c4   : > { %v6628_v19 = vpop.f32.mrb[104].mxu1  ;;  %v6565_v13 = vpop.f32.mrb[105].mxu0 }
 0x8c5   : > { %v6566_v62 = vadd.f32 %v6565_v13, %v6564_v5  ;;  %v6629_v16 = vpop.f32.mrb[105].mxu1  ;;  %v6567_v52 = vpop.f32.mrb[106].mxu0  ;;  %3904 = vadd.xlane.f32.xlu0 %v10019_v43  ;;  %v10023_v4 = vadd.f32 %v3847_v59, %v11640_v7  ;;  %v3942_v15 = vmul.f32 %v10019_v43, %v10019_v43 }
 0x8c6   : > { %v6630_v32 = vadd.f32 %v6629_v16, %v6628_v19  ;;  %v6631_v0 = vpop.f32.mrb[106].mxu1  ;;  %v6568_v54 = vpop.f32.mrb[107].mxu0 }
 0x8c7   : > { %v3755_v61 = vadd.f32 %v6566_v62, %v9935_v37  ;;  %v6569_v58 = vadd.f32 %v6568_v54, %v6567_v52  ;;  %v6632_v12 = vpop.f32.mrb[107].mxu1  ;;  %3906 = vadd.xlane.f32.xlu1 %v10023_v4  ;;  %v3943_v25 = vmul.f32 %v10023_v4, %v10023_v4 }
 0x8c8   : > { %v6633_v29 = vadd.f32 %v6632_v12, %v6631_v0 }
 0x8c9   : > { %v3852_v41 = vadd.f32 %v6630_v32, %v3755_v61  ;;  %v3758_v10 = vadd.f32 %v6569_v58, %v9935_v37  ;;  %3968 = vadd.xlane.f32.xlu0 %v3942_v15 }
 0x8cb   : > { %v3855_v24 = vadd.f32 %v6633_v29, %v3758_v10  ;;  %3970 = vadd.xlane.f32.xlu1 %v3943_v25  ;;  %v6570_v28 = vpop.f32.mrb[108].mxu0  ;;  %v10036_v53 = vadd.f32 %v3852_v41, %v11641_v39 }
 0x8cc   : > { %v6634_v47 = vpop.f32.mrb[108].mxu1  ;;  %v6571_v26 = vpop.f32.mrb[109].mxu0 }
 0x8cd   : > { %v6572_v34 = vadd.f32 %v6571_v26, %v6570_v28  ;;  %v6635_v6 = vpop.f32.mrb[109].mxu1  ;;  %3908 = vadd.xlane.f32.xlu0 %v10036_v53  ;;  %v6573_v30 = vpop.f32.mrb[110].mxu0  ;;  %v10040_v40 = vadd.f32 %v3855_v24, %v11642_v9  ;;  %v3944_v2 = vmul.f32 %v10036_v53, %v10036_v53  ;;  %v10069_v28 = vld [vmem:[%s11362_s15] ss:$0 sm:$0xff] }
 0x8ce   : > { %v6636_v31 = vadd.f32 %v6635_v6, %v6634_v47  ;;  %v6637_v3 = vpop.f32.mrb[110].mxu1  ;;  %v6574_v1 = vpop.f32.mrb[111].mxu0 }
 0x8cf   : > { %v3763_v23 = vadd.f32 %v6572_v34, %v9935_v37  ;;  %v6575_v20 = vadd.f32 %v6574_v1, %v6573_v30  ;;  %v6638_v44 = vpop.f32.mrb[111].mxu1  ;;  %3910 = vadd.xlane.f32.xlu1 %v10040_v40  ;;  %v3945_v46 = vmul.f32 %v10040_v40, %v10040_v40 }
 0x8d0   : > { %v6639_v27 = vadd.f32 %v6638_v44, %v6637_v3 }
 0x8d1   : > { %v3860_v55 = vadd.f32 %v6636_v31, %v3763_v23  ;;  %v3766_v8 = vadd.f32 %v6575_v20, %v9935_v37  ;;  %3972 = vadd.xlane.f32.xlu0 %v3944_v2 }
 0x8d3   : > { %v3863_v45 = vadd.f32 %v6639_v27, %v3766_v8  ;;  %3974 = vadd.xlane.f32.xlu1 %v3945_v46  ;;  %v10053_v51 = vadd.f32 %v3860_v55, %v11643_v50 }
 0x8d5   : > { %3912 = vadd.xlane.f32.xlu0 %v10053_v51  ;;  %v10057_v21 = vadd.f32 %v3863_v45, %v11644_v11  ;;  %v3946_v37 = vmul.f32 %v10053_v51, %v10053_v51 }
 0x8d7   : > { %3914 = vadd.xlane.f32.xlu1 %v10057_v21  ;;  %v3947_v48 = vmul.f32 %v10057_v21, %v10057_v21 }
 0x8d9   : > { %3976 = vadd.xlane.f32.xlu0 %v3946_v37 }
 0x8db   : > { %3978 = vadd.xlane.f32.xlu1 %v3947_v48 }
 0x903   : > { %v3885_v42 = vpop.xlane.xlu0 %3884 }
 0x904   : > { %v3916_v59 = vmul.f32 0.0078125, %v3885_v42 }
 0x905   : > { %v3887_v5 = vpop.xlane.xlu1 %3886 }
 0x906   : > { %v3917_v38 = vmul.f32 0.0078125, %v3887_v5  ;;  %v3996_v13 = vmul.f32 %v3916_v59, %v3916_v59  ;;  %v4044_v15 = vsub.f32 %v9940_v14, %v3916_v59  ;;  %v10074_v14 = vld [vmem:[%s11363_s16] ss:$0 sm:$0xff] }
 0x907   : > { %v3949_v19 = vpop.xlane.xlu0 %3948 }
 0x908   : > { %v3980_v62 = vmul.f32 0.0078125, %v3949_v19  ;;  %v3997_v52 = vmul.f32 %v3917_v38, %v3917_v38  ;;  %v4045_v25 = vsub.f32 %v9944_v49, %v3917_v38 }
 0x909   : > { %v3951_v16 = vpop.xlane.xlu1 %3950 }
 0x90a   : > { %v4012_v7 = vsub.f32 %v3980_v62, %v3996_v13  ;;  %v3981_v18 = vmul.f32 0.0078125, %v3951_v16 }
 0x90c   : > { %v4028_v32 = vmax.f32 %v4012_v7, 0.0  ;;  %v4013_v0 = vsub.f32 %v3981_v18, %v3997_v52 }
 0x90e   : > { %v4060_v54 = vadd.f32 1e-12, %v4028_v32  ;;  %v4029_v61 = vmax.f32 %v4013_v0, 0.0 }
 0x910   : > { %7377 = vrsqrt.f32 %v4060_v54  ;;  %v4061_v58 = vadd.f32 1e-12, %v4029_v61 }
 0x912   : > { %7379 = vrsqrt.f32 %v4061_v58 }
 0x917   : > { %v3889_v12 = vpop.xlane.xlu0 %3888 }
 0x918   : > { %v3918_v29 = vmul.f32 0.0078125, %v3889_v12 }
 0x919   : > { %v3891_v10 = vpop.xlane.xlu1 %3890 }
 0x91a   : > { %v7378_v41 = vpop.eup %7377  ;;  %v3919_v24 = vmul.f32 0.0078125, %v3891_v10  ;;  %v3998_v34 = vmul.f32 %v3918_v29, %v3918_v29  ;;  %v4046_v50 = vsub.f32 %v9957_v57, %v3918_v29 }
 0x91b   : > { %v4092_v39 = vmul.f32 %v7378_v41, %v4044_v15  ;;  %v3953_v26 = vpop.xlane.xlu0 %3952 }
 0x91c   : > { %v7380_v47 = vpop.eup %7379  ;;  %v3982_v6 = vmul.f32 0.0078125, %v3953_v26  ;;  %v3999_v31 = vmul.f32 %v3919_v24, %v3919_v24  ;;  %v4047_v42 = vsub.f32 %v9961_v17, %v3919_v24 }
 0x91d   : > { %v4093_v30 = vmul.f32 %v7380_v47, %v4045_v25  ;;  %v3955_v9 = vpop.xlane.xlu1 %3954  ;;  %v4114_v49 = vmul.f32 %v10069_v28, %v4092_v39 }
 0x91e   : > { %v4014_v3 = vsub.f32 %v3982_v6, %v3998_v34  ;;  %v3983_v1 = vmul.f32 0.0078125, %v3955_v9 }
 0x91f   : > { %v4115_v23 = vmul.f32 %v10069_v28, %v4093_v30  ;;  %v4136_v2 = vadd.f32 %v10074_v14, %v4114_v49 }
 0x920   : > { %v4030_v20 = vmax.f32 %v4014_v3, 0.0  ;;  %v4015_v44 = vsub.f32 %v3983_v1, %v3999_v31 }
 0x921   : > { %v4137_v27 = vadd.f32 %v10074_v14, %v4115_v23 }
 0x922   : > { %v4062_v55 = vadd.f32 1e-12, %v4030_v20  ;;  %v4031_v8 = vmax.f32 %v4015_v44, 0.0 }
 0x923   : > { %v4169_v46 = vpack.c.bf16 %v4137_v27, %v4136_v2 }
 0x924   : > { %7381 = vrsqrt.f32 %v4062_v55  ;;  %v4063_v35 = vadd.f32 1e-12, %v4031_v8 }
 0x925   : > { %6832 = vmatprep.mubr.bf16.mxu0 %v4169_v46 }
 0x926   : > { %7383 = vrsqrt.f32 %v4063_v35 }
 0x92d   : > { %v3893_v45 = vpop.xlane.xlu0 %3892 }
 0x92e   : > { %v3920_v11 = vmul.f32 0.0078125, %v3893_v45  ;;  %v7382_v37 = vpop.eup %7381 }
 0x92f   : > { %v3895_v48 = vpop.xlane.xlu1 %3894  ;;  %v4094_v59 = vmul.f32 %v7382_v37, %v4046_v50 }
 0x930   : > { %v3921_v5 = vmul.f32 0.0078125, %v3895_v48  ;;  %v7384_v38 = vpop.eup %7383  ;;  %v4000_v62 = vmul.f32 %v3920_v11, %v3920_v11  ;;  %v4048_v25 = vsub.f32 %v9974_v22, %v3920_v11 }
 0x931   : > { %v3957_v19 = vpop.xlane.xlu0 %3956  ;;  %v4095_v13 = vmul.f32 %v7384_v38, %v4047_v42  ;;  %v4116_v7 = vmul.f32 %v10069_v28, %v4094_v59 }
 0x932   : > { %v3984_v16 = vmul.f32 0.0078125, %v3957_v19  ;;  %v4001_v18 = vmul.f32 %v3921_v5, %v3921_v5  ;;  %v4049_v26 = vsub.f32 %v9978_v33, %v3921_v5 }
 0x933   : > { %v3959_v52 = vpop.xlane.xlu1 %3958  ;;  %v4117_v57 = vmul.f32 %v10069_v28, %v4095_v13  ;;  %v4138_v58 = vadd.f32 %v10074_v14, %v4116_v7 }
 0x934   : > { %v4016_v32 = vsub.f32 %v3984_v16, %v4000_v62  ;;  %v3985_v0 = vmul.f32 0.0078125, %v3959_v52 }
 0x935   : > { %v4139_v17 = vadd.f32 %v10074_v14, %v4117_v57 }
 0x936   : > { %v4032_v54 = vmax.f32 %v4016_v32, 0.0  ;;  %v4017_v61 = vsub.f32 %v3985_v0, %v4001_v18 }
 0x937   : > { %v4170_v29 = vpack.c.bf16 %v4139_v17, %v4138_v58 }
 0x938   : > { %v4064_v12 = vadd.f32 1e-12, %v4032_v54  ;;  %v4033_v15 = vmax.f32 %v4017_v61, 0.0 }
 0x939   : > { %6833 = vmatmul.mubr.bf16.vlgmr.msra.gmra.mrb[112].mxu0 %v4170_v29 }
 0x93a   : > { %7385 = vrsqrt.f32 %v4064_v12  ;;  %v4065_v41 = vadd.f32 1e-12, %v4033_v15 }
 0x93c   : > { %7387 = vrsqrt.f32 %v4065_v41 }
 0x942   : > { %v3897_v10 = vpop.xlane.xlu0 %3896 }
 0x943   : > { %v3922_v24 = vmul.f32 0.0078125, %v3897_v10 }
 0x944   : > { %v7386_v39 = vpop.eup %7385  ;;  %v3899_v47 = vpop.xlane.xlu1 %3898 }
 0x945   : > { %v10088_v34 = vmul.f32 0.0078125, %v3899_v47  ;;  %v4096_v6 = vmul.f32 %v7386_v39, %v4048_v25  ;;  %v4002_v49 = vmul.f32 %v3922_v24, %v3922_v24  ;;  %v4050_v29 = vsub.f32 %v9991_v60, %v3922_v24 }
 0x946   : > { %v7388_v30 = vpop.eup %7387  ;;  %v3961_v9 = vpop.xlane.xlu0 %3960 }
 0x947   : > { %v3986_v31 = vmul.f32 0.0078125, %v3961_v9  ;;  %v4097_v3 = vmul.f32 %v7388_v30, %v4049_v26  ;;  %v4118_v23 = vmul.f32 %v10069_v28, %v4096_v6  ;;  %v4003_v20 = vmul.f32 %v10088_v34, %v10088_v34 }
 0x948   : > { %v3963_v1 = vpop.xlane.xlu1 %3962  ;;  %v4051_v26 = vsub.f32 %v9995_v63, %v10088_v34 }
 0x949   : > { %v4018_v22 = vsub.f32 %v3986_v31, %v4002_v49  ;;  %v3987_v44 = vmul.f32 0.0078125, %v3963_v1  ;;  %v4119_v2 = vmul.f32 %v10069_v28, %v4097_v3  ;;  %v4140_v45 = vadd.f32 %v10074_v14, %v4118_v23 }
 0x94a   : > { %v3901_v27 = vpop.xlane.xlu0 %3900 }
 0x94b   : > { %v4034_v33 = vmax.f32 %v4018_v22, 0.0  ;;  %v4019_v55 = vsub.f32 %v3987_v44, %v4003_v20  ;;  %v10094_v8 = vmul.f32 0.0078125, %v3901_v27  ;;  %v4141_v46 = vadd.f32 %v10074_v14, %v4119_v2 }
 0x94c   : > { %v3903_v35 = vpop.xlane.xlu1 %3902 }
 0x94d   : > { %v4066_v50 = vadd.f32 1e-12, %v4034_v33  ;;  %v4035_v11 = vmax.f32 %v4019_v55, 0.0  ;;  %v10098_v37 = vmul.f32 0.0078125, %v3903_v35  ;;  %v4171_v42 = vpack.c.bf16 %v4141_v46, %v4140_v45 }
 0x94e   : > { %v3965_v48 = vpop.xlane.xlu0 %3964  ;;  %v4004_v5 = vmul.f32 %v10094_v8, %v10094_v8  ;;  %v4052_v33 = vsub.f32 %v10005_v36, %v10094_v8 }
 0x94f   : > { %7389 = vrsqrt.f32 %v4066_v50  ;;  %v4067_v59 = vadd.f32 1e-12, %v4035_v11  ;;  %v3988_v38 = vmul.f32 0.0078125, %v3965_v48  ;;  %6836 = vmatprep.mubr.bf16.mxu0 %v4171_v42  ;;  %v4005_v13 = vmul.f32 %v10098_v37, %v10098_v37 }
 0x950   : > { %v3967_v19 = vpop.xlane.xlu1 %3966  ;;  %v4053_v42 = vsub.f32 %v10009_v56, %v10098_v37 }
 0x951   : > { %7391 = vrsqrt.f32 %v4067_v59  ;;  %v4020_v62 = vsub.f32 %v3988_v38, %v4004_v5  ;;  %v3989_v16 = vmul.f32 0.0078125, %v3967_v19 }
 0x952   : > { %v3905_v52 = vpop.xlane.xlu0 %3904 }
 0x953   : > { %v4036_v7 = vmax.f32 %v4020_v62, 0.0  ;;  %v4021_v18 = vsub.f32 %v3989_v16, %v4005_v13  ;;  %v10104_v32 = vmul.f32 0.0078125, %v3905_v52 }
 0x954   : > { %v3907_v0 = vpop.xlane.xlu1 %3906 }
 0x955   : > { %v4068_v57 = vadd.f32 1e-12, %v4036_v7  ;;  %v4037_v54 = vmax.f32 %v4021_v18, 0.0  ;;  %v10106_v61 = vmul.f32 0.0078125, %v3907_v0  ;;  %v4006_v12 = vmul.f32 %v10104_v32, %v10104_v32 }
 0x956   : > { %v3969_v58 = vpop.xlane.xlu0 %3968 }
 0x957   : > { %7393 = vrsqrt.f32 %v4068_v57  ;;  %v4069_v17 = vadd.f32 1e-12, %v4037_v54  ;;  %v3990_v15 = vmul.f32 0.0078125, %v3969_v58  ;;  %v4007_v25 = vmul.f32 %v10106_v61, %v10106_v61 }
 0x958   : > { %v3971_v41 = vpop.xlane.xlu1 %3970 }
 0x959   : > { %v7390_v10 = vpop.eup %7389  ;;  %7395 = vrsqrt.f32 %v4069_v17  ;;  %v4022_v39 = vsub.f32 %v3990_v15, %v4006_v12  ;;  %v3991_v47 = vmul.f32 0.0078125, %v3971_v41  ;;  %v4054_v17 = vsub.f32 %v10019_v43, %v10104_v32 }
 0x95a   : > { %v3909_v6 = vpop.xlane.xlu0 %3908  ;;  %v4098_v30 = vmul.f32 %v7390_v10, %v4050_v29 }
 0x95b   : > { %v7392_v9 = vpop.eup %7391  ;;  %v4038_v49 = vmax.f32 %v4022_v39, 0.0  ;;  %v4023_v31 = vsub.f32 %v3991_v47, %v4007_v25  ;;  %v10115_v3 = vmul.f32 0.0078125, %v3909_v6  ;;  %v4055_v47 = vsub.f32 %v10023_v4, %v10106_v61 }
 0x95c   : > { %v3911_v1 = vpop.xlane.xlu1 %3910  ;;  %v4099_v60 = vmul.f32 %v7392_v9, %v4051_v26  ;;  %v4120_v24 = vmul.f32 %v10069_v28, %v4098_v30 }
 0x95d   : > { %v4070_v23 = vadd.f32 1e-12, %v4038_v49  ;;  %v4039_v20 = vmax.f32 %v4023_v31, 0.0  ;;  %v10118_v22 = vmul.f32 0.0078125, %v3911_v1  ;;  %v4008_v34 = vmul.f32 %v10115_v3, %v10115_v3 }
 0x95e   : > { %v3973_v44 = vpop.xlane.xlu0 %3972  ;;  %v4121_v2 = vmul.f32 %v10069_v28, %v4099_v60  ;;  %v4142_v46 = vadd.f32 %v10074_v14, %v4120_v24 }
 0x95f   : > { %7397 = vrsqrt.f32 %v4070_v23  ;;  %v4071_v63 = vadd.f32 1e-12, %v4039_v20  ;;  %v3992_v27 = vmul.f32 0.0078125, %v3973_v44  ;;  %v4009_v50 = vmul.f32 %v10118_v22, %v10118_v22 }
 0x960   : > { %v3975_v55 = vpop.xlane.xlu1 %3974  ;;  %v4143_v35 = vadd.f32 %v10074_v14, %v4121_v2  ;;  %v4056_v23 = vsub.f32 %v10036_v53, %v10115_v3  ;;  %v4057_v44 = vsub.f32 %v10040_v40, %v10118_v22 }
 0x961   : > { %v7394_v45 = vpop.eup %7393  ;;  %7399 = vrsqrt.f32 %v4071_v63  ;;  %v4024_v11 = vsub.f32 %v3992_v27, %v4008_v34  ;;  %v3993_v48 = vmul.f32 0.0078125, %v3975_v55 }
 0x962   : > { %v3913_v59 = vpop.xlane.xlu0 %3912  ;;  %v4172_v5 = vpack.c.bf16 %v4143_v35, %v4142_v46  ;;  %v4100_v38 = vmul.f32 %v7394_v45, %v4052_v33 }
 0x963   : > { %v7396_v19 = vpop.eup %7395  ;;  %v4040_v36 = vmax.f32 %v4024_v11, 0.0  ;;  %v4025_v8 = vsub.f32 %v3993_v48, %v4009_v50  ;;  %v3930_v13 = vmul.f32 0.0078125, %v3913_v59 }
 0x964   : > { %6837 = vmatmul.mubr.bf16.gmra.mrb[116].mxu0 %v4172_v5  ;;  %v3915_v62 = vpop.xlane.xlu1 %3914  ;;  %v4101_v16 = vmul.f32 %v7396_v19, %v4053_v42  ;;  %v4122_v52 = vmul.f32 %v10069_v28, %v4100_v38  ;;  %v7105_v38 = vld [vmem:[%s11368_s21] ss:$8 sps:$4 sm:$0xff]  }
 0x965   : > { %v4072_v7 = vadd.f32 1e-12, %v4040_v36  ;;  %v4041_v18 = vmax.f32 %v4025_v8, 0.0  ;;  %v3931_v0 = vmul.f32 0.0078125, %v3915_v62  ;;  %v4010_v37 = vmul.f32 %v3930_v13, %v3930_v13  ;;  %6848 = vmatprep.subr.bf16.mxu1 %v7105_v38 }
 0x966   : > { %v3977_v57 = vpop.xlane.xlu0 %3976  ;;  %v4123_v54 = vmul.f32 %v10069_v28, %v4101_v16  ;;  %v4144_v15 = vadd.f32 %v10074_v14, %v4122_v52  ;;  %v4058_v53 = vsub.f32 %v10053_v51, %v3930_v13  ;;  %6849 = vmatpush3.bf16.msra.mxu1 %v7105_v38 }
 0x967   : > { %7401 = vrsqrt.f32 %v4072_v7  ;;  %v4073_v56 = vadd.f32 1e-12, %v4041_v18  ;;  %v3994_v58 = vmul.f32 0.0078125, %v3977_v57  ;;  %v4011_v10 = vmul.f32 %v3931_v0, %v3931_v0 }
 0x968   : > { %v3979_v12 = vpop.xlane.xlu1 %3978  ;;  %v4145_v29 = vadd.f32 %v10074_v14, %v4123_v54  ;;  %v4059_v45 = vsub.f32 %v10057_v21, %v3931_v0  ;;  %v7106_v21 = vld [vmem:[%s11368_s21 + $0x10] ss:$8 sps:$4 sm:$0xff]  }
 0x969   : > { %v7398_v41 = vpop.eup %7397  ;;  %7403 = vrsqrt.f32 %v4073_v56  ;;  %v4026_v25 = vsub.f32 %v3994_v58, %v4010_v37  ;;  %v3995_v39 = vmul.f32 0.0078125, %v3979_v12  ;;  %6850 = vmatprep.subr.bf16.mxu1 %v7106_v21 }
 0x96a   : > { %v4173_v26 = vpack.c.bf16 %v4145_v29, %v4144_v15  ;;  %v4102_v6 = vmul.f32 %v7398_v41, %v4054_v17  ;;  %6851 = vmatpush3.bf16.msra.mxu1 %v7106_v21 }
 0x96b   : > { %v7400_v30 = vpop.eup %7399  ;;  %v4042_v9 = vmax.f32 %v4026_v25, 0.0  ;;  %v4027_v49 = vsub.f32 %v3995_v39, %v4011_v10 }
 0x96c   : > { %6840 = vmatprep.mubr.bf16.mxu0 %v4173_v26  ;;  %v4103_v43 = vmul.f32 %v7400_v30, %v4055_v47  ;;  %v4124_v32 = vmul.f32 %v10069_v28, %v4102_v6 }
 0x96d   : > { %v4074_v31 = vadd.f32 1e-12, %v4042_v9  ;;  %v4043_v1 = vmax.f32 %v4027_v49, 0.0 }
 0x96e   : > { %v4125_v60 = vmul.f32 %v10069_v28, %v4103_v43  ;;  %v4146_v4 = vadd.f32 %v10074_v14, %v4124_v32 }
 0x96f   : > { %7405 = vrsqrt.f32 %v4074_v31  ;;  %v4075_v24 = vadd.f32 1e-12, %v4043_v1 }
 0x970   : > { %v4147_v61 = vadd.f32 %v10074_v14, %v4125_v60 }
 0x971   : > { %v7402_v20 = vpop.eup %7401  ;;  %7407 = vrsqrt.f32 %v4075_v24 }
 0x972   : > { %v4174_v2 = vpack.c.bf16 %v4147_v61, %v4146_v4  ;;  %v4104_v63 = vmul.f32 %v7402_v20, %v4056_v23 }
 0x973   : > { %v7404_v34 = vpop.eup %7403 }
 0x974   : > { %6841 = vmatmul.mubr.bf16.gmra.mrb[120].mxu0 %v4174_v2  ;;  %v4105_v27 = vmul.f32 %v7404_v34, %v4057_v44  ;;  %v4126_v33 = vmul.f32 %v10069_v28, %v4104_v63 }
 0x976   : > { %v4127_v55 = vmul.f32 %v10069_v28, %v4105_v27  ;;  %v4148_v3 = vadd.f32 %v10074_v14, %v4126_v33 }
 0x978   : > { %v4149_v46 = vadd.f32 %v10074_v14, %v4127_v55 }
 0x979   : > { %v7406_v35 = vpop.eup %7405 }
 0x97a   : > { %v4175_v50 = vpack.c.bf16 %v4149_v46, %v4148_v3  ;;  %v4106_v40 = vmul.f32 %v7406_v35, %v4058_v53 }
 0x97b   : > { %v7408_v22 = vpop.eup %7407 }
 0x97c   : > { %6844 = vmatprep.mubr.bf16.mxu0 %v4175_v50  ;;  %v4107_v11 = vmul.f32 %v7408_v22, %v4059_v45  ;;  %v4128_v48 = vmul.f32 %v10069_v28, %v4106_v40 }
 0x97e   : > { %v4129_v42 = vmul.f32 %v10069_v28, %v4107_v11  ;;  %v4150_v59 = vadd.f32 %v10074_v14, %v4128_v48  ;;  %v7107_v28 = vld [vmem:[%s11368_s21 + $0x20] ss:$8 sps:$4 sm:$0xff]  }
 0x97f   : > { %6852 = vmatprep.subr.bf16.mxu1 %v7107_v28 }
 0x980   : > { %v4151_v51 = vadd.f32 %v10074_v14, %v4129_v42  ;;  %v10169_v14 = vld [vmem:[%s11365_s18] ss:$0 sm:$0xff]  ;;  %6853 = vmatpush3.bf16.msra.mxu1 %v7107_v28  ;;  %v7108_v28 = vld [vmem:[%s11368_s21 + $0x30] ss:$8 sps:$4 sm:$0xff]  }
 0x981   : > { %6854 = vmatprep.subr.bf16.mxu1 %v7108_v28 }
 0x982   : > { %v4176_v5 = vpack.c.bf16 %v4151_v51, %v4150_v59 }
 0x984   : > { %6845 = vmatmul.mubr.bf16.gmra.mrb[124].mxu0 %v4176_v5  ;;  %6855 = vmatpush3.bf16.msra.mxu1 %v7108_v28 }
 0xa0c   : > { %v6834_v19 = vpop.f32.mrb[112].mxu0 }
 0xa0d   : > { %v4274_v36 = vadd.f32 %v6834_v19, %v10169_v14  ;;  %v4265_v8 = vpop.f32.mrb[113].mxu0 }
 0xa0e   : > { %v4266_v13 = vadd.f32 %v10169_v14, %v4265_v8  ;;  %v6835_v62 = vpop.f32.mrb[114].mxu0 }
 0xa0f   : > { %v4330_v16 = vmul.f32 %v4274_v36, %v4274_v36  ;;  %v4277_v52 = vadd.f32 %v6835_v62, %v10169_v14  ;;  %v4268_v7 = vpop.f32.mrb[115].mxu0 }
 0xa10   : > { %v4328_v18 = vmul.f32 %v4266_v13, %v4266_v13  ;;  %v4269_v0 = vadd.f32 %v10169_v14, %v4268_v7 }
 0xa11   : > { %v4346_v57 = vmul.f32 %v4330_v16, %v4274_v36  ;;  %v4331_v54 = vmul.f32 %v4277_v52, %v4277_v52 }
 0xa12   : > { %v4344_v56 = vmul.f32 %v4328_v18, %v4266_v13  ;;  %v4329_v37 = vmul.f32 %v4269_v0, %v4269_v0 }
 0xa13   : > { %v4362_v58 = vmul.f32 0.044715, %v4346_v57  ;;  %v4347_v17 = vmul.f32 %v4331_v54, %v4277_v52 }
 0xa14   : > { %v4360_v12 = vmul.f32 0.044715, %v4344_v56  ;;  %v4345_v15 = vmul.f32 %v4329_v37, %v4269_v0 }
 0xa15   : > { %v4378_v29 = vadd.f32 %v4362_v58, %v4274_v36  ;;  %v4363_v41 = vmul.f32 0.044715, %v4347_v17 }
 0xa16   : > { %v4376_v10 = vadd.f32 %v4360_v12, %v4266_v13  ;;  %v4361_v25 = vmul.f32 0.044715, %v4345_v15 }
 0xa17   : > { %v4394_v39 = vmul.f32 0.7978846, %v4378_v29  ;;  %v4379_v47 = vadd.f32 %v4363_v41, %v4277_v52 }
 0xa18   : > { %v4392_v26 = vmul.f32 0.7978846, %v4376_v10  ;;  %v4377_v6 = vadd.f32 %v4361_v25, %v4269_v0 }
 0xa19   : > { %v4395_v30 = vmul.f32 0.7978846, %v4379_v47  ;;  %7409 = vtanh.f32 %v4394_v39 }
 0xa1a   : > { %v4393_v9 = vmul.f32 0.7978846, %v4377_v6  ;;  %7411 = vtanh.f32 %v4392_v26 }
 0xa1b   : > { %7413 = vtanh.f32 %v4395_v30 }
 0xa1c   : > { %7415 = vtanh.f32 %v4393_v9 }
 0xa23   : > { %v7410_v49 = vpop.eup %7409 }
 0xa24   : > { %v7412_v43 = vpop.eup %7411  ;;  %v4426_v32 = vadd.f32 1.0, %v7410_v49 }
 0xa25   : > { %v7414_v31 = vpop.eup %7413  ;;  %v4424_v1 = vadd.f32 1.0, %v7412_v43 }
 0xa26   : > { %v7416_v60 = vpop.eup %7415  ;;  %v4442_v24 = vmul.f32 0.5, %v4426_v32  ;;  %v4427_v23 = vadd.f32 1.0, %v7414_v31 }
 0xa27   : > { %v4425_v4 = vadd.f32 1.0, %v7416_v60  ;;  %v4440_v44 = vmul.f32 0.5, %v4424_v1 }
 0xa28   : > { %v10175_v61 = vmul.f32 %v4442_v24, %v4274_v36  ;;  %v4443_v20 = vmul.f32 0.5, %v4427_v23 }
 0xa29   : > { %v4441_v63 = vmul.f32 0.5, %v4425_v4  ;;  %v10181_v34 = vmul.f32 %v4440_v44, %v4266_v13 }
 0xa2a   : > { %4478 = vadd.xlane.f32.xlu0 %v10175_v61  ;;  %v10178_v2 = vmul.f32 %v4443_v20, %v4277_v52  ;;  %v4524_v33 = vmul.f32 %v10175_v61, %v10175_v61 }
 0xa2b   : > { %v10184_v27 = vmul.f32 %v4441_v63, %v4269_v0  ;;  %v4522_v53 = vmul.f32 %v10181_v34, %v10181_v34 }
 0xa2c   : > { %4480 = vadd.xlane.f32.xlu1 %v10178_v2  ;;  %v4525_v55 = vmul.f32 %v10178_v2, %v10178_v2 }
 0xa2d   : > { %v4523_v46 = vmul.f32 %v10184_v27, %v10184_v27 }
 0xa2e   : > { %4474 = vadd.xlane.f32.xlu0 %v10181_v34 }
 0xa30   : > { %4476 = vadd.xlane.f32.xlu1 %v10184_v27 }
 0xa32   : > { %4542 = vadd.xlane.f32.xlu0 %v4524_v33 }
 0xa34   : > { %4544 = vadd.xlane.f32.xlu1 %v4525_v55 }
 0xa36   : > { %4538 = vadd.xlane.f32.xlu0 %v4522_v53 }
 0xa37   : > { %v6838_v3 = vpop.f32.mrb[116].mxu0 }
 0xa38   : > { %v10196_v35 = vadd.f32 %v6838_v3, %v10169_v14  ;;  %v4281_v45 = vpop.f32.mrb[117].mxu0  ;;  %4540 = vadd.xlane.f32.xlu1 %v4523_v46 }
 0xa39   : > { %v10199_v50 = vadd.f32 %v10169_v14, %v4281_v45  ;;  %v6839_v40 = vpop.f32.mrb[118].mxu0 }
 0xa3a   : > { %v4334_v22 = vmul.f32 %v10196_v35, %v10196_v35  ;;  %v10204_v11 = vadd.f32 %v6839_v40, %v10169_v14  ;;  %v4284_v48 = vpop.f32.mrb[119].mxu0 }
 0xa3b   : > { %v4332_v42 = vmul.f32 %v10199_v50, %v10199_v50  ;;  %v10209_v59 = vadd.f32 %v10169_v14, %v4284_v48 }
 0xa3c   : > { %v4350_v51 = vmul.f32 %v4334_v22, %v10196_v35  ;;  %v4335_v5 = vmul.f32 %v10204_v11, %v10204_v11 }
 0xa3d   : > { %v4348_v38 = vmul.f32 %v4332_v42, %v10199_v50  ;;  %v4333_v21 = vmul.f32 %v10209_v59, %v10209_v59 }
 0xa3e   : > { %v4366_v19 = vmul.f32 0.044715, %v4350_v51  ;;  %v4351_v36 = vmul.f32 %v4335_v5, %v10204_v11 }
 0xa3f   : > { %v4364_v8 = vmul.f32 0.044715, %v4348_v38  ;;  %v4349_v13 = vmul.f32 %v4333_v21, %v10209_v59 }
 0xa40   : > { %v4382_v62 = vadd.f32 %v4366_v19, %v10196_v35  ;;  %v4367_v16 = vmul.f32 0.044715, %v4351_v36  ;;  %v10264_v36 = vld [vmem:[%s11368_s21 + $0x4] ss:$8 sps:$4 sm:$0xff]  }
 0xa41   : > { %v4380_v52 = vadd.f32 %v4364_v8, %v10199_v50  ;;  %v4365_v7 = vmul.f32 0.044715, %v4349_v13  ;;  %v10272_v8 = vld [vmem:[%s11368_s21 + $0x14] ss:$8 sps:$4 sm:$0xff]   ;;  %6880 = vmatprep.subr.bf16.mxu0 %v10264_v36 }
 0xa42   : > { %v4398_v18 = vmul.f32 0.7978846, %v4382_v62  ;;  %v4383_v0 = vadd.f32 %v4367_v16, %v10204_v11  ;;  %6881 = vmatpush3.bf16.msra.mxu0 %v10264_v36 }
 0xa43   : > { %v4396_v57 = vmul.f32 0.7978846, %v4380_v52  ;;  %v4381_v54 = vadd.f32 %v4365_v7, %v10209_v59  ;;  %6882 = vmatprep.subr.bf16.mxu0 %v10272_v8 }
 0xa44   : > { %v4399_v56 = vmul.f32 0.7978846, %v4383_v0  ;;  %7417 = vtanh.f32 %v4398_v18 }
 0xa45   : > { %v4397_v37 = vmul.f32 0.7978846, %v4381_v54  ;;  %7419 = vtanh.f32 %v4396_v57 }
 0xa46   : > { %7421 = vtanh.f32 %v4399_v56  ;;  %6883 = vmatpush3.bf16.msra.mxu0 %v10272_v8 }
 0xa47   : > { %v6842_v58 = vpop.f32.mrb[120].mxu0  ;;  %7423 = vtanh.f32 %v4397_v37 }
 0xa48   : > { %v10227_v17 = vadd.f32 %v6842_v58, %v10169_v14  ;;  %v4297_v12 = vpop.f32.mrb[121].mxu0 }
 0xa49   : > { %v10230_v15 = vadd.f32 %v10169_v14, %v4297_v12  ;;  %v6843_v29 = vpop.f32.mrb[122].mxu0 }
 0xa4a   : > { %v4338_v41 = vmul.f32 %v10227_v17, %v10227_v17  ;;  %v10235_v10 = vadd.f32 %v6843_v29, %v10169_v14  ;;  %v4300_v25 = vpop.f32.mrb[123].mxu0 }
 0xa4b   : > { %v4336_v39 = vmul.f32 %v10230_v15, %v10230_v15  ;;  %v10240_v47 = vadd.f32 %v10169_v14, %v4300_v25 }
 0xa4c   : > { %v4354_v26 = vmul.f32 %v4338_v41, %v10227_v17  ;;  %v4339_v6 = vmul.f32 %v10235_v10, %v10235_v10 }
 0xa4d   : > { %v4352_v30 = vmul.f32 %v4336_v39, %v10230_v15  ;;  %v4337_v9 = vmul.f32 %v10240_v47, %v10240_v47 }
 0xa4e   : > { %v7418_v49 = vpop.eup %7417  ;;  %v4370_v43 = vmul.f32 0.044715, %v4354_v26  ;;  %v4355_v32 = vmul.f32 %v4339_v6, %v10235_v10 }
 0xa4f   : > { %v7420_v31 = vpop.eup %7419  ;;  %v4368_v1 = vmul.f32 0.044715, %v4352_v30  ;;  %v4353_v60 = vmul.f32 %v4337_v9, %v10240_v47  ;;  %v4430_v24 = vadd.f32 1.0, %v7418_v49 }
 0xa50   : > { %v7422_v23 = vpop.eup %7421  ;;  %v4386_v4 = vadd.f32 %v4370_v43, %v10227_v17  ;;  %v4371_v20 = vmul.f32 0.044715, %v4355_v32  ;;  %v4428_v44 = vadd.f32 1.0, %v7420_v31 }
 0xa51   : > { %v7424_v63 = vpop.eup %7423  ;;  %v4384_v33 = vadd.f32 %v4368_v1, %v10230_v15  ;;  %v4369_v55 = vmul.f32 0.044715, %v4353_v60  ;;  %v4446_v53 = vmul.f32 0.5, %v4430_v24  ;;  %v4431_v3 = vadd.f32 1.0, %v7422_v23 }
 0xa52   : > { %v4402_v46 = vmul.f32 0.7978846, %v4386_v4  ;;  %v4387_v45 = vadd.f32 %v4371_v20, %v10235_v10  ;;  %v4444_v40 = vmul.f32 0.5, %v4428_v44  ;;  %v4429_v22 = vadd.f32 1.0, %v7424_v63 }
 0xa53   : > { %v4400_v48 = vmul.f32 0.7978846, %v4384_v33  ;;  %v4385_v42 = vadd.f32 %v4369_v55, %v10240_v47  ;;  %v10255_v51 = vmul.f32 %v4446_v53, %v10196_v35  ;;  %v4447_v5 = vmul.f32 0.5, %v4431_v3  ;;  %v7110_v35 = vld [vmem:[%s11368_s21 + $0x40] ss:$8 sps:$4 sm:$0xff]  }
 0xa54   : > { %v4403_v38 = vmul.f32 0.7978846, %v4387_v45  ;;  %7425 = vtanh.f32 %v4402_v46  ;;  %v4445_v19 = vmul.f32 0.5, %v4429_v22  ;;  %v10276_v13 = vmul.f32 %v4444_v40, %v10199_v50  ;;  %6856 = vmatprep.subr.bf16.mxu1 %v7110_v35 }
 0xa55   : > { %v4401_v21 = vmul.f32 0.7978846, %v4385_v42  ;;  %4486 = vadd.xlane.f32.xlu0 %v10255_v51  ;;  %v10259_v28 = vmul.f32 %v4447_v5, %v10204_v11  ;;  %7427 = vtanh.f32 %v4400_v48  ;;  %6857 = vmatpush3.bf16.msra.mxu1 %v7110_v35 }
 0xa56   : > { %7429 = vtanh.f32 %v4403_v38  ;;  %v10287_v18 = vmul.f32 %v4445_v19, %v10209_v59  ;;  %v4528_v59 = vmul.f32 %v10255_v51, %v10255_v51  ;;  %v4526_v9 = vmul.f32 %v10276_v13, %v10276_v13  ;;  %v10354_v19 = vld [vmem:[%s11368_s21 + $0x34] ss:$8 sps:$4 sm:$0xff]  }
 0xa57   : > { %4488 = vadd.xlane.f32.xlu1 %v10259_v28  ;;  %v6846_v11 = vpop.f32.mrb[124].mxu0  ;;  %7431 = vtanh.f32 %v4401_v21  ;;  %v7113_v21 = vld [vmem:[%s11368_s21 + $0x50] ss:$8 sps:$4 sm:$0xff]  }
 0xa58   : > { %v10279_v62 = vadd.f32 %v6846_v11, %v10169_v14  ;;  %v4313_v16 = vpop.f32.mrb[125].mxu0  ;;  %v4527_v1 = vmul.f32 %v10287_v18, %v10287_v18  ;;  %6858 = vmatprep.subr.bf16.mxu1 %v7113_v21 }
 0xa59   : > { %v10283_v52 = vadd.f32 %v10169_v14, %v4313_v16  ;;  %4482 = vadd.xlane.f32.xlu0 %v10276_v13  ;;  %v6847_v7 = vpop.f32.mrb[126].mxu0  ;;  %6859 = vmatpush3.bf16.msra.mxu1 %v7113_v21 }
 0xa5a   : > { %v4342_v50 = vmul.f32 %v10279_v62, %v10279_v62  ;;  %v10293_v0 = vadd.f32 %v6847_v7, %v10169_v14  ;;  %v4316_v57 = vpop.f32.mrb[127].mxu0 }
 0xa5b   : > { %v4340_v54 = vmul.f32 %v10283_v52, %v10283_v52  ;;  %v10299_v56 = vadd.f32 %v10169_v14, %v4316_v57  ;;  %4484 = vadd.xlane.f32.xlu1 %v10287_v18  ;;  %v4529_v14 = vmul.f32 %v10259_v28, %v10259_v28 }
 0xa5c   : > { %v4358_v37 = vmul.f32 %v4342_v50, %v10279_v62  ;;  %v4343_v58 = vmul.f32 %v10293_v0, %v10293_v0 }
 0xa5d   : > { %v4356_v12 = vmul.f32 %v4340_v54, %v10283_v52  ;;  %v4341_v29 = vmul.f32 %v10299_v56, %v10299_v56  ;;  %4550 = vadd.xlane.f32.xlu0 %v4528_v59  ;;  %v10365_v54 = vld [vmem:[%s11368_s21 + $0x44] ss:$8 sps:$4 sm:$0xff]  }
 0xa5e   : > { %v7426_v41 = vpop.eup %7425  ;;  %v4374_v25 = vmul.f32 0.044715, %v4358_v37  ;;  %v4359_v39 = vmul.f32 %v4343_v58, %v10293_v0 }
 0xa5f   : > { %v7428_v26 = vpop.eup %7427  ;;  %v4372_v6 = vmul.f32 0.044715, %v4356_v12  ;;  %v4357_v30 = vmul.f32 %v4341_v29, %v10299_v56  ;;  %4552 = vadd.xlane.f32.xlu1 %v4529_v14  ;;  %v4434_v49 = vadd.f32 1.0, %v7426_v41 }
 0xa60   : > { %v7430_v43 = vpop.eup %7429  ;;  %v4390_v32 = vadd.f32 %v4374_v25, %v10279_v62  ;;  %v4375_v31 = vmul.f32 0.044715, %v4359_v39  ;;  %v4432_v60 = vadd.f32 1.0, %v7428_v26  ;;  %v10377_v39 = vld [vmem:[%s11368_s21 + $0x54] ss:$8 sps:$4 sm:$0xff]  }
 0xa61   : > { %v7432_v24 = vpop.eup %7431  ;;  %v4388_v23 = vadd.f32 %v4372_v6, %v10283_v52  ;;  %v4373_v4 = vmul.f32 0.044715, %v4357_v30  ;;  %4546 = vadd.xlane.f32.xlu0 %v4526_v9  ;;  %v4450_v20 = vmul.f32 0.5, %v4434_v49  ;;  %v4435_v44 = vadd.f32 1.0, %v7430_v43  ;;  %v7119_v49 = vld [vmem:[%s11368_s21 + $0x70] ss:$8 sps:$4 sm:$0xff]  }
 0xa62   : > { %v4406_v63 = vmul.f32 0.7978846, %v4390_v32  ;;  %v4391_v33 = vadd.f32 %v4375_v31, %v10293_v0  ;;  %v4448_v55 = vmul.f32 0.5, %v4432_v60  ;;  %v4433_v53 = vadd.f32 1.0, %v7432_v24  ;;  %v10411_v43 = vld [vmem:[%s11368_s21 + $0x74] ss:$8 sps:$4 sm:$0xff]  }
 0xa63   : > { %v4404_v3 = vmul.f32 0.7978846, %v4388_v23  ;;  %v4389_v46 = vadd.f32 %v4373_v4, %v10299_v56  ;;  %4548 = vadd.xlane.f32.xlu1 %v4527_v1  ;;  %v10324_v45 = vmul.f32 %v4450_v20, %v10227_v17  ;;  %v4451_v40 = vmul.f32 0.5, %v4435_v44  ;;  %v10337_v17 = vld [vmem:[%s11368_s21 + $0x24] ss:$8 sps:$4 sm:$0xff]   ;;  %v4752_v60 = vld [vmem:[%s10428_s0 + $0x10] sm:$0xff] }
 0xa64   : > { %v4407_v22 = vmul.f32 0.7978846, %v4391_v33  ;;  %7433 = vtanh.f32 %v4406_v63  ;;  %v4449_v5 = vmul.f32 0.5, %v4433_v53  ;;  %v10332_v38 = vmul.f32 %v4448_v55, %v10230_v15  ;;  %6884 = vmatprep.subr.bf16.mxu0 %v10337_v17  ;;  %v4751_v1 = vld [vmem:[%s10428_s0 + $0x8] sm:$0xff]  ;;  %v4753_v24 = vld [vmem:[%s10428_s0 + $0x18] sm:$0xff]  ;;  %v4754_v23 = vld [vmem:[%s10428_s0 + $0x20] sm:$0xff] }
 0xa65   : > { %v4405_v48 = vmul.f32 0.7978846, %v4389_v46  ;;  %4494 = vadd.xlane.f32.xlu0 %v10324_v45  ;;  %v10328_v42 = vmul.f32 %v4451_v40, %v10235_v10  ;;  %7435 = vtanh.f32 %v4404_v3  ;;  %6885 = vmatpush3.bf16.msra.mxu0 %v10337_v17  ;;  %v4532_v15 = vmul.f32 %v10324_v45, %v10324_v45  ;;  %v4755_v4 = vld [vmem:[%s10428_s0 + $0x28] sm:$0xff]  ;;  %v4756_v33 = vld [vmem:[%s10428_s0 + $0x30] sm:$0xff]  ;;  %v4750_v3 = vld [vmem:[%s10428_s0] sm:$0xff] }
 0xa66   : > { %7437 = vtanh.f32 %v4407_v22  ;;  %v10344_v10 = vmul.f32 %v4449_v5, %v10240_v47  ;;  %6886 = vmatprep.subr.bf16.mxu0 %v10354_v19  ;;  %v4530_v16 = vmul.f32 %v10332_v38, %v10332_v38  ;;  %v4757_v40 = vld [vmem:[%s10428_s0 + $0x38] sm:$0xff] }
 0xa67   : > { %4496 = vadd.xlane.f32.xlu1 %v10328_v42  ;;  %7439 = vtanh.f32 %v4405_v48  ;;  %v4533_v47 = vmul.f32 %v10328_v42, %v10328_v42  ;;  %v4759_v48 = vld [vmem:[%s10428_s0 + $0x48] sm:$0xff] }
 0xa68   : > { %v4531_v37 = vmul.f32 %v10344_v10, %v10344_v10 }
 0xa69   : > { %4490 = vadd.xlane.f32.xlu0 %v10332_v38  ;;  %6887 = vmatpush3.bf16.msra.mxu0 %v10354_v19 }
 0xa6a   : > { %6888 = vmatprep.subr.bf16.mxu0 %v10365_v54 }
 0xa6b   : > { %4492 = vadd.xlane.f32.xlu1 %v10344_v10 }
 0xa6d   : > { %4558 = vadd.xlane.f32.xlu0 %v4532_v15  ;;  %6889 = vmatpush3.bf16.msra.mxu0 %v10365_v54 }
 0xa6e   : > { %v7434_v35 = vpop.eup %7433  ;;  %6890 = vmatprep.subr.bf16.mxu0 %v10377_v39 }
 0xa6f   : > { %v7436_v11 = vpop.eup %7435  ;;  %4560 = vadd.xlane.f32.xlu1 %v4533_v47  ;;  %v4438_v7 = vadd.f32 1.0, %v7434_v35 }
 0xa70   : > { %v7438_v50 = vpop.eup %7437  ;;  %v4436_v57 = vadd.f32 1.0, %v7436_v11 }
 0xa71   : > { %v7440_v59 = vpop.eup %7439  ;;  %4554 = vadd.xlane.f32.xlu0 %v4530_v16  ;;  %v4454_v58 = vmul.f32 0.5, %v4438_v7  ;;  %v4439_v12 = vadd.f32 1.0, %v7438_v50  ;;  %6891 = vmatpush3.bf16.msra.mxu0 %v10377_v39  ;;  %v4758_v50 = vld [vmem:[%s10428_s0 + $0x40] sm:$0xff] }
 0xa72   : > { %v4437_v29 = vadd.f32 1.0, %v7440_v59  ;;  %v4452_v25 = vmul.f32 0.5, %v4436_v57  ;;  %v4761_v59 = vld [vmem:[%s10428_s0 + $0x58] sm:$0xff] }
 0xa73   : > { %4556 = vadd.xlane.f32.xlu1 %v4531_v37  ;;  %v10371_v14 = vmul.f32 %v4454_v58, %v10279_v62  ;;  %v4455_v41 = vmul.f32 0.5, %v4439_v12  ;;  %v7116_v62 = vld [vmem:[%s11368_s21 + $0x60] ss:$8 sps:$4 sm:$0xff]  }
 0xa74   : > { %v4453_v6 = vmul.f32 0.5, %v4437_v29  ;;  %v10389_v30 = vmul.f32 %v4452_v25, %v10283_v52  ;;  %6860 = vmatprep.subr.bf16.mxu1 %v7116_v62 }
 0xa75   : > { %4502 = vadd.xlane.f32.xlu0 %v10371_v14  ;;  %v10381_v26 = vmul.f32 %v4455_v41, %v10293_v0  ;;  %6861 = vmatpush3.bf16.msra.mxu1 %v7116_v62  ;;  %v10395_v0 = vld [vmem:[%s11368_s21 + $0x64] ss:$8 sps:$4 sm:$0xff]   ;;  %v4536_v32 = vmul.f32 %v10371_v14, %v10371_v14 }
 0xa76   : > { %v10399_v9 = vmul.f32 %v4453_v6, %v10299_v56  ;;  %6892 = vmatprep.subr.bf16.mxu0 %v10395_v0  ;;  %v4534_v52 = vmul.f32 %v10389_v30, %v10389_v30  ;;  %6862 = vmatprep.subr.bf16.mxu1 %v7119_v49 }
 0xa77   : > { %4504 = vadd.xlane.f32.xlu1 %v10381_v26  ;;  %6893 = vmatpush3.bf16.msra.mxu0 %v10395_v0  ;;  %v4537_v31 = vmul.f32 %v10381_v26, %v10381_v26 }
 0xa78   : > { %v4535_v56 = vmul.f32 %v10399_v9, %v10399_v9  ;;  %6894 = vmatprep.subr.bf16.mxu0 %v10411_v43 }
 0xa79   : > { %4498 = vadd.xlane.f32.xlu0 %v10389_v30  ;;  %6863 = vmatpush3.bf16.msra.mxu1 %v7119_v49 }
 0xa7a   : > { %6912 = vmatprep.subr.bf16.mxu1 %v10264_v36 }
 0xa7b   : > { %4500 = vadd.xlane.f32.xlu1 %v10399_v9  ;;  %6895 = vmatpush3.bf16.msra.mxu0 %v10411_v43 }
 0xa7d   : > { %4562 = vadd.xlane.f32.xlu0 %v4534_v52 }
 0xa7f   : > { %4564 = vadd.xlane.f32.xlu1 %v4535_v56  ;;  %v4760_v56 = vld [vmem:[%s10428_s0 + $0x50] sm:$0xff] }
 0xa81   : > { %4566 = vadd.xlane.f32.xlu0 %v4536_v32  ;;  %v4763_v32 = vld [vmem:[%s10428_s0 + $0x68] sm:$0xff] }
 0xa83   : > { %4568 = vadd.xlane.f32.xlu1 %v4537_v31 }
 0xa94   : > { %5260 = vperm.xlu1 %6976, %v4751_v1  }
 0xa97   : > { %5257 = vperm.xlu0 %6975, %v4750_v3  }
 0xa98   : > { %5263 = vperm.xlu1 %6976, %v4752_v60  }
 0xa9b   : > { %5284 = vperm.xlu0 %6975, %v4759_v48  }
 0xa9c   : > { %5266 = vperm.xlu1 %6976, %v4753_v24  }
 0xa9f   : > { %5290 = vperm.xlu0 %6975, %v4761_v59  }
 0xaa0   : > { %5269 = vperm.xlu1 %6976, %v4754_v23  }
 0xaa3   : > { %5296 = vperm.xlu0 %6975, %v4763_v32  }
 0xaa4   : > { %5272 = vperm.xlu1 %6976, %v4755_v4   ;;  %v4762_v4 = vld [vmem:[%s10428_s0 + $0x60] sm:$0xff] }
 0xaa8   : > { %5275 = vperm.xlu1 %6976, %v4756_v33  }
 0xaac   : > { %5278 = vperm.xlu1 %6976, %v4757_v40  }
 0xab0   : > { %5281 = vperm.xlu1 %6976, %v4758_v50  }
 0xab4   : > { %5287 = vperm.xlu1 %6976, %v4760_v56  }
 0xab7   : > { %v4479_v20 = vpop.xlane.xlu0 %4478 }
 0xab8   : > { %v4508_v55 = vmul.f32 0.0078125, %v4479_v20  ;;  %v4765_v20 = vld [vmem:[%s10428_s0 + $0x78] sm:$0xff]  ;;  %5293 = vperm.xlu1 %6976, %v4762_v4  }
 0xab9   : > { %v4481_v44 = vpop.xlane.xlu1 %4480  ;;  %5302 = vperm.xlu0 %6975, %v4765_v20  }
 0xaba   : > { %v4509_v46 = vmul.f32 0.0078125, %v4481_v44  ;;  %v4588_v5 = vmul.f32 %v4508_v55, %v4508_v55  ;;  %v4636_v40 = vsub.f32 %v10175_v61, %v4508_v55 }
 0xabb   : > { %v4475_v63 = vpop.xlane.xlu0 %4474 }
 0xabc   : > { %v4506_v21 = vmul.f32 0.0078125, %v4475_v63  ;;  %v4589_v11 = vmul.f32 %v4509_v46, %v4509_v46  ;;  %v4764_v63 = vld [vmem:[%s10428_s0 + $0x70] sm:$0xff] }
 0xabd   : > { %v4477_v53 = vpop.xlane.xlu1 %4476  ;;  %5299 = vperm.xlu1 %6976, %v4764_v63  }
 0xabe   : > { %v4507_v47 = vmul.f32 0.0078125, %v4477_v53  ;;  %v4586_v37 = vmul.f32 %v4506_v21, %v4506_v21  ;;  %v4637_v53 = vsub.f32 %v10178_v2, %v4509_v46 }
 0xabf   : > { %v4543_v22 = vpop.xlane.xlu0 %4542 }
 0xac0   : > { %v4572_v15 = vmul.f32 0.0078125, %v4543_v22  ;;  %v4587_v41 = vmul.f32 %v4507_v47, %v4507_v47  ;;  %v4634_v22 = vsub.f32 %v10181_v34, %v4506_v21  ;;  %v10461_v34 = vld [vmem:[%s11367_s20] ss:$0 sm:$0xff] }
 0xac1   : > { %v4545_v35 = vpop.xlane.xlu1 %4544 }
 0xac2   : > { %v4604_v16 = vsub.f32 %v4572_v15, %v4588_v5  ;;  %v4573_v7 = vmul.f32 0.0078125, %v4545_v35  ;;  %v4635_v35 = vsub.f32 %v10184_v27, %v4507_v47 }
 0xac3   : > { %v4539_v57 = vpop.xlane.xlu0 %4538 }
 0xac4   : > { %v4620_v58 = vmax.f32 %v4604_v16, 0.0  ;;  %v4605_v12 = vsub.f32 %v4573_v7, %v4589_v11  ;;  %v4570_v29 = vmul.f32 0.0078125, %v4539_v57  ;;  %v10453_v11 = vld [vmem:[%s11366_s19] ss:$0 sm:$0xff] }
 0xac5   : > { %v4541_v25 = vpop.xlane.xlu1 %4540 }
 0xac6   : > { %v4652_v6 = vadd.f32 1e-12, %v4620_v58  ;;  %v4621_v62 = vmax.f32 %v4605_v12, 0.0  ;;  %v4602_v49 = vsub.f32 %v4570_v29, %v4586_v37  ;;  %v4571_v52 = vmul.f32 0.0078125, %v4541_v25 }
 0xac8   : > { %v4653_v31 = vadd.f32 1e-12, %v4621_v62  ;;  %v4618_v1 = vmax.f32 %v4602_v49, 0.0  ;;  %v4603_v60 = vsub.f32 %v4571_v52, %v4587_v41  ;;  %7441 = vrsqrt.f32 %v4652_v6 }
 0xaca   : > { %7443 = vrsqrt.f32 %v4653_v31  ;;  %v4650_v24 = vadd.f32 1e-12, %v4618_v1  ;;  %v4619_v23 = vmax.f32 %v4603_v60, 0.0 }
 0xacc   : > { %7445 = vrsqrt.f32 %v4650_v24  ;;  %v4651_v44 = vadd.f32 1e-12, %v4619_v23 }
 0xace   : > { %7447 = vrsqrt.f32 %v4651_v44 }
 0xad2   : > { %v7442_v33 = vpop.eup %7441 }
 0xad3   : > { %v4684_v15 = vmul.f32 %v7442_v33, %v4636_v40 }
 0xad4   : > { %v7444_v3 = vpop.eup %7443 }
 0xad5   : > { %v4685_v48 = vmul.f32 %v7444_v3, %v4637_v53  ;;  %v4706_v61 = vmul.f32 %v10453_v11, %v4684_v15 }
 0xad6   : > { %v7446_v5 = vpop.eup %7445 }
 0xad7   : > { %v4682_v16 = vmul.f32 %v7446_v5, %v4634_v22  ;;  %v4707_v50 = vmul.f32 %v10453_v11, %v4685_v48  ;;  %v4728_v57 = vadd.f32 %v10461_v34, %v4706_v61 }
 0xad8   : > { %v7448_v7 = vpop.eup %7447 }
 0xad9   : > { %v4683_v2 = vmul.f32 %v7448_v7, %v4635_v35  ;;  %v4704_v46 = vmul.f32 %v10453_v11, %v4682_v16  ;;  %v4729_v55 = vadd.f32 %v10461_v34, %v4707_v50 }
 0xadb   : > { %v4705_v27 = vmul.f32 %v10453_v11, %v4683_v2  ;;  %v4726_v21 = vadd.f32 %v10461_v34, %v4704_v46  ;;  %v4743_v37 = vpack.c.bf16 %v4729_v55, %v4728_v57 }
 0xadd   : > { %v4727_v47 = vadd.f32 %v10461_v34, %v4705_v27 }
 0xadf   : > { %v4742_v59 = vpack.c.bf16 %v4727_v47, %v4726_v21 }
 0xae1   : > { %6864 = vmatprep.mubr.bf16.mxu1 %v4742_v59  ;;  %6896 = vmatprep.mubr.bf16.mxu0 %v4742_v59 }
 0xae2   : > { %v4487_v58 = vpop.xlane.xlu0 %4486  ;;  %6865 = vmatmul.mubr.bf16.vlgmr.msra.gmra.mrb[112].mxu1 %v4743_v37  ;;  %6897 = vmatmul.mubr.bf16.vlgmr.msra.gmra.mrb[128].mxu0 %v4743_v37 }
 0xae3   : > { %6920 = vmatpush3.bf16.msra.mxu1 %v10264_v36  ;;  %v10470_v41 = vmul.f32 0.0078125, %v4487_v58 }
 0xae4   : > { %v4489_v12 = vpop.xlane.xlu1 %4488  ;;  %6913 = vmatprep.subr.bf16.mxu1 %v10272_v8 }
 0xae5   : > { %v10473_v6 = vmul.f32 0.0078125, %v4489_v12  ;;  %v4592_v49 = vmul.f32 %v10470_v41, %v10470_v41  ;;  %v4640_v58 = vsub.f32 %v10255_v51, %v10470_v41 }
 0xae6   : > { %v4483_v29 = vpop.xlane.xlu0 %4482 }
 0xae7   : > { %6921 = vmatpush3.bf16.msra.mxu1 %v10272_v8  ;;  %v10478_v52 = vmul.f32 0.0078125, %v4483_v29  ;;  %v4593_v31 = vmul.f32 %v10473_v6, %v10473_v6  ;;  %v4641_v12 = vsub.f32 %v10259_v28, %v10473_v6 }
 0xae8   : > { %v4485_v25 = vpop.xlane.xlu1 %4484  ;;  %6914 = vmatprep.subr.bf16.mxu1 %v10337_v17 }
 0xae9   : > { %v10480_v36 = vmul.f32 0.0078125, %v4485_v25  ;;  %v4590_v24 = vmul.f32 %v10478_v52, %v10478_v52 }
 0xaea   : > { %v4551_v62 = vpop.xlane.xlu0 %4550 }
 0xaeb   : > { %v4576_v56 = vmul.f32 0.0078125, %v4551_v62  ;;  %6922 = vmatpush3.bf16.msra.mxu1 %v10337_v17  ;;  %v4591_v44 = vmul.f32 %v10480_v36, %v10480_v36 }
 0xaec   : > { %v4553_v32 = vpop.xlane.xlu1 %4552  ;;  %6915 = vmatprep.subr.bf16.mxu1 %v10354_v19 }
 0xaed   : > { %v4608_v8 = vsub.f32 %v4576_v56, %v4592_v49  ;;  %v4577_v1 = vmul.f32 0.0078125, %v4553_v32  ;;  %v4638_v32 = vsub.f32 %v10276_v13, %v10478_v52 }
 0xaee   : > { %v4547_v60 = vpop.xlane.xlu0 %4546 }
 0xaef   : > { %v4624_v23 = vmax.f32 %v4608_v8, 0.0  ;;  %v4609_v4 = vsub.f32 %v4577_v1, %v4593_v31  ;;  %v4574_v20 = vmul.f32 0.0078125, %v4547_v60  ;;  %6923 = vmatpush3.bf16.msra.mxu1 %v10354_v19 }
 0xaf0   : > { %v4549_v63 = vpop.xlane.xlu1 %4548  ;;  %6916 = vmatprep.subr.bf16.mxu1 %v10365_v54 }
 0xaf1   : > { %v4656_v17 = vadd.f32 1e-12, %v4624_v23  ;;  %v4625_v33 = vmax.f32 %v4609_v4, 0.0  ;;  %v4606_v53 = vsub.f32 %v4574_v20, %v4590_v24  ;;  %v4575_v3 = vmul.f32 0.0078125, %v4549_v63 }
 0xaf2   : > { %v4495_v40 = vpop.xlane.xlu0 %4494  ;;  %v4639_v23 = vsub.f32 %v10287_v18, %v10480_v36 }
 0xaf3   : > { %7449 = vrsqrt.f32 %v4656_v17  ;;  %v4657_v22 = vadd.f32 1e-12, %v4625_v33  ;;  %v4622_v48 = vmax.f32 %v4606_v53, 0.0  ;;  %v4607_v5 = vsub.f32 %v4575_v3, %v4591_v44  ;;  %6924 = vmatpush3.bf16.msra.mxu1 %v10365_v54 }
 0xaf4   : > { %v4497_v15 = vpop.xlane.xlu1 %4496  ;;  %6917 = vmatprep.subr.bf16.mxu1 %v10377_v39  ;;  %v10494_v50 = vmul.f32 0.0078125, %v4495_v40 }
 0xaf5   : > { %7451 = vrsqrt.f32 %v4657_v22  ;;  %v4654_v35 = vadd.f32 1e-12, %v4622_v48  ;;  %v4623_v16 = vmax.f32 %v4607_v5, 0.0  ;;  %v10497_v46 = vmul.f32 0.0078125, %v4497_v15 }
 0xaf6   : > { %v4491_v19 = vpop.xlane.xlu0 %4490  ;;  %v4596_v54 = vmul.f32 %v10494_v50, %v10494_v50 }
 0xaf7   : > { %7453 = vrsqrt.f32 %v4654_v35  ;;  %v4655_v7 = vadd.f32 1e-12, %v4623_v16  ;;  %6925 = vmatpush3.bf16.msra.mxu1 %v10377_v39  ;;  %v10502_v27 = vmul.f32 0.0078125, %v4491_v19  ;;  %v4597_v39 = vmul.f32 %v10497_v46, %v10497_v46 }
 0xaf8   : > { %v4493_v2 = vpop.xlane.xlu1 %4492  ;;  %6918 = vmatprep.subr.bf16.mxu1 %v10395_v0 }
 0xaf9   : > { %7455 = vrsqrt.f32 %v4655_v7  ;;  %v10504_v21 = vmul.f32 0.0078125, %v4493_v2  ;;  %v4594_v62 = vmul.f32 %v10502_v27, %v10502_v27 }
 0xafa   : > { %v4559_v61 = vpop.xlane.xlu0 %4558 }
 0xafb   : > { %v4580_v55 = vmul.f32 0.0078125, %v4559_v61  ;;  %6926 = vmatpush3.bf16.msra.mxu1 %v10395_v0  ;;  %v4595_v31 = vmul.f32 %v10504_v21, %v10504_v21 }
 0xafc   : > { %v4561_v47 = vpop.xlane.xlu1 %4560  ;;  %6919 = vmatprep.subr.bf16.mxu1 %v10411_v43 }
 0xafd   : > { %v7450_v57 = vpop.eup %7449  ;;  %v4612_v59 = vsub.f32 %v4580_v55, %v4596_v54  ;;  %v4581_v37 = vmul.f32 0.0078125, %v4561_v47 }
 0xafe   : > { %v4555_v29 = vpop.xlane.xlu0 %4554  ;;  %v4688_v1 = vmul.f32 %v7450_v57, %v4640_v58 }
 0xaff   : > { %v7452_v25 = vpop.eup %7451  ;;  %v4628_v0 = vmax.f32 %v4612_v59, 0.0  ;;  %v4613_v49 = vsub.f32 %v4581_v37, %v4597_v39  ;;  %v4578_v56 = vmul.f32 0.0078125, %v4555_v29  ;;  %6927 = vmatpush3.bf16.msra.mxu1 %v10411_v43 }
 0xb00   : > { %v4557_v8 = vpop.xlane.xlu1 %4556  ;;  %v4689_v51 = vmul.f32 %v7452_v25, %v4641_v12  ;;  %v4710_v22 = vmul.f32 %v10453_v11, %v4688_v1 }
 0xb01   : > { %v7454_v28 = vpop.eup %7453  ;;  %v4660_v41 = vadd.f32 1e-12, %v4628_v0  ;;  %v4629_v6 = vmax.f32 %v4613_v49, 0.0  ;;  %v4610_v60 = vsub.f32 %v4578_v56, %v4594_v62  ;;  %v4579_v24 = vmul.f32 0.0078125, %v4557_v8 }
 0xb02   : > { %v4503_v4 = vpop.xlane.xlu0 %4502  ;;  %v4686_v20 = vmul.f32 %v7454_v28, %v4638_v32  ;;  %v4711_v13 = vmul.f32 %v10453_v11, %v4689_v51  ;;  %v4732_v2 = vadd.f32 %v10461_v34, %v4710_v22  ;;  %v4644_v62 = vsub.f32 %v10324_v45, %v10494_v50 }
 0xb03   : > { %v7456_v52 = vpop.eup %7455  ;;  %7457 = vrsqrt.f32 %v4660_v41  ;;  %v4661_v44 = vadd.f32 1e-12, %v4629_v6  ;;  %v4626_v63 = vmax.f32 %v4610_v60, 0.0  ;;  %v4611_v17 = vsub.f32 %v4579_v24, %v4595_v31 }
 0xb04   : > { %v4505_v33 = vpop.xlane.xlu1 %4504  ;;  %v4687_v53 = vmul.f32 %v7456_v52, %v4639_v23  ;;  %v4708_v43 = vmul.f32 %v10453_v11, %v4686_v20  ;;  %v4733_v5 = vadd.f32 %v10461_v34, %v4711_v13  ;;  %v10535_v55 = vmul.f32 0.0078125, %v4503_v4 }
 0xb05   : > { %7459 = vrsqrt.f32 %v4661_v44  ;;  %v4658_v3 = vadd.f32 1e-12, %v4626_v63  ;;  %v4627_v40 = vmax.f32 %v4611_v17, 0.0  ;;  %v10539_v59 = vmul.f32 0.0078125, %v4505_v33 }
 0xb06   : > { %v4499_v48 = vpop.xlane.xlu0 %4498  ;;  %v4709_v18 = vmul.f32 %v10453_v11, %v4687_v53  ;;  %v4730_v16 = vadd.f32 %v10461_v34, %v4708_v43  ;;  %v4745_v39 = vpack.c.bf16 %v4733_v5, %v4732_v2  ;;  %v4645_v0 = vsub.f32 %v10328_v42, %v10497_v46 }
 0xb07   : > { %7461 = vrsqrt.f32 %v4658_v3  ;;  %v4659_v36 = vadd.f32 1e-12, %v4627_v40  ;;  %v10528_v15 = vmul.f32 0.0078125, %v4499_v48  ;;  %v4600_v32 = vmul.f32 %v10535_v55, %v10535_v55 }
 0xb08   : > { %v4501_v35 = vpop.xlane.xlu1 %4500  ;;  %v4731_v19 = vadd.f32 %v10461_v34, %v4709_v18  ;;  %v4642_v51 = vsub.f32 %v10332_v38, %v10502_v27  ;;  %v4601_v28 = vmul.f32 %v10539_v59, %v10539_v59  ;;  %v4643_v23 = vsub.f32 %v10344_v10, %v10504_v21 }
 0xb09   : > { %7463 = vrsqrt.f32 %v4659_v36  ;;  %v10532_v7 = vmul.f32 0.0078125, %v4501_v35  ;;  %v4598_v47 = vmul.f32 %v10528_v15, %v10528_v15  ;;  %v4646_v36 = vsub.f32 %v10389_v30, %v10528_v15 }
 0xb0a   : > { %v4563_v61 = vpop.xlane.xlu0 %4562  ;;  %v4744_v54 = vpack.c.bf16 %v4731_v19, %v4730_v16  ;;  %v4648_v2 = vsub.f32 %v10371_v14, %v10535_v55 }
 0xb0b   : > { %v4582_v57 = vmul.f32 0.0078125, %v4563_v61  ;;  %v4599_v12 = vmul.f32 %v10532_v7, %v10532_v7  ;;  %v4647_v35 = vsub.f32 %v10399_v9, %v10532_v7 }
 0xb0c   : > { %v4565_v37 = vpop.xlane.xlu1 %4564  ;;  %6868 = vmatprep.mubr.bf16.mxu1 %v4744_v54  ;;  %6900 = vmatprep.mubr.bf16.mxu0 %v4744_v54 }
 0xb0d   : > { %v7458_v58 = vpop.eup %7457  ;;  %v4614_v29 = vsub.f32 %v4582_v57, %v4598_v47  ;;  %v4583_v25 = vmul.f32 0.0078125, %v4565_v37  ;;  %6869 = vmatmul.mubr.bf16.gmra.mrb[116].mxu1 %v4745_v39  ;;  %6901 = vmatmul.mubr.bf16.gmra.mrb[132].mxu0 %v4745_v39  ;;  %v4649_v57 = vsub.f32 %v10381_v26, %v10539_v59 }
 0xb0e   : > { %v4567_v49 = vpop.xlane.xlu0 %4566  ;;  %v4692_v6 = vmul.f32 %v7458_v58, %v4644_v62 }
 0xb0f   : > { %v7460_v56 = vpop.eup %7459  ;;  %v4630_v31 = vmax.f32 %v4614_v29, 0.0  ;;  %v4615_v8 = vsub.f32 %v4583_v25, %v4599_v12  ;;  %v4584_v1 = vmul.f32 0.0078125, %v4567_v49  ;;  %v11647_v25 = vlaneseq }
 0xb10   : > { %v4569_v41 = vpop.xlane.xlu1 %4568  ;;  %v4693_v45 = vmul.f32 %v7460_v56, %v4645_v0  ;;  %v4714_v53 = vmul.f32 %v10453_v11, %v4692_v6 }
 0xb11   : > { %v7462_v50 = vpop.eup %7461  ;;  %v4662_v60 = vadd.f32 1e-12, %v4630_v31  ;;  %v4631_v42 = vmax.f32 %v4615_v8, 0.0  ;;  %v4616_v46 = vsub.f32 %v4584_v1, %v4600_v32  ;;  %v4585_v24 = vmul.f32 0.0078125, %v4569_v41 }
 0xb12   : > { %v4690_v4 = vmul.f32 %v7462_v50, %v4642_v51  ;;  %v4715_v20 = vmul.f32 %v10453_v11, %v4693_v45  ;;  %v4736_v22 = vadd.f32 %v10461_v34, %v4714_v53  ;;  %v10582_v62 = vand.u32 127, %v11647_v25 }
 0xb13   : > { %v7464_v13 = vpop.eup %7463  ;;  %7465 = vrsqrt.f32 %v4662_v60  ;;  %v4663_v38 = vadd.f32 1e-12, %v4631_v42  ;;  %v4632_v27 = vmax.f32 %v4616_v46, 0.0  ;;  %v4617_v52 = vsub.f32 %v4585_v24, %v4601_v28 }
 0xb14   : > { %v4691_v44 = vmul.f32 %v7464_v13, %v4643_v23  ;;  %v4712_v63 = vmul.f32 %v10453_v11, %v4690_v4  ;;  %v4737_v21 = vadd.f32 %v10461_v34, %v4715_v20  ;;  %v10579_v29 = vpop.permute.xlu1 %5260  ;;  %11648 = vst [vmem:[#allocation50_spill] sm:$0xff] %v10582_v62  ;;  %v10596_v0 = vadd.s32 128, %v10582_v62 }
 0xb15   : > { %7467 = vrsqrt.f32 %v4663_v38  ;;  %v4664_v17 = vadd.f32 1e-12, %v4632_v27  ;;  %v4633_v33 = vmax.f32 %v4617_v52, 0.0  ;;  %vm5305_vm4 = vcmp.eq.s32.totalorder %v10582_v62, %v10579_v29 }
 0xb16   : > { %v4713_v43 = vmul.f32 %v10453_v11, %v4691_v44  ;;  %v4734_v3 = vadd.f32 %v10461_v34, %v4712_v63  ;;  %v4747_v18 = vpack.c.bf16 %v4737_v21, %v4736_v22  ;;  %v5258_v53 = vpop.permute.xlu0 %5257  ;;  %vm5842_vm6 = vcmp.eq.s32.totalorder %v10596_v0, %v10579_v29 }
 0xb17   : > { %7469 = vrsqrt.f32 %v4664_v17  ;;  %v4665_v10 = vadd.f32 1e-12, %v4633_v33  ;;  %vm5304_vm3 = vcmp.eq.s32.totalorder %v10582_v62, %v5258_v53  ;;  %vm5841_vm5 = vcmp.eq.s32.totalorder %v10596_v0, %v5258_v53 }
 0xb18   : > { %v4735_v40 = vadd.f32 %v10461_v34, %v4713_v43  ;;  %v5264_v49 = vpop.permute.xlu1 %5263 }
 0xb19   : > { %7471 = vrsqrt.f32 %v4665_v10  ;;  %vm5843_vm0 = vcmp.eq.s32.totalorder %v10596_v0, %v5264_v49  ;;  %vm5306_vm1 = vcmp.eq.s32.totalorder %v10582_v62, %v5264_v49 }
 0xb1a   : > { %v4746_v48 = vpack.c.bf16 %v4735_v40, %v4734_v3 }
 0xb1c   : > { %6872 = vmatprep.mubr.bf16.mxu1 %v4746_v48  ;;  %v5267_v43 = vpop.permute.xlu1 %5266 }
 0xb1d   : > { %v7466_v5 = vpop.eup %7465  ;;  %6873 = vmatmul.mubr.bf16.gmra.mrb[120].mxu1 %v4747_v18  ;;  %vm5844_vm2 = vcmp.eq.s32.totalorder %v10596_v0, %v5267_v43  ;;  %vm5307_vm7 = vcmp.eq.s32.totalorder %v10582_v62, %v5267_v43 }
 0xb1e   : > { %v4694_v16 = vmul.f32 %v7466_v5, %v4646_v36 }
 0xb1f   : > { %v7468_v19 = vpop.eup %7467 }
 0xb20   : > { %v4695_v61 = vmul.f32 %v7468_v19, %v4647_v35  ;;  %v4716_v54 = vmul.f32 %v10453_v11, %v4694_v16  ;;  %v5270_v25 = vpop.permute.xlu1 %5269 }
 0xb21   : > { %v7470_v47 = vpop.eup %7469  ;;  %vm5845_vm8 = vcmp.eq.s32.totalorder %v10596_v0, %v5270_v25  ;;  %vm5308_vm9 = vcmp.eq.s32.totalorder %v10582_v62, %v5270_v25 }
 0xb22   : > { %v4717_v30 = vmul.f32 %v10453_v11, %v4695_v61  ;;  %v4696_v15 = vmul.f32 %v7470_v47, %v4648_v2  ;;  %v4738_v37 = vadd.f32 %v10461_v34, %v4716_v54 }
 0xb23   : > { %v7472_v39 = vpop.eup %7471 }
 0xb24   : > { %v4739_v9 = vadd.f32 %v10461_v34, %v4717_v30  ;;  %v4697_v7 = vmul.f32 %v7472_v39, %v4649_v57  ;;  %v4718_v58 = vmul.f32 %v10453_v11, %v4696_v15 }
 0xb26   : > { %v4748_v14 = vpack.c.bf16 %v4739_v9, %v4738_v37  ;;  %v4719_v55 = vmul.f32 %v10453_v11, %v4697_v7  ;;  %v4740_v12 = vadd.f32 %v10461_v34, %v4718_v58  ;;  %v10588_v11 = vld [vmem:[%s11369_s22] ss:$0 sm:$0xff] }
 0xb28   : > { %6876 = vmatprep.mubr.bf16.mxu1 %v4748_v14  ;;  %v4741_v26 = vadd.f32 %v10461_v34, %v4719_v55  ;;  %v10593_v34 = vld [vmem:[%s11369_s22 + $0x1] ss:$0 sm:$0xff] }
 0xb2a   : > { %v4749_v59 = vpack.c.bf16 %v4741_v26, %v4740_v12 }
 0xb2c   : > { %6877 = vmatmul.mubr.bf16.gmra.mrb[124].mxu1 %v4749_v59 }
 0xb2d   : > { %6904 = vmatprep.mubr.bf16.mxu1 %v4746_v48 }
 0xb34   : > { %6905 = vmatmul.mubr.bf16.vlgmr.msra.gmra.mrb[128].mxu1 %v4747_v18 }
 0xb35   : > { %6908 = vmatprep.mubr.bf16.mxu1 %v4748_v14 }
 0xb3c   : > { %6909 = vmatmul.mubr.bf16.gmra.mrb[132].mxu1 %v4749_v59 }
 0xbb5   : > { %v6866_v56 = vpop.f32.mrb[112].mxu1  ;;  %v6898_v32 = vpop.f32.mrb[128].mxu0 }
 0xbb6   : > { %v10601_v31 = vadd.f32 %v6866_v56, %v10588_v11  ;;  %v10604_v8 = vadd.f32 %v6898_v32, %v10593_v34  ;;  %v4919_v1 = vpop.f32.mrb[113].mxu1  ;;  %v5489_v51 = vpop.f32.mrb[129].mxu0 }
 0xbb7   : > { %v10607_v28 = vadd.f32 %v10588_v11, %v4919_v1  ;;  %v10610_v41 = vadd.f32 %v10593_v34, %v5489_v51  ;;  %v6867_v6 = vpop.f32.mrb[114].mxu1  ;;  %v6899_v45 = vpop.f32.mrb[130].mxu0 }
 0xbb8   : > { %v6416_v50 = vpack.c.bf16 %v10601_v31, %v10601_v31  ;;  %v6432_v60 = vpack.c.bf16 %v10604_v8, %v10604_v8  ;;  %v10618_v42 = vadd.f32 %v6867_v6, %v10588_v11  ;;  %v10621_v46 = vadd.f32 %v6899_v45, %v10593_v34  ;;  %v5492_v24 = vpop.f32.mrb[131].mxu0  ;;  %5066 = vmax.xlane.f32.xlu0 %v10601_v31  ;;  %v4922_v23 = vpop.f32.mrb[115].mxu1 }
 0xbb9   : > { %v6414_v4 = vpack.c.bf16 %v10607_v28, %v10607_v28  ;;  %v6430_v20 = vpack.c.bf16 %v10610_v41, %v10610_v41  ;;  %v10629_v13 = vadd.f32 %v10593_v34, %v5492_v24  ;;  %v10632_v38 = vadd.f32 %v10588_v11, %v4922_v23  ;;  %5632 = vmax.xlane.f32.xlu1 %v10610_v41 }
 0xbba   : > { %5048 = vst [vmem:[%s10635_s8 + $0x10] sm:$0xf] %v6416_v50  ;;  %5618 = vst [vmem:[%s10635_s8 + $0x14] sm:$0xf] %v6432_v60  ;;  %v6417_v27 = vpack.c.bf16 %v10618_v42, %v10618_v42  ;;  %v6433_v52 = vpack.c.bf16 %v10621_v46, %v10621_v46  ;;  %v5859_v17 = vsel %vm5843_vm0, %v10604_v8, 0.0  ;;  %v5322_v33 = vsel %vm5306_vm1, %v10601_v31, 0.0 }
 0xbbb   : > { %5046 = vst [vmem:[%s10635_s8] sm:$0xf] %v6414_v4  ;;  %5616 = vst [vmem:[%s10635_s8 + $0x4] sm:$0xf] %v6430_v20  ;;  %v6431_v44 = vpack.c.bf16 %v10629_v13, %v10629_v13  ;;  %v6415_v63 = vpack.c.bf16 %v10632_v38, %v10632_v38  ;;  %v5860_v10 = vsel %vm5844_vm2, %v10621_v46, 0.0  ;;  %v5320_v21 = vsel %vm5304_vm3, %v10607_v28, 0.0 }
 0xbbc   : > { %5049 = vst [vmem:[%s10635_s8 + $0x18] sm:$0xf] %v6417_v27  ;;  %5619 = vst [vmem:[%s10635_s8 + $0x1c] sm:$0xf] %v6433_v52  ;;  %5636 = vmax.xlane.f32.xlu0 %v10604_v8  ;;  %v5321_v3 = vsel %vm5305_vm4, %v10632_v38, 0.0  ;;  %v5857_v40 = vsel %vm5841_vm5, %v10610_v41, 0.0 }
 0xbbd   : > { %5617 = vst [vmem:[%s10635_s8 + $0xc] sm:$0xf] %v6431_v44  ;;  %5047 = vst [vmem:[%s10635_s8 + $0x8] sm:$0xf] %v6415_v63  ;;  %5877 = vadd.xlane.f32.xlu1 %v5859_v17  ;;  %v5858_v22 = vsel %vm5842_vm6, %v10629_v13, 0.0  ;;  %v5323_v48 = vsel %vm5307_vm7, %v10618_v42, 0.0 }
 0xbc0   : > { %5062 = vmax.xlane.f32.xlu0 %v10607_v28 }
 0xbc1   : > { %5068 = vmax.xlane.f32.xlu1 %v10618_v42 }
 0xbc4   : > { %5340 = vadd.xlane.f32.xlu0 %v5322_v33 }
 0xbc5   : > { %5064 = vmax.xlane.f32.xlu1 %v10632_v38 }
 0xbc8   : > { %5638 = vmax.xlane.f32.xlu0 %v10621_v46 }
 0xbc9   : > { %5879 = vadd.xlane.f32.xlu1 %v5860_v10 }
 0xbcc   : > { %5336 = vadd.xlane.f32.xlu0 %v5320_v21 }
 0xbcd   : > { %5338 = vadd.xlane.f32.xlu1 %v5321_v3 }
 0xbd0   : > { %5873 = vadd.xlane.f32.xlu0 %v5857_v40 }
 0xbd1   : > { %5875 = vadd.xlane.f32.xlu1 %v5858_v22 }
 0xbd4   : > { %5634 = vmax.xlane.f32.xlu0 %v10629_v13 }
 0xbd8   : > { %5342 = vadd.xlane.f32.xlu0 %v5323_v48 }
 0xbe0   : > { %v6870_v18 = vpop.f32.mrb[116].mxu1  ;;  %v6902_v36 = vpop.f32.mrb[132].mxu0 }
 0xbe1   : > { %v10679_v5 = vadd.f32 %v6870_v18, %v10588_v11  ;;  %v10682_v35 = vadd.f32 %v6902_v36, %v10593_v34  ;;  %v4935_v16 = vpop.f32.mrb[117].mxu1  ;;  %v5505_v19 = vpop.f32.mrb[133].mxu0 }
 0xbe2   : > { %v10685_v2 = vadd.f32 %v10588_v11, %v4935_v16  ;;  %v10688_v61 = vadd.f32 %v10593_v34, %v5505_v19  ;;  %v6871_v54 = vpop.f32.mrb[118].mxu1  ;;  %v6903_v47 = vpop.f32.mrb[134].mxu0 }
 0xbe3   : > { %v6420_v57 = vpack.c.bf16 %v10679_v5, %v10679_v5  ;;  %v6436_v30 = vpack.c.bf16 %v10682_v35, %v10682_v35  ;;  %v10695_v15 = vadd.f32 %v6871_v54, %v10588_v11  ;;  %v10698_v39 = vadd.f32 %v6903_v47, %v10593_v34  ;;  %v4938_v37 = vpop.f32.mrb[119].mxu1  ;;  %v5508_v9 = vpop.f32.mrb[135].mxu0  ;;  %5074 = vmax.xlane.f32.xlu1 %v10679_v5 }
 0xbe4   : > { %v6418_v7 = vpack.c.bf16 %v10685_v2, %v10685_v2  ;;  %v6434_v58 = vpack.c.bf16 %v10688_v61, %v10688_v61  ;;  %v10706_v14 = vadd.f32 %v10588_v11, %v4938_v37  ;;  %v10709_v55 = vadd.f32 %v10593_v34, %v5508_v9  ;;  %5644 = vmax.xlane.f32.xlu0 %v10682_v35 }
 0xbe5   : > { %5052 = vst [vmem:[%s10635_s8 + $0x30] sm:$0xf] %v6420_v57  ;;  %5622 = vst [vmem:[%s10635_s8 + $0x34] sm:$0xf] %v6436_v30  ;;  %v6421_v12 = vpack.c.bf16 %v10695_v15, %v10695_v15  ;;  %v6437_v26 = vpack.c.bf16 %v10698_v39, %v10698_v39  ;;  %v5861_v49 = vsel %vm5845_vm8, %v10688_v61, 0.0  ;;  %v5324_v56 = vsel %vm5308_vm9, %v10685_v2, 0.0 }
 0xbe6   : > { %5050 = vst [vmem:[%s10635_s8 + $0x20] sm:$0xf] %v6418_v7  ;;  %5620 = vst [vmem:[%s10635_s8 + $0x24] sm:$0xf] %v6434_v58  ;;  %v6419_v59 = vpack.c.bf16 %v10706_v14, %v10706_v14  ;;  %v6435_v29 = vpack.c.bf16 %v10709_v55, %v10709_v55  ;;  %vm6001_vm8 = vcmask 7168  }
 0xbe7   : > { %5053 = vst [vmem:[%s10635_s8 + $0x38] sm:$0xf] %v6421_v12  ;;  %5623 = vst [vmem:[%s10635_s8 + $0x3c] sm:$0xf] %v6437_v26  ;;  %5070 = vmax.xlane.f32.xlu1 %v10685_v2 }
 0xbe8   : > { %5051 = vst [vmem:[%s10635_s8 + $0x28] sm:$0xf] %v6419_v59  ;;  %5621 = vst [vmem:[%s10635_s8 + $0x2c] sm:$0xf] %v6435_v29  ;;  %5640 = vmax.xlane.f32.xlu0 %v10688_v61  ;;  %v5273_v29 = vpop.permute.xlu1 %5272 }
 0xbe9   : > { %vm5846_vm10 = vcmp.eq.s32.totalorder %v10596_v0, %v5273_v29  ;;  %vm5309_vm13 = vcmp.eq.s32.totalorder %v10582_v62, %v5273_v29 }
 0xbeb   : > { %5076 = vmax.xlane.f32.xlu1 %v10695_v15 }
 0xbec   : > { %5646 = vmax.xlane.f32.xlu0 %v10698_v39 }
 0xbef   : > { %5881 = vadd.xlane.f32.xlu1 %v5861_v49 }
 0xbf0   : > { %v6874_v32 = vpop.f32.mrb[120].mxu1  ;;  %5344 = vadd.xlane.f32.xlu0 %v5324_v56 }
 0xbf1   : > { %v10737_v1 = vadd.f32 %v6874_v32, %v10588_v11  ;;  %v4951_v51 = vpop.f32.mrb[121].mxu1 }
 0xbf2   : > { %v10740_v6 = vadd.f32 %v10588_v11, %v4951_v51  ;;  %v6875_v45 = vpop.f32.mrb[122].mxu1 }
 0xbf3   : > { %v6424_v50 = vpack.c.bf16 %v10737_v1, %v10737_v1  ;;  %v10745_v60 = vadd.f32 %v6875_v45, %v10588_v11  ;;  %v4954_v24 = vpop.f32.mrb[123].mxu1  ;;  %5072 = vmax.xlane.f32.xlu1 %v10706_v14 }
 0xbf4   : > { %v6422_v23 = vpack.c.bf16 %v10740_v6, %v10740_v6  ;;  %v10751_v4 = vadd.f32 %v10588_v11, %v4954_v24  ;;  %5642 = vmax.xlane.f32.xlu0 %v10709_v55  ;;  %v5276_v24 = vpop.permute.xlu1 %5275 }
 0xbf5   : > { %5056 = vst [vmem:[%s10635_s8 + $0x50] sm:$0xf] %v6424_v50  ;;  %v6425_v20 = vpack.c.bf16 %v10745_v60, %v10745_v60  ;;  %vm5847_vm11 = vcmp.eq.s32.totalorder %v10596_v0, %v5276_v24  ;;  %vm5310_vm15 = vcmp.eq.s32.totalorder %v10582_v62, %v5276_v24 }
 0xbf6   : > { %5054 = vst [vmem:[%s10635_s8 + $0x40] sm:$0xf] %v6422_v23  ;;  %v6423_v27 = vpack.c.bf16 %v10751_v4, %v10751_v4 }
 0xbf7   : > { %5057 = vst [vmem:[%s10635_s8 + $0x58] sm:$0xf] %v6425_v20  ;;  %5082 = vmax.xlane.f32.xlu1 %v10737_v1  ;;  %v5863_v20 = vsel %vm5847_vm11, %v10682_v35, 0.0 }
 0xbf8   : > { %5055 = vst [vmem:[%s10635_s8 + $0x48] sm:$0xf] %v6423_v27  ;;  %v5279_v23 = vpop.permute.xlu1 %5278 }
 0xbf9   : > { %vm5311_vm12 = vcmp.eq.s32.totalorder %v10582_v62, %v5279_v23  ;;  %vm5848_vm1 = vcmp.eq.s32.totalorder %v10596_v0, %v5279_v23 }
 0xbfa   : > { %v5327_v27 = vsel %vm5311_vm12, %v10695_v15, 0.0 }
 0xbfb   : > { %5078 = vmax.xlane.f32.xlu1 %v10740_v6 }
 0xbff   : > { %v6878_v52 = vpop.f32.mrb[124].mxu1  ;;  %5084 = vmax.xlane.f32.xlu1 %v10745_v60 }
 0xc00   : > { %v10766_v44 = vadd.f32 %v6878_v52, %v10588_v11  ;;  %v4967_v63 = vpop.f32.mrb[125].mxu1  ;;  %v5282_v52 = vpop.permute.xlu1 %5281 }
 0xc01   : > { %v10769_v17 = vadd.f32 %v10588_v11, %v4967_v63  ;;  %v6879_v33 = vpop.f32.mrb[126].mxu1  ;;  %v5325_v63 = vsel %vm5309_vm13, %v10706_v14, 0.0  ;;  %vm5849_vm14 = vcmp.eq.s32.totalorder %v10596_v0, %v5282_v52  ;;  %vm5312_vm3 = vcmp.eq.s32.totalorder %v10582_v62, %v5282_v52 }
 0xc02   : > { %v6428_v53 = vpack.c.bf16 %v10766_v44, %v10766_v44  ;;  %v10774_v43 = vadd.f32 %v6879_v33, %v10588_v11  ;;  %v4970_v10 = vpop.f32.mrb[127].mxu1 }
 0xc03   : > { %v6426_v21 = vpack.c.bf16 %v10769_v17, %v10769_v17  ;;  %v10779_v3 = vadd.f32 %v10588_v11, %v4970_v10  ;;  %5080 = vmax.xlane.f32.xlu1 %v10751_v4  ;;  %v5326_v10 = vsel %vm5310_vm15, %v10679_v5, 0.0 }
 0xc04   : > { %5060 = vst [vmem:[%s10635_s8 + $0x70] sm:$0xf] %v6428_v53  ;;  %v6429_v40 = vpack.c.bf16 %v10774_v43, %v10774_v43  ;;  %v5285_v53 = vpop.permute.xlu0 %5284 }
 0xc05   : > { %5058 = vst [vmem:[%s10635_s8 + $0x60] sm:$0xf] %v6426_v21  ;;  %v6427_v22 = vpack.c.bf16 %v10779_v3, %v10779_v3  ;;  %vm5850_vm0 = vcmp.eq.s32.totalorder %v10596_v0, %v5285_v53  ;;  %vm5313_vm4 = vcmp.eq.s32.totalorder %v10582_v62, %v5285_v53 }
 0xc06   : > { %5061 = vst [vmem:[%s10635_s8 + $0x78] sm:$0xf] %v6429_v40  ;;  %v5288_v40 = vpop.permute.xlu1 %5287 }
 0xc07   : > { %5059 = vst [vmem:[%s10635_s8 + $0x68] sm:$0xf] %v6427_v22  ;;  %v6906_v48 = vpop.f32.mrb[128].mxu1  ;;  %5090 = vmax.xlane.f32.xlu1 %v10766_v44  ;;  %v5864_v22 = vsel %vm5848_vm1, %v10698_v39, 0.0  ;;  %vm5851_vm2 = vcmp.eq.s32.totalorder %v10596_v0, %v5288_v40  ;;  %vm5314_vm5 = vcmp.eq.s32.totalorder %v10582_v62, %v5288_v40 }
 0xc08   : > { %v10792_v11 = vadd.f32 %v6906_v48, %v10593_v34  ;;  %v5521_v18 = vpop.f32.mrb[129].mxu1 }
 0xc09   : > { %v10795_v36 = vadd.f32 %v10593_v34, %v5521_v18  ;;  %v6907_v16 = vpop.f32.mrb[130].mxu1  ;;  %v5328_v18 = vsel %vm5312_vm3, %v10740_v6, 0.0 }
 0xc0a   : > { %v6440_v19 = vpack.c.bf16 %v10792_v11, %v10792_v11  ;;  %v10800_v54 = vadd.f32 %v6907_v16, %v10593_v34  ;;  %v5524_v47 = vpop.f32.mrb[131].mxu1  ;;  %5652 = vmax.xlane.f32.xlu0 %v10792_v11  ;;  %v5867_v48 = vsel %vm5851_vm2, %v10792_v11, 0.0  ;;  %v5329_v16 = vsel %vm5313_vm4, %v10751_v4, 0.0 }
 0xc0b   : > { %v6438_v57 = vpack.c.bf16 %v10795_v36, %v10795_v36  ;;  %v10806_v30 = vadd.f32 %v10593_v34, %v5524_v47  ;;  %5086 = vmax.xlane.f32.xlu1 %v10769_v17  ;;  %v5865_v33 = vsel %vm5849_vm14, %v10795_v36, 0.0  ;;  %v5330_v47 = vsel %vm5314_vm5, %v10737_v1, 0.0 }
 0xc0c   : > { %5626 = vst [vmem:[%s10635_s8 + $0x54] sm:$0xf] %v6440_v19  ;;  %v6441_v37 = vpack.c.bf16 %v10800_v54, %v10800_v54  ;;  %v10872_v19 = vpop.permute.xlu0 %5290 }
 0xc0d   : > { %5624 = vst [vmem:[%s10635_s8 + $0x44] sm:$0xf] %v6438_v57  ;;  %v6439_v9 = vpack.c.bf16 %v10806_v30, %v10806_v30  ;;  %v5866_v21 = vsel %vm5850_vm0, %v10806_v30, 0.0  ;;  %vm5852_vm0 = vcmp.eq.s32.totalorder %v10596_v0, %v10872_v19 }
 0xc0e   : > { %5627 = vst [vmem:[%s10635_s8 + $0x5c] sm:$0xf] %v6441_v37  ;;  %5648 = vmax.xlane.f32.xlu0 %v10795_v36  ;;  %v10878_v37 = vpop.permute.xlu1 %5293 }
 0xc0f   : > { %5625 = vst [vmem:[%s10635_s8 + $0x4c] sm:$0xf] %v6439_v9  ;;  %v6910_v7 = vpop.f32.mrb[132].mxu1  ;;  %5092 = vmax.xlane.f32.xlu1 %v10774_v43  ;;  %vm5316_vm12 = vcmp.eq.s32.totalorder %v10582_v62, %v10878_v37  ;;  %vm5853_vm3 = vcmp.eq.s32.totalorder %v10596_v0, %v10878_v37 }
 0xc10   : > { %v10820_v58 = vadd.f32 %v6910_v7, %v10593_v34  ;;  %v5537_v12 = vpop.f32.mrb[133].mxu1  ;;  %v10876_v57 = vpop.permute.xlu0 %5296 }
 0xc11   : > { %v10823_v26 = vadd.f32 %v10593_v34, %v5537_v12  ;;  %v6911_v59 = vpop.f32.mrb[134].mxu1  ;;  %vm5317_vm14 = vcmp.eq.s32.totalorder %v10582_v62, %v10876_v57 }
 0xc12   : > { %v6444_v25 = vpack.c.bf16 %v10820_v58, %v10820_v58  ;;  %v10828_v49 = vadd.f32 %v6911_v59, %v10593_v34  ;;  %v5540_v56 = vpop.f32.mrb[135].mxu1  ;;  %5654 = vmax.xlane.f32.xlu0 %v10800_v54  ;;  %v10882_v7 = vpop.permute.xlu1 %5299 }
 0xc13   : > { %v6442_v32 = vpack.c.bf16 %v10823_v26, %v10823_v26  ;;  %v10834_v51 = vadd.f32 %v10593_v34, %v5540_v56  ;;  %5088 = vmax.xlane.f32.xlu1 %v10779_v3  ;;  %v5862_v34 = vsel %vm5846_vm10, %v10709_v55, 0.0  ;;  %vm5315_vm10 = vcmp.eq.s32.totalorder %v10582_v62, %v10872_v19 }
 0xc14   : > { %5630 = vst [vmem:[%s10635_s8 + $0x74] sm:$0xf] %v6444_v25  ;;  %v6445_v45 = vpack.c.bf16 %v10828_v49, %v10828_v49  ;;  %v10880_v9 = vpop.permute.xlu0 %5302  ;;  %vm5318_vm1 = vcmp.eq.s32.totalorder %v10582_v62, %v10882_v7 }
 0xc15   : > { %5628 = vst [vmem:[%s10635_s8 + $0x64] sm:$0xf] %v6442_v32  ;;  %v6443_v50 = vpack.c.bf16 %v10834_v51, %v10834_v51  ;;  %vm5319_vm4 = vcmp.eq.s32.totalorder %v10582_v62, %v10880_v9 }
 0xc16   : > { %5631 = vst [vmem:[%s10635_s8 + $0x7c] sm:$0xf] %v6445_v45  ;;  %5650 = vmax.xlane.f32.xlu0 %v10806_v30 }
 0xc17   : > { %5629 = vst [vmem:[%s10635_s8 + $0x6c] sm:$0xf] %v6443_v50  ;;  %5662 = vmax.xlane.f32.xlu1 %v10828_v49 }
 0xc1a   : > { %5660 = vmax.xlane.f32.xlu0 %v10820_v58 }
 0xc1b   : > { %5883 = vadd.xlane.f32.xlu1 %v5862_v34 }
 0xc1e   : > { %5656 = vmax.xlane.f32.xlu0 %v10823_v26 }
 0xc1f   : > { %5885 = vadd.xlane.f32.xlu1 %v5863_v20 }
 0xc22   : > { %5658 = vmax.xlane.f32.xlu0 %v10834_v51 }
 0xc23   : > { %5350 = vadd.xlane.f32.xlu1 %v5327_v27 }
 0xc26   : > { %5346 = vadd.xlane.f32.xlu0 %v5325_v63 }
 0xc27   : > { %5889 = vadd.xlane.f32.xlu1 %v5865_v33 }
 0xc2a   : > { %5348 = vadd.xlane.f32.xlu0 %v5326_v10 }
 0xc2b   : > { %5891 = vadd.xlane.f32.xlu1 %v5866_v21 }
 0xc2e   : > { %5887 = vadd.xlane.f32.xlu0 %v5864_v22 }
 0xc2f   : > { %5893 = vadd.xlane.f32.xlu1 %v5867_v48 }
 0xc32   : > { %5352 = vadd.xlane.f32.xlu0 %v5328_v18 }
 0xc36   : > { %5354 = vadd.xlane.f32.xlu0 %v5329_v16 }
 0xc3a   : > { %5356 = vadd.xlane.f32.xlu0 %v5330_v47 }
 0xc45   : > { %v10884_v12 = vpop.xlane.xlu0 %5066 }
 0xc46   : > { %v5160_v59 = vsub.f32 %v10601_v31, %v10884_v12  ;;  %v5633_v29 = vpop.xlane.xlu1 %5632 }
 0xc48   : > { %v5178_v25 = vmul.f32 1.442695, %v5160_v59 }
 0xc49   : > { %v5637_v56 = vpop.xlane.xlu0 %5636 }
 0xc4a   : > { %7473 = vpow2.f32 %v5178_v25  ;;  %v5878_v32 = vpop.xlane.xlu1 %5877  ;;  %v10891_v50 = vmax.f32 %v10884_v12, %v5637_v56 }
 0xc4c   : > { %v5746_v52 = vsub.f32 %v10604_v8, %v10891_v50 }
 0xc4d   : > { %v10888_v45 = vpop.xlane.xlu0 %5062 }
 0xc4e   : > { %v5158_v24 = vsub.f32 %v10607_v28, %v10888_v45  ;;  %v10895_v34 = vpop.xlane.xlu1 %5068  ;;  %v10900_v31 = vmax.f32 %v10888_v45, %v5633_v29  ;;  %v5764_v40 = vmul.f32 1.442695, %v5746_v52 }
 0xc4f   : > { %v5161_v23 = vsub.f32 %v10618_v42, %v10895_v34 }
 0xc50   : > { %v5174_v20 = vmul.f32 1.442695, %v5158_v24  ;;  %v5744_v10 = vsub.f32 %v10610_v41, %v10900_v31 }
 0xc51   : > { %v5341_v27 = vpop.xlane.xlu0 %5340  ;;  %v5180_v63 = vmul.f32 1.442695, %v5161_v23 }
 0xc52   : > { %7475 = vpow2.f32 %v5174_v20  ;;  %v10904_v33 = vadd.f32 %v5878_v32, %v5341_v27  ;;  %v10906_v53 = vpop.xlane.xlu1 %5064  ;;  %v5760_v18 = vmul.f32 1.442695, %v5744_v10 }
 0xc53   : > { %v5159_v42 = vsub.f32 %v10632_v38, %v10906_v53  ;;  %7477 = vpow2.f32 %v5180_v63 }
 0xc54   : > { %v7474_v28 = vpop.eup %7473 }
 0xc55   : > { %5210 = vadd.xlane.f32.xlu0 %v7474_v28  ;;  %v5639_v21 = vpop.xlane.xlu0 %5638  ;;  %v5176_v22 = vmul.f32 1.442695, %v5159_v42 }
 0xc56   : > { %v10913_v8 = vmax.f32 %v10895_v34, %v5639_v21  ;;  %v5880_v48 = vpop.xlane.xlu1 %5879 }
 0xc57   : > { %7479 = vpow2.f32 %v5176_v22 }
 0xc58   : > { %v5747_v16 = vsub.f32 %v10621_v46, %v10913_v8  ;;  %7481 = vpow2.f32 %v5764_v40 }
 0xc59   : > { %v5337_v47 = vpop.xlane.xlu0 %5336  ;;  %7483 = vpow2.f32 %v5760_v18 }
 0xc5a   : > { %v5766_v41 = vmul.f32 1.442695, %v5747_v16  ;;  %v5339_v59 = vpop.xlane.xlu1 %5338 }
 0xc5c   : > { %v7476_v29 = vpop.eup %7475  ;;  %7485 = vpow2.f32 %v5766_v41 }
 0xc5d   : > { %5206 = vadd.xlane.f32.xlu1 %v7476_v29  ;;  %v5874_v38 = vpop.xlane.xlu0 %5873  ;;  %v7478_v24 = vpop.eup %7477 }
 0xc5e   : > { %v10917_v25 = vadd.f32 %v5874_v38, %v5337_v47  ;;  %v5876_v56 = vpop.xlane.xlu1 %5875 }
 0xc5f   : > { %v10919_v32 = vadd.f32 %v5876_v56, %v5339_v59 }
 0xc61   : > { %5212 = vadd.xlane.f32.xlu1 %v7478_v24  ;;  %v5635_v23 = vpop.xlane.xlu0 %5634  ;;  %v7480_v20 = vpop.eup %7479 }
 0xc62   : > { %v10922_v46 = vmax.f32 %v10906_v53, %v5635_v23  ;;  %5208 = vadd.xlane.f32.xlu0 %v7480_v20  ;;  %v7482_v27 = vpop.eup %7481 }
 0xc63   : > { %v7484_v28 = vpop.eup %7483 }
 0xc64   : > { %v5745_v52 = vsub.f32 %v10629_v13, %v10922_v46 }
 0xc65   : > { %5796 = vadd.xlane.f32.xlu1 %v7482_v27  ;;  %v5343_v63 = vpop.xlane.xlu0 %5342 }
 0xc66   : > { %v5762_v10 = vmul.f32 1.442695, %v5745_v52  ;;  %v10926_v42 = vadd.f32 %v5880_v48, %v5343_v63  ;;  %5792 = vadd.xlane.f32.xlu0 %v7484_v28  ;;  %v7486_v21 = vpop.eup %7485 }
 0xc68   : > { %7487 = vpow2.f32 %v5762_v10 }
 0xc69   : > { %5798 = vadd.xlane.f32.xlu1 %v7486_v21 }
 0xc70   : > { %v10928_v40 = vpop.xlane.xlu1 %5074 }
 0xc71   : > { %v5164_v22 = vsub.f32 %v10679_v5, %v10928_v40  ;;  %v5645_v18 = vpop.xlane.xlu0 %5644 }
 0xc72   : > { %v10933_v16 = vmax.f32 %v10928_v40, %v5645_v18  ;;  %v7488_v47 = vpop.eup %7487 }
 0xc73   : > { %v5186_v13 = vmul.f32 1.442695, %v5164_v22  ;;  %5794 = vadd.xlane.f32.xlu1 %v7488_v47 }
 0xc74   : > { %v10935_v41 = vpop.xlane.xlu1 %5070  ;;  %v5750_v48 = vsub.f32 %v10682_v35, %v10933_v16 }
 0xc75   : > { %7489 = vpow2.f32 %v5186_v13  ;;  %v5162_v59 = vsub.f32 %v10685_v2, %v10935_v41  ;;  %v5641_v29 = vpop.xlane.xlu0 %5640 }
 0xc76   : > { %v5772_v38 = vmul.f32 1.442695, %v5750_v48  ;;  %v10942_v5 = vmax.f32 %v10935_v41, %v5641_v29 }
 0xc77   : > { %v5182_v56 = vmul.f32 1.442695, %v5162_v59 }
 0xc78   : > { %v10944_v24 = vpop.xlane.xlu1 %5076  ;;  %v5748_v23 = vsub.f32 %v10688_v61, %v10942_v5 }
 0xc79   : > { %7491 = vpow2.f32 %v5182_v56  ;;  %v5165_v35 = vsub.f32 %v10695_v15, %v10944_v24  ;;  %v5647_v20 = vpop.xlane.xlu0 %5646 }
 0xc7a   : > { %7493 = vpow2.f32 %v5772_v38  ;;  %v5768_v27 = vmul.f32 1.442695, %v5748_v23  ;;  %v10951_v2 = vmax.f32 %v10944_v24, %v5647_v20 }
 0xc7b   : > { %v5188_v52 = vmul.f32 1.442695, %v5165_v35 }
 0xc7c   : > { %v5882_v63 = vpop.xlane.xlu1 %5881  ;;  %v5751_v28 = vsub.f32 %v10698_v39, %v10951_v2 }
 0xc7d   : > { %7495 = vpow2.f32 %v5188_v52  ;;  %v5345_v10 = vpop.xlane.xlu0 %5344 }
 0xc7e   : > { %7497 = vpow2.f32 %v5768_v27  ;;  %v5774_v21 = vmul.f32 1.442695, %v5751_v28  ;;  %v10955_v61 = vadd.f32 %v5882_v63, %v5345_v10 }
 0xc7f   : > { %v7490_v22 = vpop.eup %7489 }
 0xc80   : > { %v10957_v18 = vpop.xlane.xlu1 %5072  ;;  %5218 = vadd.xlane.f32.xlu0 %v7490_v22  ;;  %7499 = vpow2.f32 %v5774_v21 }
 0xc81   : > { %v5163_v15 = vsub.f32 %v10706_v14, %v10957_v18  ;;  %v5643_v13 = vpop.xlane.xlu0 %5642 }
 0xc82   : > { %v10962_v47 = vmax.f32 %v10957_v18, %v5643_v13 }
 0xc83   : > { %v7492_v48 = vpop.eup %7491  ;;  %v5184_v39 = vmul.f32 1.442695, %v5163_v15 }
 0xc84   : > { %v7494_v59 = vpop.eup %7493  ;;  %v10964_v29 = vpop.xlane.xlu1 %5082  ;;  %5214 = vadd.xlane.f32.xlu0 %v7492_v48  ;;  %v5749_v38 = vsub.f32 %v10709_v55, %v10962_v47 }
 0xc85   : > { %7501 = vpow2.f32 %v5184_v39  ;;  %v5168_v56 = vsub.f32 %v10737_v1, %v10964_v29  ;;  %5804 = vadd.xlane.f32.xlu1 %v7494_v59 }
 0xc86   : > { %v5770_v23 = vmul.f32 1.442695, %v5749_v38 }
 0xc87   : > { %v7496_v14 = vpop.eup %7495  ;;  %v5194_v35 = vmul.f32 1.442695, %v5168_v56 }
 0xc88   : > { %v7498_v20 = vpop.eup %7497  ;;  %v10970_v27 = vpop.xlane.xlu1 %5078  ;;  %5220 = vadd.xlane.f32.xlu0 %v7496_v14 }
 0xc89   : > { %7503 = vpow2.f32 %v5194_v35  ;;  %v5166_v52 = vsub.f32 %v10740_v6, %v10970_v27  ;;  %5800 = vadd.xlane.f32.xlu1 %v7498_v20 }
 0xc8a   : > { %7505 = vpow2.f32 %v5770_v23  ;;  %v7500_v63 = vpop.eup %7499 }
 0xc8b   : > { %v5190_v55 = vmul.f32 1.442695, %v5166_v52 }
 0xc8c   : > { %v10974_v28 = vpop.xlane.xlu1 %5084 }
 0xc8d   : > { %7507 = vpow2.f32 %v5190_v55  ;;  %v5169_v1 = vsub.f32 %v10745_v60, %v10974_v28  ;;  %5806 = vadd.xlane.f32.xlu1 %v7500_v63 }
 0xc8f   : > { %v7502_v10 = vpop.eup %7501  ;;  %v5196_v21 = vmul.f32 1.442695, %v5169_v1 }
 0xc90   : > { %v10978_v22 = vpop.xlane.xlu1 %5080  ;;  %5216 = vadd.xlane.f32.xlu0 %v7502_v10 }
 0xc91   : > { %7509 = vpow2.f32 %v5196_v21  ;;  %v5167_v6 = vsub.f32 %v10751_v4, %v10978_v22 }
 0xc93   : > { %v7504_v15 = vpop.eup %7503  ;;  %v5192_v13 = vmul.f32 1.442695, %v5167_v6 }
 0xc94   : > { %v7506_v48 = vpop.eup %7505  ;;  %v10982_v39 = vpop.xlane.xlu1 %5090  ;;  %5226 = vadd.xlane.f32.xlu0 %v7504_v15 }
 0xc95   : > { %11649 = vst [vmem:[#allocation29_spill] sm:$0xff] %v10982_v39  ;;  %7511 = vpow2.f32 %v5192_v13  ;;  %v5172_v59 = vsub.f32 %v10766_v44, %v10982_v39  ;;  %5802 = vadd.xlane.f32.xlu1 %v7506_v48 }
 0xc97   : > { %v7508_v38 = vpop.eup %7507  ;;  %v5653_v56 = vpop.xlane.xlu0 %5652  ;;  %v5202_v23 = vmul.f32 1.442695, %v5172_v59 }
 0xc98   : > { %v10987_v14 = vmax.f32 %v10964_v29, %v5653_v56  ;;  %v10989_v35 = vpop.xlane.xlu1 %5086  ;;  %5222 = vadd.xlane.f32.xlu0 %v7508_v38 }
 0xc99   : > { %7513 = vpow2.f32 %v5202_v23  ;;  %v5170_v4 = vsub.f32 %v10769_v17, %v10989_v35 }
 0xc9a   : > { %v5754_v20 = vsub.f32 %v10792_v11, %v10987_v14 }
 0xc9b   : > { %v7510_v52 = vpop.eup %7509  ;;  %v5649_v63 = vpop.xlane.xlu0 %5648  ;;  %v5198_v55 = vmul.f32 1.442695, %v5170_v4 }
 0xc9c   : > { %v5780_v1 = vmul.f32 1.442695, %v5754_v20  ;;  %v10996_v10 = vmax.f32 %v10970_v27, %v5649_v63  ;;  %v10998_v21 = vpop.xlane.xlu1 %5092  ;;  %5228 = vadd.xlane.f32.xlu0 %v7510_v52 }
 0xc9d   : > { %11650 = vst [vmem:[#allocation51_spill] sm:$0xff] %v10998_v21  ;;  %7515 = vpow2.f32 %v5198_v55  ;;  %v5173_v6 = vsub.f32 %v10774_v43, %v10998_v21 }
 0xc9e   : > { %v5752_v15 = vsub.f32 %v10795_v36, %v10996_v10  ;;  %7517 = vpow2.f32 %v5780_v1 }
 0xc9f   : > { %v7512_v13 = vpop.eup %7511  ;;  %v5655_v11 = vpop.xlane.xlu0 %5654  ;;  %v5204_v48 = vmul.f32 1.442695, %v5173_v6 }
 0xca0   : > { %v5776_v59 = vmul.f32 1.442695, %v5752_v15  ;;  %v11005_v38 = vmax.f32 %v10974_v28, %v5655_v11  ;;  %v11007_v56 = vpop.xlane.xlu1 %5088  ;;  %5224 = vadd.xlane.f32.xlu0 %v7512_v13 }
 0xca1   : > { %11651 = vst [vmem:[#allocation55_spill] sm:$0xff] %v11007_v56  ;;  %7519 = vpow2.f32 %v5204_v48  ;;  %v5171_v23 = vsub.f32 %v10779_v3, %v11007_v56 }
 0xca2   : > { %v5755_v4 = vsub.f32 %v10800_v54, %v11005_v38  ;;  %7521 = vpow2.f32 %v5776_v59 }
 0xca3   : > { %v7514_v20 = vpop.eup %7513  ;;  %v5651_v36 = vpop.xlane.xlu0 %5650  ;;  %v5200_v52 = vmul.f32 1.442695, %v5171_v23 }
 0xca4   : > { %v5782_v63 = vmul.f32 1.442695, %v5755_v4  ;;  %v11014_v55 = vmax.f32 %v10978_v22, %v5651_v36  ;;  %v5663_v1 = vpop.xlane.xlu1 %5662  ;;  %5234 = vadd.xlane.f32.xlu0 %v7514_v20 }
 0xca5   : > { %7523 = vpow2.f32 %v5200_v52  ;;  %v11022_v4 = vmax.f32 %v10998_v21, %v5663_v1 }
 0xca6   : > { %11652 = vst [vmem:[#allocation34_spill] sm:$0xff] %v11014_v55  ;;  %v5753_v6 = vsub.f32 %v10806_v30, %v11014_v55  ;;  %7525 = vpow2.f32 %v5782_v63  ;;  %v7636_v55 = vld [vmem:[%s10428_s0 + $0x18] sm:$0xff] }
 0xca7   : > { %v7516_v15 = vpop.eup %7515  ;;  %v5661_v13 = vpop.xlane.xlu0 %5660  ;;  %11654 = vst [vmem:[#allocation39_spill] sm:$0xff] %v11022_v4  ;;  %vm4769_vm11 = vcmp.ge.s32.totalorder %v7636_v55, 0 }
 0xca8   : > { %v5778_v11 = vmul.f32 1.442695, %v5753_v6  ;;  %v11019_v48 = vmax.f32 %v10982_v39, %v5661_v13  ;;  %v5884_v59 = vpop.xlane.xlu1 %5883  ;;  %5230 = vadd.xlane.f32.xlu0 %v7516_v15  ;;  %v7518_v23 = vpop.eup %7517  ;;  %v5759_v15 = vsub.f32 %v10828_v49, %v11022_v4 }
 0xca9   : > { %5812 = vadd.xlane.f32.xlu1 %v7518_v23 }
 0xcaa   : > { %11653 = vst [vmem:[#allocation49_spill] sm:$0xff] %v11019_v48  ;;  %v5758_v20 = vsub.f32 %v10820_v58, %v11019_v48  ;;  %7527 = vpow2.f32 %v5778_v11 }
 0xcab   : > { %v7520_v36 = vpop.eup %7519  ;;  %v5657_v30 = vpop.xlane.xlu0 %5656 }
 0xcac   : > { %v5788_v52 = vmul.f32 1.442695, %v5758_v20  ;;  %v11027_v63 = vmax.f32 %v10989_v35, %v5657_v30  ;;  %5236 = vadd.xlane.f32.xlu0 %v7520_v36  ;;  %v7522_v6 = vpop.eup %7521  ;;  %v5886_v13 = vpop.xlane.xlu1 %5885  ;;  %v5790_v30 = vmul.f32 1.442695, %v5759_v15 }
 0xcad   : > { %5808 = vadd.xlane.f32.xlu1 %v7522_v6 }
 0xcae   : > { %11655 = vst [vmem:[#allocation35_spill] sm:$0xff] %v11027_v63  ;;  %v5756_v1 = vsub.f32 %v10823_v26, %v11027_v63  ;;  %7529 = vpow2.f32 %v5788_v52  ;;  %v7633_v52 = vld [vmem:[%s10428_s0 + $0x8] sm:$0xff] }
 0xcaf   : > { %v7524_v21 = vpop.eup %7523  ;;  %v5659_v23 = vpop.xlane.xlu0 %5658  ;;  %vm4767_vm6 = vcmp.ge.s32.totalorder %v7633_v52, 0  ;;  %v7635_v52 = vld [vmem:[%s10428_s0 + $0x10] sm:$0xff] }
 0xcb0   : > { %v5784_v11 = vmul.f32 1.442695, %v5756_v1  ;;  %v11034_v20 = vmax.f32 %v11007_v56, %v5659_v23  ;;  %5232 = vadd.xlane.f32.xlu0 %v7524_v21  ;;  %v7526_v36 = vpop.eup %7525  ;;  %v5351_v63 = vpop.xlane.xlu1 %5350  ;;  %v7634_v1 = vld [vmem:[%s10428_s0] sm:$0xff]  ;;  %vm4768_vm9 = vcmp.ge.s32.totalorder %v7635_v52, 0 }
 0xcb1   : > { %5814 = vadd.xlane.f32.xlu1 %v7526_v36  ;;  %vm4766_vm7 = vcmp.ge.s32.totalorder %v7634_v1, 0  ;;  %v7714_v36 = vmov 0.0  }
 0xcb2   : > { %11656 = vst [vmem:[#allocation54_spill] sm:$0xff] %v11034_v20  ;;  %7531 = vpow2.f32 %v5784_v11  ;;  %v5757_v4 = vsub.f32 %v10834_v51, %v11034_v20  ;;  %v11045_v20 = vsel %vm4767_vm6, 1.0, %v7714_v36  ;;  %vm5854_vm6 = vcmp.eq.s32.totalorder %v10596_v0, %v10876_v57 }
 0xcb3   : > { %v5347_v48 = vpop.xlane.xlu0 %5346  ;;  %7533 = vpow2.f32 %v5790_v30  ;;  %v6043_v30 = vsel %vm6001_vm8, %v11045_v20, 0.0 }
 0xcb4   : > { %v11038_v6 = vadd.f32 %v5884_v59, %v5347_v48  ;;  %v7528_v39 = vpop.eup %7527  ;;  %v5786_v21 = vmul.f32 1.442695, %v5757_v4  ;;  %v11048_v48 = vsel %vm4766_vm7, 1.0, %v7714_v36  ;;  %v5890_v59 = vpop.xlane.xlu1 %5889 }
 0xcb5   : > { %5810 = vadd.xlane.f32.xlu1 %v7528_v39  ;;  %v6042_v39 = vsel %vm6001_vm8, %v11048_v48, 0.0 }
 0xcb6   : > { %11657 = vst [vmem:[#allocation42_spill] sm:$0xff] %v11038_v6  ;;  %7535 = vpow2.f32 %v5786_v21  ;;  %v6044_v56 = vadd.f32 %v6043_v30, %v6042_v39  ;;  %v5331_v6 = vsel %vm5315_vm10, %v10745_v60, 0.0  ;;  %v11071_v30 = vsel %vm4769_vm11, 1.0, %v7714_v36 }
 0xcb7   : > { %v5349_v23 = vpop.xlane.xlu0 %5348  ;;  %v5332_v60 = vsel %vm5316_vm12, %v10769_v17, 0.0  ;;  %v6047_v55 = vsel %vm6001_vm8, %v11071_v30, 0.0  ;;  %v5333_v17 = vsel %vm5317_vm14, %v10779_v3, 0.0  ;;  %vm5856_vm11 = vcmp.eq.s32.totalorder %v10596_v0, %v10880_v9 }
 0xcb8   : > { %v11042_v15 = vadd.f32 %v5886_v13, %v5349_v23  ;;  %v7530_v11 = vpop.eup %7529  ;;  %v11060_v23 = vsel %vm4768_vm9, 1.0, %v7714_v36  ;;  %vm5855_vm9 = vcmp.eq.s32.totalorder %v10596_v0, %v10882_v7 }
 0xcb9   : > { %5820 = vadd.xlane.f32.xlu0 %v7530_v11  ;;  %v6045_v52 = vsel %vm6001_vm8, %v11060_v23, 0.0  ;;  %v5892_v11 = vpop.xlane.xlu1 %5891 }
 0xcba   : > { %v6046_v39 = vadd.f32 %v6045_v52, %v6044_v56 }
 0xcbb   : > { %v5888_v4 = vpop.xlane.xlu0 %5887 }
 0xcbc   : > { %v11055_v13 = vadd.f32 %v5888_v4, %v5351_v63  ;;  %v7532_v1 = vpop.eup %7531  ;;  %v6048_v56 = vadd.f32 %v6047_v55, %v6046_v39  ;;  %v5868_v55 = vsel %vm5852_vm0, %v10800_v54, 0.0 }
 0xcbd   : > { %5816 = vadd.xlane.f32.xlu1 %v7532_v1  ;;  %5358 = vadd.xlane.f32.xlu0 %v5331_v6  ;;  %v7534_v63 = vpop.eup %7533  ;;  %v7637_v1 = vld [vmem:[%s10428_s0 + $0x20] sm:$0xff]  ;;  %v5894_v52 = vpop.xlane.xlu1 %5893 }
 0xcbe   : > { %vm4770_vm13 = vcmp.ge.s32.totalorder %v7637_v1, 0 }
 0xcbf   : > { %v5353_v21 = vpop.xlane.xlu0 %5352 }
 0xcc0   : > { %v11066_v4 = vadd.f32 %v5890_v59, %v5353_v21  ;;  %v7536_v21 = vpop.eup %7535 }
 0xcc1   : > { %5822 = vadd.xlane.f32.xlu1 %v7534_v63  ;;  %5360 = vadd.xlane.f32.xlu0 %v5332_v60  ;;  %v7638_v63 = vld [vmem:[%s10428_s0 + $0x28] sm:$0xff] }
 0xcc2   : > { %11658 = vst [vmem:[#allocation58_spill] sm:$0xff] %v11066_v4  ;;  %v11082_v4 = vsel %vm4770_vm13, 1.0, %v7714_v36  ;;  %vm4771_vm15 = vcmp.ge.s32.totalorder %v7638_v63, 0 }
 0xcc3   : > { %v5355_v6 = vpop.xlane.xlu0 %5354  ;;  %v6049_v1 = vsel %vm6001_vm8, %v11082_v4, 0.0  ;;  %v11095_v39 = vsel %vm4771_vm15, 1.0, %v7714_v36 }
 0xcc4   : > { %v11077_v59 = vadd.f32 %v5892_v11, %v5355_v6  ;;  %v6050_v3 = vadd.f32 %v6049_v1, %v6048_v56  ;;  %v5334_v6 = vsel %vm5318_vm1, %v10766_v44, 0.0  ;;  %v5869_v44 = vsel %vm5853_vm3, %v10823_v26, 0.0  ;;  %v7640_v1 = vld [vmem:[%s10428_s0 + $0x38] sm:$0xff]  ;;  %v7641_v26 = vld [vmem:[%s10428_s0 + $0x40] sm:$0xff] }
 0xcc5   : > { %5818 = vadd.xlane.f32.xlu1 %v7536_v21  ;;  %5362 = vadd.xlane.f32.xlu0 %v5333_v17  ;;  %v6051_v21 = vsel %vm6001_vm8, %v11095_v39, 0.0  ;;  %v5335_v56 = vsel %vm5319_vm4, %v10774_v43, 0.0  ;;  %vm4773_vm5 = vcmp.ge.s32.totalorder %v7640_v1, 0  ;;  %vm4774_vm7 = vcmp.ge.s32.totalorder %v7641_v26, 0 }
 0xcc6   : > { %v6052_v54 = vadd.f32 %v6051_v21, %v6050_v3  ;;  %v11117_v37 = vsel %vm4773_vm5, 1.0, %v7714_v36  ;;  %v11126_v3 = vsel %vm4774_vm7, 1.0, %v7714_v36  ;;  %v5096_v21 = vsub.f32 -inf, %v10884_v12 }
 0xcc7   : > { %v5357_v11 = vpop.xlane.xlu0 %5356  ;;  %v6055_v43 = vsel %vm6001_vm8, %v11117_v37, 0.0  ;;  %v5682_v26 = vsub.f32 %v10884_v12, %v10891_v50 }
 0xcc8   : > { %v11088_v60 = vadd.f32 %v5894_v52, %v5357_v11  ;;  %v7639_v52 = vld [vmem:[%s10428_s0 + $0x30] sm:$0xff]  ;;  %v5870_v11 = vsel %vm5854_vm6, %v10834_v51, 0.0  ;;  %v7642_v51 = vld [vmem:[%s10428_s0 + $0x48] sm:$0xff]  ;;  %v5114_v1 = vmul.f32 1.442695, %v5096_v21 }
 0xcc9   : > { %vm4772_vm2 = vcmp.ge.s32.totalorder %v7639_v52, 0  ;;  %5895 = vadd.xlane.f32.xlu1 %v5868_v55  ;;  %5364 = vadd.xlane.f32.xlu0 %v5334_v6  ;;  %v5871_v55 = vsel %vm5855_vm9, %v10820_v58, 0.0  ;;  %v6057_v6 = vsel %vm6001_vm8, %v11126_v3, 0.0  ;;  %vm4775_vm10 = vcmp.ge.s32.totalorder %v7642_v51, 0 }
 0xcca   : > { %v11107_v19 = vsel %vm4772_vm2, 1.0, %v7714_v36  ;;  %v11136_v7 = vsel %vm4775_vm10, 1.0, %v7714_v36  ;;  %v5872_v58 = vsel %vm5856_vm11, %v10828_v49, 0.0  ;;  %v7645_v49 = vld [vmem:[%s10428_s0 + $0x58] sm:$0xff]  ;;  %7537 = vpow2.f32 %v5114_v1 }
 0xccb   : > { %v6053_v17 = vsel %vm6001_vm8, %v11107_v19, 0.0  ;;  %11659 = vst [vmem:[#allocation32_spill] sm:$0xff] %v11136_v7  ;;  %vm4777_vm14 = vcmp.ge.s32.totalorder %v7645_v49, 0 }
 0xccc   : > { %v6054_v63 = vadd.f32 %v6053_v17, %v6052_v54  ;;  %v5094_v54 = vsub.f32 -inf, %v10888_v45  ;;  %v5097_v17 = vsub.f32 -inf, %v10895_v34  ;;  %v11157_v51 = vsel %vm4777_vm14, 1.0, %v7714_v36 }
 0xccd   : > { %5897 = vadd.xlane.f32.xlu1 %v5869_v44  ;;  %5366 = vadd.xlane.f32.xlu0 %v5335_v56  ;;  %v7643_v44 = vld [vmem:[%s10428_s0 + $0x50] sm:$0xff]  ;;  %v6059_v56 = vsel %vm6001_vm8, %v11136_v7, 0.0  ;;  %11661 = vst [vmem:[#allocation37_spill] sm:$0xff] %v11157_v51  ;;  %v6063_v12 = vsel %vm6001_vm8, %v11157_v51, 0.0 }
 0xcce   : > { %v6056_v57 = vadd.f32 %v6055_v43, %v6054_v63  ;;  %vm4776_vm12 = vcmp.ge.s32.totalorder %v7643_v44, 0  ;;  %v5110_v63 = vmul.f32 1.442695, %v5094_v54  ;;  %v7644_v43 = vld [vmem:[%s10428_s0 + $0x60] sm:$0xff]  ;;  %v5700_v54 = vmul.f32 1.442695, %v5682_v26 }
 0xccf   : > { %v11145_v0 = vsel %vm4776_vm12, 1.0, %v7714_v36  ;;  %vm4778_vm13 = vcmp.ge.s32.totalorder %v7644_v43, 0  ;;  %v7648_v43 = vld [vmem:[%s10428_s0 + $0x78] sm:$0xff] }
 0xcd0   : > { %v6058_v52 = vadd.f32 %v6057_v6, %v6056_v57  ;;  %11660 = vst [vmem:[#allocation59_spill] sm:$0xff] %v11145_v0  ;;  %v5116_v57 = vmul.f32 1.442695, %v5097_v17  ;;  %v5680_v6 = vsub.f32 %v10888_v45, %v10900_v31  ;;  %7539 = vpow2.f32 %v5110_v63 }
 0xcd1   : > { %5899 = vadd.xlane.f32.xlu1 %v5870_v11  ;;  %v6061_v11 = vsel %vm6001_vm8, %v11145_v0, 0.0  ;;  %v5683_v45 = vsub.f32 %v10895_v34, %v10913_v8  ;;  %v5095_v63 = vsub.f32 -inf, %v10906_v53  ;;  %vm4781_vm1 = vcmp.ge.s32.totalorder %v7648_v43, 0 }
 0xcd2   : > { %v6060_v9 = vadd.f32 %v6059_v56, %v6058_v52  ;;  %v11160_v52 = vsel %vm4778_vm13, 1.0, %v7714_v36  ;;  %7541 = vpow2.f32 %v5116_v57  ;;  %v5696_v17 = vmul.f32 1.442695, %v5680_v6 }
 0xcd3   : > { %11662 = vst [vmem:[#allocation61_spill] sm:$0xff] %v11160_v52  ;;  %7543 = vpow2.f32 %v5700_v54  ;;  %v5702_v49 = vmul.f32 1.442695, %v5683_v45  ;;  %v5112_v57 = vmul.f32 1.442695, %v5095_v63  ;;  %v11180_v6 = vsel %vm4781_vm1, 1.0, %v7714_v36 }
 0xcd4   : > { %v6062_v21 = vadd.f32 %v6061_v11, %v6060_v9  ;;  %v7647_v11 = vld [vmem:[%s10428_s0 + $0x70] sm:$0xff]  ;;  %v7538_v34 = vpop.eup %7537  ;;  %7545 = vpow2.f32 %v5696_v17  ;;  %11665 = vst [vmem:[#allocation62_spill] sm:$0xff] %v11180_v6  ;;  %v6071_v45 = vsel %vm6001_vm8, %v11180_v6, 0.0 }
 0xcd5   : > { %5901 = vadd.xlane.f32.xlu1 %v5871_v55  ;;  %v7646_v55 = vld [vmem:[%s10428_s0 + $0x68] sm:$0xff]  ;;  %vm4780_vm0 = vcmp.ge.s32.totalorder %v7647_v11, 0  ;;  %7547 = vpow2.f32 %v5702_v49  ;;  %v5144_v11 = vmul.f32 0.0, %v7538_v34  ;;  %s6447_s0 = sshll.u32 %s7864_s6, 11  ;;  %s7715_s6 = smov [#allocation2]  }
 0xcd6   : > { %vm4779_vm15 = vcmp.ge.s32.totalorder %v7646_v55, 0  ;;  %v6064_v44 = vadd.f32 %v6063_v12, %v6062_v21  ;;  %v11177_v55 = vsel %vm4780_vm0, 1.0, %v7714_v36  ;;  %7549 = vpow2.f32 %v5112_v57  ;;  %s11293_s27 = scalar_lea.hbm %s11370_s23, %s6447_s0  ;;  %s7653_s1 = sshll.u32 %s7715_s6, 4  ;;  %s7654_s1 = int_to_ptr.vmem [resolvable:$false] %s7653_s1 }
 0xcd7   : > { %v11169_v56 = vsel %vm4779_vm15, 1.0, %v7714_v36  ;;  %11664 = vst [vmem:[#allocation38_spill] sm:$0xff] %v11177_v55  ;;  %s7655_s2 = scalar_lea.vmem %s7654_s1, 4096  ;;  %p7656_p1 = scmp.lt.s32.totalorder %s11296_s10, %s7654_s1 }
 0xcd8   : > { %11663 = vst [vmem:[#allocation33_spill] sm:$0xff] %v11169_v56  ;;  %v6067_v9 = vsel %vm6001_vm8, %v11169_v56, 0.0  ;;  %p7657_p2 = scmp.lt.s32.totalorder %s7655_s2, %s7649_s4 }
 0xcd9   : > { %5903 = vadd.xlane.f32.xlu1 %v5872_v58  ;;  %v6065_v58 = vsel %vm6001_vm8, %v11160_v52, 0.0 }
 0xcda   : > { %v6066_v1 = vadd.f32 %v6065_v58, %v6064_v44  ;;  %v7540_v21 = vpop.eup %7539  ;;  %v6069_v44 = vsel %vm6001_vm8, %v11177_v55, 0.0  ;;  %p7658_p3 = por %p7657_p2, %p7656_p1 }
 0xcdb   : > { %v5142_v63 = vmul.f32 0.0, %v7540_v21 }
 0xcdc   : > { %v6068_v26 = vadd.f32 %v6067_v9, %v6066_v1  ;;  %v7542_v17 = vpop.eup %7541  ;;  %v5681_v1 = vsub.f32 %v10906_v53, %v10922_v46  ;;  %p7659_p4 = pnand %p7658_p3, %p7652_p0 }
 0xcdd   : > { %v5145_v62 = vmul.f32 0.0, %v7542_v17  ;;  %v7544_v56 = vpop.eup %7543 }
 0xcde   : > { %v6070_v54 = vadd.f32 %v6069_v44, %v6068_v26  ;;  %v5698_v52 = vmul.f32 1.442695, %v5681_v1  ;;  %v7546_v44 = vpop.eup %7545 }
 0xcdf   : > { %v7548_v0 = vpop.eup %7547 }
 0xce0   : > { %v6072_v36 = vadd.f32 %v6071_v45, %v6070_v54  ;;  %7551 = vpow2.f32 %v5698_v52  ;;  %v5098_v45 = vsub.f32 -inf, %v10935_v41 }
 0xce2   : > { %v5211_v12 = vpop.xlane.xlu0 %5210  ;;  %6073 = vadd.xlane.f32.xlu1 %v6072_v36  ;;  %v5118_v52 = vmul.f32 1.442695, %v5098_v45 }
 0xce3   : > { %v5240_v9 = vadd.f32 %v5211_v12, %v5144_v11  ;;  %v5100_v12 = vsub.f32 -inf, %v10928_v40  ;;  %v7550_v11 = vpop.eup %7549 }
 0xce5   : > { %v5730_v26 = vmul.f32 %v7544_v56, %v5240_v9  ;;  %v5122_v56 = vmul.f32 1.442695, %v5100_v12 }
 0xcea   : > { %v5207_v58 = vpop.xlane.xlu1 %5206  ;;  %v7552_v1 = vpop.eup %7551 }
 0xceb   : > { %v5238_v49 = vadd.f32 %v5207_v58, %v5142_v63 }
 0xced   : > { %v5728_v7 = vmul.f32 %v7546_v44, %v5238_v49 }
 0xcee   : > { %v5213_v43 = vpop.xlane.xlu1 %5212 }
 0xcef   : > { %v5209_v55 = vpop.xlane.xlu0 %5208  ;;  %v5241_v34 = vadd.f32 %v5213_v43, %v5145_v62  ;;  %v5143_v62 = vmul.f32 0.0, %v7550_v11  ;;  %v5684_v43 = vsub.f32 %v10935_v41, %v10942_v5  ;;  %v5099_v41 = vsub.f32 -inf, %v10957_v18 }
 0xcf1   : > { %v5731_v57 = vmul.f32 %v7548_v0, %v5241_v34  ;;  %v5239_v17 = vadd.f32 %v5209_v55, %v5143_v62  ;;  %v5704_v12 = vmul.f32 1.442695, %v5684_v43 }
 0xcf2   : > { %v5797_v51 = vpop.xlane.xlu1 %5796 }
 0xcf3   : > { %v5826_v6 = vadd.f32 %v5797_v51, %v5730_v26  ;;  %v5793_v53 = vpop.xlane.xlu0 %5792  ;;  %v5686_v51 = vsub.f32 %v10928_v40, %v10933_v16  ;;  %v5729_v9 = vmul.f32 %v7552_v1, %v5239_v17 }
 0xcf4   : > { %v5824_v21 = vadd.f32 %v5793_v53, %v5728_v7  ;;  %v5101_v7 = vsub.f32 -inf, %v10944_v24 }
 0xcf5   : > { %7553 = vlog2.f32 %v5826_v6  ;;  %v5708_v36 = vmul.f32 1.442695, %v5686_v51 }
 0xcf6   : > { %v5799_v58 = vpop.xlane.xlu1 %5798  ;;  %7555 = vlog2.f32 %v5824_v21  ;;  %v5124_v40 = vmul.f32 1.442695, %v5101_v7 }
 0xcf7   : > { %v5827_v54 = vadd.f32 %v5799_v58, %v5731_v57  ;;  %v5687_v58 = vsub.f32 %v10944_v24, %v10951_v2  ;;  %v5685_v24 = vsub.f32 %v10957_v18, %v10962_v47 }
 0xcf9   : > { %7557 = vlog2.f32 %v5827_v54 }
 0xcfa   : > { %7559 = vpow2.f32 %v5122_v56 }
 0xcfb   : > { %7561 = vpow2.f32 %v5118_v52 }
 0xcff   : > { %v7554_v0 = vpop.eup %7553 }
 0xd00   : > { %v5926_v6 = vmul.f32 0.6931472, %v7554_v0  ;;  %v7556_v63 = vpop.eup %7555  ;;  %v5795_v49 = vpop.xlane.xlu1 %5794 }
 0xd01   : > { %v5922_v34 = vmul.f32 0.6931472, %v7556_v63  ;;  %v5825_v26 = vadd.f32 %v5795_v49, %v5729_v9 }
 0xd02   : > { %v5955_v55 = vadd.f32 %v5926_v6, %v10891_v50 }
 0xd03   : > { %v7558_v44 = vpop.eup %7557  ;;  %v5953_v21 = vadd.f32 %v5922_v34, %v10900_v31  ;;  %7563 = vlog2.f32 %v5825_v26  ;;  %v5120_v31 = vmul.f32 1.442695, %v5099_v41 }
 0xd04   : > { %v5971_v53 = vsub.f32 %v5955_v55, %v10904_v33  ;;  %v5928_v57 = vmul.f32 0.6931472, %v7558_v44  ;;  %7565 = vpow2.f32 %v5708_v36  ;;  %v7560_v54 = vpop.eup %7559  ;;  %v5710_v33 = vmul.f32 1.442695, %v5687_v58 }
 0xd05   : > { %v5969_v11 = vsub.f32 %v5953_v21, %v10917_v25  ;;  %7567 = vpow2.f32 %v5124_v40  ;;  %v7562_v62 = vpop.eup %7561  ;;  %v5148_v56 = vmul.f32 0.0, %v7560_v54 }
 0xd06   : > { %v5956_v50 = vadd.f32 %v5928_v57, %v10913_v8  ;;  %7569 = vpow2.f32 %v5704_v12  ;;  %v5146_v8 = vmul.f32 0.0, %v7562_v62  ;;  %v5987_v44 = vmul.f32 %v11060_v23, %v5971_v53 }
 0xd07   : > { %7571 = vpow2.f32 %v5710_v33  ;;  %v5985_v55 = vmul.f32 %v11048_v48, %v5969_v11  ;;  %v5104_v23 = vsub.f32 -inf, %v10964_v29 }
 0xd08   : > { %v5972_v45 = vsub.f32 %v5956_v50, %v10926_v42  ;;  %7573 = vpow2.f32 %v5120_v31  ;;  %v5706_v42 = vmul.f32 1.442695, %v5685_v24  ;;  %v6005_v33 = vsel %vm6001_vm8, %v5987_v44, 0.0 }
 0xd09   : > { %v6002_v41 = vsel %vm6001_vm8, %v5985_v55, 0.0  ;;  %v5105_v55 = vsub.f32 -inf, %v10974_v28  ;;  %v5688_v44 = vsub.f32 %v10970_v27, %v10996_v10 }
 0xd0a   : > { %v5988_v50 = vmul.f32 %v11071_v30, %v5972_v45 }
 0xd0c   : > { %v6007_v62 = vsel %vm6001_vm8, %v5988_v50, 0.0 }
 0xd0d   : > { %v5219_v17 = vpop.xlane.xlu0 %5218  ;;  %v7564_v52 = vpop.eup %7563 }
 0xd0e   : > { %v5244_v51 = vadd.f32 %v5219_v17, %v5148_v56  ;;  %v7566_v25 = vpop.eup %7565  ;;  %v5924_v1 = vmul.f32 0.6931472, %v7564_v52  ;;  %v5130_v52 = vmul.f32 1.442695, %v5104_v23 }
 0xd0f   : > { %v7568_v7 = vpop.eup %7567 }
 0xd10   : > { %v5734_v6 = vmul.f32 %v7566_v25, %v5244_v51  ;;  %v5954_v9 = vadd.f32 %v5924_v1, %v10922_v46  ;;  %v7570_v49 = vpop.eup %7569  ;;  %v5149_v34 = vmul.f32 0.0, %v7568_v7  ;;  %v5102_v51 = vsub.f32 -inf, %v10970_v27 }
 0xd11   : > { %v5215_v0 = vpop.xlane.xlu0 %5214  ;;  %v7572_v58 = vpop.eup %7571 }
 0xd12   : > { %v5242_v63 = vadd.f32 %v5215_v0, %v5146_v8  ;;  %v5805_v36 = vpop.xlane.xlu1 %5804  ;;  %v5970_v18 = vsub.f32 %v5954_v9, %v10919_v32  ;;  %v7574_v32 = vpop.eup %7573  ;;  %v5690_v9 = vsub.f32 %v10964_v29, %v10987_v14 }
 0xd13   : > { %v5830_v43 = vadd.f32 %v5805_v36, %v5734_v6  ;;  %v5147_v56 = vmul.f32 0.0, %v7574_v32 }
 0xd14   : > { %v5732_v40 = vmul.f32 %v7570_v49, %v5242_v63  ;;  %v5986_v21 = vmul.f32 %v11045_v20, %v5970_v18  ;;  %v5126_v63 = vmul.f32 1.442695, %v5102_v51 }
 0xd15   : > { %v5221_v26 = vpop.xlane.xlu0 %5220  ;;  %7575 = vlog2.f32 %v5830_v43 }
 0xd16   : > { %7577 = vpow2.f32 %v5706_v42  ;;  %v5245_v57 = vadd.f32 %v5221_v26, %v5149_v34  ;;  %v5801_v12 = vpop.xlane.xlu1 %5800  ;;  %v6003_v48 = vsel %vm6001_vm8, %v5986_v21, 0.0  ;;  %v5103_v34 = vsub.f32 -inf, %v10978_v22 }
 0xd17   : > { %v5828_v46 = vadd.f32 %v5801_v12, %v5732_v40  ;;  %v6004_v11 = vadd.f32 %v6003_v48, %v6002_v41  ;;  %v5716_v40 = vmul.f32 1.442695, %v5690_v9  ;;  %v5712_v41 = vmul.f32 1.442695, %v5688_v44 }
 0xd18   : > { %v5735_v54 = vmul.f32 %v7572_v58, %v5245_v57  ;;  %v5132_v57 = vmul.f32 1.442695, %v5105_v55  ;;  %v5128_v58 = vmul.f32 1.442695, %v5103_v34 }
 0xd19   : > { %7579 = vlog2.f32 %v5828_v46  ;;  %v6006_v20 = vadd.f32 %v6005_v33, %v6004_v11 }
 0xd1a   : > { %v5807_v31 = vpop.xlane.xlu1 %5806 }
 0xd1b   : > { %v5831_v53 = vadd.f32 %v5807_v31, %v5735_v54  ;;  %v6008_v17 = vadd.f32 %v6007_v62, %v6006_v20  ;;  %v11667_v62 = vld [vmem:[#allocation29_spill] sm:$0xff] }
 0xd1d   : > { %v5217_v24 = vpop.xlane.xlu0 %5216  ;;  %7581 = vlog2.f32 %v5831_v53 }
 0xd1e   : > { %v5243_v30 = vadd.f32 %v5217_v24, %v5147_v56  ;;  %7583 = vpow2.f32 %v5130_v52  ;;  %v11669_v52 = vld [vmem:[#allocation42_spill] sm:$0xff] }
 0xd1f   : > { %v7576_v45 = vpop.eup %7575 }
 0xd20   : > { %v7578_v25 = vpop.eup %7577  ;;  %v5934_v1 = vmul.f32 0.6931472, %v7576_v45 }
 0xd21   : > { %v5227_v8 = vpop.xlane.xlu0 %5226  ;;  %v5733_v7 = vmul.f32 %v7578_v25, %v5243_v30  ;;  %v11668_v30 = vld [vmem:[#allocation51_spill] sm:$0xff] }
 0xd22   : > { %v5959_v0 = vadd.f32 %v5934_v1, %v10933_v16  ;;  %v5803_v6 = vpop.xlane.xlu1 %5802  ;;  %v5109_v45 = vsub.f32 -inf, %v11668_v30  ;;  %v11670_v1 = vld [vmem:[#allocation55_spill] sm:$0xff] }
 0xd23   : > { %v7580_v42 = vpop.eup %7579  ;;  %v5829_v36 = vadd.f32 %v5803_v6, %v5733_v7  ;;  %v5107_v7 = vsub.f32 -inf, %v11670_v1 }
 0xd24   : > { %v5975_v43 = vsub.f32 %v5959_v0, %v11042_v15  ;;  %v5930_v49 = vmul.f32 0.6931472, %v7580_v42  ;;  %v5140_v44 = vmul.f32 1.442695, %v5109_v45 }
 0xd25   : > { %v5223_v18 = vpop.xlane.xlu0 %5222  ;;  %7585 = vlog2.f32 %v5829_v36 }
 0xd26   : > { %v5957_v26 = vadd.f32 %v5930_v49, %v10942_v5  ;;  %7587 = vpow2.f32 %v5126_v63  ;;  %v5106_v5 = vsub.f32 -inf, %v10989_v35  ;;  %v5991_v6 = vmul.f32 %v11107_v19, %v5975_v43 }
 0xd27   : > { %v7582_v16 = vpop.eup %7581  ;;  %7589 = vpow2.f32 %v5716_v40  ;;  %v5136_v43 = vmul.f32 1.442695, %v5107_v7 }
 0xd28   : > { %v5973_v29 = vsub.f32 %v5957_v26, %v10955_v61  ;;  %v5936_v21 = vmul.f32 0.6931472, %v7582_v16  ;;  %v7584_v48 = vpop.eup %7583  ;;  %v5691_v61 = vsub.f32 %v10974_v28, %v11005_v38  ;;  %7591 = vpow2.f32 %v5132_v57 }
 0xd29   : > { %v11228_v15 = vpop.xlane.xlu0 %5228  ;;  %7593 = vpow2.f32 %v5128_v58  ;;  %v5152_v33 = vmul.f32 0.0, %v7584_v48  ;;  %v5134_v23 = vmul.f32 1.442695, %v5106_v5  ;;  %v11674_v48 = vld [vmem:[#allocation54_spill] sm:$0xff] }
 0xd2a   : > { %v5989_v12 = vmul.f32 %v11082_v4, %v5973_v29  ;;  %v5960_v46 = vadd.f32 %v5936_v21, %v10951_v2  ;;  %7595 = vpow2.f32 %v5712_v41  ;;  %v11666_v2 = vld [vmem:[#allocation34_spill] sm:$0xff]  ;;  %v5718_v53 = vmul.f32 1.442695, %v5691_v61  ;;  %v11673_v41 = vld [vmem:[#allocation39_spill] sm:$0xff] }
 0xd2b   : > { %v5689_v54 = vsub.f32 %v10978_v22, %v11666_v2  ;;  %v5248_v24 = vadd.f32 %v5227_v8, %v5152_v33  ;;  %7597 = vpow2.f32 %v5134_v23  ;;  %v6013_v21 = vsel %vm6001_vm8, %v5991_v6, 0.0 }
 0xd2c   : > { %v6009_v50 = vsel %vm6001_vm8, %v5989_v12, 0.0  ;;  %v5976_v27 = vsub.f32 %v5960_v46, %v11055_v13  ;;  %v5108_v13 = vsub.f32 -inf, %v11667_v62  ;;  %7599 = vpow2.f32 %v5718_v53 }
 0xd2d   : > { %v6010_v32 = vadd.f32 %v6009_v50, %v6008_v17  ;;  %v5225_v11 = vpop.xlane.xlu0 %5224  ;;  %v5714_v17 = vmul.f32 1.442695, %v5689_v54  ;;  %v5695_v5 = vsub.f32 %v11668_v30, %v11673_v41  ;;  %v5693_v61 = vsub.f32 %v11670_v1, %v11674_v48 }
 0xd2e   : > { %v5138_v0 = vmul.f32 1.442695, %v5108_v13  ;;  %v5992_v26 = vmul.f32 %v11117_v37, %v5976_v27 }
 0xd2f   : > { %v7586_v4 = vpop.eup %7585  ;;  %7601 = vpow2.f32 %v5714_v17 }
 0xd30   : > { %v5932_v31 = vmul.f32 0.6931472, %v7586_v4  ;;  %v7588_v20 = vpop.eup %7587  ;;  %7603 = vpow2.f32 %v5138_v0  ;;  %v6015_v50 = vsel %vm6001_vm8, %v5992_v26, 0.0 }
 0xd31   : > { %v11240_v56 = vpop.xlane.xlu0 %5234  ;;  %v5150_v51 = vmul.f32 0.0, %v7588_v20  ;;  %v7590_v22 = vpop.eup %7589 }
 0xd32   : > { %v5958_v28 = vadd.f32 %v5932_v31, %v10962_v47  ;;  %v5738_v8 = vmul.f32 %v7590_v22, %v5248_v24  ;;  %v7592_v63 = vpop.eup %7591  ;;  %v11671_v47 = vld [vmem:[#allocation35_spill] sm:$0xff]  ;;  %v5722_v24 = vmul.f32 1.442695, %v5693_v61 }
 0xd33   : > { %v5246_v42 = vadd.f32 %v5223_v18, %v5150_v51  ;;  %v5692_v36 = vsub.f32 %v10989_v35, %v11671_v47  ;;  %v7594_v34 = vpop.eup %7593  ;;  %v5153_v46 = vmul.f32 0.0, %v7592_v63 }
 0xd34   : > { %v5974_v25 = vsub.f32 %v5958_v28, %v11669_v52  ;;  %v7596_v29 = vpop.eup %7595  ;;  %v5151_v58 = vmul.f32 0.0, %v7594_v34 }
 0xd35   : > { %v5231_v55 = vpop.xlane.xlu0 %5230  ;;  %v5736_v35 = vmul.f32 %v7596_v29, %v5246_v42  ;;  %v5720_v57 = vmul.f32 1.442695, %v5692_v36  ;;  %v7598_v33 = vpop.eup %7597 }
 0xd36   : > { %v5990_v9 = vmul.f32 %v11095_v39, %v5974_v25  ;;  %v5813_v49 = vpop.xlane.xlu1 %5812  ;;  %v11672_v39 = vld [vmem:[#allocation49_spill] sm:$0xff]  ;;  %v5247_v23 = vadd.f32 %v5225_v11, %v5151_v58  ;;  %v7600_v20 = vpop.eup %7599  ;;  %v5154_v25 = vmul.f32 0.0, %v7598_v33 }
 0xd37   : > { %v5834_v40 = vadd.f32 %v5813_v49, %v5738_v8  ;;  %v5694_v18 = vsub.f32 %v11667_v62, %v11672_v39  ;;  %v5726_v62 = vmul.f32 1.442695, %v5695_v5 }
 0xd38   : > { %v6011_v16 = vsel %vm6001_vm8, %v5990_v9, 0.0  ;;  %v5250_v7 = vadd.f32 %v5231_v55, %v5154_v25 }
 0xd39   : > { %v6012_v19 = vadd.f32 %v6011_v16, %v6010_v32  ;;  %7605 = vlog2.f32 %v5834_v40  ;;  %v5249_v32 = vadd.f32 %v11228_v15, %v5153_v46  ;;  %v5237_v54 = vpop.xlane.xlu0 %5236  ;;  %v5724_v31 = vmul.f32 1.442695, %v5694_v18  ;;  %v7602_v13 = vpop.eup %7601 }
 0xd3a   : > { %v5809_v37 = vpop.xlane.xlu1 %5808  ;;  %7607 = vpow2.f32 %v5140_v44  ;;  %v5737_v17 = vmul.f32 %v7602_v13, %v5247_v23  ;;  %v7604_v30 = vpop.eup %7603 }
 0xd3b   : > { %v6014_v12 = vadd.f32 %v6013_v21, %v6012_v19  ;;  %v5832_v27 = vadd.f32 %v5809_v37, %v5736_v35  ;;  %7609 = vpow2.f32 %v5136_v43  ;;  %v5739_v28 = vmul.f32 %v7600_v20, %v5249_v32  ;;  %v11675_v43 = vld [vmem:[#allocation58_spill] sm:$0xff] }
 0xd3c   : > { %v5156_v42 = vmul.f32 0.0, %v7604_v30 }
 0xd3d   : > { %v6016_v4 = vadd.f32 %v6015_v50, %v6014_v12  ;;  %7611 = vlog2.f32 %v5832_v27  ;;  %v5233_v15 = vpop.xlane.xlu0 %5232 }
 0xd3e   : > { %7613 = vpow2.f32 %v5720_v57  ;;  %v5815_v53 = vpop.xlane.xlu1 %5814  ;;  %v5252_v49 = vadd.f32 %v11240_v56, %v5156_v42 }
 0xd3f   : > { %7615 = vpow2.f32 %v5724_v31  ;;  %v5835_v45 = vadd.f32 %v5815_v53, %v5739_v28 }
 0xd40   : > { %7617 = vpow2.f32 %v5726_v62  ;;  %v11676_v62 = vld [vmem:[#allocation59_spill] sm:$0xff] }
 0xd41   : > { %7619 = vpow2.f32 %v5722_v24  ;;  %v11677_v24 = vld [vmem:[#allocation32_spill] sm:$0xff] }
 0xd42   : > { %v5811_v51 = vpop.xlane.xlu1 %5810 }
 0xd43   : > { %v7606_v52 = vpop.eup %7605  ;;  %v5833_v22 = vadd.f32 %v5811_v51, %v5737_v17 }
 0xd44   : > { %v5942_v11 = vmul.f32 0.6931472, %v7606_v52  ;;  %v7608_v1 = vpop.eup %7607 }
 0xd45   : > { %7621 = vlog2.f32 %v5833_v22  ;;  %v7610_v0 = vpop.eup %7609  ;;  %v5157_v40 = vmul.f32 0.0, %v7608_v1 }
 0xd46   : > { %v5963_v6 = vadd.f32 %v5942_v11, %v10987_v14  ;;  %7623 = vlog2.f32 %v5835_v45  ;;  %v5821_v34 = vpop.xlane.xlu0 %5820  ;;  %v5155_v29 = vmul.f32 0.0, %v7610_v0  ;;  %v11678_v11 = vld [vmem:[#allocation37_spill] sm:$0xff] }
 0xd47   : > { %v7612_v9 = vpop.eup %7611  ;;  %v5253_v18 = vadd.f32 %v5237_v54, %v5157_v40 }
 0xd48   : > { %v7614_v8 = vpop.eup %7613  ;;  %v5979_v63 = vsub.f32 %v5963_v6, %v11088_v60  ;;  %v5938_v36 = vmul.f32 0.6931472, %v7612_v9  ;;  %v5251_v57 = vadd.f32 %v5233_v15, %v5155_v29 }
 0xd49   : > { %v5740_v26 = vmul.f32 %v7614_v8, %v5250_v7  ;;  %v7616_v55 = vpop.eup %7615 }
 0xd4a   : > { %v5961_v16 = vadd.f32 %v5938_v36, %v10996_v10  ;;  %v5817_v44 = vpop.xlane.xlu1 %5816  ;;  %v5742_v21 = vmul.f32 %v7616_v55, %v5252_v49  ;;  %v7618_v35 = vpop.eup %7617  ;;  %v5995_v13 = vmul.f32 %v11676_v62, %v5979_v63 }
 0xd4b   : > { %v5836_v19 = vadd.f32 %v5817_v44, %v5740_v26  ;;  %v7620_v60 = vpop.eup %7619  ;;  %v5359_v58 = vpop.xlane.xlu0 %5358  ;;  %v5743_v27 = vmul.f32 %v7618_v35, %v5253_v18 }
 0xd4c   : > { %v5977_v14 = vsub.f32 %v5961_v16, %v11675_v43  ;;  %v5838_v56 = vadd.f32 %v5821_v34, %v5742_v21  ;;  %v5741_v32 = vmul.f32 %v7620_v60, %v5251_v57  ;;  %v6021_v25 = vsel %vm6001_vm8, %v5995_v13, 0.0  ;;  %v11679_v34 = vld [vmem:[#allocation61_spill] sm:$0xff] }
 0xd4d   : > { %7625 = vlog2.f32 %v5836_v19  ;;  %v11680_v60 = vld [vmem:[#allocation33_spill] sm:$0xff] }
 0xd4e   : > { %v5993_v12 = vmul.f32 %v11126_v3, %v5977_v14  ;;  %v5823_v46 = vpop.xlane.xlu1 %5822  ;;  %7627 = vlog2.f32 %v5838_v56 }
 0xd4f   : > { %v7622_v37 = vpop.eup %7621  ;;  %v5839_v33 = vadd.f32 %v5823_v46, %v5743_v27  ;;  %v5361_v53 = vpop.xlane.xlu0 %5360 }
 0xd50   : > { %v7624_v10 = vpop.eup %7623  ;;  %v6017_v5 = vsel %vm6001_vm8, %v5993_v12, 0.0  ;;  %v5940_v50 = vmul.f32 0.6931472, %v7622_v37 }
 0xd51   : > { %v6018_v61 = vadd.f32 %v6017_v5, %v6016_v4  ;;  %v5944_v23 = vmul.f32 0.6931472, %v7624_v10 }
 0xd52   : > { %v5962_v54 = vadd.f32 %v5940_v50, %v11666_v2  ;;  %v5819_v31 = vpop.xlane.xlu1 %5818 }
 0xd53   : > { %v5837_v20 = vadd.f32 %v5819_v31, %v5741_v32  ;;  %v5964_v45 = vadd.f32 %v5944_v23, %v11005_v38 }
 0xd54   : > { %v5978_v3 = vsub.f32 %v5962_v54, %v11077_v59  ;;  %v5363_v59 = vpop.xlane.xlu0 %5362 }
 0xd55   : > { %7629 = vlog2.f32 %v5837_v20 }
 0xd56   : > { %v5994_v28 = vmul.f32 %v11677_v24, %v5978_v3  ;;  %7631 = vlog2.f32 %v5839_v33  ;;  %v5896_v17 = vpop.xlane.xlu1 %5895 }
 0xd57   : > { %v7626_v30 = vpop.eup %7625  ;;  %v5916_v4 = vadd.f32 %v5896_v17, %v5359_v58  ;;  %v11681_v58 = vld [vmem:[#allocation38_spill] sm:$0xff] }
 0xd58   : > { %v6019_v2 = vsel %vm6001_vm8, %v5994_v28, 0.0  ;;  %v5946_v51 = vmul.f32 0.6931472, %v7626_v30  ;;  %v7628_v42 = vpop.eup %7627  ;;  %v5365_v44 = vpop.xlane.xlu0 %5364 }
 0xd59   : > { %v5980_v15 = vsub.f32 %v5964_v45, %v5916_v4  ;;  %v6020_v52 = vadd.f32 %v6019_v2, %v6018_v61  ;;  %v5950_v49 = vmul.f32 0.6931472, %v7628_v42  ;;  %v11682_v61 = vld [vmem:[#allocation62_spill] sm:$0xff] }
 0xd5a   : > { %v5898_v22 = vpop.xlane.xlu1 %5897  ;;  %v5965_v6 = vadd.f32 %v5946_v51, %v11671_v47 }
 0xd5b   : > { %v5996_v1 = vmul.f32 %v11678_v11, %v5980_v15  ;;  %v6022_v7 = vadd.f32 %v6021_v25, %v6020_v52  ;;  %v5917_v0 = vadd.f32 %v5898_v22, %v5361_v53  ;;  %v5967_v21 = vadd.f32 %v5950_v49, %v11672_v39 }
 0xd5c   : > { %v5367_v56 = vpop.xlane.xlu0 %5366 }
 0xd5d   : > { %v6023_v9 = vsel %vm6001_vm8, %v5996_v1, 0.0  ;;  %v5981_v8 = vsub.f32 %v5965_v6, %v5917_v0 }
 0xd5e   : > { %v6024_v38 = vadd.f32 %v6023_v9, %v6022_v7  ;;  %v5900_v63 = vpop.xlane.xlu1 %5899 }
 0xd5f   : > { %v7630_v36 = vpop.eup %7629  ;;  %v5997_v26 = vmul.f32 %v11679_v34, %v5981_v8  ;;  %v5918_v19 = vadd.f32 %v5900_v63, %v5363_v59 }
 0xd60   : > { %v7632_v16 = vpop.eup %7631  ;;  %v5948_v40 = vmul.f32 0.6931472, %v7630_v36 }
 0xd61   : > { %v6025_v55 = vsel %vm6001_vm8, %v5997_v26, 0.0  ;;  %v5952_v14 = vmul.f32 0.6931472, %v7632_v16 }
 0xd62   : > { %v6026_v29 = vadd.f32 %v6025_v55, %v6024_v38  ;;  %v5966_v43 = vadd.f32 %v5948_v40, %v11674_v48  ;;  %v5902_v47 = vpop.xlane.xlu1 %5901 }
 0xd63   : > { %v5919_v18 = vadd.f32 %v5902_v47, %v5365_v44  ;;  %v5968_v5 = vadd.f32 %v5952_v14, %v11673_v41 }
 0xd64   : > { %v5982_v35 = vsub.f32 %v5966_v43, %v5918_v19 }
 0xd65   : > { %v5983_v57 = vsub.f32 %v5967_v21, %v5919_v18 }
 0xd66   : > { %v5998_v12 = vmul.f32 %v11680_v60, %v5982_v35  ;;  %v5904_v46 = vpop.xlane.xlu1 %5903 }
 0xd67   : > { %v5999_v37 = vmul.f32 %v11681_v58, %v5983_v57  ;;  %v5920_v10 = vadd.f32 %v5904_v46, %v5367_v56 }
 0xd68   : > { %v6027_v48 = vsel %vm6001_vm8, %v5998_v12, 0.0 }
 0xd69   : > { %v6028_v50 = vadd.f32 %v6027_v48, %v6026_v29  ;;  %v6029_v39 = vsel %vm6001_vm8, %v5999_v37, 0.0  ;;  %v5984_v27 = vsub.f32 %v5968_v5, %v5920_v10 }
 0xd6b   : > { %v6000_v32 = vmul.f32 %v11682_v61, %v5984_v27  ;;  %v6030_v54 = vadd.f32 %v6029_v39, %v6028_v50 }
 0xd6d   : > { %v6031_v33 = vsel %vm6001_vm8, %v6000_v32, 0.0 }
 0xd6e   : > { %v6032_v31 = vadd.f32 %v6031_v33, %v6030_v54 }
 0xd70   : > { %6033 = vadd.xlane.f32.xlu0 %v6032_v31 }
 0xd71   : > { %7662 = shalt.err (!%p7659_p4)
}
 0xd72   : > { %s7663_s9 = scalar_lea.hbm %s11293_s27, 2048  ;;  %s7667_s25 = scalar_lea.hbm %s11370_s23, 4096 }
 0xd73   : > { %p7664_p7 = scmp.ne.s32.totalorder %s11293_s27, %s7663_s9  ;;  %p7668_p10 = scmp.lt.u32.totalorder %s11293_s27, %s11370_s23 }
 0xd74   : > { %p7669_p11 = scmp.lt.u32.totalorder %s7667_s25, %s7663_s9  ;;  %p7671_p13 = scmp.lt.u32.totalorder %s7663_s9, %s11293_s27 }
 0xd75   : > { %p7665_p8 = pnand %p7664_p7, %p7881_p5 }
 0xd76   : > { %p7670_p12 = por %p7669_p11, %p7668_p10 }
 0xd77   : > { %p7666_p9 = pneg %p7665_p8 }
 0xd78   : > { %p7672_p0 = por %p7671_p13, %p7670_p12 }
 0xd7a   : > { %p7673_p1 = pnand %p7672_p0, %p7666_p9 }
 0xd7c   : > { %7676 = shalt.err (!%p7673_p1)
}
 0xd7d   : > { %s7716_s4 = smov 128   ;;  %s7717_s1 = smov 8   ;;  %v6074_v41 = vpop.xlane.xlu1 %6073  ;;  %v11683_v51 = vld [vmem:[#allocation50_spill] sm:$0xff] }
 0xd7e   : > { %6932 = dma.vmem_to_hbm [thread:$0]  (%p7881_p5), %s11296_s10, 2048, %s11293_s27, %s11300_s29, %s7716_s4, %s7716_s4, %s7717_s1   ;;  %v6075_v23 = vrot.slane %v6074_v41, 4  ;;  %vm6083_vm8 = vcmp.eq.s32.totalorder %v11683_v51, 1  ;;  %vm6082_vm2 = vcmp.eq.s32.totalorder %v11683_v51, 0 }
 0xd7f   : > { %s789_s29 = scalar_lea.vmem %s11371_s24, %s8362_s30 }
 0xd80   : > { %v6076_v20 = vadd.f32 %v6075_v23, %v6074_v41 }
 0xd82   : > { %v6077_v3 = vrot.slane %v6076_v20, 2 }
 0xd84   : > { %v6078_v24 = vadd.f32 %v6077_v3, %v6076_v20 }
 0xd86   : > { %v6079_v30 = vrot.slane %v6078_v24, 1 }
 0xd88   : > { %v6080_v2 = vadd.f32 %v6079_v30, %v6078_v24 }
 0xdfd   : > { %v6034_v53 = vpop.xlane.xlu0 %6033 }
 0xdfe   : > { %v6035_v62 = vrot.slane %v6034_v53, 4 }
 0xe00   : > { %v6036_v13 = vadd.f32 %v6035_v62, %v6034_v53 }
 0xe02   : > { %v6037_v28 = vrot.slane %v6036_v13, 2 }
 0xe04   : > { %v6038_v17 = vadd.f32 %v6037_v28, %v6036_v13 }
 0xe06   : > { %v6039_v4 = vrot.slane %v6038_v17, 1 }
 0xe08   : > { %v6040_v45 = vadd.f32 %v6039_v4, %v6038_v17 }
 0xe0a   : > { %6928 = vpush %v6040_v45 }
 0xe0b   : > { %6930 = vpush %v6080_v2 }
 0xe3b   : > { %s6929_s2 = spop %6928 }
 0xe3c   : > { %v6086_v15 = vstv %s6929_s2  ;;  %s6931_s3 = spop %6930 }
 0xe3d   : > { %v6084_v52 = vstv %s6931_s3 }
 0xe3e   : > { %v6085_v25 = vsel %vm6083_vm8, %v6084_v52, 0.0 }
 0xe3f   : > { %v6087_v59 = vsel %vm6082_vm2, %v6086_v15, %v6085_v25 }
 0xe40   : > { %6088 = vst [vmem:[%s789_s29] sm:$0x1] %v6087_v59 }
 0xe41 PF: > { %p6938_p5 = scmp.ge.s32.totalorder %s7711_s28, 2  ;;  %s6125_s8 = sand.u32 1, %s7699_s5  }
 0xe42   : > { %s6126_s0 = scalar_lea.sflag [#allocation3], %s6125_s8 }
 0xe43   : > { %p6935_p2 = pnand %p6938_p5, %p7885_p6 }
 0xe45   : > { %7694 = dma.done.wait (!%p6935_p2), %s6126_s0, 2048  }
 0xe46   : > { %7696 = vsyncadd (!%p6935_p2), %s6126_s0, 4294965248  ;;  %s11685_s28 = sld [smem:[#allocation6_spill]]  ;;  %s11686_s25 = sld [smem:[#allocation5_spill]] }
 0xe47   : > { %s11687_s27 = sld [smem:[#allocation7_spill]]  ;;  %s11688_s5 = smov %s7703_s26 }
 0xe4c   : > { %p35_p3 = scmp.ge.s32.totalorder %s11685_s28, 4   ;;  %s11689_s26 = smov %s11686_s25 }
 0xe4e   :  { %37 = sbr.rel (!%p35_p3) target bundleno = 15 (0xf), region = 165 }
 0xe55   :  { %6137 = vsyncpa [#allocation3], 1 }
 0xe56   :  { %6139 = vsyncpa [#allocation3 + $0x1], 1 }

</bundles_post_ra>
